<compile_context>
chip_gen: v6e
topology: v6e:2x2x1
jax: 0.10.0
libtpu: 0.0.40
codegen_flags: <defaults>
</compile_context>

<pallas_src>
import functools

import jax
import jax.numpy as jnp
from jax import lax
from jax.experimental import pallas as pl
from jax.experimental.pallas import tpu as pltpu


# ----------------------------------------------------------------------------
# Fused Pallas kernel
# ----------------------------------------------------------------------------
def _signal_pred_kernel(num_layers, x_ref, *refs):
    """Fully fused SignalPred forward.

    x_ref       : (T, B, D)   time-major input
    per layer l : w_ih (D_in, 8H), w_hh (2H, 8H) block-diag, b (1, 8H)
                  (columns = [fwd i,f,g,o | bwd i,f,g,o], each block H wide)
    head        : w1 (2H, H//8), b1 (1, H//8), w2 (H//8, 2), b2 (1, 2)
    o_ref       : (B, 2)      softmax probabilities
    scratch     : gx (T,B,8H), yf (T,B,H), yb (T,B,H), h (B,2H), c (B,2H),
                  mid_f (B,H), mid_b (B,H)
    """
    n_w = 3 * num_layers
    layer_refs = refs[:n_w]
    (w1_ref, b1_ref, w2_ref, b2_ref, o_ref,
     gx, yf, yb, h, c, mid_f, mid_b) = refs[n_w:]

    T, B, D = x_ref.shape
    H = yf.shape[2]
    G = 4 * H            # per-direction gate width
    G2 = 8 * H           # fused (fwd | bwd) gate width

    t_mid = T // 2               # timestep consumed by the head
    s_bwd_mid = T - 1 - t_mid    # step at which the bwd direction reaches t_mid

    def cell(s, w_hh):
        """One fused (fwd + bwd) LSTM step; returns (h_fwd, h_bwd)."""
        gx_f = gx[s]             # fwd uses the input projection of time s
        gx_b = gx[T - 1 - s]     # bwd uses the input projection of time T-1-s
        gate_x = jnp.concatenate([gx_f[:, :G], gx_b[:, G:]], axis=-1)
        gates = gate_x + jnp.dot(h[...], w_hh,
                                 preferred_element_type=jnp.float32)
        # Full-width transcendentals instead of eight 32-lane slices.
        sig = jax.nn.sigmoid(gates)
        tnh = jnp.tanh(gates)
        c_f = sig[:, H:2 * H] * c[:, :H] + sig[:, :H] * tnh[:, 2 * H:3 * H]
        c_b = (sig[:, G + H:G + 2 * H] * c[:, H:]
               + sig[:, G:G + H] * tnh[:, G + 2 * H:G + 3 * H])
        h_f = sig[:, 3 * H:4 * H] * jnp.tanh(c_f)
        h_b = sig[:, G + 3 * H:G + 4 * H] * jnp.tanh(c_b)
        c[...] = jnp.concatenate([c_f, c_b], axis=-1)
        h[...] = jnp.concatenate([h_f, h_b], axis=-1)
        return h_f, h_b

    for layer in range(num_layers):
        w_ih_ref, w_hh_ref, b_ref = layer_refs[3 * layer:3 * (layer + 1)]

        # ---- input projection hoisted out of the recurrence (batched matmul)
        if layer == 0:
            proj = jnp.dot(x_ref[...].reshape(T * B, D), w_ih_ref[...],
                           preferred_element_type=jnp.float32)
        else:
            w_ih = w_ih_ref[...]                              # (2H, 8H)
            proj = (jnp.dot(yf[...].reshape(T * B, H), w_ih[:H, :],
                            preferred_element_type=jnp.float32)
                    + jnp.dot(yb[...].reshape(T * B, H), w_ih[H:, :],
                              preferred_element_type=jnp.float32))
        gx[...] = (proj + b_ref[...]).reshape(T, B, G2)

        h[...] = jnp.zeros_like(h)
        c[...] = jnp.zeros_like(c)
        w_hh = w_hh_ref[...]                                  # (2H, 8H)

        if layer < num_layers - 1:
            def step(s, carry):
                h_f, h_b = cell(s, w_hh)
                yf[s] = h_f                # fwd hidden for time s
                yb[T - 1 - s] = h_b        # bwd hidden for time T-1-s
                return carry

            lax.fori_loop(0, T, step, 0, unroll=True)
        else:
            # Last layer: only the steps feeding the middle timestep.
            def step(s, carry):
                h_f, h_b = cell(s, w_hh)

                @pl.when(s == t_mid)
                def _():
                    mid_f[...] = h_f

                @pl.when(s == s_bwd_mid)
                def _():
                    mid_b[...] = h_b

                return carry

            lax.fori_loop(0, t_mid + 1, step, 0, unroll=True)

    # ---- head: pred_linear -> (dropout = identity) -> pred_linear1 -> softmax
    mid = jnp.concatenate([mid_f[...], mid_b[...]], axis=-1)   # (B, 2H)
    z = jnp.dot(mid, w1_ref[...], preferred_element_type=jnp.float32) + b1_ref[...]
    z2 = jnp.dot(z, w2_ref[...], preferred_element_type=jnp.float32) + b2_ref[...]
    z2 = z2 - jnp.max(z2, axis=-1, keepdims=True)
    e = jnp.exp(z2)
    o_ref[...] = e / jnp.sum(e, axis=-1, keepdims=True)


# ----------------------------------------------------------------------------
# Wrapper
# ----------------------------------------------------------------------------
_VMEM = pl.BlockSpec(memory_space=pltpu.MemorySpace.VMEM)


@jax.jit
def signal_pred_forward(x, packed_params):
    """SignalPred.forward (ispretrain=False, pretrainbp=False). x: (B, T, D)."""
    B, T, _ = x.shape
    num_layers = (len(packed_params) - 4) // 3
    H = packed_params[1].shape[0] // 2        # layer-0 w_hh is (2H, 8H)
    x_tbd = jnp.transpose(x, (1, 0, 2))       # (T, B, D) time-major

    return pl.pallas_call(
        functools.partial(_signal_pred_kernel, num_layers),
        out_shape=jax.ShapeDtypeStruct((B, 2), jnp.float32),
        in_specs=[_VMEM] * (1 + len(packed_params)),
        out_specs=_VMEM,
        scratch_shapes=[
            pltpu.VMEM((T, B, 8 * H), jnp.float32),   # gx : per-layer gate buffer
            pltpu.VMEM((T, B, H), jnp.float32),       # yf : fwd hidden sequence
            pltpu.VMEM((T, B, H), jnp.float32),       # yb : bwd hidden sequence
            pltpu.VMEM((B, 2 * H), jnp.float32),      # h  : [h_fwd | h_bwd]
            pltpu.VMEM((B, 2 * H), jnp.float32),      # c  : [c_fwd | c_bwd]
            pltpu.VMEM((B, H), jnp.float32),          # mid_f
            pltpu.VMEM((B, H), jnp.float32),          # mid_b
        ],
    )(x_tbd, *packed_params)


def pack_params(lstm_params, head_params):
    """Pack per-direction params into the fused layout the kernel expects."""
    packed = []
    for layer in lstm_params:
        w_ih_f, w_hh_f, b_f = layer["fwd"]
        w_ih_b, w_hh_b, b_b = layer["bwd"]
        H = w_hh_f.shape[0]
        G = 4 * H
        zeros = jnp.zeros((H, G), jnp.float32)
        w_ih = jnp.concatenate([w_ih_f, w_ih_b], axis=1)          # (D_in, 8H)
        w_hh = jnp.concatenate(                                   # (2H, 8H) block-diag
            [jnp.concatenate([w_hh_f, zeros], axis=1),
             jnp.concatenate([zeros, w_hh_b], axis=1)], axis=0)
        b = jnp.concatenate([b_f, b_b], axis=1)                   # (1, 8H)
        packed += [w_ih, w_hh, b]
    packed += list(head_params)
    return tuple(packed)


# ----------------------------------------------------------------------------
# Pure-JAX reference (for correctness check)
# ----------------------------------------------------------------------------
def _lstm_layer_dir_ref(x_btd, w_ih, w_hh, b):
    B, T, _ = x_btd.shape
    H = w_hh.shape[0]

    def step(carry, x_t):
        h, c = carry
        gates = x_t @ w_ih + h @ w_hh + b
        i_g = jax.nn.sigmoid(gates[:, :H])
        f_g = jax.nn.sigmoid(gates[:, H:2 * H])
        g_g = jnp.tanh(gates[:, 2 * H:3 * H])
        o_g = jax.nn.sigmoid(gates[:, 3 * H:])
        c = f_g * c + i_g * g_g
        h = o_g * jnp.tanh(c)
        return (h, c), h

    h0 = jnp.zeros((B, H), jnp.float32)
    (_, _), ys = lax.scan(step, (h0, h0), jnp.transpose(x_btd, (1, 0, 2)))
    return jnp.transpose(ys, (1, 0, 2))


def signal_pred_ref(x, lstm_params, head_params):
    out = x
    for layer in lstm_params:
        fwd = _lstm_layer_dir_ref(out, *layer["fwd"])
        bwd = jnp.flip(_lstm_layer_dir_ref(jnp.flip(out, axis=1), *layer["bwd"]), axis=1)
        out = jnp.concatenate([fwd, bwd], axis=-1)
    mid = out[:, out.shape[1] // 2, :]
    w1, b1, w2, b2 = head_params
    z = mid @ w1 + b1
    z2 = z @ w2 + b2
    return jax.nn.softmax(z2, axis=-1)


# ----------------------------------------------------------------------------
# Deterministic parameter construction (PyTorch-style uniform init)
# ----------------------------------------------------------------------------
def make_params(key, input_size, hidden, num_layers):
    bound = 1.0 / jnp.sqrt(hidden)

    def uni(k, shape):
        return jax.random.uniform(k, shape, jnp.float32, -bound, bound)

    lstm_params = []
    for layer in range(num_layers):
        d_in = input_size if layer == 0 else 2 * hidden
        layer_p = {}
        for dname in ("fwd", "bwd"):
            key, k1, k2, k3, k4 = jax.random.split(key, 5)
            w_ih = uni(k1, (d_in, 4 * hidden))       # transposed vs torch (4H, D)
            w_hh = uni(k2, (hidden, 4 * hidden))     # transposed vs torch (4H, H)
            b = uni(k3, (1, 4 * hidden)) + uni(k4, (1, 4 * hidden))  # b_ih + b_hh
            layer_p[dname] = (w_ih, w_hh, b)
        lstm_params.append(layer_p)

    key, k1, k2, k3, k4 = jax.random.split(key, 5)
    h8 = hidden // 8
    b1h = 1.0 / jnp.sqrt(2 * hidden)
    b2h = 1.0 / jnp.sqrt(h8)
    w1 = jax.random.uniform(k1, (2 * hidden, h8), jnp.float32, -b1h, b1h)
    bb1 = jax.random.uniform(k2, (1, h8), jnp.float32, -b1h, b1h)
    w2 = jax.random.uniform(k3, (h8, 2), jnp.float32, -b2h, b2h)
    bb2 = jax.random.uniform(k4, (1, 2), jnp.float32, -b2h, b2h)
    head_params = (w1, bb1, w2, bb2)
    return lstm_params, head_params


# ----------------------------------------------------------------------------
if __name__ == "__main__":
    # Small, module-consistent shapes:
    #   signal_dis_size (input feature dim) = 16, hidden = 32, layers = 3,
    #   batch = 8, seq_len = 8.
    B, T, D, H, L = 8, 8, 16, 32, 3

    key = jax.random.PRNGKey(0)
    kx, kp = jax.random.split(key)
    x = jax.random.normal(kx, (B, T, D), jnp.float32)

    lstm_params, head_params = make_params(kp, D, H, L)
    packed = pack_params(lstm_params, head_params)

    out = signal_pred_forward(x, packed)
    out = jax.block_until_ready(out)

    ref = signal_pred_ref(x, lstm_params, head_params)
    assert out.shape == (B, 2), out.shape
    assert jnp.allclose(out, ref, rtol=1e-4, atol=1e-4), (out, ref)
    assert jnp.allclose(jnp.sum(out, axis=-1), 1.0, atol=1e-5)

    print("KERNEL_OK")
</pallas_src>

<mosaic_0001>
module attributes {stable_mosaic.version = 11 : i64} {
  func.func @_signal_pred_kernel(%arg0: memref<8x8x16xf32, #tpu.memory_space<vmem>>, %arg1: memref<16x256xf32, #tpu.memory_space<vmem>>, %arg2: memref<64x256xf32, #tpu.memory_space<vmem>>, %arg3: memref<1x256xf32, #tpu.memory_space<vmem>>, %arg4: memref<64x256xf32, #tpu.memory_space<vmem>>, %arg5: memref<64x256xf32, #tpu.memory_space<vmem>>, %arg6: memref<1x256xf32, #tpu.memory_space<vmem>>, %arg7: memref<64x256xf32, #tpu.memory_space<vmem>>, %arg8: memref<64x256xf32, #tpu.memory_space<vmem>>, %arg9: memref<1x256xf32, #tpu.memory_space<vmem>>, %arg10: memref<64x4xf32, #tpu.memory_space<vmem>>, %arg11: memref<1x4xf32, #tpu.memory_space<vmem>>, %arg12: memref<4x2xf32, #tpu.memory_space<vmem>>, %arg13: memref<1x2xf32, #tpu.memory_space<vmem>>, %arg14: memref<8x2xf32, #tpu.memory_space<vmem>>, %arg15: memref<8x8x256xf32, #tpu.memory_space<vmem>>, %arg16: memref<8x8x32xf32, #tpu.memory_space<vmem>>, %arg17: memref<8x8x32xf32, #tpu.memory_space<vmem>>, %arg18: memref<8x64xf32, #tpu.memory_space<vmem>>, %arg19: memref<8x64xf32, #tpu.memory_space<vmem>>, %arg20: memref<8x32xf32, #tpu.memory_space<vmem>>, %arg21: memref<8x32xf32, #tpu.memory_space<vmem>>) attributes {dimension_semantics = [], scalar_prefetch = 0 : i64, scratch_operands = 7 : i64, tpu.core_type = #tpu.core_type<tc>} {
    %c0 = arith.constant 0 : index
    %c0_0 = arith.constant 0 : index
    %c0_1 = arith.constant 0 : index
    %0 = vector.load %arg0[%c0, %c0_0, %c0_1] : memref<8x8x16xf32, #tpu.memory_space<vmem>>, vector<8x8x16xf32>
    %1 = vector.shape_cast %0 : vector<8x8x16xf32> to vector<64x16xf32>
    %c0_2 = arith.constant 0 : index
    %c0_3 = arith.constant 0 : index
    %2 = vector.load %arg1[%c0_2, %c0_3] : memref<16x256xf32, #tpu.memory_space<vmem>>, vector<16x256xf32>
    %cst = arith.constant dense<0.000000e+00> : vector<64x256xf32>
    %3 = tpu.matmul %1, %2, %cst {dimension_numbers = #tpu.dot_dimension_numbers<[1], [0], [0], [1], [0, 0, 1, 1], [], []>} : vector<64x16xf32>, vector<16x256xf32>, vector<64x256xf32> -> vector<64x256xf32>
    %c0_4 = arith.constant 0 : index
    %c0_5 = arith.constant 0 : index
    %4 = vector.load %arg3[%c0_4, %c0_5] : memref<1x256xf32, #tpu.memory_space<vmem>>, vector<1x256xf32>
    %5 = vector.broadcast %4 : vector<1x256xf32> to vector<64x256xf32>
    %6 = arith.addf %3, %5 : vector<64x256xf32>
    %7 = vector.shape_cast %6 : vector<64x256xf32> to vector<8x8x256xf32>
    %c0_6 = arith.constant 0 : index
    %c0_7 = arith.constant 0 : index
    %c0_8 = arith.constant 0 : index
    %8 = vector.load %arg15[%c0_6, %c0_7, %c0_8] : memref<8x8x256xf32, #tpu.memory_space<vmem>>, vector<8x8x256xf32>
    tpu.vector_store %arg15[%c0_6, %c0_7, %c0_8], %7 {strides = array<i32>} : memref<8x8x256xf32, #tpu.memory_space<vmem>>, vector<8x8x256xf32>,
    %cst_9 = arith.constant 0.000000e+00 : f32
    %9 = vector.broadcast %cst_9 : f32 to vector<8x64xf32>
    %c0_10 = arith.constant 0 : index
    %c0_11 = arith.constant 0 : index
    %10 = vector.load %arg18[%c0_10, %c0_11] : memref<8x64xf32, #tpu.memory_space<vmem>>, vector<8x64xf32>
    tpu.vector_store %arg18[%c0_10, %c0_11], %9 {strides = array<i32>} : memref<8x64xf32, #tpu.memory_space<vmem>>, vector<8x64xf32>,
    %cst_12 = arith.constant 0.000000e+00 : f32
    %11 = vector.broadcast %cst_12 : f32 to vector<8x64xf32>
    %c0_13 = arith.constant 0 : index
    %c0_14 = arith.constant 0 : index
    %12 = vector.load %arg19[%c0_13, %c0_14] : memref<8x64xf32, #tpu.memory_space<vmem>>, vector<8x64xf32>
    tpu.vector_store %arg19[%c0_13, %c0_14], %11 {strides = array<i32>} : memref<8x64xf32, #tpu.memory_space<vmem>>, vector<8x64xf32>,
    %c0_15 = arith.constant 0 : index
    %c0_16 = arith.constant 0 : index
    %13 = vector.load %arg2[%c0_15, %c0_16] : memref<64x256xf32, #tpu.memory_space<vmem>>, vector<64x256xf32>
    %c0_i32 = arith.constant 0 : i32
    %14 = arith.index_cast %c0_i32 : i32 to index
    %c0_17 = arith.constant 0 : index
    %c0_18 = arith.constant 0 : index
    %15 = vector.load %arg15[%14, %c0_17, %c0_18] : memref<8x8x256xf32, #tpu.memory_space<vmem>>, vector<1x8x256xf32>
    %16 = vector.shape_cast %15 : vector<1x8x256xf32> to vector<8x256xf32>
    %c7_i32 = arith.constant 7 : i32
    %17 = arith.subi %c7_i32, %c0_i32 : i32
    %18 = arith.index_cast %17 : i32 to index
    %c0_19 = arith.constant 0 : index
    %c0_20 = arith.constant 0 : index
    %19 = vector.load %arg15[%18, %c0_19, %c0_20] : memref<8x8x256xf32, #tpu.memory_space<vmem>>, vector<1x8x256xf32>
    %20 = vector.shape_cast %19 : vector<1x8x256xf32> to vector<8x256xf32>
    %21 = vector.extract_strided_slice %16 {offsets = [0, 0], sizes = [8, 128], strides = [1, 1]} : vector<8x256xf32> to vector<8x128xf32>
    %22 = vector.extract_strided_slice %20 {offsets = [0, 128], sizes = [8, 128], strides = [1, 1]} : vector<8x256xf32> to vector<8x128xf32>
    %23 = tpu.concatenate %21, %22 in 1 : vector<8x128xf32>, vector<8x128xf32> -> vector<8x256xf32>
    %c0_21 = arith.constant 0 : index
    %c0_22 = arith.constant 0 : index
    %24 = vector.load %arg18[%c0_21, %c0_22] : memref<8x64xf32, #tpu.memory_space<vmem>>, vector<8x64xf32>
    %cst_23 = arith.constant dense<0.000000e+00> : vector<8x256xf32>
    %25 = tpu.matmul %24, %13, %cst_23 {dimension_numbers = #tpu.dot_dimension_numbers<[1], [0], [0], [1], [0, 0, 1, 1], [], []>} : vector<8x64xf32>, vector<64x256xf32>, vector<8x256xf32> -> vector<8x256xf32>
    %26 = arith.addf %23, %25 : vector<8x256xf32>
    %27 = arith.negf %26 : vector<8x256xf32>
    %28 = math.exp %27 : vector<8x256xf32>
    %cst_24 = arith.constant 1.000000e+00 : f32
    %29 = vector.broadcast %cst_24 : f32 to vector<8x256xf32>
    %30 = arith.addf %29, %28 : vector<8x256xf32>
    %31 = arith.divf %29, %30 : vector<8x256xf32>
    %32 = math.tanh %26 : vector<8x256xf32>
    %33 = vector.extract_strided_slice %31 {offsets = [0, 32], sizes = [8, 32], strides = [1, 1]} : vector<8x256xf32> to vector<8x32xf32>
    %c0_25 = arith.constant 0 : index
    %c0_26 = arith.constant 0 : index
    %34 = vector.load %arg19[%c0_25, %c0_26] : memref<8x64xf32, #tpu.memory_space<vmem>>, vector<8x32xf32>
    %35 = arith.mulf %33, %34 : vector<8x32xf32>
    %36 = vector.extract_strided_slice %31 {offsets = [0, 0], sizes = [8, 32], strides = [1, 1]} : vector<8x256xf32> to vector<8x32xf32>
    %37 = vector.extract_strided_slice %32 {offsets = [0, 64], sizes = [8, 32], strides = [1, 1]} : vector<8x256xf32> to vector<8x32xf32>
    %38 = arith.mulf %36, %37 : vector<8x32xf32>
    %39 = arith.addf %35, %38 : vector<8x32xf32>
    %40 = vector.extract_strided_slice %31 {offsets = [0, 160], sizes = [8, 32], strides = [1, 1]} : vector<8x256xf32> to vector<8x32xf32>
    %c0_27 = arith.constant 0 : index
    %c32 = arith.constant 32 : index
    %41 = vector.load %arg19[%c0_27, %c32] : memref<8x64xf32, #tpu.memory_space<vmem>>, vector<8x32xf32>
    %42 = arith.mulf %40, %41 : vector<8x32xf32>
    %43 = vector.extract_strided_slice %31 {offsets = [0, 128], sizes = [8, 32], strides = [1, 1]} : vector<8x256xf32> to vector<8x32xf32>
    %44 = vector.extract_strided_slice %32 {offsets = [0, 192], sizes = [8, 32], strides = [1, 1]} : vector<8x256xf32> to vector<8x32xf32>
    %45 = arith.mulf %43, %44 : vector<8x32xf32>
    %46 = arith.addf %42, %45 : vector<8x32xf32>
    %47 = vector.extract_strided_slice %31 {offsets = [0, 96], sizes = [8, 32], strides = [1, 1]} : vector<8x256xf32> to vector<8x32xf32>
    %48 = math.tanh %39 : vector<8x32xf32>
    %49 = arith.mulf %47, %48 : vector<8x32xf32>
    %50 = vector.extract_strided_slice %31 {offsets = [0, 224], sizes = [8, 32], strides = [1, 1]} : vector<8x256xf32> to vector<8x32xf32>
    %51 = math.tanh %46 : vector<8x32xf32>
    %52 = arith.mulf %50, %51 : vector<8x32xf32>
    %53 = tpu.concatenate %39, %46 in 1 : vector<8x32xf32>, vector<8x32xf32> -> vector<8x64xf32>
    %c0_28 = arith.constant 0 : index
    %c0_29 = arith.constant 0 : index
    %54 = vector.load %arg19[%c0_28, %c0_29] : memref<8x64xf32, #tpu.memory_space<vmem>>, vector<8x64xf32>
    tpu.vector_store %arg19[%c0_28, %c0_29], %53 {strides = array<i32>} : memref<8x64xf32, #tpu.memory_space<vmem>>, vector<8x64xf32>,
    %55 = tpu.concatenate %49, %52 in 1 : vector<8x32xf32>, vector<8x32xf32> -> vector<8x64xf32>
    %c0_30 = arith.constant 0 : index
    %c0_31 = arith.constant 0 : index
    %56 = vector.load %arg18[%c0_30, %c0_31] : memref<8x64xf32, #tpu.memory_space<vmem>>, vector<8x64xf32>
    tpu.vector_store %arg18[%c0_30, %c0_31], %55 {strides = array<i32>} : memref<8x64xf32, #tpu.memory_space<vmem>>, vector<8x64xf32>,
    %57 = arith.index_cast %c0_i32 : i32 to index
    %c0_32 = arith.constant 0 : index
    %c0_33 = arith.constant 0 : index
    %58 = vector.load %arg16[%57, %c0_32, %c0_33] : memref<8x8x32xf32, #tpu.memory_space<vmem>>, vector<1x8x32xf32>
    %59 = vector.shape_cast %58 : vector<1x8x32xf32> to vector<8x32xf32>
    %60 = vector.shape_cast %49 : vector<8x32xf32> to vector<1x8x32xf32>
    tpu.vector_store %arg16[%57, %c0_32, %c0_33], %60 {strides = array<i32>} : memref<8x8x32xf32, #tpu.memory_space<vmem>>, vector<1x8x32xf32>,
    %c7_i32_34 = arith.constant 7 : i32
    %61 = arith.subi %c7_i32_34, %c0_i32 : i32
    %62 = arith.index_cast %61 : i32 to index
    %c0_35 = arith.constant 0 : index
    %c0_36 = arith.constant 0 : index
    %63 = vector.load %arg17[%62, %c0_35, %c0_36] : memref<8x8x32xf32, #tpu.memory_space<vmem>>, vector<1x8x32xf32>
    %64 = vector.shape_cast %63 : vector<1x8x32xf32> to vector<8x32xf32>
    %65 = vector.shape_cast %52 : vector<8x32xf32> to vector<1x8x32xf32>
    tpu.vector_store %arg17[%62, %c0_35, %c0_36], %65 {strides = array<i32>} : memref<8x8x32xf32, #tpu.memory_space<vmem>>, vector<1x8x32xf32>,
    %c1_i32 = arith.constant 1 : i32
    %66 = arith.index_cast %c1_i32 : i32 to index
    %c0_37 = arith.constant 0 : index
    %c0_38 = arith.constant 0 : index
    %67 = vector.load %arg15[%66, %c0_37, %c0_38] : memref<8x8x256xf32, #tpu.memory_space<vmem>>, vector<1x8x256xf32>
    %68 = vector.shape_cast %67 : vector<1x8x256xf32> to vector<8x256xf32>
    %c7_i32_39 = arith.constant 7 : i32
    %69 = arith.subi %c7_i32_39, %c1_i32 : i32
    %70 = arith.index_cast %69 : i32 to index
    %c0_40 = arith.constant 0 : index
    %c0_41 = arith.constant 0 : index
    %71 = vector.load %arg15[%70, %c0_40, %c0_41] : memref<8x8x256xf32, #tpu.memory_space<vmem>>, vector<1x8x256xf32>
    %72 = vector.shape_cast %71 : vector<1x8x256xf32> to vector<8x256xf32>
    %73 = vector.extract_strided_slice %68 {offsets = [0, 0], sizes = [8, 128], strides = [1, 1]} : vector<8x256xf32> to vector<8x128xf32>
    %74 = vector.extract_strided_slice %72 {offsets = [0, 128], sizes = [8, 128], strides = [1, 1]} : vector<8x256xf32> to vector<8x128xf32>
    %75 = tpu.concatenate %73, %74 in 1 : vector<8x128xf32>, vector<8x128xf32> -> vector<8x256xf32>
    %c0_42 = arith.constant 0 : index
    %c0_43 = arith.constant 0 : index
    %76 = vector.load %arg18[%c0_42, %c0_43] : memref<8x64xf32, #tpu.memory_space<vmem>>, vector<8x64xf32>
    %cst_44 = arith.constant dense<0.000000e+00> : vector<8x256xf32>
    %77 = tpu.matmul %76, %13, %cst_44 {dimension_numbers = #tpu.dot_dimension_numbers<[1], [0], [0], [1], [0, 0, 1, 1], [], []>} : vector<8x64xf32>, vector<64x256xf32>, vector<8x256xf32> -> vector<8x256xf32>
    %78 = arith.addf %75, %77 : vector<8x256xf32>
    %79 = arith.negf %78 : vector<8x256xf32>
    %80 = math.exp %79 : vector<8x256xf32>
    %cst_45 = arith.constant 1.000000e+00 : f32
    %81 = vector.broadcast %cst_45 : f32 to vector<8x256xf32>
    %82 = arith.addf %81, %80 : vector<8x256xf32>
    %83 = arith.divf %81, %82 : vector<8x256xf32>
    %84 = math.tanh %78 : vector<8x256xf32>
    %85 = vector.extract_strided_slice %83 {offsets = [0, 32], sizes = [8, 32], strides = [1, 1]} : vector<8x256xf32> to vector<8x32xf32>
    %c0_46 = arith.constant 0 : index
    %c0_47 = arith.constant 0 : index
    %86 = vector.load %arg19[%c0_46, %c0_47] : memref<8x64xf32, #tpu.memory_space<vmem>>, vector<8x32xf32>
    %87 = arith.mulf %85, %86 : vector<8x32xf32>
    %88 = vector.extract_strided_slice %83 {offsets = [0, 0], sizes = [8, 32], strides = [1, 1]} : vector<8x256xf32> to vector<8x32xf32>
    %89 = vector.extract_strided_slice %84 {offsets = [0, 64], sizes = [8, 32], strides = [1, 1]} : vector<8x256xf32> to vector<8x32xf32>
    %90 = arith.mulf %88, %89 : vector<8x32xf32>
    %91 = arith.addf %87, %90 : vector<8x32xf32>
    %92 = vector.extract_strided_slice %83 {offsets = [0, 160], sizes = [8, 32], strides = [1, 1]} : vector<8x256xf32> to vector<8x32xf32>
    %c0_48 = arith.constant 0 : index
    %c32_49 = arith.constant 32 : index
    %93 = vector.load %arg19[%c0_48, %c32_49] : memref<8x64xf32, #tpu.memory_space<vmem>>, vector<8x32xf32>
    %94 = arith.mulf %92, %93 : vector<8x32xf32>
    %95 = vector.extract_strided_slice %83 {offsets = [0, 128], sizes = [8, 32], strides = [1, 1]} : vector<8x256xf32> to vector<8x32xf32>
    %96 = vector.extract_strided_slice %84 {offsets = [0, 192], sizes = [8, 32], strides = [1, 1]} : vector<8x256xf32> to vector<8x32xf32>
    %97 = arith.mulf %95, %96 : vector<8x32xf32>
    %98 = arith.addf %94, %97 : vector<8x32xf32>
    %99 = vector.extract_strided_slice %83 {offsets = [0, 96], sizes = [8, 32], strides = [1, 1]} : vector<8x256xf32> to vector<8x32xf32>
    %100 = math.tanh %91 : vector<8x32xf32>
    %101 = arith.mulf %99, %100 : vector<8x32xf32>
    %102 = vector.extract_strided_slice %83 {offsets = [0, 224], sizes = [8, 32], strides = [1, 1]} : vector<8x256xf32> to vector<8x32xf32>
    %103 = math.tanh %98 : vector<8x32xf32>
    %104 = arith.mulf %102, %103 : vector<8x32xf32>
    %105 = tpu.concatenate %91, %98 in 1 : vector<8x32xf32>, vector<8x32xf32> -> vector<8x64xf32>
    %c0_50 = arith.constant 0 : index
    %c0_51 = arith.constant 0 : index
    %106 = vector.load %arg19[%c0_50, %c0_51] : memref<8x64xf32, #tpu.memory_space<vmem>>, vector<8x64xf32>
    tpu.vector_store %arg19[%c0_50, %c0_51], %105 {strides = array<i32>} : memref<8x64xf32, #tpu.memory_space<vmem>>, vector<8x64xf32>,
    %107 = tpu.concatenate %101, %104 in 1 : vector<8x32xf32>, vector<8x32xf32> -> vector<8x64xf32>
    %c0_52 = arith.constant 0 : index
    %c0_53 = arith.constant 0 : index
    %108 = vector.load %arg18[%c0_52, %c0_53] : memref<8x64xf32, #tpu.memory_space<vmem>>, vector<8x64xf32>
    tpu.vector_store %arg18[%c0_52, %c0_53], %107 {strides = array<i32>} : memref<8x64xf32, #tpu.memory_space<vmem>>, vector<8x64xf32>,
    %109 = arith.index_cast %c1_i32 : i32 to index
    %c0_54 = arith.constant 0 : index
    %c0_55 = arith.constant 0 : index
    %110 = vector.load %arg16[%109, %c0_54, %c0_55] : memref<8x8x32xf32, #tpu.memory_space<vmem>>, vector<1x8x32xf32>
    %111 = vector.shape_cast %110 : vector<1x8x32xf32> to vector<8x32xf32>
    %112 = vector.shape_cast %101 : vector<8x32xf32> to vector<1x8x32xf32>
    tpu.vector_store %arg16[%109, %c0_54, %c0_55], %112 {strides = array<i32>} : memref<8x8x32xf32, #tpu.memory_space<vmem>>, vector<1x8x32xf32>,
    %c7_i32_56 = arith.constant 7 : i32
    %113 = arith.subi %c7_i32_56, %c1_i32 : i32
    %114 = arith.index_cast %113 : i32 to index
    %c0_57 = arith.constant 0 : index
    %c0_58 = arith.constant 0 : index
    %115 = vector.load %arg17[%114, %c0_57, %c0_58] : memref<8x8x32xf32, #tpu.memory_space<vmem>>, vector<1x8x32xf32>
    %116 = vector.shape_cast %115 : vector<1x8x32xf32> to vector<8x32xf32>
    %117 = vector.shape_cast %104 : vector<8x32xf32> to vector<1x8x32xf32>
    tpu.vector_store %arg17[%114, %c0_57, %c0_58], %117 {strides = array<i32>} : memref<8x8x32xf32, #tpu.memory_space<vmem>>, vector<1x8x32xf32>,
    %c2_i32 = arith.constant 2 : i32
    %118 = arith.index_cast %c2_i32 : i32 to index
    %c0_59 = arith.constant 0 : index
    %c0_60 = arith.constant 0 : index
    %119 = vector.load %arg15[%118, %c0_59, %c0_60] : memref<8x8x256xf32, #tpu.memory_space<vmem>>, vector<1x8x256xf32>
    %120 = vector.shape_cast %119 : vector<1x8x256xf32> to vector<8x256xf32>
    %c7_i32_61 = arith.constant 7 : i32
    %121 = arith.subi %c7_i32_61, %c2_i32 : i32
    %122 = arith.index_cast %121 : i32 to index
    %c0_62 = arith.constant 0 : index
    %c0_63 = arith.constant 0 : index
    %123 = vector.load %arg15[%122, %c0_62, %c0_63] : memref<8x8x256xf32, #tpu.memory_space<vmem>>, vector<1x8x256xf32>
    %124 = vector.shape_cast %123 : vector<1x8x256xf32> to vector<8x256xf32>
    %125 = vector.extract_strided_slice %120 {offsets = [0, 0], sizes = [8, 128], strides = [1, 1]} : vector<8x256xf32> to vector<8x128xf32>
    %126 = vector.extract_strided_slice %124 {offsets = [0, 128], sizes = [8, 128], strides = [1, 1]} : vector<8x256xf32> to vector<8x128xf32>
    %127 = tpu.concatenate %125, %126 in 1 : vector<8x128xf32>, vector<8x128xf32> -> vector<8x256xf32>
    %c0_64 = arith.constant 0 : index
    %c0_65 = arith.constant 0 : index
    %128 = vector.load %arg18[%c0_64, %c0_65] : memref<8x64xf32, #tpu.memory_space<vmem>>, vector<8x64xf32>
    %cst_66 = arith.constant dense<0.000000e+00> : vector<8x256xf32>
    %129 = tpu.matmul %128, %13, %cst_66 {dimension_numbers = #tpu.dot_dimension_numbers<[1], [0], [0], [1], [0, 0, 1, 1], [], []>} : vector<8x64xf32>, vector<64x256xf32>, vector<8x256xf32> -> vector<8x256xf32>
    %130 = arith.addf %127, %129 : vector<8x256xf32>
    %131 = arith.negf %130 : vector<8x256xf32>
    %132 = math.exp %131 : vector<8x256xf32>
    %cst_67 = arith.constant 1.000000e+00 : f32
    %133 = vector.broadcast %cst_67 : f32 to vector<8x256xf32>
    %134 = arith.addf %133, %132 : vector<8x256xf32>
    %135 = arith.divf %133, %134 : vector<8x256xf32>
    %136 = math.tanh %130 : vector<8x256xf32>
    %137 = vector.extract_strided_slice %135 {offsets = [0, 32], sizes = [8, 32], strides = [1, 1]} : vector<8x256xf32> to vector<8x32xf32>
    %c0_68 = arith.constant 0 : index
    %c0_69 = arith.constant 0 : index
    %138 = vector.load %arg19[%c0_68, %c0_69] : memref<8x64xf32, #tpu.memory_space<vmem>>, vector<8x32xf32>
    %139 = arith.mulf %137, %138 : vector<8x32xf32>
    %140 = vector.extract_strided_slice %135 {offsets = [0, 0], sizes = [8, 32], strides = [1, 1]} : vector<8x256xf32> to vector<8x32xf32>
    %141 = vector.extract_strided_slice %136 {offsets = [0, 64], sizes = [8, 32], strides = [1, 1]} : vector<8x256xf32> to vector<8x32xf32>
    %142 = arith.mulf %140, %141 : vector<8x32xf32>
    %143 = arith.addf %139, %142 : vector<8x32xf32>
    %144 = vector.extract_strided_slice %135 {offsets = [0, 160], sizes = [8, 32], strides = [1, 1]} : vector<8x256xf32> to vector<8x32xf32>
    %c0_70 = arith.constant 0 : index
    %c32_71 = arith.constant 32 : index
    %145 = vector.load %arg19[%c0_70, %c32_71] : memref<8x64xf32, #tpu.memory_space<vmem>>, vector<8x32xf32>
    %146 = arith.mulf %144, %145 : vector<8x32xf32>
    %147 = vector.extract_strided_slice %135 {offsets = [0, 128], sizes = [8, 32], strides = [1, 1]} : vector<8x256xf32> to vector<8x32xf32>
    %148 = vector.extract_strided_slice %136 {offsets = [0, 192], sizes = [8, 32], strides = [1, 1]} : vector<8x256xf32> to vector<8x32xf32>
    %149 = arith.mulf %147, %148 : vector<8x32xf32>
    %150 = arith.addf %146, %149 : vector<8x32xf32>
    %151 = vector.extract_strided_slice %135 {offsets = [0, 96], sizes = [8, 32], strides = [1, 1]} : vector<8x256xf32> to vector<8x32xf32>
    %152 = math.tanh %143 : vector<8x32xf32>
    %153 = arith.mulf %151, %152 : vector<8x32xf32>
    %154 = vector.extract_strided_slice %135 {offsets = [0, 224], sizes = [8, 32], strides = [1, 1]} : vector<8x256xf32> to vector<8x32xf32>
    %155 = math.tanh %150 : vector<8x32xf32>
    %156 = arith.mulf %154, %155 : vector<8x32xf32>
    %157 = tpu.concatenate %143, %150 in 1 : vector<8x32xf32>, vector<8x32xf32> -> vector<8x64xf32>
    %c0_72 = arith.constant 0 : index
    %c0_73 = arith.constant 0 : index
    %158 = vector.load %arg19[%c0_72, %c0_73] : memref<8x64xf32, #tpu.memory_space<vmem>>, vector<8x64xf32>
    tpu.vector_store %arg19[%c0_72, %c0_73], %157 {strides = array<i32>} : memref<8x64xf32, #tpu.memory_space<vmem>>, vector<8x64xf32>,
    %159 = tpu.concatenate %153, %156 in 1 : vector<8x32xf32>, vector<8x32xf32> -> vector<8x64xf32>
    %c0_74 = arith.constant 0 : index
    %c0_75 = arith.constant 0 : index
    %160 = vector.load %arg18[%c0_74, %c0_75] : memref<8x64xf32, #tpu.memory_space<vmem>>, vector<8x64xf32>
    tpu.vector_store %arg18[%c0_74, %c0_75], %159 {strides = array<i32>} : memref<8x64xf32, #tpu.memory_space<vmem>>, vector<8x64xf32>,
    %161 = arith.index_cast %c2_i32 : i32 to index
    %c0_76 = arith.constant 0 : index
    %c0_77 = arith.constant 0 : index
    %162 = vector.load %arg16[%161, %c0_76, %c0_77] : memref<8x8x32xf32, #tpu.memory_space<vmem>>, vector<1x8x32xf32>
    %163 = vector.shape_cast %162 : vector<1x8x32xf32> to vector<8x32xf32>
    %164 = vector.shape_cast %153 : vector<8x32xf32> to vector<1x8x32xf32>
    tpu.vector_store %arg16[%161, %c0_76, %c0_77], %164 {strides = array<i32>} : memref<8x8x32xf32, #tpu.memory_space<vmem>>, vector<1x8x32xf32>,
    %c7_i32_78 = arith.constant 7 : i32
    %165 = arith.subi %c7_i32_78, %c2_i32 : i32
    %166 = arith.index_cast %165 : i32 to index
    %c0_79 = arith.constant 0 : index
    %c0_80 = arith.constant 0 : index
    %167 = vector.load %arg17[%166, %c0_79, %c0_80] : memref<8x8x32xf32, #tpu.memory_space<vmem>>, vector<1x8x32xf32>
    %168 = vector.shape_cast %167 : vector<1x8x32xf32> to vector<8x32xf32>
    %169 = vector.shape_cast %156 : vector<8x32xf32> to vector<1x8x32xf32>
    tpu.vector_store %arg17[%166, %c0_79, %c0_80], %169 {strides = array<i32>} : memref<8x8x32xf32, #tpu.memory_space<vmem>>, vector<1x8x32xf32>,
    %c3_i32 = arith.constant 3 : i32
    %170 = arith.index_cast %c3_i32 : i32 to index
    %c0_81 = arith.constant 0 : index
    %c0_82 = arith.constant 0 : index
    %171 = vector.load %arg15[%170, %c0_81, %c0_82] : memref<8x8x256xf32, #tpu.memory_space<vmem>>, vector<1x8x256xf32>
    %172 = vector.shape_cast %171 : vector<1x8x256xf32> to vector<8x256xf32>
    %c7_i32_83 = arith.constant 7 : i32
    %173 = arith.subi %c7_i32_83, %c3_i32 : i32
    %174 = arith.index_cast %173 : i32 to index
    %c0_84 = arith.constant 0 : index
    %c0_85 = arith.constant 0 : index
    %175 = vector.load %arg15[%174, %c0_84, %c0_85] : memref<8x8x256xf32, #tpu.memory_space<vmem>>, vector<1x8x256xf32>
    %176 = vector.shape_cast %175 : vector<1x8x256xf32> to vector<8x256xf32>
    %177 = vector.extract_strided_slice %172 {offsets = [0, 0], sizes = [8, 128], strides = [1, 1]} : vector<8x256xf32> to vector<8x128xf32>
    %178 = vector.extract_strided_slice %176 {offsets = [0, 128], sizes = [8, 128], strides = [1, 1]} : vector<8x256xf32> to vector<8x128xf32>
    %179 = tpu.concatenate %177, %178 in 1 : vector<8x128xf32>, vector<8x128xf32> -> vector<8x256xf32>
    %c0_86 = arith.constant 0 : index
    %c0_87 = arith.constant 0 : index
    %180 = vector.load %arg18[%c0_86, %c0_87] : memref<8x64xf32, #tpu.memory_space<vmem>>, vector<8x64xf32>
    %cst_88 = arith.constant dense<0.000000e+00> : vector<8x256xf32>
    %181 = tpu.matmul %180, %13, %cst_88 {dimension_numbers = #tpu.dot_dimension_numbers<[1], [0], [0], [1], [0, 0, 1, 1], [], []>} : vector<8x64xf32>, vector<64x256xf32>, vector<8x256xf32> -> vector<8x256xf32>
    %182 = arith.addf %179, %181 : vector<8x256xf32>
    %183 = arith.negf %182 : vector<8x256xf32>
    %184 = math.exp %183 : vector<8x256xf32>
    %cst_89 = arith.constant 1.000000e+00 : f32
    %185 = vector.broadcast %cst_89 : f32 to vector<8x256xf32>
    %186 = arith.addf %185, %184 : vector<8x256xf32>
    %187 = arith.divf %185, %186 : vector<8x256xf32>
    %188 = math.tanh %182 : vector<8x256xf32>
    %189 = vector.extract_strided_slice %187 {offsets = [0, 32], sizes = [8, 32], strides = [1, 1]} : vector<8x256xf32> to vector<8x32xf32>
    %c0_90 = arith.constant 0 : index
    %c0_91 = arith.constant 0 : index
    %190 = vector.load %arg19[%c0_90, %c0_91] : memref<8x64xf32, #tpu.memory_space<vmem>>, vector<8x32xf32>
    %191 = arith.mulf %189, %190 : vector<8x32xf32>
    %192 = vector.extract_strided_slice %187 {offsets = [0, 0], sizes = [8, 32], strides = [1, 1]} : vector<8x256xf32> to vector<8x32xf32>
    %193 = vector.extract_strided_slice %188 {offsets = [0, 64], sizes = [8, 32], strides = [1, 1]} : vector<8x256xf32> to vector<8x32xf32>
    %194 = arith.mulf %192, %193 : vector<8x32xf32>
    %195 = arith.addf %191, %194 : vector<8x32xf32>
    %196 = vector.extract_strided_slice %187 {offsets = [0, 160], sizes = [8, 32], strides = [1, 1]} : vector<8x256xf32> to vector<8x32xf32>
    %c0_92 = arith.constant 0 : index
    %c32_93 = arith.constant 32 : index
    %197 = vector.load %arg19[%c0_92, %c32_93] : memref<8x64xf32, #tpu.memory_space<vmem>>, vector<8x32xf32>
    %198 = arith.mulf %196, %197 : vector<8x32xf32>
    %199 = vector.extract_strided_slice %187 {offsets = [0, 128], sizes = [8, 32], strides = [1, 1]} : vector<8x256xf32> to vector<8x32xf32>
    %200 = vector.extract_strided_slice %188 {offsets = [0, 192], sizes = [8, 32], strides = [1, 1]} : vector<8x256xf32> to vector<8x32xf32>
    %201 = arith.mulf %199, %200 : vector<8x32xf32>
    %202 = arith.addf %198, %201 : vector<8x32xf32>
    %203 = vector.extract_strided_slice %187 {offsets = [0, 96], sizes = [8, 32], strides = [1, 1]} : vector<8x256xf32> to vector<8x32xf32>
    %204 = math.tanh %195 : vector<8x32xf32>
    %205 = arith.mulf %203, %204 : vector<8x32xf32>
    %206 = vector.extract_strided_slice %187 {offsets = [0, 224], sizes = [8, 32], strides = [1, 1]} : vector<8x256xf32> to vector<8x32xf32>
    %207 = math.tanh %202 : vector<8x32xf32>
    %208 = arith.mulf %206, %207 : vector<8x32xf32>
    %209 = tpu.concatenate %195, %202 in 1 : vector<8x32xf32>, vector<8x32xf32> -> vector<8x64xf32>
    %c0_94 = arith.constant 0 : index
    %c0_95 = arith.constant 0 : index
    %210 = vector.load %arg19[%c0_94, %c0_95] : memref<8x64xf32, #tpu.memory_space<vmem>>, vector<8x64xf32>
    tpu.vector_store %arg19[%c0_94, %c0_95], %209 {strides = array<i32>} : memref<8x64xf32, #tpu.memory_space<vmem>>, vector<8x64xf32>,
    %211 = tpu.concatenate %205, %208 in 1 : vector<8x32xf32>, vector<8x32xf32> -> vector<8x64xf32>
    %c0_96 = arith.constant 0 : index
    %c0_97 = arith.constant 0 : index
    %212 = vector.load %arg18[%c0_96, %c0_97] : memref<8x64xf32, #tpu.memory_space<vmem>>, vector<8x64xf32>
    tpu.vector_store %arg18[%c0_96, %c0_97], %211 {strides = array<i32>} : memref<8x64xf32, #tpu.memory_space<vmem>>, vector<8x64xf32>,
    %213 = arith.index_cast %c3_i32 : i32 to index
    %c0_98 = arith.constant 0 : index
    %c0_99 = arith.constant 0 : index
    %214 = vector.load %arg16[%213, %c0_98, %c0_99] : memref<8x8x32xf32, #tpu.memory_space<vmem>>, vector<1x8x32xf32>
    %215 = vector.shape_cast %214 : vector<1x8x32xf32> to vector<8x32xf32>
    %216 = vector.shape_cast %205 : vector<8x32xf32> to vector<1x8x32xf32>
    tpu.vector_store %arg16[%213, %c0_98, %c0_99], %216 {strides = array<i32>} : memref<8x8x32xf32, #tpu.memory_space<vmem>>, vector<1x8x32xf32>,
    %c7_i32_100 = arith.constant 7 : i32
    %217 = arith.subi %c7_i32_100, %c3_i32 : i32
    %218 = arith.index_cast %217 : i32 to index
    %c0_101 = arith.constant 0 : index
    %c0_102 = arith.constant 0 : index
    %219 = vector.load %arg17[%218, %c0_101, %c0_102] : memref<8x8x32xf32, #tpu.memory_space<vmem>>, vector<1x8x32xf32>
    %220 = vector.shape_cast %219 : vector<1x8x32xf32> to vector<8x32xf32>
    %221 = vector.shape_cast %208 : vector<8x32xf32> to vector<1x8x32xf32>
    tpu.vector_store %arg17[%218, %c0_101, %c0_102], %221 {strides = array<i32>} : memref<8x8x32xf32, #tpu.memory_space<vmem>>, vector<1x8x32xf32>,
    %c4_i32 = arith.constant 4 : i32
    %222 = arith.index_cast %c4_i32 : i32 to index
    %c0_103 = arith.constant 0 : index
    %c0_104 = arith.constant 0 : index
    %223 = vector.load %arg15[%222, %c0_103, %c0_104] : memref<8x8x256xf32, #tpu.memory_space<vmem>>, vector<1x8x256xf32>
    %224 = vector.shape_cast %223 : vector<1x8x256xf32> to vector<8x256xf32>
    %c7_i32_105 = arith.constant 7 : i32
    %225 = arith.subi %c7_i32_105, %c4_i32 : i32
    %226 = arith.index_cast %225 : i32 to index
    %c0_106 = arith.constant 0 : index
    %c0_107 = arith.constant 0 : index
    %227 = vector.load %arg15[%226, %c0_106, %c0_107] : memref<8x8x256xf32, #tpu.memory_space<vmem>>, vector<1x8x256xf32>
    %228 = vector.shape_cast %227 : vector<1x8x256xf32> to vector<8x256xf32>
    %229 = vector.extract_strided_slice %224 {offsets = [0, 0], sizes = [8, 128], strides = [1, 1]} : vector<8x256xf32> to vector<8x128xf32>
    %230 = vector.extract_strided_slice %228 {offsets = [0, 128], sizes = [8, 128], strides = [1, 1]} : vector<8x256xf32> to vector<8x128xf32>
    %231 = tpu.concatenate %229, %230 in 1 : vector<8x128xf32>, vector<8x128xf32> -> vector<8x256xf32>
    %c0_108 = arith.constant 0 : index
    %c0_109 = arith.constant 0 : index
    %232 = vector.load %arg18[%c0_108, %c0_109] : memref<8x64xf32, #tpu.memory_space<vmem>>, vector<8x64xf32>
    %cst_110 = arith.constant dense<0.000000e+00> : vector<8x256xf32>
    %233 = tpu.matmul %232, %13, %cst_110 {dimension_numbers = #tpu.dot_dimension_numbers<[1], [0], [0], [1], [0, 0, 1, 1], [], []>} : vector<8x64xf32>, vector<64x256xf32>, vector<8x256xf32> -> vector<8x256xf32>
    %234 = arith.addf %231, %233 : vector<8x256xf32>
    %235 = arith.negf %234 : vector<8x256xf32>
    %236 = math.exp %235 : vector<8x256xf32>
    %cst_111 = arith.constant 1.000000e+00 : f32
    %237 = vector.broadcast %cst_111 : f32 to vector<8x256xf32>
    %238 = arith.addf %237, %236 : vector<8x256xf32>
    %239 = arith.divf %237, %238 : vector<8x256xf32>
    %240 = math.tanh %234 : vector<8x256xf32>
    %241 = vector.extract_strided_slice %239 {offsets = [0, 32], sizes = [8, 32], strides = [1, 1]} : vector<8x256xf32> to vector<8x32xf32>
    %c0_112 = arith.constant 0 : index
    %c0_113 = arith.constant 0 : index
    %242 = vector.load %arg19[%c0_112, %c0_113] : memref<8x64xf32, #tpu.memory_space<vmem>>, vector<8x32xf32>
    %243 = arith.mulf %241, %242 : vector<8x32xf32>
    %244 = vector.extract_strided_slice %239 {offsets = [0, 0], sizes = [8, 32], strides = [1, 1]} : vector<8x256xf32> to vector<8x32xf32>
    %245 = vector.extract_strided_slice %240 {offsets = [0, 64], sizes = [8, 32], strides = [1, 1]} : vector<8x256xf32> to vector<8x32xf32>
    %246 = arith.mulf %244, %245 : vector<8x32xf32>
    %247 = arith.addf %243, %246 : vector<8x32xf32>
    %248 = vector.extract_strided_slice %239 {offsets = [0, 160], sizes = [8, 32], strides = [1, 1]} : vector<8x256xf32> to vector<8x32xf32>
    %c0_114 = arith.constant 0 : index
    %c32_115 = arith.constant 32 : index
    %249 = vector.load %arg19[%c0_114, %c32_115] : memref<8x64xf32, #tpu.memory_space<vmem>>, vector<8x32xf32>
    %250 = arith.mulf %248, %249 : vector<8x32xf32>
    %251 = vector.extract_strided_slice %239 {offsets = [0, 128], sizes = [8, 32], strides = [1, 1]} : vector<8x256xf32> to vector<8x32xf32>
    %252 = vector.extract_strided_slice %240 {offsets = [0, 192], sizes = [8, 32], strides = [1, 1]} : vector<8x256xf32> to vector<8x32xf32>
    %253 = arith.mulf %251, %252 : vector<8x32xf32>
    %254 = arith.addf %250, %253 : vector<8x32xf32>
    %255 = vector.extract_strided_slice %239 {offsets = [0, 96], sizes = [8, 32], strides = [1, 1]} : vector<8x256xf32> to vector<8x32xf32>
    %256 = math.tanh %247 : vector<8x32xf32>
    %257 = arith.mulf %255, %256 : vector<8x32xf32>
    %258 = vector.extract_strided_slice %239 {offsets = [0, 224], sizes = [8, 32], strides = [1, 1]} : vector<8x256xf32> to vector<8x32xf32>
    %259 = math.tanh %254 : vector<8x32xf32>
    %260 = arith.mulf %258, %259 : vector<8x32xf32>
    %261 = tpu.concatenate %247, %254 in 1 : vector<8x32xf32>, vector<8x32xf32> -> vector<8x64xf32>
    %c0_116 = arith.constant 0 : index
    %c0_117 = arith.constant 0 : index
    %262 = vector.load %arg19[%c0_116, %c0_117] : memref<8x64xf32, #tpu.memory_space<vmem>>, vector<8x64xf32>
    tpu.vector_store %arg19[%c0_116, %c0_117], %261 {strides = array<i32>} : memref<8x64xf32, #tpu.memory_space<vmem>>, vector<8x64xf32>,
    %263 = tpu.concatenate %257, %260 in 1 : vector<8x32xf32>, vector<8x32xf32> -> vector<8x64xf32>
    %c0_118 = arith.constant 0 : index
    %c0_119 = arith.constant 0 : index
    %264 = vector.load %arg18[%c0_118, %c0_119] : memref<8x64xf32, #tpu.memory_space<vmem>>, vector<8x64xf32>
    tpu.vector_store %arg18[%c0_118, %c0_119], %263 {strides = array<i32>} : memref<8x64xf32, #tpu.memory_space<vmem>>, vector<8x64xf32>,
    %265 = arith.index_cast %c4_i32 : i32 to index
    %c0_120 = arith.constant 0 : index
    %c0_121 = arith.constant 0 : index
    %266 = vector.load %arg16[%265, %c0_120, %c0_121] : memref<8x8x32xf32, #tpu.memory_space<vmem>>, vector<1x8x32xf32>
    %267 = vector.shape_cast %266 : vector<1x8x32xf32> to vector<8x32xf32>
    %268 = vector.shape_cast %257 : vector<8x32xf32> to vector<1x8x32xf32>
    tpu.vector_store %arg16[%265, %c0_120, %c0_121], %268 {strides = array<i32>} : memref<8x8x32xf32, #tpu.memory_space<vmem>>, vector<1x8x32xf32>,
    %c7_i32_122 = arith.constant 7 : i32
    %269 = arith.subi %c7_i32_122, %c4_i32 : i32
    %270 = arith.index_cast %269 : i32 to index
    %c0_123 = arith.constant 0 : index
    %c0_124 = arith.constant 0 : index
    %271 = vector.load %arg17[%270, %c0_123, %c0_124] : memref<8x8x32xf32, #tpu.memory_space<vmem>>, vector<1x8x32xf32>
    %272 = vector.shape_cast %271 : vector<1x8x32xf32> to vector<8x32xf32>
    %273 = vector.shape_cast %260 : vector<8x32xf32> to vector<1x8x32xf32>
    tpu.vector_store %arg17[%270, %c0_123, %c0_124], %273 {strides = array<i32>} : memref<8x8x32xf32, #tpu.memory_space<vmem>>, vector<1x8x32xf32>,
    %c5_i32 = arith.constant 5 : i32
    %274 = arith.index_cast %c5_i32 : i32 to index
    %c0_125 = arith.constant 0 : index
    %c0_126 = arith.constant 0 : index
    %275 = vector.load %arg15[%274, %c0_125, %c0_126] : memref<8x8x256xf32, #tpu.memory_space<vmem>>, vector<1x8x256xf32>
    %276 = vector.shape_cast %275 : vector<1x8x256xf32> to vector<8x256xf32>
    %c7_i32_127 = arith.constant 7 : i32
    %277 = arith.subi %c7_i32_127, %c5_i32 : i32
    %278 = arith.index_cast %277 : i32 to index
    %c0_128 = arith.constant 0 : index
    %c0_129 = arith.constant 0 : index
    %279 = vector.load %arg15[%278, %c0_128, %c0_129] : memref<8x8x256xf32, #tpu.memory_space<vmem>>, vector<1x8x256xf32>
    %280 = vector.shape_cast %279 : vector<1x8x256xf32> to vector<8x256xf32>
    %281 = vector.extract_strided_slice %276 {offsets = [0, 0], sizes = [8, 128], strides = [1, 1]} : vector<8x256xf32> to vector<8x128xf32>
    %282 = vector.extract_strided_slice %280 {offsets = [0, 128], sizes = [8, 128], strides = [1, 1]} : vector<8x256xf32> to vector<8x128xf32>
    %283 = tpu.concatenate %281, %282 in 1 : vector<8x128xf32>, vector<8x128xf32> -> vector<8x256xf32>
    %c0_130 = arith.constant 0 : index
    %c0_131 = arith.constant 0 : index
    %284 = vector.load %arg18[%c0_130, %c0_131] : memref<8x64xf32, #tpu.memory_space<vmem>>, vector<8x64xf32>
    %cst_132 = arith.constant dense<0.000000e+00> : vector<8x256xf32>
    %285 = tpu.matmul %284, %13, %cst_132 {dimension_numbers = #tpu.dot_dimension_numbers<[1], [0], [0], [1], [0, 0, 1, 1], [], []>} : vector<8x64xf32>, vector<64x256xf32>, vector<8x256xf32> -> vector<8x256xf32>
    %286 = arith.addf %283, %285 : vector<8x256xf32>
    %287 = arith.negf %286 : vector<8x256xf32>
    %288 = math.exp %287 : vector<8x256xf32>
    %cst_133 = arith.constant 1.000000e+00 : f32
    %289 = vector.broadcast %cst_133 : f32 to vector<8x256xf32>
    %290 = arith.addf %289, %288 : vector<8x256xf32>
    %291 = arith.divf %289, %290 : vector<8x256xf32>
    %292 = math.tanh %286 : vector<8x256xf32>
    %293 = vector.extract_strided_slice %291 {offsets = [0, 32], sizes = [8, 32], strides = [1, 1]} : vector<8x256xf32> to vector<8x32xf32>
    %c0_134 = arith.constant 0 : index
    %c0_135 = arith.constant 0 : index
    %294 = vector.load %arg19[%c0_134, %c0_135] : memref<8x64xf32, #tpu.memory_space<vmem>>, vector<8x32xf32>
    %295 = arith.mulf %293, %294 : vector<8x32xf32>
    %296 = vector.extract_strided_slice %291 {offsets = [0, 0], sizes = [8, 32], strides = [1, 1]} : vector<8x256xf32> to vector<8x32xf32>
    %297 = vector.extract_strided_slice %292 {offsets = [0, 64], sizes = [8, 32], strides = [1, 1]} : vector<8x256xf32> to vector<8x32xf32>
    %298 = arith.mulf %296, %297 : vector<8x32xf32>
    %299 = arith.addf %295, %298 : vector<8x32xf32>
    %300 = vector.extract_strided_slice %291 {offsets = [0, 160], sizes = [8, 32], strides = [1, 1]} : vector<8x256xf32> to vector<8x32xf32>
    %c0_136 = arith.constant 0 : index
    %c32_137 = arith.constant 32 : index
    %301 = vector.load %arg19[%c0_136, %c32_137] : memref<8x64xf32, #tpu.memory_space<vmem>>, vector<8x32xf32>
    %302 = arith.mulf %300, %301 : vector<8x32xf32>
    %303 = vector.extract_strided_slice %291 {offsets = [0, 128], sizes = [8, 32], strides = [1, 1]} : vector<8x256xf32> to vector<8x32xf32>
    %304 = vector.extract_strided_slice %292 {offsets = [0, 192], sizes = [8, 32], strides = [1, 1]} : vector<8x256xf32> to vector<8x32xf32>
    %305 = arith.mulf %303, %304 : vector<8x32xf32>
    %306 = arith.addf %302, %305 : vector<8x32xf32>
    %307 = vector.extract_strided_slice %291 {offsets = [0, 96], sizes = [8, 32], strides = [1, 1]} : vector<8x256xf32> to vector<8x32xf32>
    %308 = math.tanh %299 : vector<8x32xf32>
    %309 = arith.mulf %307, %308 : vector<8x32xf32>
    %310 = vector.extract_strided_slice %291 {offsets = [0, 224], sizes = [8, 32], strides = [1, 1]} : vector<8x256xf32> to vector<8x32xf32>
    %311 = math.tanh %306 : vector<8x32xf32>
    %312 = arith.mulf %310, %311 : vector<8x32xf32>
    %313 = tpu.concatenate %299, %306 in 1 : vector<8x32xf32>, vector<8x32xf32> -> vector<8x64xf32>
    %c0_138 = arith.constant 0 : index
    %c0_139 = arith.constant 0 : index
    %314 = vector.load %arg19[%c0_138, %c0_139] : memref<8x64xf32, #tpu.memory_space<vmem>>, vector<8x64xf32>
    tpu.vector_store %arg19[%c0_138, %c0_139], %313 {strides = array<i32>} : memref<8x64xf32, #tpu.memory_space<vmem>>, vector<8x64xf32>,
    %315 = tpu.concatenate %309, %312 in 1 : vector<8x32xf32>, vector<8x32xf32> -> vector<8x64xf32>
    %c0_140 = arith.constant 0 : index
    %c0_141 = arith.constant 0 : index
    %316 = vector.load %arg18[%c0_140, %c0_141] : memref<8x64xf32, #tpu.memory_space<vmem>>, vector<8x64xf32>
    tpu.vector_store %arg18[%c0_140, %c0_141], %315 {strides = array<i32>} : memref<8x64xf32, #tpu.memory_space<vmem>>, vector<8x64xf32>,
    %317 = arith.index_cast %c5_i32 : i32 to index
    %c0_142 = arith.constant 0 : index
    %c0_143 = arith.constant 0 : index
    %318 = vector.load %arg16[%317, %c0_142, %c0_143] : memref<8x8x32xf32, #tpu.memory_space<vmem>>, vector<1x8x32xf32>
    %319 = vector.shape_cast %318 : vector<1x8x32xf32> to vector<8x32xf32>
    %320 = vector.shape_cast %309 : vector<8x32xf32> to vector<1x8x32xf32>
    tpu.vector_store %arg16[%317, %c0_142, %c0_143], %320 {strides = array<i32>} : memref<8x8x32xf32, #tpu.memory_space<vmem>>, vector<1x8x32xf32>,
    %c7_i32_144 = arith.constant 7 : i32
    %321 = arith.subi %c7_i32_144, %c5_i32 : i32
    %322 = arith.index_cast %321 : i32 to index
    %c0_145 = arith.constant 0 : index
    %c0_146 = arith.constant 0 : index
    %323 = vector.load %arg17[%322, %c0_145, %c0_146] : memref<8x8x32xf32, #tpu.memory_space<vmem>>, vector<1x8x32xf32>
    %324 = vector.shape_cast %323 : vector<1x8x32xf32> to vector<8x32xf32>
    %325 = vector.shape_cast %312 : vector<8x32xf32> to vector<1x8x32xf32>
    tpu.vector_store %arg17[%322, %c0_145, %c0_146], %325 {strides = array<i32>} : memref<8x8x32xf32, #tpu.memory_space<vmem>>, vector<1x8x32xf32>,
    %c6_i32 = arith.constant 6 : i32
    %326 = arith.index_cast %c6_i32 : i32 to index
    %c0_147 = arith.constant 0 : index
    %c0_148 = arith.constant 0 : index
    %327 = vector.load %arg15[%326, %c0_147, %c0_148] : memref<8x8x256xf32, #tpu.memory_space<vmem>>, vector<1x8x256xf32>
    %328 = vector.shape_cast %327 : vector<1x8x256xf32> to vector<8x256xf32>
    %c7_i32_149 = arith.constant 7 : i32
    %329 = arith.subi %c7_i32_149, %c6_i32 : i32
    %330 = arith.index_cast %329 : i32 to index
    %c0_150 = arith.constant 0 : index
    %c0_151 = arith.constant 0 : index
    %331 = vector.load %arg15[%330, %c0_150, %c0_151] : memref<8x8x256xf32, #tpu.memory_space<vmem>>, vector<1x8x256xf32>
    %332 = vector.shape_cast %331 : vector<1x8x256xf32> to vector<8x256xf32>
    %333 = vector.extract_strided_slice %328 {offsets = [0, 0], sizes = [8, 128], strides = [1, 1]} : vector<8x256xf32> to vector<8x128xf32>
    %334 = vector.extract_strided_slice %332 {offsets = [0, 128], sizes = [8, 128], strides = [1, 1]} : vector<8x256xf32> to vector<8x128xf32>
    %335 = tpu.concatenate %333, %334 in 1 : vector<8x128xf32>, vector<8x128xf32> -> vector<8x256xf32>
    %c0_152 = arith.constant 0 : index
    %c0_153 = arith.constant 0 : index
    %336 = vector.load %arg18[%c0_152, %c0_153] : memref<8x64xf32, #tpu.memory_space<vmem>>, vector<8x64xf32>
    %cst_154 = arith.constant dense<0.000000e+00> : vector<8x256xf32>
    %337 = tpu.matmul %336, %13, %cst_154 {dimension_numbers = #tpu.dot_dimension_numbers<[1], [0], [0], [1], [0, 0, 1, 1], [], []>} : vector<8x64xf32>, vector<64x256xf32>, vector<8x256xf32> -> vector<8x256xf32>
    %338 = arith.addf %335, %337 : vector<8x256xf32>
    %339 = arith.negf %338 : vector<8x256xf32>
    %340 = math.exp %339 : vector<8x256xf32>
    %cst_155 = arith.constant 1.000000e+00 : f32
    %341 = vector.broadcast %cst_155 : f32 to vector<8x256xf32>
    %342 = arith.addf %341, %340 : vector<8x256xf32>
    %343 = arith.divf %341, %342 : vector<8x256xf32>
    %344 = math.tanh %338 : vector<8x256xf32>
    %345 = vector.extract_strided_slice %343 {offsets = [0, 32], sizes = [8, 32], strides = [1, 1]} : vector<8x256xf32> to vector<8x32xf32>
    %c0_156 = arith.constant 0 : index
    %c0_157 = arith.constant 0 : index
    %346 = vector.load %arg19[%c0_156, %c0_157] : memref<8x64xf32, #tpu.memory_space<vmem>>, vector<8x32xf32>
    %347 = arith.mulf %345, %346 : vector<8x32xf32>
    %348 = vector.extract_strided_slice %343 {offsets = [0, 0], sizes = [8, 32], strides = [1, 1]} : vector<8x256xf32> to vector<8x32xf32>
    %349 = vector.extract_strided_slice %344 {offsets = [0, 64], sizes = [8, 32], strides = [1, 1]} : vector<8x256xf32> to vector<8x32xf32>
    %350 = arith.mulf %348, %349 : vector<8x32xf32>
    %351 = arith.addf %347, %350 : vector<8x32xf32>
    %352 = vector.extract_strided_slice %343 {offsets = [0, 160], sizes = [8, 32], strides = [1, 1]} : vector<8x256xf32> to vector<8x32xf32>
    %c0_158 = arith.constant 0 : index
    %c32_159 = arith.constant 32 : index
    %353 = vector.load %arg19[%c0_158, %c32_159] : memref<8x64xf32, #tpu.memory_space<vmem>>, vector<8x32xf32>
    %354 = arith.mulf %352, %353 : vector<8x32xf32>
    %355 = vector.extract_strided_slice %343 {offsets = [0, 128], sizes = [8, 32], strides = [1, 1]} : vector<8x256xf32> to vector<8x32xf32>
    %356 = vector.extract_strided_slice %344 {offsets = [0, 192], sizes = [8, 32], strides = [1, 1]} : vector<8x256xf32> to vector<8x32xf32>
    %357 = arith.mulf %355, %356 : vector<8x32xf32>
    %358 = arith.addf %354, %357 : vector<8x32xf32>
    %359 = vector.extract_strided_slice %343 {offsets = [0, 96], sizes = [8, 32], strides = [1, 1]} : vector<8x256xf32> to vector<8x32xf32>
    %360 = math.tanh %351 : vector<8x32xf32>
    %361 = arith.mulf %359, %360 : vector<8x32xf32>
    %362 = vector.extract_strided_slice %343 {offsets = [0, 224], sizes = [8, 32], strides = [1, 1]} : vector<8x256xf32> to vector<8x32xf32>
    %363 = math.tanh %358 : vector<8x32xf32>
    %364 = arith.mulf %362, %363 : vector<8x32xf32>
    %365 = tpu.concatenate %351, %358 in 1 : vector<8x32xf32>, vector<8x32xf32> -> vector<8x64xf32>
    %c0_160 = arith.constant 0 : index
    %c0_161 = arith.constant 0 : index
    %366 = vector.load %arg19[%c0_160, %c0_161] : memref<8x64xf32, #tpu.memory_space<vmem>>, vector<8x64xf32>
    tpu.vector_store %arg19[%c0_160, %c0_161], %365 {strides = array<i32>} : memref<8x64xf32, #tpu.memory_space<vmem>>, vector<8x64xf32>,
    %367 = tpu.concatenate %361, %364 in 1 : vector<8x32xf32>, vector<8x32xf32> -> vector<8x64xf32>
    %c0_162 = arith.constant 0 : index
    %c0_163 = arith.constant 0 : index
    %368 = vector.load %arg18[%c0_162, %c0_163] : memref<8x64xf32, #tpu.memory_space<vmem>>, vector<8x64xf32>
    tpu.vector_store %arg18[%c0_162, %c0_163], %367 {strides = array<i32>} : memref<8x64xf32, #tpu.memory_space<vmem>>, vector<8x64xf32>,
    %369 = arith.index_cast %c6_i32 : i32 to index
    %c0_164 = arith.constant 0 : index
    %c0_165 = arith.constant 0 : index
    %370 = vector.load %arg16[%369, %c0_164, %c0_165] : memref<8x8x32xf32, #tpu.memory_space<vmem>>, vector<1x8x32xf32>
    %371 = vector.shape_cast %370 : vector<1x8x32xf32> to vector<8x32xf32>
    %372 = vector.shape_cast %361 : vector<8x32xf32> to vector<1x8x32xf32>
    tpu.vector_store %arg16[%369, %c0_164, %c0_165], %372 {strides = array<i32>} : memref<8x8x32xf32, #tpu.memory_space<vmem>>, vector<1x8x32xf32>,
    %c7_i32_166 = arith.constant 7 : i32
    %373 = arith.subi %c7_i32_166, %c6_i32 : i32
    %374 = arith.index_cast %373 : i32 to index
    %c0_167 = arith.constant 0 : index
    %c0_168 = arith.constant 0 : index
    %375 = vector.load %arg17[%374, %c0_167, %c0_168] : memref<8x8x32xf32, #tpu.memory_space<vmem>>, vector<1x8x32xf32>
    %376 = vector.shape_cast %375 : vector<1x8x32xf32> to vector<8x32xf32>
    %377 = vector.shape_cast %364 : vector<8x32xf32> to vector<1x8x32xf32>
    tpu.vector_store %arg17[%374, %c0_167, %c0_168], %377 {strides = array<i32>} : memref<8x8x32xf32, #tpu.memory_space<vmem>>, vector<1x8x32xf32>,
    %c7_i32_169 = arith.constant 7 : i32
    %378 = arith.index_cast %c7_i32_169 : i32 to index
    %c0_170 = arith.constant 0 : index
    %c0_171 = arith.constant 0 : index
    %379 = vector.load %arg15[%378, %c0_170, %c0_171] : memref<8x8x256xf32, #tpu.memory_space<vmem>>, vector<1x8x256xf32>
    %380 = vector.shape_cast %379 : vector<1x8x256xf32> to vector<8x256xf32>
    %c7_i32_172 = arith.constant 7 : i32
    %381 = arith.subi %c7_i32_172, %c7_i32_169 : i32
    %382 = arith.index_cast %381 : i32 to index
    %c0_173 = arith.constant 0 : index
    %c0_174 = arith.constant 0 : index
    %383 = vector.load %arg15[%382, %c0_173, %c0_174] : memref<8x8x256xf32, #tpu.memory_space<vmem>>, vector<1x8x256xf32>
    %384 = vector.shape_cast %383 : vector<1x8x256xf32> to vector<8x256xf32>
    %385 = vector.extract_strided_slice %380 {offsets = [0, 0], sizes = [8, 128], strides = [1, 1]} : vector<8x256xf32> to vector<8x128xf32>
    %386 = vector.extract_strided_slice %384 {offsets = [0, 128], sizes = [8, 128], strides = [1, 1]} : vector<8x256xf32> to vector<8x128xf32>
    %387 = tpu.concatenate %385, %386 in 1 : vector<8x128xf32>, vector<8x128xf32> -> vector<8x256xf32>
    %c0_175 = arith.constant 0 : index
    %c0_176 = arith.constant 0 : index
    %388 = vector.load %arg18[%c0_175, %c0_176] : memref<8x64xf32, #tpu.memory_space<vmem>>, vector<8x64xf32>
    %cst_177 = arith.constant dense<0.000000e+00> : vector<8x256xf32>
    %389 = tpu.matmul %388, %13, %cst_177 {dimension_numbers = #tpu.dot_dimension_numbers<[1], [0], [0], [1], [0, 0, 1, 1], [], []>} : vector<8x64xf32>, vector<64x256xf32>, vector<8x256xf32> -> vector<8x256xf32>
    %390 = arith.addf %387, %389 : vector<8x256xf32>
    %391 = arith.negf %390 : vector<8x256xf32>
    %392 = math.exp %391 : vector<8x256xf32>
    %cst_178 = arith.constant 1.000000e+00 : f32
    %393 = vector.broadcast %cst_178 : f32 to vector<8x256xf32>
    %394 = arith.addf %393, %392 : vector<8x256xf32>
    %395 = arith.divf %393, %394 : vector<8x256xf32>
    %396 = math.tanh %390 : vector<8x256xf32>
    %397 = vector.extract_strided_slice %395 {offsets = [0, 32], sizes = [8, 32], strides = [1, 1]} : vector<8x256xf32> to vector<8x32xf32>
    %c0_179 = arith.constant 0 : index
    %c0_180 = arith.constant 0 : index
    %398 = vector.load %arg19[%c0_179, %c0_180] : memref<8x64xf32, #tpu.memory_space<vmem>>, vector<8x32xf32>
    %399 = arith.mulf %397, %398 : vector<8x32xf32>
    %400 = vector.extract_strided_slice %395 {offsets = [0, 0], sizes = [8, 32], strides = [1, 1]} : vector<8x256xf32> to vector<8x32xf32>
    %401 = vector.extract_strided_slice %396 {offsets = [0, 64], sizes = [8, 32], strides = [1, 1]} : vector<8x256xf32> to vector<8x32xf32>
    %402 = arith.mulf %400, %401 : vector<8x32xf32>
    %403 = arith.addf %399, %402 : vector<8x32xf32>
    %404 = vector.extract_strided_slice %395 {offsets = [0, 160], sizes = [8, 32], strides = [1, 1]} : vector<8x256xf32> to vector<8x32xf32>
    %c0_181 = arith.constant 0 : index
    %c32_182 = arith.constant 32 : index
    %405 = vector.load %arg19[%c0_181, %c32_182] : memref<8x64xf32, #tpu.memory_space<vmem>>, vector<8x32xf32>
    %406 = arith.mulf %404, %405 : vector<8x32xf32>
    %407 = vector.extract_strided_slice %395 {offsets = [0, 128], sizes = [8, 32], strides = [1, 1]} : vector<8x256xf32> to vector<8x32xf32>
    %408 = vector.extract_strided_slice %396 {offsets = [0, 192], sizes = [8, 32], strides = [1, 1]} : vector<8x256xf32> to vector<8x32xf32>
    %409 = arith.mulf %407, %408 : vector<8x32xf32>
    %410 = arith.addf %406, %409 : vector<8x32xf32>
    %411 = vector.extract_strided_slice %395 {offsets = [0, 96], sizes = [8, 32], strides = [1, 1]} : vector<8x256xf32> to vector<8x32xf32>
    %412 = math.tanh %403 : vector<8x32xf32>
    %413 = arith.mulf %411, %412 : vector<8x32xf32>
    %414 = vector.extract_strided_slice %395 {offsets = [0, 224], sizes = [8, 32], strides = [1, 1]} : vector<8x256xf32> to vector<8x32xf32>
    %415 = math.tanh %410 : vector<8x32xf32>
    %416 = arith.mulf %414, %415 : vector<8x32xf32>
    %417 = tpu.concatenate %403, %410 in 1 : vector<8x32xf32>, vector<8x32xf32> -> vector<8x64xf32>
    %c0_183 = arith.constant 0 : index
    %c0_184 = arith.constant 0 : index
    %418 = vector.load %arg19[%c0_183, %c0_184] : memref<8x64xf32, #tpu.memory_space<vmem>>, vector<8x64xf32>
    tpu.vector_store %arg19[%c0_183, %c0_184], %417 {strides = array<i32>} : memref<8x64xf32, #tpu.memory_space<vmem>>, vector<8x64xf32>,
    %419 = tpu.concatenate %413, %416 in 1 : vector<8x32xf32>, vector<8x32xf32> -> vector<8x64xf32>
    %c0_185 = arith.constant 0 : index
    %c0_186 = arith.constant 0 : index
    %420 = vector.load %arg18[%c0_185, %c0_186] : memref<8x64xf32, #tpu.memory_space<vmem>>, vector<8x64xf32>
    tpu.vector_store %arg18[%c0_185, %c0_186], %419 {strides = array<i32>} : memref<8x64xf32, #tpu.memory_space<vmem>>, vector<8x64xf32>,
    %421 = arith.index_cast %c7_i32_169 : i32 to index
    %c0_187 = arith.constant 0 : index
    %c0_188 = arith.constant 0 : index
    %422 = vector.load %arg16[%421, %c0_187, %c0_188] : memref<8x8x32xf32, #tpu.memory_space<vmem>>, vector<1x8x32xf32>
    %423 = vector.shape_cast %422 : vector<1x8x32xf32> to vector<8x32xf32>
    %424 = vector.shape_cast %413 : vector<8x32xf32> to vector<1x8x32xf32>
    tpu.vector_store %arg16[%421, %c0_187, %c0_188], %424 {strides = array<i32>} : memref<8x8x32xf32, #tpu.memory_space<vmem>>, vector<1x8x32xf32>,
    %c7_i32_189 = arith.constant 7 : i32
    %425 = arith.subi %c7_i32_189, %c7_i32_169 : i32
    %426 = arith.index_cast %425 : i32 to index
    %c0_190 = arith.constant 0 : index
    %c0_191 = arith.constant 0 : index
    %427 = vector.load %arg17[%426, %c0_190, %c0_191] : memref<8x8x32xf32, #tpu.memory_space<vmem>>, vector<1x8x32xf32>
    %428 = vector.shape_cast %427 : vector<1x8x32xf32> to vector<8x32xf32>
    %429 = vector.shape_cast %416 : vector<8x32xf32> to vector<1x8x32xf32>
    tpu.vector_store %arg17[%426, %c0_190, %c0_191], %429 {strides = array<i32>} : memref<8x8x32xf32, #tpu.memory_space<vmem>>, vector<1x8x32xf32>,
    %c8_i32 = arith.constant 8 : i32
    %c0_192 = arith.constant 0 : index
    %c0_193 = arith.constant 0 : index
    %430 = vector.load %arg4[%c0_192, %c0_193] : memref<64x256xf32, #tpu.memory_space<vmem>>, vector<64x256xf32>
    %c0_194 = arith.constant 0 : index
    %c0_195 = arith.constant 0 : index
    %c0_196 = arith.constant 0 : index
    %431 = vector.load %arg16[%c0_194, %c0_195, %c0_196] : memref<8x8x32xf32, #tpu.memory_space<vmem>>, vector<8x8x32xf32>
    %432 = vector.shape_cast %431 : vector<8x8x32xf32> to vector<64x32xf32>
    %433 = vector.extract_strided_slice %430 {offsets = [0, 0], sizes = [32, 256], strides = [1, 1]} : vector<64x256xf32> to vector<32x256xf32>
    %cst_197 = arith.constant dense<0.000000e+00> : vector<64x256xf32>
    %434 = tpu.matmul %432, %433, %cst_197 {dimension_numbers = #tpu.dot_dimension_numbers<[1], [0], [0], [1], [0, 0, 1, 1], [], []>} : vector<64x32xf32>, vector<32x256xf32>, vector<64x256xf32> -> vector<64x256xf32>
    %c0_198 = arith.constant 0 : index
    %c0_199 = arith.constant 0 : index
    %c0_200 = arith.constant 0 : index
    %435 = vector.load %arg17[%c0_198, %c0_199, %c0_200] : memref<8x8x32xf32, #tpu.memory_space<vmem>>, vector<8x8x32xf32>
    %436 = vector.shape_cast %435 : vector<8x8x32xf32> to vector<64x32xf32>
    %437 = vector.extract_strided_slice %430 {offsets = [32, 0], sizes = [32, 256], strides = [1, 1]} : vector<64x256xf32> to vector<32x256xf32>
    %cst_201 = arith.constant dense<0.000000e+00> : vector<64x256xf32>
    %438 = tpu.matmul %436, %437, %cst_201 {dimension_numbers = #tpu.dot_dimension_numbers<[1], [0], [0], [1], [0, 0, 1, 1], [], []>} : vector<64x32xf32>, vector<32x256xf32>, vector<64x256xf32> -> vector<64x256xf32>
    %439 = arith.addf %434, %438 : vector<64x256xf32>
    %c0_202 = arith.constant 0 : index
    %c0_203 = arith.constant 0 : index
    %440 = vector.load %arg6[%c0_202, %c0_203] : memref<1x256xf32, #tpu.memory_space<vmem>>, vector<1x256xf32>
    %441 = vector.broadcast %440 : vector<1x256xf32> to vector<64x256xf32>
    %442 = arith.addf %439, %441 : vector<64x256xf32>
    %443 = vector.shape_cast %442 : vector<64x256xf32> to vector<8x8x256xf32>
    %c0_204 = arith.constant 0 : index
    %c0_205 = arith.constant 0 : index
    %c0_206 = arith.constant 0 : index
    %444 = vector.load %arg15[%c0_204, %c0_205, %c0_206] : memref<8x8x256xf32, #tpu.memory_space<vmem>>, vector<8x8x256xf32>
    tpu.vector_store %arg15[%c0_204, %c0_205, %c0_206], %443 {strides = array<i32>} : memref<8x8x256xf32, #tpu.memory_space<vmem>>, vector<8x8x256xf32>,
    %cst_207 = arith.constant 0.000000e+00 : f32
    %445 = vector.broadcast %cst_207 : f32 to vector<8x64xf32>
    %c0_208 = arith.constant 0 : index
    %c0_209 = arith.constant 0 : index
    %446 = vector.load %arg18[%c0_208, %c0_209] : memref<8x64xf32, #tpu.memory_space<vmem>>, vector<8x64xf32>
    tpu.vector_store %arg18[%c0_208, %c0_209], %445 {strides = array<i32>} : memref<8x64xf32, #tpu.memory_space<vmem>>, vector<8x64xf32>,
    %cst_210 = arith.constant 0.000000e+00 : f32
    %447 = vector.broadcast %cst_210 : f32 to vector<8x64xf32>
    %c0_211 = arith.constant 0 : index
    %c0_212 = arith.constant 0 : index
    %448 = vector.load %arg19[%c0_211, %c0_212] : memref<8x64xf32, #tpu.memory_space<vmem>>, vector<8x64xf32>
    tpu.vector_store %arg19[%c0_211, %c0_212], %447 {strides = array<i32>} : memref<8x64xf32, #tpu.memory_space<vmem>>, vector<8x64xf32>,
    %c0_213 = arith.constant 0 : index
    %c0_214 = arith.constant 0 : index
    %449 = vector.load %arg5[%c0_213, %c0_214] : memref<64x256xf32, #tpu.memory_space<vmem>>, vector<64x256xf32>
    %c0_i32_215 = arith.constant 0 : i32
    %450 = arith.index_cast %c0_i32_215 : i32 to index
    %c0_216 = arith.constant 0 : index
    %c0_217 = arith.constant 0 : index
    %451 = vector.load %arg15[%450, %c0_216, %c0_217] : memref<8x8x256xf32, #tpu.memory_space<vmem>>, vector<1x8x256xf32>
    %452 = vector.shape_cast %451 : vector<1x8x256xf32> to vector<8x256xf32>
    %c7_i32_218 = arith.constant 7 : i32
    %453 = arith.subi %c7_i32_218, %c0_i32_215 : i32
    %454 = arith.index_cast %453 : i32 to index
    %c0_219 = arith.constant 0 : index
    %c0_220 = arith.constant 0 : index
    %455 = vector.load %arg15[%454, %c0_219, %c0_220] : memref<8x8x256xf32, #tpu.memory_space<vmem>>, vector<1x8x256xf32>
    %456 = vector.shape_cast %455 : vector<1x8x256xf32> to vector<8x256xf32>
    %457 = vector.extract_strided_slice %452 {offsets = [0, 0], sizes = [8, 128], strides = [1, 1]} : vector<8x256xf32> to vector<8x128xf32>
    %458 = vector.extract_strided_slice %456 {offsets = [0, 128], sizes = [8, 128], strides = [1, 1]} : vector<8x256xf32> to vector<8x128xf32>
    %459 = tpu.concatenate %457, %458 in 1 : vector<8x128xf32>, vector<8x128xf32> -> vector<8x256xf32>
    %c0_221 = arith.constant 0 : index
    %c0_222 = arith.constant 0 : index
    %460 = vector.load %arg18[%c0_221, %c0_222] : memref<8x64xf32, #tpu.memory_space<vmem>>, vector<8x64xf32>
    %cst_223 = arith.constant dense<0.000000e+00> : vector<8x256xf32>
    %461 = tpu.matmul %460, %449, %cst_223 {dimension_numbers = #tpu.dot_dimension_numbers<[1], [0], [0], [1], [0, 0, 1, 1], [], []>} : vector<8x64xf32>, vector<64x256xf32>, vector<8x256xf32> -> vector<8x256xf32>
    %462 = arith.addf %459, %461 : vector<8x256xf32>
    %463 = arith.negf %462 : vector<8x256xf32>
    %464 = math.exp %463 : vector<8x256xf32>
    %cst_224 = arith.constant 1.000000e+00 : f32
    %465 = vector.broadcast %cst_224 : f32 to vector<8x256xf32>
    %466 = arith.addf %465, %464 : vector<8x256xf32>
    %467 = arith.divf %465, %466 : vector<8x256xf32>
    %468 = math.tanh %462 : vector<8x256xf32>
    %469 = vector.extract_strided_slice %467 {offsets = [0, 32], sizes = [8, 32], strides = [1, 1]} : vector<8x256xf32> to vector<8x32xf32>
    %c0_225 = arith.constant 0 : index
    %c0_226 = arith.constant 0 : index
    %470 = vector.load %arg19[%c0_225, %c0_226] : memref<8x64xf32, #tpu.memory_space<vmem>>, vector<8x32xf32>
    %471 = arith.mulf %469, %470 : vector<8x32xf32>
    %472 = vector.extract_strided_slice %467 {offsets = [0, 0], sizes = [8, 32], strides = [1, 1]} : vector<8x256xf32> to vector<8x32xf32>
    %473 = vector.extract_strided_slice %468 {offsets = [0, 64], sizes = [8, 32], strides = [1, 1]} : vector<8x256xf32> to vector<8x32xf32>
    %474 = arith.mulf %472, %473 : vector<8x32xf32>
    %475 = arith.addf %471, %474 : vector<8x32xf32>
    %476 = vector.extract_strided_slice %467 {offsets = [0, 160], sizes = [8, 32], strides = [1, 1]} : vector<8x256xf32> to vector<8x32xf32>
    %c0_227 = arith.constant 0 : index
    %c32_228 = arith.constant 32 : index
    %477 = vector.load %arg19[%c0_227, %c32_228] : memref<8x64xf32, #tpu.memory_space<vmem>>, vector<8x32xf32>
    %478 = arith.mulf %476, %477 : vector<8x32xf32>
    %479 = vector.extract_strided_slice %467 {offsets = [0, 128], sizes = [8, 32], strides = [1, 1]} : vector<8x256xf32> to vector<8x32xf32>
    %480 = vector.extract_strided_slice %468 {offsets = [0, 192], sizes = [8, 32], strides = [1, 1]} : vector<8x256xf32> to vector<8x32xf32>
    %481 = arith.mulf %479, %480 : vector<8x32xf32>
    %482 = arith.addf %478, %481 : vector<8x32xf32>
    %483 = vector.extract_strided_slice %467 {offsets = [0, 96], sizes = [8, 32], strides = [1, 1]} : vector<8x256xf32> to vector<8x32xf32>
    %484 = math.tanh %475 : vector<8x32xf32>
    %485 = arith.mulf %483, %484 : vector<8x32xf32>
    %486 = vector.extract_strided_slice %467 {offsets = [0, 224], sizes = [8, 32], strides = [1, 1]} : vector<8x256xf32> to vector<8x32xf32>
    %487 = math.tanh %482 : vector<8x32xf32>
    %488 = arith.mulf %486, %487 : vector<8x32xf32>
    %489 = tpu.concatenate %475, %482 in 1 : vector<8x32xf32>, vector<8x32xf32> -> vector<8x64xf32>
    %c0_229 = arith.constant 0 : index
    %c0_230 = arith.constant 0 : index
    %490 = vector.load %arg19[%c0_229, %c0_230] : memref<8x64xf32, #tpu.memory_space<vmem>>, vector<8x64xf32>
    tpu.vector_store %arg19[%c0_229, %c0_230], %489 {strides = array<i32>} : memref<8x64xf32, #tpu.memory_space<vmem>>, vector<8x64xf32>,
    %491 = tpu.concatenate %485, %488 in 1 : vector<8x32xf32>, vector<8x32xf32> -> vector<8x64xf32>
    %c0_231 = arith.constant 0 : index
    %c0_232 = arith.constant 0 : index
    %492 = vector.load %arg18[%c0_231, %c0_232] : memref<8x64xf32, #tpu.memory_space<vmem>>, vector<8x64xf32>
    tpu.vector_store %arg18[%c0_231, %c0_232], %491 {strides = array<i32>} : memref<8x64xf32, #tpu.memory_space<vmem>>, vector<8x64xf32>,
    %493 = arith.index_cast %c0_i32_215 : i32 to index
    %c0_233 = arith.constant 0 : index
    %c0_234 = arith.constant 0 : index
    %494 = vector.load %arg16[%493, %c0_233, %c0_234] : memref<8x8x32xf32, #tpu.memory_space<vmem>>, vector<1x8x32xf32>
    %495 = vector.shape_cast %494 : vector<1x8x32xf32> to vector<8x32xf32>
    %496 = vector.shape_cast %485 : vector<8x32xf32> to vector<1x8x32xf32>
    tpu.vector_store %arg16[%493, %c0_233, %c0_234], %496 {strides = array<i32>} : memref<8x8x32xf32, #tpu.memory_space<vmem>>, vector<1x8x32xf32>,
    %c7_i32_235 = arith.constant 7 : i32
    %497 = arith.subi %c7_i32_235, %c0_i32_215 : i32
    %498 = arith.index_cast %497 : i32 to index
    %c0_236 = arith.constant 0 : index
    %c0_237 = arith.constant 0 : index
    %499 = vector.load %arg17[%498, %c0_236, %c0_237] : memref<8x8x32xf32, #tpu.memory_space<vmem>>, vector<1x8x32xf32>
    %500 = vector.shape_cast %499 : vector<1x8x32xf32> to vector<8x32xf32>
    %501 = vector.shape_cast %488 : vector<8x32xf32> to vector<1x8x32xf32>
    tpu.vector_store %arg17[%498, %c0_236, %c0_237], %501 {strides = array<i32>} : memref<8x8x32xf32, #tpu.memory_space<vmem>>, vector<1x8x32xf32>,
    %c1_i32_238 = arith.constant 1 : i32
    %502 = arith.index_cast %c1_i32_238 : i32 to index
    %c0_239 = arith.constant 0 : index
    %c0_240 = arith.constant 0 : index
    %503 = vector.load %arg15[%502, %c0_239, %c0_240] : memref<8x8x256xf32, #tpu.memory_space<vmem>>, vector<1x8x256xf32>
    %504 = vector.shape_cast %503 : vector<1x8x256xf32> to vector<8x256xf32>
    %c7_i32_241 = arith.constant 7 : i32
    %505 = arith.subi %c7_i32_241, %c1_i32_238 : i32
    %506 = arith.index_cast %505 : i32 to index
    %c0_242 = arith.constant 0 : index
    %c0_243 = arith.constant 0 : index
    %507 = vector.load %arg15[%506, %c0_242, %c0_243] : memref<8x8x256xf32, #tpu.memory_space<vmem>>, vector<1x8x256xf32>
    %508 = vector.shape_cast %507 : vector<1x8x256xf32> to vector<8x256xf32>
    %509 = vector.extract_strided_slice %504 {offsets = [0, 0], sizes = [8, 128], strides = [1, 1]} : vector<8x256xf32> to vector<8x128xf32>
    %510 = vector.extract_strided_slice %508 {offsets = [0, 128], sizes = [8, 128], strides = [1, 1]} : vector<8x256xf32> to vector<8x128xf32>
    %511 = tpu.concatenate %509, %510 in 1 : vector<8x128xf32>, vector<8x128xf32> -> vector<8x256xf32>
    %c0_244 = arith.constant 0 : index
    %c0_245 = arith.constant 0 : index
    %512 = vector.load %arg18[%c0_244, %c0_245] : memref<8x64xf32, #tpu.memory_space<vmem>>, vector<8x64xf32>
    %cst_246 = arith.constant dense<0.000000e+00> : vector<8x256xf32>
    %513 = tpu.matmul %512, %449, %cst_246 {dimension_numbers = #tpu.dot_dimension_numbers<[1], [0], [0], [1], [0, 0, 1, 1], [], []>} : vector<8x64xf32>, vector<64x256xf32>, vector<8x256xf32> -> vector<8x256xf32>
    %514 = arith.addf %511, %513 : vector<8x256xf32>
    %515 = arith.negf %514 : vector<8x256xf32>
    %516 = math.exp %515 : vector<8x256xf32>
    %cst_247 = arith.constant 1.000000e+00 : f32
    %517 = vector.broadcast %cst_247 : f32 to vector<8x256xf32>
    %518 = arith.addf %517, %516 : vector<8x256xf32>
    %519 = arith.divf %517, %518 : vector<8x256xf32>
    %520 = math.tanh %514 : vector<8x256xf32>
    %521 = vector.extract_strided_slice %519 {offsets = [0, 32], sizes = [8, 32], strides = [1, 1]} : vector<8x256xf32> to vector<8x32xf32>
    %c0_248 = arith.constant 0 : index
    %c0_249 = arith.constant 0 : index
    %522 = vector.load %arg19[%c0_248, %c0_249] : memref<8x64xf32, #tpu.memory_space<vmem>>, vector<8x32xf32>
    %523 = arith.mulf %521, %522 : vector<8x32xf32>
    %524 = vector.extract_strided_slice %519 {offsets = [0, 0], sizes = [8, 32], strides = [1, 1]} : vector<8x256xf32> to vector<8x32xf32>
    %525 = vector.extract_strided_slice %520 {offsets = [0, 64], sizes = [8, 32], strides = [1, 1]} : vector<8x256xf32> to vector<8x32xf32>
    %526 = arith.mulf %524, %525 : vector<8x32xf32>
    %527 = arith.addf %523, %526 : vector<8x32xf32>
    %528 = vector.extract_strided_slice %519 {offsets = [0, 160], sizes = [8, 32], strides = [1, 1]} : vector<8x256xf32> to vector<8x32xf32>
    %c0_250 = arith.constant 0 : index
    %c32_251 = arith.constant 32 : index
    %529 = vector.load %arg19[%c0_250, %c32_251] : memref<8x64xf32, #tpu.memory_space<vmem>>, vector<8x32xf32>
    %530 = arith.mulf %528, %529 : vector<8x32xf32>
    %531 = vector.extract_strided_slice %519 {offsets = [0, 128], sizes = [8, 32], strides = [1, 1]} : vector<8x256xf32> to vector<8x32xf32>
    %532 = vector.extract_strided_slice %520 {offsets = [0, 192], sizes = [8, 32], strides = [1, 1]} : vector<8x256xf32> to vector<8x32xf32>
    %533 = arith.mulf %531, %532 : vector<8x32xf32>
    %534 = arith.addf %530, %533 : vector<8x32xf32>
    %535 = vector.extract_strided_slice %519 {offsets = [0, 96], sizes = [8, 32], strides = [1, 1]} : vector<8x256xf32> to vector<8x32xf32>
    %536 = math.tanh %527 : vector<8x32xf32>
    %537 = arith.mulf %535, %536 : vector<8x32xf32>
    %538 = vector.extract_strided_slice %519 {offsets = [0, 224], sizes = [8, 32], strides = [1, 1]} : vector<8x256xf32> to vector<8x32xf32>
    %539 = math.tanh %534 : vector<8x32xf32>
    %540 = arith.mulf %538, %539 : vector<8x32xf32>
    %541 = tpu.concatenate %527, %534 in 1 : vector<8x32xf32>, vector<8x32xf32> -> vector<8x64xf32>
    %c0_252 = arith.constant 0 : index
    %c0_253 = arith.constant 0 : index
    %542 = vector.load %arg19[%c0_252, %c0_253] : memref<8x64xf32, #tpu.memory_space<vmem>>, vector<8x64xf32>
    tpu.vector_store %arg19[%c0_252, %c0_253], %541 {strides = array<i32>} : memref<8x64xf32, #tpu.memory_space<vmem>>, vector<8x64xf32>,
    %543 = tpu.concatenate %537, %540 in 1 : vector<8x32xf32>, vector<8x32xf32> -> vector<8x64xf32>
    %c0_254 = arith.constant 0 : index
    %c0_255 = arith.constant 0 : index
    %544 = vector.load %arg18[%c0_254, %c0_255] : memref<8x64xf32, #tpu.memory_space<vmem>>, vector<8x64xf32>
    tpu.vector_store %arg18[%c0_254, %c0_255], %543 {strides = array<i32>} : memref<8x64xf32, #tpu.memory_space<vmem>>, vector<8x64xf32>,
    %545 = arith.index_cast %c1_i32_238 : i32 to index
    %c0_256 = arith.constant 0 : index
    %c0_257 = arith.constant 0 : index
    %546 = vector.load %arg16[%545, %c0_256, %c0_257] : memref<8x8x32xf32, #tpu.memory_space<vmem>>, vector<1x8x32xf32>
    %547 = vector.shape_cast %546 : vector<1x8x32xf32> to vector<8x32xf32>
    %548 = vector.shape_cast %537 : vector<8x32xf32> to vector<1x8x32xf32>
    tpu.vector_store %arg16[%545, %c0_256, %c0_257], %548 {strides = array<i32>} : memref<8x8x32xf32, #tpu.memory_space<vmem>>, vector<1x8x32xf32>,
    %c7_i32_258 = arith.constant 7 : i32
    %549 = arith.subi %c7_i32_258, %c1_i32_238 : i32
    %550 = arith.index_cast %549 : i32 to index
    %c0_259 = arith.constant 0 : index
    %c0_260 = arith.constant 0 : index
    %551 = vector.load %arg17[%550, %c0_259, %c0_260] : memref<8x8x32xf32, #tpu.memory_space<vmem>>, vector<1x8x32xf32>
    %552 = vector.shape_cast %551 : vector<1x8x32xf32> to vector<8x32xf32>
    %553 = vector.shape_cast %540 : vector<8x32xf32> to vector<1x8x32xf32>
    tpu.vector_store %arg17[%550, %c0_259, %c0_260], %553 {strides = array<i32>} : memref<8x8x32xf32, #tpu.memory_space<vmem>>, vector<1x8x32xf32>,
    %c2_i32_261 = arith.constant 2 : i32
    %554 = arith.index_cast %c2_i32_261 : i32 to index
    %c0_262 = arith.constant 0 : index
    %c0_263 = arith.constant 0 : index
    %555 = vector.load %arg15[%554, %c0_262, %c0_263] : memref<8x8x256xf32, #tpu.memory_space<vmem>>, vector<1x8x256xf32>
    %556 = vector.shape_cast %555 : vector<1x8x256xf32> to vector<8x256xf32>
    %c7_i32_264 = arith.constant 7 : i32
    %557 = arith.subi %c7_i32_264, %c2_i32_261 : i32
    %558 = arith.index_cast %557 : i32 to index
    %c0_265 = arith.constant 0 : index
    %c0_266 = arith.constant 0 : index
    %559 = vector.load %arg15[%558, %c0_265, %c0_266] : memref<8x8x256xf32, #tpu.memory_space<vmem>>, vector<1x8x256xf32>
    %560 = vector.shape_cast %559 : vector<1x8x256xf32> to vector<8x256xf32>
    %561 = vector.extract_strided_slice %556 {offsets = [0, 0], sizes = [8, 128], strides = [1, 1]} : vector<8x256xf32> to vector<8x128xf32>
    %562 = vector.extract_strided_slice %560 {offsets = [0, 128], sizes = [8, 128], strides = [1, 1]} : vector<8x256xf32> to vector<8x128xf32>
    %563 = tpu.concatenate %561, %562 in 1 : vector<8x128xf32>, vector<8x128xf32> -> vector<8x256xf32>
    %c0_267 = arith.constant 0 : index
    %c0_268 = arith.constant 0 : index
    %564 = vector.load %arg18[%c0_267, %c0_268] : memref<8x64xf32, #tpu.memory_space<vmem>>, vector<8x64xf32>
    %cst_269 = arith.constant dense<0.000000e+00> : vector<8x256xf32>
    %565 = tpu.matmul %564, %449, %cst_269 {dimension_numbers = #tpu.dot_dimension_numbers<[1], [0], [0], [1], [0, 0, 1, 1], [], []>} : vector<8x64xf32>, vector<64x256xf32>, vector<8x256xf32> -> vector<8x256xf32>
    %566 = arith.addf %563, %565 : vector<8x256xf32>
    %567 = arith.negf %566 : vector<8x256xf32>
    %568 = math.exp %567 : vector<8x256xf32>
    %cst_270 = arith.constant 1.000000e+00 : f32
    %569 = vector.broadcast %cst_270 : f32 to vector<8x256xf32>
    %570 = arith.addf %569, %568 : vector<8x256xf32>
    %571 = arith.divf %569, %570 : vector<8x256xf32>
    %572 = math.tanh %566 : vector<8x256xf32>
    %573 = vector.extract_strided_slice %571 {offsets = [0, 32], sizes = [8, 32], strides = [1, 1]} : vector<8x256xf32> to vector<8x32xf32>
    %c0_271 = arith.constant 0 : index
    %c0_272 = arith.constant 0 : index
    %574 = vector.load %arg19[%c0_271, %c0_272] : memref<8x64xf32, #tpu.memory_space<vmem>>, vector<8x32xf32>
    %575 = arith.mulf %573, %574 : vector<8x32xf32>
    %576 = vector.extract_strided_slice %571 {offsets = [0, 0], sizes = [8, 32], strides = [1, 1]} : vector<8x256xf32> to vector<8x32xf32>
    %577 = vector.extract_strided_slice %572 {offsets = [0, 64], sizes = [8, 32], strides = [1, 1]} : vector<8x256xf32> to vector<8x32xf32>
    %578 = arith.mulf %576, %577 : vector<8x32xf32>
    %579 = arith.addf %575, %578 : vector<8x32xf32>
    %580 = vector.extract_strided_slice %571 {offsets = [0, 160], sizes = [8, 32], strides = [1, 1]} : vector<8x256xf32> to vector<8x32xf32>
    %c0_273 = arith.constant 0 : index
    %c32_274 = arith.constant 32 : index
    %581 = vector.load %arg19[%c0_273, %c32_274] : memref<8x64xf32, #tpu.memory_space<vmem>>, vector<8x32xf32>
    %582 = arith.mulf %580, %581 : vector<8x32xf32>
    %583 = vector.extract_strided_slice %571 {offsets = [0, 128], sizes = [8, 32], strides = [1, 1]} : vector<8x256xf32> to vector<8x32xf32>
    %584 = vector.extract_strided_slice %572 {offsets = [0, 192], sizes = [8, 32], strides = [1, 1]} : vector<8x256xf32> to vector<8x32xf32>
    %585 = arith.mulf %583, %584 : vector<8x32xf32>
    %586 = arith.addf %582, %585 : vector<8x32xf32>
    %587 = vector.extract_strided_slice %571 {offsets = [0, 96], sizes = [8, 32], strides = [1, 1]} : vector<8x256xf32> to vector<8x32xf32>
    %588 = math.tanh %579 : vector<8x32xf32>
    %589 = arith.mulf %587, %588 : vector<8x32xf32>
    %590 = vector.extract_strided_slice %571 {offsets = [0, 224], sizes = [8, 32], strides = [1, 1]} : vector<8x256xf32> to vector<8x32xf32>
    %591 = math.tanh %586 : vector<8x32xf32>
    %592 = arith.mulf %590, %591 : vector<8x32xf32>
    %593 = tpu.concatenate %579, %586 in 1 : vector<8x32xf32>, vector<8x32xf32> -> vector<8x64xf32>
    %c0_275 = arith.constant 0 : index
    %c0_276 = arith.constant 0 : index
    %594 = vector.load %arg19[%c0_275, %c0_276] : memref<8x64xf32, #tpu.memory_space<vmem>>, vector<8x64xf32>
    tpu.vector_store %arg19[%c0_275, %c0_276], %593 {strides = array<i32>} : memref<8x64xf32, #tpu.memory_space<vmem>>, vector<8x64xf32>,
    %595 = tpu.concatenate %589, %592 in 1 : vector<8x32xf32>, vector<8x32xf32> -> vector<8x64xf32>
    %c0_277 = arith.constant 0 : index
    %c0_278 = arith.constant 0 : index
    %596 = vector.load %arg18[%c0_277, %c0_278] : memref<8x64xf32, #tpu.memory_space<vmem>>, vector<8x64xf32>
    tpu.vector_store %arg18[%c0_277, %c0_278], %595 {strides = array<i32>} : memref<8x64xf32, #tpu.memory_space<vmem>>, vector<8x64xf32>,
    %597 = arith.index_cast %c2_i32_261 : i32 to index
    %c0_279 = arith.constant 0 : index
    %c0_280 = arith.constant 0 : index
    %598 = vector.load %arg16[%597, %c0_279, %c0_280] : memref<8x8x32xf32, #tpu.memory_space<vmem>>, vector<1x8x32xf32>
    %599 = vector.shape_cast %598 : vector<1x8x32xf32> to vector<8x32xf32>
    %600 = vector.shape_cast %589 : vector<8x32xf32> to vector<1x8x32xf32>
    tpu.vector_store %arg16[%597, %c0_279, %c0_280], %600 {strides = array<i32>} : memref<8x8x32xf32, #tpu.memory_space<vmem>>, vector<1x8x32xf32>,
    %c7_i32_281 = arith.constant 7 : i32
    %601 = arith.subi %c7_i32_281, %c2_i32_261 : i32
    %602 = arith.index_cast %601 : i32 to index
    %c0_282 = arith.constant 0 : index
    %c0_283 = arith.constant 0 : index
    %603 = vector.load %arg17[%602, %c0_282, %c0_283] : memref<8x8x32xf32, #tpu.memory_space<vmem>>, vector<1x8x32xf32>
    %604 = vector.shape_cast %603 : vector<1x8x32xf32> to vector<8x32xf32>
    %605 = vector.shape_cast %592 : vector<8x32xf32> to vector<1x8x32xf32>
    tpu.vector_store %arg17[%602, %c0_282, %c0_283], %605 {strides = array<i32>} : memref<8x8x32xf32, #tpu.memory_space<vmem>>, vector<1x8x32xf32>,
    %c3_i32_284 = arith.constant 3 : i32
    %606 = arith.index_cast %c3_i32_284 : i32 to index
    %c0_285 = arith.constant 0 : index
    %c0_286 = arith.constant 0 : index
    %607 = vector.load %arg15[%606, %c0_285, %c0_286] : memref<8x8x256xf32, #tpu.memory_space<vmem>>, vector<1x8x256xf32>
    %608 = vector.shape_cast %607 : vector<1x8x256xf32> to vector<8x256xf32>
    %c7_i32_287 = arith.constant 7 : i32
    %609 = arith.subi %c7_i32_287, %c3_i32_284 : i32
    %610 = arith.index_cast %609 : i32 to index
    %c0_288 = arith.constant 0 : index
    %c0_289 = arith.constant 0 : index
    %611 = vector.load %arg15[%610, %c0_288, %c0_289] : memref<8x8x256xf32, #tpu.memory_space<vmem>>, vector<1x8x256xf32>
    %612 = vector.shape_cast %611 : vector<1x8x256xf32> to vector<8x256xf32>
    %613 = vector.extract_strided_slice %608 {offsets = [0, 0], sizes = [8, 128], strides = [1, 1]} : vector<8x256xf32> to vector<8x128xf32>
    %614 = vector.extract_strided_slice %612 {offsets = [0, 128], sizes = [8, 128], strides = [1, 1]} : vector<8x256xf32> to vector<8x128xf32>
    %615 = tpu.concatenate %613, %614 in 1 : vector<8x128xf32>, vector<8x128xf32> -> vector<8x256xf32>
    %c0_290 = arith.constant 0 : index
    %c0_291 = arith.constant 0 : index
    %616 = vector.load %arg18[%c0_290, %c0_291] : memref<8x64xf32, #tpu.memory_space<vmem>>, vector<8x64xf32>
    %cst_292 = arith.constant dense<0.000000e+00> : vector<8x256xf32>
    %617 = tpu.matmul %616, %449, %cst_292 {dimension_numbers = #tpu.dot_dimension_numbers<[1], [0], [0], [1], [0, 0, 1, 1], [], []>} : vector<8x64xf32>, vector<64x256xf32>, vector<8x256xf32> -> vector<8x256xf32>
    %618 = arith.addf %615, %617 : vector<8x256xf32>
    %619 = arith.negf %618 : vector<8x256xf32>
    %620 = math.exp %619 : vector<8x256xf32>
    %cst_293 = arith.constant 1.000000e+00 : f32
    %621 = vector.broadcast %cst_293 : f32 to vector<8x256xf32>
    %622 = arith.addf %621, %620 : vector<8x256xf32>
    %623 = arith.divf %621, %622 : vector<8x256xf32>
    %624 = math.tanh %618 : vector<8x256xf32>
    %625 = vector.extract_strided_slice %623 {offsets = [0, 32], sizes = [8, 32], strides = [1, 1]} : vector<8x256xf32> to vector<8x32xf32>
    %c0_294 = arith.constant 0 : index
    %c0_295 = arith.constant 0 : index
    %626 = vector.load %arg19[%c0_294, %c0_295] : memref<8x64xf32, #tpu.memory_space<vmem>>, vector<8x32xf32>
    %627 = arith.mulf %625, %626 : vector<8x32xf32>
    %628 = vector.extract_strided_slice %623 {offsets = [0, 0], sizes = [8, 32], strides = [1, 1]} : vector<8x256xf32> to vector<8x32xf32>
    %629 = vector.extract_strided_slice %624 {offsets = [0, 64], sizes = [8, 32], strides = [1, 1]} : vector<8x256xf32> to vector<8x32xf32>
    %630 = arith.mulf %628, %629 : vector<8x32xf32>
    %631 = arith.addf %627, %630 : vector<8x32xf32>
    %632 = vector.extract_strided_slice %623 {offsets = [0, 160], sizes = [8, 32], strides = [1, 1]} : vector<8x256xf32> to vector<8x32xf32>
    %c0_296 = arith.constant 0 : index
    %c32_297 = arith.constant 32 : index
    %633 = vector.load %arg19[%c0_296, %c32_297] : memref<8x64xf32, #tpu.memory_space<vmem>>, vector<8x32xf32>
    %634 = arith.mulf %632, %633 : vector<8x32xf32>
    %635 = vector.extract_strided_slice %623 {offsets = [0, 128], sizes = [8, 32], strides = [1, 1]} : vector<8x256xf32> to vector<8x32xf32>
    %636 = vector.extract_strided_slice %624 {offsets = [0, 192], sizes = [8, 32], strides = [1, 1]} : vector<8x256xf32> to vector<8x32xf32>
    %637 = arith.mulf %635, %636 : vector<8x32xf32>
    %638 = arith.addf %634, %637 : vector<8x32xf32>
    %639 = vector.extract_strided_slice %623 {offsets = [0, 96], sizes = [8, 32], strides = [1, 1]} : vector<8x256xf32> to vector<8x32xf32>
    %640 = math.tanh %631 : vector<8x32xf32>
    %641 = arith.mulf %639, %640 : vector<8x32xf32>
    %642 = vector.extract_strided_slice %623 {offsets = [0, 224], sizes = [8, 32], strides = [1, 1]} : vector<8x256xf32> to vector<8x32xf32>
    %643 = math.tanh %638 : vector<8x32xf32>
    %644 = arith.mulf %642, %643 : vector<8x32xf32>
    %645 = tpu.concatenate %631, %638 in 1 : vector<8x32xf32>, vector<8x32xf32> -> vector<8x64xf32>
    %c0_298 = arith.constant 0 : index
    %c0_299 = arith.constant 0 : index
    %646 = vector.load %arg19[%c0_298, %c0_299] : memref<8x64xf32, #tpu.memory_space<vmem>>, vector<8x64xf32>
    tpu.vector_store %arg19[%c0_298, %c0_299], %645 {strides = array<i32>} : memref<8x64xf32, #tpu.memory_space<vmem>>, vector<8x64xf32>,
    %647 = tpu.concatenate %641, %644 in 1 : vector<8x32xf32>, vector<8x32xf32> -> vector<8x64xf32>
    %c0_300 = arith.constant 0 : index
    %c0_301 = arith.constant 0 : index
    %648 = vector.load %arg18[%c0_300, %c0_301] : memref<8x64xf32, #tpu.memory_space<vmem>>, vector<8x64xf32>
    tpu.vector_store %arg18[%c0_300, %c0_301], %647 {strides = array<i32>} : memref<8x64xf32, #tpu.memory_space<vmem>>, vector<8x64xf32>,
    %649 = arith.index_cast %c3_i32_284 : i32 to index
    %c0_302 = arith.constant 0 : index
    %c0_303 = arith.constant 0 : index
    %650 = vector.load %arg16[%649, %c0_302, %c0_303] : memref<8x8x32xf32, #tpu.memory_space<vmem>>, vector<1x8x32xf32>
    %651 = vector.shape_cast %650 : vector<1x8x32xf32> to vector<8x32xf32>
    %652 = vector.shape_cast %641 : vector<8x32xf32> to vector<1x8x32xf32>
    tpu.vector_store %arg16[%649, %c0_302, %c0_303], %652 {strides = array<i32>} : memref<8x8x32xf32, #tpu.memory_space<vmem>>, vector<1x8x32xf32>,
    %c7_i32_304 = arith.constant 7 : i32
    %653 = arith.subi %c7_i32_304, %c3_i32_284 : i32
    %654 = arith.index_cast %653 : i32 to index
    %c0_305 = arith.constant 0 : index
    %c0_306 = arith.constant 0 : index
    %655 = vector.load %arg17[%654, %c0_305, %c0_306] : memref<8x8x32xf32, #tpu.memory_space<vmem>>, vector<1x8x32xf32>
    %656 = vector.shape_cast %655 : vector<1x8x32xf32> to vector<8x32xf32>
    %657 = vector.shape_cast %644 : vector<8x32xf32> to vector<1x8x32xf32>
    tpu.vector_store %arg17[%654, %c0_305, %c0_306], %657 {strides = array<i32>} : memref<8x8x32xf32, #tpu.memory_space<vmem>>, vector<1x8x32xf32>,
    %c4_i32_307 = arith.constant 4 : i32
    %658 = arith.index_cast %c4_i32_307 : i32 to index
    %c0_308 = arith.constant 0 : index
    %c0_309 = arith.constant 0 : index
    %659 = vector.load %arg15[%658, %c0_308, %c0_309] : memref<8x8x256xf32, #tpu.memory_space<vmem>>, vector<1x8x256xf32>
    %660 = vector.shape_cast %659 : vector<1x8x256xf32> to vector<8x256xf32>
    %c7_i32_310 = arith.constant 7 : i32
    %661 = arith.subi %c7_i32_310, %c4_i32_307 : i32
    %662 = arith.index_cast %661 : i32 to index
    %c0_311 = arith.constant 0 : index
    %c0_312 = arith.constant 0 : index
    %663 = vector.load %arg15[%662, %c0_311, %c0_312] : memref<8x8x256xf32, #tpu.memory_space<vmem>>, vector<1x8x256xf32>
    %664 = vector.shape_cast %663 : vector<1x8x256xf32> to vector<8x256xf32>
    %665 = vector.extract_strided_slice %660 {offsets = [0, 0], sizes = [8, 128], strides = [1, 1]} : vector<8x256xf32> to vector<8x128xf32>
    %666 = vector.extract_strided_slice %664 {offsets = [0, 128], sizes = [8, 128], strides = [1, 1]} : vector<8x256xf32> to vector<8x128xf32>
    %667 = tpu.concatenate %665, %666 in 1 : vector<8x128xf32>, vector<8x128xf32> -> vector<8x256xf32>
    %c0_313 = arith.constant 0 : index
    %c0_314 = arith.constant 0 : index
    %668 = vector.load %arg18[%c0_313, %c0_314] : memref<8x64xf32, #tpu.memory_space<vmem>>, vector<8x64xf32>
    %cst_315 = arith.constant dense<0.000000e+00> : vector<8x256xf32>
    %669 = tpu.matmul %668, %449, %cst_315 {dimension_numbers = #tpu.dot_dimension_numbers<[1], [0], [0], [1], [0, 0, 1, 1], [], []>} : vector<8x64xf32>, vector<64x256xf32>, vector<8x256xf32> -> vector<8x256xf32>
    %670 = arith.addf %667, %669 : vector<8x256xf32>
    %671 = arith.negf %670 : vector<8x256xf32>
    %672 = math.exp %671 : vector<8x256xf32>
    %cst_316 = arith.constant 1.000000e+00 : f32
    %673 = vector.broadcast %cst_316 : f32 to vector<8x256xf32>
    %674 = arith.addf %673, %672 : vector<8x256xf32>
    %675 = arith.divf %673, %674 : vector<8x256xf32>
    %676 = math.tanh %670 : vector<8x256xf32>
    %677 = vector.extract_strided_slice %675 {offsets = [0, 32], sizes = [8, 32], strides = [1, 1]} : vector<8x256xf32> to vector<8x32xf32>
    %c0_317 = arith.constant 0 : index
    %c0_318 = arith.constant 0 : index
    %678 = vector.load %arg19[%c0_317, %c0_318] : memref<8x64xf32, #tpu.memory_space<vmem>>, vector<8x32xf32>
    %679 = arith.mulf %677, %678 : vector<8x32xf32>
    %680 = vector.extract_strided_slice %675 {offsets = [0, 0], sizes = [8, 32], strides = [1, 1]} : vector<8x256xf32> to vector<8x32xf32>
    %681 = vector.extract_strided_slice %676 {offsets = [0, 64], sizes = [8, 32], strides = [1, 1]} : vector<8x256xf32> to vector<8x32xf32>
    %682 = arith.mulf %680, %681 : vector<8x32xf32>
    %683 = arith.addf %679, %682 : vector<8x32xf32>
    %684 = vector.extract_strided_slice %675 {offsets = [0, 160], sizes = [8, 32], strides = [1, 1]} : vector<8x256xf32> to vector<8x32xf32>
    %c0_319 = arith.constant 0 : index
    %c32_320 = arith.constant 32 : index
    %685 = vector.load %arg19[%c0_319, %c32_320] : memref<8x64xf32, #tpu.memory_space<vmem>>, vector<8x32xf32>
    %686 = arith.mulf %684, %685 : vector<8x32xf32>
    %687 = vector.extract_strided_slice %675 {offsets = [0, 128], sizes = [8, 32], strides = [1, 1]} : vector<8x256xf32> to vector<8x32xf32>
    %688 = vector.extract_strided_slice %676 {offsets = [0, 192], sizes = [8, 32], strides = [1, 1]} : vector<8x256xf32> to vector<8x32xf32>
    %689 = arith.mulf %687, %688 : vector<8x32xf32>
    %690 = arith.addf %686, %689 : vector<8x32xf32>
    %691 = vector.extract_strided_slice %675 {offsets = [0, 96], sizes = [8, 32], strides = [1, 1]} : vector<8x256xf32> to vector<8x32xf32>
    %692 = math.tanh %683 : vector<8x32xf32>
    %693 = arith.mulf %691, %692 : vector<8x32xf32>
    %694 = vector.extract_strided_slice %675 {offsets = [0, 224], sizes = [8, 32], strides = [1, 1]} : vector<8x256xf32> to vector<8x32xf32>
    %695 = math.tanh %690 : vector<8x32xf32>
    %696 = arith.mulf %694, %695 : vector<8x32xf32>
    %697 = tpu.concatenate %683, %690 in 1 : vector<8x32xf32>, vector<8x32xf32> -> vector<8x64xf32>
    %c0_321 = arith.constant 0 : index
    %c0_322 = arith.constant 0 : index
    %698 = vector.load %arg19[%c0_321, %c0_322] : memref<8x64xf32, #tpu.memory_space<vmem>>, vector<8x64xf32>
    tpu.vector_store %arg19[%c0_321, %c0_322], %697 {strides = array<i32>} : memref<8x64xf32, #tpu.memory_space<vmem>>, vector<8x64xf32>,
    %699 = tpu.concatenate %693, %696 in 1 : vector<8x32xf32>, vector<8x32xf32> -> vector<8x64xf32>
    %c0_323 = arith.constant 0 : index
    %c0_324 = arith.constant 0 : index
    %700 = vector.load %arg18[%c0_323, %c0_324] : memref<8x64xf32, #tpu.memory_space<vmem>>, vector<8x64xf32>
    tpu.vector_store %arg18[%c0_323, %c0_324], %699 {strides = array<i32>} : memref<8x64xf32, #tpu.memory_space<vmem>>, vector<8x64xf32>,
    %701 = arith.index_cast %c4_i32_307 : i32 to index
    %c0_325 = arith.constant 0 : index
    %c0_326 = arith.constant 0 : index
    %702 = vector.load %arg16[%701, %c0_325, %c0_326] : memref<8x8x32xf32, #tpu.memory_space<vmem>>, vector<1x8x32xf32>
    %703 = vector.shape_cast %702 : vector<1x8x32xf32> to vector<8x32xf32>
    %704 = vector.shape_cast %693 : vector<8x32xf32> to vector<1x8x32xf32>
    tpu.vector_store %arg16[%701, %c0_325, %c0_326], %704 {strides = array<i32>} : memref<8x8x32xf32, #tpu.memory_space<vmem>>, vector<1x8x32xf32>,
    %c7_i32_327 = arith.constant 7 : i32
    %705 = arith.subi %c7_i32_327, %c4_i32_307 : i32
    %706 = arith.index_cast %705 : i32 to index
    %c0_328 = arith.constant 0 : index
    %c0_329 = arith.constant 0 : index
    %707 = vector.load %arg17[%706, %c0_328, %c0_329] : memref<8x8x32xf32, #tpu.memory_space<vmem>>, vector<1x8x32xf32>
    %708 = vector.shape_cast %707 : vector<1x8x32xf32> to vector<8x32xf32>
    %709 = vector.shape_cast %696 : vector<8x32xf32> to vector<1x8x32xf32>
    tpu.vector_store %arg17[%706, %c0_328, %c0_329], %709 {strides = array<i32>} : memref<8x8x32xf32, #tpu.memory_space<vmem>>, vector<1x8x32xf32>,
    %c5_i32_330 = arith.constant 5 : i32
    %710 = arith.index_cast %c5_i32_330 : i32 to index
    %c0_331 = arith.constant 0 : index
    %c0_332 = arith.constant 0 : index
    %711 = vector.load %arg15[%710, %c0_331, %c0_332] : memref<8x8x256xf32, #tpu.memory_space<vmem>>, vector<1x8x256xf32>
    %712 = vector.shape_cast %711 : vector<1x8x256xf32> to vector<8x256xf32>
    %c7_i32_333 = arith.constant 7 : i32
    %713 = arith.subi %c7_i32_333, %c5_i32_330 : i32
    %714 = arith.index_cast %713 : i32 to index
    %c0_334 = arith.constant 0 : index
    %c0_335 = arith.constant 0 : index
    %715 = vector.load %arg15[%714, %c0_334, %c0_335] : memref<8x8x256xf32, #tpu.memory_space<vmem>>, vector<1x8x256xf32>
    %716 = vector.shape_cast %715 : vector<1x8x256xf32> to vector<8x256xf32>
    %717 = vector.extract_strided_slice %712 {offsets = [0, 0], sizes = [8, 128], strides = [1, 1]} : vector<8x256xf32> to vector<8x128xf32>
    %718 = vector.extract_strided_slice %716 {offsets = [0, 128], sizes = [8, 128], strides = [1, 1]} : vector<8x256xf32> to vector<8x128xf32>
    %719 = tpu.concatenate %717, %718 in 1 : vector<8x128xf32>, vector<8x128xf32> -> vector<8x256xf32>
    %c0_336 = arith.constant 0 : index
    %c0_337 = arith.constant 0 : index
    %720 = vector.load %arg18[%c0_336, %c0_337] : memref<8x64xf32, #tpu.memory_space<vmem>>, vector<8x64xf32>
    %cst_338 = arith.constant dense<0.000000e+00> : vector<8x256xf32>
    %721 = tpu.matmul %720, %449, %cst_338 {dimension_numbers = #tpu.dot_dimension_numbers<[1], [0], [0], [1], [0, 0, 1, 1], [], []>} : vector<8x64xf32>, vector<64x256xf32>, vector<8x256xf32> -> vector<8x256xf32>
    %722 = arith.addf %719, %721 : vector<8x256xf32>
    %723 = arith.negf %722 : vector<8x256xf32>
    %724 = math.exp %723 : vector<8x256xf32>
    %cst_339 = arith.constant 1.000000e+00 : f32
    %725 = vector.broadcast %cst_339 : f32 to vector<8x256xf32>
    %726 = arith.addf %725, %724 : vector<8x256xf32>
    %727 = arith.divf %725, %726 : vector<8x256xf32>
    %728 = math.tanh %722 : vector<8x256xf32>
    %729 = vector.extract_strided_slice %727 {offsets = [0, 32], sizes = [8, 32], strides = [1, 1]} : vector<8x256xf32> to vector<8x32xf32>
    %c0_340 = arith.constant 0 : index
    %c0_341 = arith.constant 0 : index
    %730 = vector.load %arg19[%c0_340, %c0_341] : memref<8x64xf32, #tpu.memory_space<vmem>>, vector<8x32xf32>
    %731 = arith.mulf %729, %730 : vector<8x32xf32>
    %732 = vector.extract_strided_slice %727 {offsets = [0, 0], sizes = [8, 32], strides = [1, 1]} : vector<8x256xf32> to vector<8x32xf32>
    %733 = vector.extract_strided_slice %728 {offsets = [0, 64], sizes = [8, 32], strides = [1, 1]} : vector<8x256xf32> to vector<8x32xf32>
    %734 = arith.mulf %732, %733 : vector<8x32xf32>
    %735 = arith.addf %731, %734 : vector<8x32xf32>
    %736 = vector.extract_strided_slice %727 {offsets = [0, 160], sizes = [8, 32], strides = [1, 1]} : vector<8x256xf32> to vector<8x32xf32>
    %c0_342 = arith.constant 0 : index
    %c32_343 = arith.constant 32 : index
    %737 = vector.load %arg19[%c0_342, %c32_343] : memref<8x64xf32, #tpu.memory_space<vmem>>, vector<8x32xf32>
    %738 = arith.mulf %736, %737 : vector<8x32xf32>
    %739 = vector.extract_strided_slice %727 {offsets = [0, 128], sizes = [8, 32], strides = [1, 1]} : vector<8x256xf32> to vector<8x32xf32>
    %740 = vector.extract_strided_slice %728 {offsets = [0, 192], sizes = [8, 32], strides = [1, 1]} : vector<8x256xf32> to vector<8x32xf32>
    %741 = arith.mulf %739, %740 : vector<8x32xf32>
    %742 = arith.addf %738, %741 : vector<8x32xf32>
    %743 = vector.extract_strided_slice %727 {offsets = [0, 96], sizes = [8, 32], strides = [1, 1]} : vector<8x256xf32> to vector<8x32xf32>
    %744 = math.tanh %735 : vector<8x32xf32>
    %745 = arith.mulf %743, %744 : vector<8x32xf32>
    %746 = vector.extract_strided_slice %727 {offsets = [0, 224], sizes = [8, 32], strides = [1, 1]} : vector<8x256xf32> to vector<8x32xf32>
    %747 = math.tanh %742 : vector<8x32xf32>
    %748 = arith.mulf %746, %747 : vector<8x32xf32>
    %749 = tpu.concatenate %735, %742 in 1 : vector<8x32xf32>, vector<8x32xf32> -> vector<8x64xf32>
    %c0_344 = arith.constant 0 : index
    %c0_345 = arith.constant 0 : index
    %750 = vector.load %arg19[%c0_344, %c0_345] : memref<8x64xf32, #tpu.memory_space<vmem>>, vector<8x64xf32>
    tpu.vector_store %arg19[%c0_344, %c0_345], %749 {strides = array<i32>} : memref<8x64xf32, #tpu.memory_space<vmem>>, vector<8x64xf32>,
    %751 = tpu.concatenate %745, %748 in 1 : vector<8x32xf32>, vector<8x32xf32> -> vector<8x64xf32>
    %c0_346 = arith.constant 0 : index
    %c0_347 = arith.constant 0 : index
    %752 = vector.load %arg18[%c0_346, %c0_347] : memref<8x64xf32, #tpu.memory_space<vmem>>, vector<8x64xf32>
    tpu.vector_store %arg18[%c0_346, %c0_347], %751 {strides = array<i32>} : memref<8x64xf32, #tpu.memory_space<vmem>>, vector<8x64xf32>,
    %753 = arith.index_cast %c5_i32_330 : i32 to index
    %c0_348 = arith.constant 0 : index
    %c0_349 = arith.constant 0 : index
    %754 = vector.load %arg16[%753, %c0_348, %c0_349] : memref<8x8x32xf32, #tpu.memory_space<vmem>>, vector<1x8x32xf32>
    %755 = vector.shape_cast %754 : vector<1x8x32xf32> to vector<8x32xf32>
    %756 = vector.shape_cast %745 : vector<8x32xf32> to vector<1x8x32xf32>
    tpu.vector_store %arg16[%753, %c0_348, %c0_349], %756 {strides = array<i32>} : memref<8x8x32xf32, #tpu.memory_space<vmem>>, vector<1x8x32xf32>,
    %c7_i32_350 = arith.constant 7 : i32
    %757 = arith.subi %c7_i32_350, %c5_i32_330 : i32
    %758 = arith.index_cast %757 : i32 to index
    %c0_351 = arith.constant 0 : index
    %c0_352 = arith.constant 0 : index
    %759 = vector.load %arg17[%758, %c0_351, %c0_352] : memref<8x8x32xf32, #tpu.memory_space<vmem>>, vector<1x8x32xf32>
    %760 = vector.shape_cast %759 : vector<1x8x32xf32> to vector<8x32xf32>
    %761 = vector.shape_cast %748 : vector<8x32xf32> to vector<1x8x32xf32>
    tpu.vector_store %arg17[%758, %c0_351, %c0_352], %761 {strides = array<i32>} : memref<8x8x32xf32, #tpu.memory_space<vmem>>, vector<1x8x32xf32>,
    %c6_i32_353 = arith.constant 6 : i32
    %762 = arith.index_cast %c6_i32_353 : i32 to index
    %c0_354 = arith.constant 0 : index
    %c0_355 = arith.constant 0 : index
    %763 = vector.load %arg15[%762, %c0_354, %c0_355] : memref<8x8x256xf32, #tpu.memory_space<vmem>>, vector<1x8x256xf32>
    %764 = vector.shape_cast %763 : vector<1x8x256xf32> to vector<8x256xf32>
    %c7_i32_356 = arith.constant 7 : i32
    %765 = arith.subi %c7_i32_356, %c6_i32_353 : i32
    %766 = arith.index_cast %765 : i32 to index
    %c0_357 = arith.constant 0 : index
    %c0_358 = arith.constant 0 : index
    %767 = vector.load %arg15[%766, %c0_357, %c0_358] : memref<8x8x256xf32, #tpu.memory_space<vmem>>, vector<1x8x256xf32>
    %768 = vector.shape_cast %767 : vector<1x8x256xf32> to vector<8x256xf32>
    %769 = vector.extract_strided_slice %764 {offsets = [0, 0], sizes = [8, 128], strides = [1, 1]} : vector<8x256xf32> to vector<8x128xf32>
    %770 = vector.extract_strided_slice %768 {offsets = [0, 128], sizes = [8, 128], strides = [1, 1]} : vector<8x256xf32> to vector<8x128xf32>
    %771 = tpu.concatenate %769, %770 in 1 : vector<8x128xf32>, vector<8x128xf32> -> vector<8x256xf32>
    %c0_359 = arith.constant 0 : index
    %c0_360 = arith.constant 0 : index
    %772 = vector.load %arg18[%c0_359, %c0_360] : memref<8x64xf32, #tpu.memory_space<vmem>>, vector<8x64xf32>
    %cst_361 = arith.constant dense<0.000000e+00> : vector<8x256xf32>
    %773 = tpu.matmul %772, %449, %cst_361 {dimension_numbers = #tpu.dot_dimension_numbers<[1], [0], [0], [1], [0, 0, 1, 1], [], []>} : vector<8x64xf32>, vector<64x256xf32>, vector<8x256xf32> -> vector<8x256xf32>
    %774 = arith.addf %771, %773 : vector<8x256xf32>
    %775 = arith.negf %774 : vector<8x256xf32>
    %776 = math.exp %775 : vector<8x256xf32>
    %cst_362 = arith.constant 1.000000e+00 : f32
    %777 = vector.broadcast %cst_362 : f32 to vector<8x256xf32>
    %778 = arith.addf %777, %776 : vector<8x256xf32>
    %779 = arith.divf %777, %778 : vector<8x256xf32>
    %780 = math.tanh %774 : vector<8x256xf32>
    %781 = vector.extract_strided_slice %779 {offsets = [0, 32], sizes = [8, 32], strides = [1, 1]} : vector<8x256xf32> to vector<8x32xf32>
    %c0_363 = arith.constant 0 : index
    %c0_364 = arith.constant 0 : index
    %782 = vector.load %arg19[%c0_363, %c0_364] : memref<8x64xf32, #tpu.memory_space<vmem>>, vector<8x32xf32>
    %783 = arith.mulf %781, %782 : vector<8x32xf32>
    %784 = vector.extract_strided_slice %779 {offsets = [0, 0], sizes = [8, 32], strides = [1, 1]} : vector<8x256xf32> to vector<8x32xf32>
    %785 = vector.extract_strided_slice %780 {offsets = [0, 64], sizes = [8, 32], strides = [1, 1]} : vector<8x256xf32> to vector<8x32xf32>
    %786 = arith.mulf %784, %785 : vector<8x32xf32>
    %787 = arith.addf %783, %786 : vector<8x32xf32>
    %788 = vector.extract_strided_slice %779 {offsets = [0, 160], sizes = [8, 32], strides = [1, 1]} : vector<8x256xf32> to vector<8x32xf32>
    %c0_365 = arith.constant 0 : index
    %c32_366 = arith.constant 32 : index
    %789 = vector.load %arg19[%c0_365, %c32_366] : memref<8x64xf32, #tpu.memory_space<vmem>>, vector<8x32xf32>
    %790 = arith.mulf %788, %789 : vector<8x32xf32>
    %791 = vector.extract_strided_slice %779 {offsets = [0, 128], sizes = [8, 32], strides = [1, 1]} : vector<8x256xf32> to vector<8x32xf32>
    %792 = vector.extract_strided_slice %780 {offsets = [0, 192], sizes = [8, 32], strides = [1, 1]} : vector<8x256xf32> to vector<8x32xf32>
    %793 = arith.mulf %791, %792 : vector<8x32xf32>
    %794 = arith.addf %790, %793 : vector<8x32xf32>
    %795 = vector.extract_strided_slice %779 {offsets = [0, 96], sizes = [8, 32], strides = [1, 1]} : vector<8x256xf32> to vector<8x32xf32>
    %796 = math.tanh %787 : vector<8x32xf32>
    %797 = arith.mulf %795, %796 : vector<8x32xf32>
    %798 = vector.extract_strided_slice %779 {offsets = [0, 224], sizes = [8, 32], strides = [1, 1]} : vector<8x256xf32> to vector<8x32xf32>
    %799 = math.tanh %794 : vector<8x32xf32>
    %800 = arith.mulf %798, %799 : vector<8x32xf32>
    %801 = tpu.concatenate %787, %794 in 1 : vector<8x32xf32>, vector<8x32xf32> -> vector<8x64xf32>
    %c0_367 = arith.constant 0 : index
    %c0_368 = arith.constant 0 : index
    %802 = vector.load %arg19[%c0_367, %c0_368] : memref<8x64xf32, #tpu.memory_space<vmem>>, vector<8x64xf32>
    tpu.vector_store %arg19[%c0_367, %c0_368], %801 {strides = array<i32>} : memref<8x64xf32, #tpu.memory_space<vmem>>, vector<8x64xf32>,
    %803 = tpu.concatenate %797, %800 in 1 : vector<8x32xf32>, vector<8x32xf32> -> vector<8x64xf32>
    %c0_369 = arith.constant 0 : index
    %c0_370 = arith.constant 0 : index
    %804 = vector.load %arg18[%c0_369, %c0_370] : memref<8x64xf32, #tpu.memory_space<vmem>>, vector<8x64xf32>
    tpu.vector_store %arg18[%c0_369, %c0_370], %803 {strides = array<i32>} : memref<8x64xf32, #tpu.memory_space<vmem>>, vector<8x64xf32>,
    %805 = arith.index_cast %c6_i32_353 : i32 to index
    %c0_371 = arith.constant 0 : index
    %c0_372 = arith.constant 0 : index
    %806 = vector.load %arg16[%805, %c0_371, %c0_372] : memref<8x8x32xf32, #tpu.memory_space<vmem>>, vector<1x8x32xf32>
    %807 = vector.shape_cast %806 : vector<1x8x32xf32> to vector<8x32xf32>
    %808 = vector.shape_cast %797 : vector<8x32xf32> to vector<1x8x32xf32>
    tpu.vector_store %arg16[%805, %c0_371, %c0_372], %808 {strides = array<i32>} : memref<8x8x32xf32, #tpu.memory_space<vmem>>, vector<1x8x32xf32>,
    %c7_i32_373 = arith.constant 7 : i32
    %809 = arith.subi %c7_i32_373, %c6_i32_353 : i32
    %810 = arith.index_cast %809 : i32 to index
    %c0_374 = arith.constant 0 : index
    %c0_375 = arith.constant 0 : index
    %811 = vector.load %arg17[%810, %c0_374, %c0_375] : memref<8x8x32xf32, #tpu.memory_space<vmem>>, vector<1x8x32xf32>
    %812 = vector.shape_cast %811 : vector<1x8x32xf32> to vector<8x32xf32>
    %813 = vector.shape_cast %800 : vector<8x32xf32> to vector<1x8x32xf32>
    tpu.vector_store %arg17[%810, %c0_374, %c0_375], %813 {strides = array<i32>} : memref<8x8x32xf32, #tpu.memory_space<vmem>>, vector<1x8x32xf32>,
    %c7_i32_376 = arith.constant 7 : i32
    %814 = arith.index_cast %c7_i32_376 : i32 to index
    %c0_377 = arith.constant 0 : index
    %c0_378 = arith.constant 0 : index
    %815 = vector.load %arg15[%814, %c0_377, %c0_378] : memref<8x8x256xf32, #tpu.memory_space<vmem>>, vector<1x8x256xf32>
    %816 = vector.shape_cast %815 : vector<1x8x256xf32> to vector<8x256xf32>
    %c7_i32_379 = arith.constant 7 : i32
    %817 = arith.subi %c7_i32_379, %c7_i32_376 : i32
    %818 = arith.index_cast %817 : i32 to index
    %c0_380 = arith.constant 0 : index
    %c0_381 = arith.constant 0 : index
    %819 = vector.load %arg15[%818, %c0_380, %c0_381] : memref<8x8x256xf32, #tpu.memory_space<vmem>>, vector<1x8x256xf32>
    %820 = vector.shape_cast %819 : vector<1x8x256xf32> to vector<8x256xf32>
    %821 = vector.extract_strided_slice %816 {offsets = [0, 0], sizes = [8, 128], strides = [1, 1]} : vector<8x256xf32> to vector<8x128xf32>
    %822 = vector.extract_strided_slice %820 {offsets = [0, 128], sizes = [8, 128], strides = [1, 1]} : vector<8x256xf32> to vector<8x128xf32>
    %823 = tpu.concatenate %821, %822 in 1 : vector<8x128xf32>, vector<8x128xf32> -> vector<8x256xf32>
    %c0_382 = arith.constant 0 : index
    %c0_383 = arith.constant 0 : index
    %824 = vector.load %arg18[%c0_382, %c0_383] : memref<8x64xf32, #tpu.memory_space<vmem>>, vector<8x64xf32>
    %cst_384 = arith.constant dense<0.000000e+00> : vector<8x256xf32>
    %825 = tpu.matmul %824, %449, %cst_384 {dimension_numbers = #tpu.dot_dimension_numbers<[1], [0], [0], [1], [0, 0, 1, 1], [], []>} : vector<8x64xf32>, vector<64x256xf32>, vector<8x256xf32> -> vector<8x256xf32>
    %826 = arith.addf %823, %825 : vector<8x256xf32>
    %827 = arith.negf %826 : vector<8x256xf32>
    %828 = math.exp %827 : vector<8x256xf32>
    %cst_385 = arith.constant 1.000000e+00 : f32
    %829 = vector.broadcast %cst_385 : f32 to vector<8x256xf32>
    %830 = arith.addf %829, %828 : vector<8x256xf32>
    %831 = arith.divf %829, %830 : vector<8x256xf32>
    %832 = math.tanh %826 : vector<8x256xf32>
    %833 = vector.extract_strided_slice %831 {offsets = [0, 32], sizes = [8, 32], strides = [1, 1]} : vector<8x256xf32> to vector<8x32xf32>
    %c0_386 = arith.constant 0 : index
    %c0_387 = arith.constant 0 : index
    %834 = vector.load %arg19[%c0_386, %c0_387] : memref<8x64xf32, #tpu.memory_space<vmem>>, vector<8x32xf32>
    %835 = arith.mulf %833, %834 : vector<8x32xf32>
    %836 = vector.extract_strided_slice %831 {offsets = [0, 0], sizes = [8, 32], strides = [1, 1]} : vector<8x256xf32> to vector<8x32xf32>
    %837 = vector.extract_strided_slice %832 {offsets = [0, 64], sizes = [8, 32], strides = [1, 1]} : vector<8x256xf32> to vector<8x32xf32>
    %838 = arith.mulf %836, %837 : vector<8x32xf32>
    %839 = arith.addf %835, %838 : vector<8x32xf32>
    %840 = vector.extract_strided_slice %831 {offsets = [0, 160], sizes = [8, 32], strides = [1, 1]} : vector<8x256xf32> to vector<8x32xf32>
    %c0_388 = arith.constant 0 : index
    %c32_389 = arith.constant 32 : index
    %841 = vector.load %arg19[%c0_388, %c32_389] : memref<8x64xf32, #tpu.memory_space<vmem>>, vector<8x32xf32>
    %842 = arith.mulf %840, %841 : vector<8x32xf32>
    %843 = vector.extract_strided_slice %831 {offsets = [0, 128], sizes = [8, 32], strides = [1, 1]} : vector<8x256xf32> to vector<8x32xf32>
    %844 = vector.extract_strided_slice %832 {offsets = [0, 192], sizes = [8, 32], strides = [1, 1]} : vector<8x256xf32> to vector<8x32xf32>
    %845 = arith.mulf %843, %844 : vector<8x32xf32>
    %846 = arith.addf %842, %845 : vector<8x32xf32>
    %847 = vector.extract_strided_slice %831 {offsets = [0, 96], sizes = [8, 32], strides = [1, 1]} : vector<8x256xf32> to vector<8x32xf32>
    %848 = math.tanh %839 : vector<8x32xf32>
    %849 = arith.mulf %847, %848 : vector<8x32xf32>
    %850 = vector.extract_strided_slice %831 {offsets = [0, 224], sizes = [8, 32], strides = [1, 1]} : vector<8x256xf32> to vector<8x32xf32>
    %851 = math.tanh %846 : vector<8x32xf32>
    %852 = arith.mulf %850, %851 : vector<8x32xf32>
    %853 = tpu.concatenate %839, %846 in 1 : vector<8x32xf32>, vector<8x32xf32> -> vector<8x64xf32>
    %c0_390 = arith.constant 0 : index
    %c0_391 = arith.constant 0 : index
    %854 = vector.load %arg19[%c0_390, %c0_391] : memref<8x64xf32, #tpu.memory_space<vmem>>, vector<8x64xf32>
    tpu.vector_store %arg19[%c0_390, %c0_391], %853 {strides = array<i32>} : memref<8x64xf32, #tpu.memory_space<vmem>>, vector<8x64xf32>,
    %855 = tpu.concatenate %849, %852 in 1 : vector<8x32xf32>, vector<8x32xf32> -> vector<8x64xf32>
    %c0_392 = arith.constant 0 : index
    %c0_393 = arith.constant 0 : index
    %856 = vector.load %arg18[%c0_392, %c0_393] : memref<8x64xf32, #tpu.memory_space<vmem>>, vector<8x64xf32>
    tpu.vector_store %arg18[%c0_392, %c0_393], %855 {strides = array<i32>} : memref<8x64xf32, #tpu.memory_space<vmem>>, vector<8x64xf32>,
    %857 = arith.index_cast %c7_i32_376 : i32 to index
    %c0_394 = arith.constant 0 : index
    %c0_395 = arith.constant 0 : index
    %858 = vector.load %arg16[%857, %c0_394, %c0_395] : memref<8x8x32xf32, #tpu.memory_space<vmem>>, vector<1x8x32xf32>
    %859 = vector.shape_cast %858 : vector<1x8x32xf32> to vector<8x32xf32>
    %860 = vector.shape_cast %849 : vector<8x32xf32> to vector<1x8x32xf32>
    tpu.vector_store %arg16[%857, %c0_394, %c0_395], %860 {strides = array<i32>} : memref<8x8x32xf32, #tpu.memory_space<vmem>>, vector<1x8x32xf32>,
    %c7_i32_396 = arith.constant 7 : i32
    %861 = arith.subi %c7_i32_396, %c7_i32_376 : i32
    %862 = arith.index_cast %861 : i32 to index
    %c0_397 = arith.constant 0 : index
    %c0_398 = arith.constant 0 : index
    %863 = vector.load %arg17[%862, %c0_397, %c0_398] : memref<8x8x32xf32, #tpu.memory_space<vmem>>, vector<1x8x32xf32>
    %864 = vector.shape_cast %863 : vector<1x8x32xf32> to vector<8x32xf32>
    %865 = vector.shape_cast %852 : vector<8x32xf32> to vector<1x8x32xf32>
    tpu.vector_store %arg17[%862, %c0_397, %c0_398], %865 {strides = array<i32>} : memref<8x8x32xf32, #tpu.memory_space<vmem>>, vector<1x8x32xf32>,
    %c8_i32_399 = arith.constant 8 : i32
    %c0_400 = arith.constant 0 : index
    %c0_401 = arith.constant 0 : index
    %866 = vector.load %arg7[%c0_400, %c0_401] : memref<64x256xf32, #tpu.memory_space<vmem>>, vector<64x256xf32>
    %c0_402 = arith.constant 0 : index
    %c0_403 = arith.constant 0 : index
    %c0_404 = arith.constant 0 : index
    %867 = vector.load %arg16[%c0_402, %c0_403, %c0_404] : memref<8x8x32xf32, #tpu.memory_space<vmem>>, vector<8x8x32xf32>
    %868 = vector.shape_cast %867 : vector<8x8x32xf32> to vector<64x32xf32>
    %869 = vector.extract_strided_slice %866 {offsets = [0, 0], sizes = [32, 256], strides = [1, 1]} : vector<64x256xf32> to vector<32x256xf32>
    %cst_405 = arith.constant dense<0.000000e+00> : vector<64x256xf32>
    %870 = tpu.matmul %868, %869, %cst_405 {dimension_numbers = #tpu.dot_dimension_numbers<[1], [0], [0], [1], [0, 0, 1, 1], [], []>} : vector<64x32xf32>, vector<32x256xf32>, vector<64x256xf32> -> vector<64x256xf32>
    %c0_406 = arith.constant 0 : index
    %c0_407 = arith.constant 0 : index
    %c0_408 = arith.constant 0 : index
    %871 = vector.load %arg17[%c0_406, %c0_407, %c0_408] : memref<8x8x32xf32, #tpu.memory_space<vmem>>, vector<8x8x32xf32>
    %872 = vector.shape_cast %871 : vector<8x8x32xf32> to vector<64x32xf32>
    %873 = vector.extract_strided_slice %866 {offsets = [32, 0], sizes = [32, 256], strides = [1, 1]} : vector<64x256xf32> to vector<32x256xf32>
    %cst_409 = arith.constant dense<0.000000e+00> : vector<64x256xf32>
    %874 = tpu.matmul %872, %873, %cst_409 {dimension_numbers = #tpu.dot_dimension_numbers<[1], [0], [0], [1], [0, 0, 1, 1], [], []>} : vector<64x32xf32>, vector<32x256xf32>, vector<64x256xf32> -> vector<64x256xf32>
    %875 = arith.addf %870, %874 : vector<64x256xf32>
    %c0_410 = arith.constant 0 : index
    %c0_411 = arith.constant 0 : index
    %876 = vector.load %arg9[%c0_410, %c0_411] : memref<1x256xf32, #tpu.memory_space<vmem>>, vector<1x256xf32>
    %877 = vector.broadcast %876 : vector<1x256xf32> to vector<64x256xf32>
    %878 = arith.addf %875, %877 : vector<64x256xf32>
    %879 = vector.shape_cast %878 : vector<64x256xf32> to vector<8x8x256xf32>
    %c0_412 = arith.constant 0 : index
    %c0_413 = arith.constant 0 : index
    %c0_414 = arith.constant 0 : index
    %880 = vector.load %arg15[%c0_412, %c0_413, %c0_414] : memref<8x8x256xf32, #tpu.memory_space<vmem>>, vector<8x8x256xf32>
    tpu.vector_store %arg15[%c0_412, %c0_413, %c0_414], %879 {strides = array<i32>} : memref<8x8x256xf32, #tpu.memory_space<vmem>>, vector<8x8x256xf32>,
    %cst_415 = arith.constant 0.000000e+00 : f32
    %881 = vector.broadcast %cst_415 : f32 to vector<8x64xf32>
    %c0_416 = arith.constant 0 : index
    %c0_417 = arith.constant 0 : index
    %882 = vector.load %arg18[%c0_416, %c0_417] : memref<8x64xf32, #tpu.memory_space<vmem>>, vector<8x64xf32>
    tpu.vector_store %arg18[%c0_416, %c0_417], %881 {strides = array<i32>} : memref<8x64xf32, #tpu.memory_space<vmem>>, vector<8x64xf32>,
    %cst_418 = arith.constant 0.000000e+00 : f32
    %883 = vector.broadcast %cst_418 : f32 to vector<8x64xf32>
    %c0_419 = arith.constant 0 : index
    %c0_420 = arith.constant 0 : index
    %884 = vector.load %arg19[%c0_419, %c0_420] : memref<8x64xf32, #tpu.memory_space<vmem>>, vector<8x64xf32>
    tpu.vector_store %arg19[%c0_419, %c0_420], %883 {strides = array<i32>} : memref<8x64xf32, #tpu.memory_space<vmem>>, vector<8x64xf32>,
    %c0_421 = arith.constant 0 : index
    %c0_422 = arith.constant 0 : index
    %885 = vector.load %arg8[%c0_421, %c0_422] : memref<64x256xf32, #tpu.memory_space<vmem>>, vector<64x256xf32>
    %c0_i32_423 = arith.constant 0 : i32
    %886 = arith.index_cast %c0_i32_423 : i32 to index
    %c0_424 = arith.constant 0 : index
    %c0_425 = arith.constant 0 : index
    %887 = vector.load %arg15[%886, %c0_424, %c0_425] : memref<8x8x256xf32, #tpu.memory_space<vmem>>, vector<1x8x256xf32>
    %888 = vector.shape_cast %887 : vector<1x8x256xf32> to vector<8x256xf32>
    %c7_i32_426 = arith.constant 7 : i32
    %889 = arith.subi %c7_i32_426, %c0_i32_423 : i32
    %890 = arith.index_cast %889 : i32 to index
    %c0_427 = arith.constant 0 : index
    %c0_428 = arith.constant 0 : index
    %891 = vector.load %arg15[%890, %c0_427, %c0_428] : memref<8x8x256xf32, #tpu.memory_space<vmem>>, vector<1x8x256xf32>
    %892 = vector.shape_cast %891 : vector<1x8x256xf32> to vector<8x256xf32>
    %893 = vector.extract_strided_slice %888 {offsets = [0, 0], sizes = [8, 128], strides = [1, 1]} : vector<8x256xf32> to vector<8x128xf32>
    %894 = vector.extract_strided_slice %892 {offsets = [0, 128], sizes = [8, 128], strides = [1, 1]} : vector<8x256xf32> to vector<8x128xf32>
    %895 = tpu.concatenate %893, %894 in 1 : vector<8x128xf32>, vector<8x128xf32> -> vector<8x256xf32>
    %c0_429 = arith.constant 0 : index
    %c0_430 = arith.constant 0 : index
    %896 = vector.load %arg18[%c0_429, %c0_430] : memref<8x64xf32, #tpu.memory_space<vmem>>, vector<8x64xf32>
    %cst_431 = arith.constant dense<0.000000e+00> : vector<8x256xf32>
    %897 = tpu.matmul %896, %885, %cst_431 {dimension_numbers = #tpu.dot_dimension_numbers<[1], [0], [0], [1], [0, 0, 1, 1], [], []>} : vector<8x64xf32>, vector<64x256xf32>, vector<8x256xf32> -> vector<8x256xf32>
    %898 = arith.addf %895, %897 : vector<8x256xf32>
    %899 = arith.negf %898 : vector<8x256xf32>
    %900 = math.exp %899 : vector<8x256xf32>
    %cst_432 = arith.constant 1.000000e+00 : f32
    %901 = vector.broadcast %cst_432 : f32 to vector<8x256xf32>
    %902 = arith.addf %901, %900 : vector<8x256xf32>
    %903 = arith.divf %901, %902 : vector<8x256xf32>
    %904 = math.tanh %898 : vector<8x256xf32>
    %905 = vector.extract_strided_slice %903 {offsets = [0, 32], sizes = [8, 32], strides = [1, 1]} : vector<8x256xf32> to vector<8x32xf32>
    %c0_433 = arith.constant 0 : index
    %c0_434 = arith.constant 0 : index
    %906 = vector.load %arg19[%c0_433, %c0_434] : memref<8x64xf32, #tpu.memory_space<vmem>>, vector<8x32xf32>
    %907 = arith.mulf %905, %906 : vector<8x32xf32>
    %908 = vector.extract_strided_slice %903 {offsets = [0, 0], sizes = [8, 32], strides = [1, 1]} : vector<8x256xf32> to vector<8x32xf32>
    %909 = vector.extract_strided_slice %904 {offsets = [0, 64], sizes = [8, 32], strides = [1, 1]} : vector<8x256xf32> to vector<8x32xf32>
    %910 = arith.mulf %908, %909 : vector<8x32xf32>
    %911 = arith.addf %907, %910 : vector<8x32xf32>
    %912 = vector.extract_strided_slice %903 {offsets = [0, 160], sizes = [8, 32], strides = [1, 1]} : vector<8x256xf32> to vector<8x32xf32>
    %c0_435 = arith.constant 0 : index
    %c32_436 = arith.constant 32 : index
    %913 = vector.load %arg19[%c0_435, %c32_436] : memref<8x64xf32, #tpu.memory_space<vmem>>, vector<8x32xf32>
    %914 = arith.mulf %912, %913 : vector<8x32xf32>
    %915 = vector.extract_strided_slice %903 {offsets = [0, 128], sizes = [8, 32], strides = [1, 1]} : vector<8x256xf32> to vector<8x32xf32>
    %916 = vector.extract_strided_slice %904 {offsets = [0, 192], sizes = [8, 32], strides = [1, 1]} : vector<8x256xf32> to vector<8x32xf32>
    %917 = arith.mulf %915, %916 : vector<8x32xf32>
    %918 = arith.addf %914, %917 : vector<8x32xf32>
    %919 = vector.extract_strided_slice %903 {offsets = [0, 96], sizes = [8, 32], strides = [1, 1]} : vector<8x256xf32> to vector<8x32xf32>
    %920 = math.tanh %911 : vector<8x32xf32>
    %921 = arith.mulf %919, %920 : vector<8x32xf32>
    %922 = vector.extract_strided_slice %903 {offsets = [0, 224], sizes = [8, 32], strides = [1, 1]} : vector<8x256xf32> to vector<8x32xf32>
    %923 = math.tanh %918 : vector<8x32xf32>
    %924 = arith.mulf %922, %923 : vector<8x32xf32>
    %925 = tpu.concatenate %911, %918 in 1 : vector<8x32xf32>, vector<8x32xf32> -> vector<8x64xf32>
    %c0_437 = arith.constant 0 : index
    %c0_438 = arith.constant 0 : index
    %926 = vector.load %arg19[%c0_437, %c0_438] : memref<8x64xf32, #tpu.memory_space<vmem>>, vector<8x64xf32>
    tpu.vector_store %arg19[%c0_437, %c0_438], %925 {strides = array<i32>} : memref<8x64xf32, #tpu.memory_space<vmem>>, vector<8x64xf32>,
    %927 = tpu.concatenate %921, %924 in 1 : vector<8x32xf32>, vector<8x32xf32> -> vector<8x64xf32>
    %c0_439 = arith.constant 0 : index
    %c0_440 = arith.constant 0 : index
    %928 = vector.load %arg18[%c0_439, %c0_440] : memref<8x64xf32, #tpu.memory_space<vmem>>, vector<8x64xf32>
    tpu.vector_store %arg18[%c0_439, %c0_440], %927 {strides = array<i32>} : memref<8x64xf32, #tpu.memory_space<vmem>>, vector<8x64xf32>,
    %c4_i32_441 = arith.constant 4 : i32
    %929 = arith.cmpi eq, %c0_i32_423, %c4_i32_441 : i32
    %930 = arith.extui %929 : i1 to i32
    %c0_i32_442 = arith.constant 0 : i32
    %931 = arith.cmpi ne, %930, %c0_i32_442 : i32
    scf.if %931 {
      %c0_552 = arith.constant 0 : index
      %c0_553 = arith.constant 0 : index
      %1154 = vector.load %arg20[%c0_552, %c0_553] : memref<8x32xf32, #tpu.memory_space<vmem>>, vector<8x32xf32>
      tpu.vector_store %arg20[%c0_552, %c0_553], %921 {strides = array<i32>} : memref<8x32xf32, #tpu.memory_space<vmem>>, vector<8x32xf32>,
    } else {
    }
    %c3_i32_443 = arith.constant 3 : i32
    %932 = arith.cmpi eq, %c0_i32_423, %c3_i32_443 : i32
    %933 = arith.extui %932 : i1 to i32
    %c0_i32_444 = arith.constant 0 : i32
    %934 = arith.cmpi ne, %933, %c0_i32_444 : i32
    scf.if %934 {
      %c0_552 = arith.constant 0 : index
      %c0_553 = arith.constant 0 : index
      %1154 = vector.load %arg21[%c0_552, %c0_553] : memref<8x32xf32, #tpu.memory_space<vmem>>, vector<8x32xf32>
      tpu.vector_store %arg21[%c0_552, %c0_553], %924 {strides = array<i32>} : memref<8x32xf32, #tpu.memory_space<vmem>>, vector<8x32xf32>,
    } else {
    }
    %c1_i32_445 = arith.constant 1 : i32
    %935 = arith.index_cast %c1_i32_445 : i32 to index
    %c0_446 = arith.constant 0 : index
    %c0_447 = arith.constant 0 : index
    %936 = vector.load %arg15[%935, %c0_446, %c0_447] : memref<8x8x256xf32, #tpu.memory_space<vmem>>, vector<1x8x256xf32>
    %937 = vector.shape_cast %936 : vector<1x8x256xf32> to vector<8x256xf32>
    %c7_i32_448 = arith.constant 7 : i32
    %938 = arith.subi %c7_i32_448, %c1_i32_445 : i32
    %939 = arith.index_cast %938 : i32 to index
    %c0_449 = arith.constant 0 : index
    %c0_450 = arith.constant 0 : index
    %940 = vector.load %arg15[%939, %c0_449, %c0_450] : memref<8x8x256xf32, #tpu.memory_space<vmem>>, vector<1x8x256xf32>
    %941 = vector.shape_cast %940 : vector<1x8x256xf32> to vector<8x256xf32>
    %942 = vector.extract_strided_slice %937 {offsets = [0, 0], sizes = [8, 128], strides = [1, 1]} : vector<8x256xf32> to vector<8x128xf32>
    %943 = vector.extract_strided_slice %941 {offsets = [0, 128], sizes = [8, 128], strides = [1, 1]} : vector<8x256xf32> to vector<8x128xf32>
    %944 = tpu.concatenate %942, %943 in 1 : vector<8x128xf32>, vector<8x128xf32> -> vector<8x256xf32>
    %c0_451 = arith.constant 0 : index
    %c0_452 = arith.constant 0 : index
    %945 = vector.load %arg18[%c0_451, %c0_452] : memref<8x64xf32, #tpu.memory_space<vmem>>, vector<8x64xf32>
    %cst_453 = arith.constant dense<0.000000e+00> : vector<8x256xf32>
    %946 = tpu.matmul %945, %885, %cst_453 {dimension_numbers = #tpu.dot_dimension_numbers<[1], [0], [0], [1], [0, 0, 1, 1], [], []>} : vector<8x64xf32>, vector<64x256xf32>, vector<8x256xf32> -> vector<8x256xf32>
    %947 = arith.addf %944, %946 : vector<8x256xf32>
    %948 = arith.negf %947 : vector<8x256xf32>
    %949 = math.exp %948 : vector<8x256xf32>
    %cst_454 = arith.constant 1.000000e+00 : f32
    %950 = vector.broadcast %cst_454 : f32 to vector<8x256xf32>
    %951 = arith.addf %950, %949 : vector<8x256xf32>
    %952 = arith.divf %950, %951 : vector<8x256xf32>
    %953 = math.tanh %947 : vector<8x256xf32>
    %954 = vector.extract_strided_slice %952 {offsets = [0, 32], sizes = [8, 32], strides = [1, 1]} : vector<8x256xf32> to vector<8x32xf32>
    %c0_455 = arith.constant 0 : index
    %c0_456 = arith.constant 0 : index
    %955 = vector.load %arg19[%c0_455, %c0_456] : memref<8x64xf32, #tpu.memory_space<vmem>>, vector<8x32xf32>
    %956 = arith.mulf %954, %955 : vector<8x32xf32>
    %957 = vector.extract_strided_slice %952 {offsets = [0, 0], sizes = [8, 32], strides = [1, 1]} : vector<8x256xf32> to vector<8x32xf32>
    %958 = vector.extract_strided_slice %953 {offsets = [0, 64], sizes = [8, 32], strides = [1, 1]} : vector<8x256xf32> to vector<8x32xf32>
    %959 = arith.mulf %957, %958 : vector<8x32xf32>
    %960 = arith.addf %956, %959 : vector<8x32xf32>
    %961 = vector.extract_strided_slice %952 {offsets = [0, 160], sizes = [8, 32], strides = [1, 1]} : vector<8x256xf32> to vector<8x32xf32>
    %c0_457 = arith.constant 0 : index
    %c32_458 = arith.constant 32 : index
    %962 = vector.load %arg19[%c0_457, %c32_458] : memref<8x64xf32, #tpu.memory_space<vmem>>, vector<8x32xf32>
    %963 = arith.mulf %961, %962 : vector<8x32xf32>
    %964 = vector.extract_strided_slice %952 {offsets = [0, 128], sizes = [8, 32], strides = [1, 1]} : vector<8x256xf32> to vector<8x32xf32>
    %965 = vector.extract_strided_slice %953 {offsets = [0, 192], sizes = [8, 32], strides = [1, 1]} : vector<8x256xf32> to vector<8x32xf32>
    %966 = arith.mulf %964, %965 : vector<8x32xf32>
    %967 = arith.addf %963, %966 : vector<8x32xf32>
    %968 = vector.extract_strided_slice %952 {offsets = [0, 96], sizes = [8, 32], strides = [1, 1]} : vector<8x256xf32> to vector<8x32xf32>
    %969 = math.tanh %960 : vector<8x32xf32>
    %970 = arith.mulf %968, %969 : vector<8x32xf32>
    %971 = vector.extract_strided_slice %952 {offsets = [0, 224], sizes = [8, 32], strides = [1, 1]} : vector<8x256xf32> to vector<8x32xf32>
    %972 = math.tanh %967 : vector<8x32xf32>
    %973 = arith.mulf %971, %972 : vector<8x32xf32>
    %974 = tpu.concatenate %960, %967 in 1 : vector<8x32xf32>, vector<8x32xf32> -> vector<8x64xf32>
    %c0_459 = arith.constant 0 : index
    %c0_460 = arith.constant 0 : index
    %975 = vector.load %arg19[%c0_459, %c0_460] : memref<8x64xf32, #tpu.memory_space<vmem>>, vector<8x64xf32>
    tpu.vector_store %arg19[%c0_459, %c0_460], %974 {strides = array<i32>} : memref<8x64xf32, #tpu.memory_space<vmem>>, vector<8x64xf32>,
    %976 = tpu.concatenate %970, %973 in 1 : vector<8x32xf32>, vector<8x32xf32> -> vector<8x64xf32>
    %c0_461 = arith.constant 0 : index
    %c0_462 = arith.constant 0 : index
    %977 = vector.load %arg18[%c0_461, %c0_462] : memref<8x64xf32, #tpu.memory_space<vmem>>, vector<8x64xf32>
    tpu.vector_store %arg18[%c0_461, %c0_462], %976 {strides = array<i32>} : memref<8x64xf32, #tpu.memory_space<vmem>>, vector<8x64xf32>,
    %c4_i32_463 = arith.constant 4 : i32
    %978 = arith.cmpi eq, %c1_i32_445, %c4_i32_463 : i32
    %979 = arith.extui %978 : i1 to i32
    %c0_i32_464 = arith.constant 0 : i32
    %980 = arith.cmpi ne, %979, %c0_i32_464 : i32
    scf.if %980 {
      %c0_552 = arith.constant 0 : index
      %c0_553 = arith.constant 0 : index
      %1154 = vector.load %arg20[%c0_552, %c0_553] : memref<8x32xf32, #tpu.memory_space<vmem>>, vector<8x32xf32>
      tpu.vector_store %arg20[%c0_552, %c0_553], %970 {strides = array<i32>} : memref<8x32xf32, #tpu.memory_space<vmem>>, vector<8x32xf32>,
    } else {
    }
    %c3_i32_465 = arith.constant 3 : i32
    %981 = arith.cmpi eq, %c1_i32_445, %c3_i32_465 : i32
    %982 = arith.extui %981 : i1 to i32
    %c0_i32_466 = arith.constant 0 : i32
    %983 = arith.cmpi ne, %982, %c0_i32_466 : i32
    scf.if %983 {
      %c0_552 = arith.constant 0 : index
      %c0_553 = arith.constant 0 : index
      %1154 = vector.load %arg21[%c0_552, %c0_553] : memref<8x32xf32, #tpu.memory_space<vmem>>, vector<8x32xf32>
      tpu.vector_store %arg21[%c0_552, %c0_553], %973 {strides = array<i32>} : memref<8x32xf32, #tpu.memory_space<vmem>>, vector<8x32xf32>,
    } else {
    }
    %c2_i32_467 = arith.constant 2 : i32
    %984 = arith.index_cast %c2_i32_467 : i32 to index
    %c0_468 = arith.constant 0 : index
    %c0_469 = arith.constant 0 : index
    %985 = vector.load %arg15[%984, %c0_468, %c0_469] : memref<8x8x256xf32, #tpu.memory_space<vmem>>, vector<1x8x256xf32>
    %986 = vector.shape_cast %985 : vector<1x8x256xf32> to vector<8x256xf32>
    %c7_i32_470 = arith.constant 7 : i32
    %987 = arith.subi %c7_i32_470, %c2_i32_467 : i32
    %988 = arith.index_cast %987 : i32 to index
    %c0_471 = arith.constant 0 : index
    %c0_472 = arith.constant 0 : index
    %989 = vector.load %arg15[%988, %c0_471, %c0_472] : memref<8x8x256xf32, #tpu.memory_space<vmem>>, vector<1x8x256xf32>
    %990 = vector.shape_cast %989 : vector<1x8x256xf32> to vector<8x256xf32>
    %991 = vector.extract_strided_slice %986 {offsets = [0, 0], sizes = [8, 128], strides = [1, 1]} : vector<8x256xf32> to vector<8x128xf32>
    %992 = vector.extract_strided_slice %990 {offsets = [0, 128], sizes = [8, 128], strides = [1, 1]} : vector<8x256xf32> to vector<8x128xf32>
    %993 = tpu.concatenate %991, %992 in 1 : vector<8x128xf32>, vector<8x128xf32> -> vector<8x256xf32>
    %c0_473 = arith.constant 0 : index
    %c0_474 = arith.constant 0 : index
    %994 = vector.load %arg18[%c0_473, %c0_474] : memref<8x64xf32, #tpu.memory_space<vmem>>, vector<8x64xf32>
    %cst_475 = arith.constant dense<0.000000e+00> : vector<8x256xf32>
    %995 = tpu.matmul %994, %885, %cst_475 {dimension_numbers = #tpu.dot_dimension_numbers<[1], [0], [0], [1], [0, 0, 1, 1], [], []>} : vector<8x64xf32>, vector<64x256xf32>, vector<8x256xf32> -> vector<8x256xf32>
    %996 = arith.addf %993, %995 : vector<8x256xf32>
    %997 = arith.negf %996 : vector<8x256xf32>
    %998 = math.exp %997 : vector<8x256xf32>
    %cst_476 = arith.constant 1.000000e+00 : f32
    %999 = vector.broadcast %cst_476 : f32 to vector<8x256xf32>
    %1000 = arith.addf %999, %998 : vector<8x256xf32>
    %1001 = arith.divf %999, %1000 : vector<8x256xf32>
    %1002 = math.tanh %996 : vector<8x256xf32>
    %1003 = vector.extract_strided_slice %1001 {offsets = [0, 32], sizes = [8, 32], strides = [1, 1]} : vector<8x256xf32> to vector<8x32xf32>
    %c0_477 = arith.constant 0 : index
    %c0_478 = arith.constant 0 : index
    %1004 = vector.load %arg19[%c0_477, %c0_478] : memref<8x64xf32, #tpu.memory_space<vmem>>, vector<8x32xf32>
    %1005 = arith.mulf %1003, %1004 : vector<8x32xf32>
    %1006 = vector.extract_strided_slice %1001 {offsets = [0, 0], sizes = [8, 32], strides = [1, 1]} : vector<8x256xf32> to vector<8x32xf32>
    %1007 = vector.extract_strided_slice %1002 {offsets = [0, 64], sizes = [8, 32], strides = [1, 1]} : vector<8x256xf32> to vector<8x32xf32>
    %1008 = arith.mulf %1006, %1007 : vector<8x32xf32>
    %1009 = arith.addf %1005, %1008 : vector<8x32xf32>
    %1010 = vector.extract_strided_slice %1001 {offsets = [0, 160], sizes = [8, 32], strides = [1, 1]} : vector<8x256xf32> to vector<8x32xf32>
    %c0_479 = arith.constant 0 : index
    %c32_480 = arith.constant 32 : index
    %1011 = vector.load %arg19[%c0_479, %c32_480] : memref<8x64xf32, #tpu.memory_space<vmem>>, vector<8x32xf32>
    %1012 = arith.mulf %1010, %1011 : vector<8x32xf32>
    %1013 = vector.extract_strided_slice %1001 {offsets = [0, 128], sizes = [8, 32], strides = [1, 1]} : vector<8x256xf32> to vector<8x32xf32>
    %1014 = vector.extract_strided_slice %1002 {offsets = [0, 192], sizes = [8, 32], strides = [1, 1]} : vector<8x256xf32> to vector<8x32xf32>
    %1015 = arith.mulf %1013, %1014 : vector<8x32xf32>
    %1016 = arith.addf %1012, %1015 : vector<8x32xf32>
    %1017 = vector.extract_strided_slice %1001 {offsets = [0, 96], sizes = [8, 32], strides = [1, 1]} : vector<8x256xf32> to vector<8x32xf32>
    %1018 = math.tanh %1009 : vector<8x32xf32>
    %1019 = arith.mulf %1017, %1018 : vector<8x32xf32>
    %1020 = vector.extract_strided_slice %1001 {offsets = [0, 224], sizes = [8, 32], strides = [1, 1]} : vector<8x256xf32> to vector<8x32xf32>
    %1021 = math.tanh %1016 : vector<8x32xf32>
    %1022 = arith.mulf %1020, %1021 : vector<8x32xf32>
    %1023 = tpu.concatenate %1009, %1016 in 1 : vector<8x32xf32>, vector<8x32xf32> -> vector<8x64xf32>
    %c0_481 = arith.constant 0 : index
    %c0_482 = arith.constant 0 : index
    %1024 = vector.load %arg19[%c0_481, %c0_482] : memref<8x64xf32, #tpu.memory_space<vmem>>, vector<8x64xf32>
    tpu.vector_store %arg19[%c0_481, %c0_482], %1023 {strides = array<i32>} : memref<8x64xf32, #tpu.memory_space<vmem>>, vector<8x64xf32>,
    %1025 = tpu.concatenate %1019, %1022 in 1 : vector<8x32xf32>, vector<8x32xf32> -> vector<8x64xf32>
    %c0_483 = arith.constant 0 : index
    %c0_484 = arith.constant 0 : index
    %1026 = vector.load %arg18[%c0_483, %c0_484] : memref<8x64xf32, #tpu.memory_space<vmem>>, vector<8x64xf32>
    tpu.vector_store %arg18[%c0_483, %c0_484], %1025 {strides = array<i32>} : memref<8x64xf32, #tpu.memory_space<vmem>>, vector<8x64xf32>,
    %c4_i32_485 = arith.constant 4 : i32
    %1027 = arith.cmpi eq, %c2_i32_467, %c4_i32_485 : i32
    %1028 = arith.extui %1027 : i1 to i32
    %c0_i32_486 = arith.constant 0 : i32
    %1029 = arith.cmpi ne, %1028, %c0_i32_486 : i32
    scf.if %1029 {
      %c0_552 = arith.constant 0 : index
      %c0_553 = arith.constant 0 : index
      %1154 = vector.load %arg20[%c0_552, %c0_553] : memref<8x32xf32, #tpu.memory_space<vmem>>, vector<8x32xf32>
      tpu.vector_store %arg20[%c0_552, %c0_553], %1019 {strides = array<i32>} : memref<8x32xf32, #tpu.memory_space<vmem>>, vector<8x32xf32>,
    } else {
    }
    %c3_i32_487 = arith.constant 3 : i32
    %1030 = arith.cmpi eq, %c2_i32_467, %c3_i32_487 : i32
    %1031 = arith.extui %1030 : i1 to i32
    %c0_i32_488 = arith.constant 0 : i32
    %1032 = arith.cmpi ne, %1031, %c0_i32_488 : i32
    scf.if %1032 {
      %c0_552 = arith.constant 0 : index
      %c0_553 = arith.constant 0 : index
      %1154 = vector.load %arg21[%c0_552, %c0_553] : memref<8x32xf32, #tpu.memory_space<vmem>>, vector<8x32xf32>
      tpu.vector_store %arg21[%c0_552, %c0_553], %1022 {strides = array<i32>} : memref<8x32xf32, #tpu.memory_space<vmem>>, vector<8x32xf32>,
    } else {
    }
    %c3_i32_489 = arith.constant 3 : i32
    %1033 = arith.index_cast %c3_i32_489 : i32 to index
    %c0_490 = arith.constant 0 : index
    %c0_491 = arith.constant 0 : index
    %1034 = vector.load %arg15[%1033, %c0_490, %c0_491] : memref<8x8x256xf32, #tpu.memory_space<vmem>>, vector<1x8x256xf32>
    %1035 = vector.shape_cast %1034 : vector<1x8x256xf32> to vector<8x256xf32>
    %c7_i32_492 = arith.constant 7 : i32
    %1036 = arith.subi %c7_i32_492, %c3_i32_489 : i32
    %1037 = arith.index_cast %1036 : i32 to index
    %c0_493 = arith.constant 0 : index
    %c0_494 = arith.constant 0 : index
    %1038 = vector.load %arg15[%1037, %c0_493, %c0_494] : memref<8x8x256xf32, #tpu.memory_space<vmem>>, vector<1x8x256xf32>
    %1039 = vector.shape_cast %1038 : vector<1x8x256xf32> to vector<8x256xf32>
    %1040 = vector.extract_strided_slice %1035 {offsets = [0, 0], sizes = [8, 128], strides = [1, 1]} : vector<8x256xf32> to vector<8x128xf32>
    %1041 = vector.extract_strided_slice %1039 {offsets = [0, 128], sizes = [8, 128], strides = [1, 1]} : vector<8x256xf32> to vector<8x128xf32>
    %1042 = tpu.concatenate %1040, %1041 in 1 : vector<8x128xf32>, vector<8x128xf32> -> vector<8x256xf32>
    %c0_495 = arith.constant 0 : index
    %c0_496 = arith.constant 0 : index
    %1043 = vector.load %arg18[%c0_495, %c0_496] : memref<8x64xf32, #tpu.memory_space<vmem>>, vector<8x64xf32>
    %cst_497 = arith.constant dense<0.000000e+00> : vector<8x256xf32>
    %1044 = tpu.matmul %1043, %885, %cst_497 {dimension_numbers = #tpu.dot_dimension_numbers<[1], [0], [0], [1], [0, 0, 1, 1], [], []>} : vector<8x64xf32>, vector<64x256xf32>, vector<8x256xf32> -> vector<8x256xf32>
    %1045 = arith.addf %1042, %1044 : vector<8x256xf32>
    %1046 = arith.negf %1045 : vector<8x256xf32>
    %1047 = math.exp %1046 : vector<8x256xf32>
    %cst_498 = arith.constant 1.000000e+00 : f32
    %1048 = vector.broadcast %cst_498 : f32 to vector<8x256xf32>
    %1049 = arith.addf %1048, %1047 : vector<8x256xf32>
    %1050 = arith.divf %1048, %1049 : vector<8x256xf32>
    %1051 = math.tanh %1045 : vector<8x256xf32>
    %1052 = vector.extract_strided_slice %1050 {offsets = [0, 32], sizes = [8, 32], strides = [1, 1]} : vector<8x256xf32> to vector<8x32xf32>
    %c0_499 = arith.constant 0 : index
    %c0_500 = arith.constant 0 : index
    %1053 = vector.load %arg19[%c0_499, %c0_500] : memref<8x64xf32, #tpu.memory_space<vmem>>, vector<8x32xf32>
    %1054 = arith.mulf %1052, %1053 : vector<8x32xf32>
    %1055 = vector.extract_strided_slice %1050 {offsets = [0, 0], sizes = [8, 32], strides = [1, 1]} : vector<8x256xf32> to vector<8x32xf32>
    %1056 = vector.extract_strided_slice %1051 {offsets = [0, 64], sizes = [8, 32], strides = [1, 1]} : vector<8x256xf32> to vector<8x32xf32>
    %1057 = arith.mulf %1055, %1056 : vector<8x32xf32>
    %1058 = arith.addf %1054, %1057 : vector<8x32xf32>
    %1059 = vector.extract_strided_slice %1050 {offsets = [0, 160], sizes = [8, 32], strides = [1, 1]} : vector<8x256xf32> to vector<8x32xf32>
    %c0_501 = arith.constant 0 : index
    %c32_502 = arith.constant 32 : index
    %1060 = vector.load %arg19[%c0_501, %c32_502] : memref<8x64xf32, #tpu.memory_space<vmem>>, vector<8x32xf32>
    %1061 = arith.mulf %1059, %1060 : vector<8x32xf32>
    %1062 = vector.extract_strided_slice %1050 {offsets = [0, 128], sizes = [8, 32], strides = [1, 1]} : vector<8x256xf32> to vector<8x32xf32>
    %1063 = vector.extract_strided_slice %1051 {offsets = [0, 192], sizes = [8, 32], strides = [1, 1]} : vector<8x256xf32> to vector<8x32xf32>
    %1064 = arith.mulf %1062, %1063 : vector<8x32xf32>
    %1065 = arith.addf %1061, %1064 : vector<8x32xf32>
    %1066 = vector.extract_strided_slice %1050 {offsets = [0, 96], sizes = [8, 32], strides = [1, 1]} : vector<8x256xf32> to vector<8x32xf32>
    %1067 = math.tanh %1058 : vector<8x32xf32>
    %1068 = arith.mulf %1066, %1067 : vector<8x32xf32>
    %1069 = vector.extract_strided_slice %1050 {offsets = [0, 224], sizes = [8, 32], strides = [1, 1]} : vector<8x256xf32> to vector<8x32xf32>
    %1070 = math.tanh %1065 : vector<8x32xf32>
    %1071 = arith.mulf %1069, %1070 : vector<8x32xf32>
    %1072 = tpu.concatenate %1058, %1065 in 1 : vector<8x32xf32>, vector<8x32xf32> -> vector<8x64xf32>
    %c0_503 = arith.constant 0 : index
    %c0_504 = arith.constant 0 : index
    %1073 = vector.load %arg19[%c0_503, %c0_504] : memref<8x64xf32, #tpu.memory_space<vmem>>, vector<8x64xf32>
    tpu.vector_store %arg19[%c0_503, %c0_504], %1072 {strides = array<i32>} : memref<8x64xf32, #tpu.memory_space<vmem>>, vector<8x64xf32>,
    %1074 = tpu.concatenate %1068, %1071 in 1 : vector<8x32xf32>, vector<8x32xf32> -> vector<8x64xf32>
    %c0_505 = arith.constant 0 : index
    %c0_506 = arith.constant 0 : index
    %1075 = vector.load %arg18[%c0_505, %c0_506] : memref<8x64xf32, #tpu.memory_space<vmem>>, vector<8x64xf32>
    tpu.vector_store %arg18[%c0_505, %c0_506], %1074 {strides = array<i32>} : memref<8x64xf32, #tpu.memory_space<vmem>>, vector<8x64xf32>,
    %c4_i32_507 = arith.constant 4 : i32
    %1076 = arith.cmpi eq, %c3_i32_489, %c4_i32_507 : i32
    %1077 = arith.extui %1076 : i1 to i32
    %c0_i32_508 = arith.constant 0 : i32
    %1078 = arith.cmpi ne, %1077, %c0_i32_508 : i32
    scf.if %1078 {
      %c0_552 = arith.constant 0 : index
      %c0_553 = arith.constant 0 : index
      %1154 = vector.load %arg20[%c0_552, %c0_553] : memref<8x32xf32, #tpu.memory_space<vmem>>, vector<8x32xf32>
      tpu.vector_store %arg20[%c0_552, %c0_553], %1068 {strides = array<i32>} : memref<8x32xf32, #tpu.memory_space<vmem>>, vector<8x32xf32>,
    } else {
    }
    %c3_i32_509 = arith.constant 3 : i32
    %1079 = arith.cmpi eq, %c3_i32_489, %c3_i32_509 : i32
    %1080 = arith.extui %1079 : i1 to i32
    %c0_i32_510 = arith.constant 0 : i32
    %1081 = arith.cmpi ne, %1080, %c0_i32_510 : i32
    scf.if %1081 {
      %c0_552 = arith.constant 0 : index
      %c0_553 = arith.constant 0 : index
      %1154 = vector.load %arg21[%c0_552, %c0_553] : memref<8x32xf32, #tpu.memory_space<vmem>>, vector<8x32xf32>
      tpu.vector_store %arg21[%c0_552, %c0_553], %1071 {strides = array<i32>} : memref<8x32xf32, #tpu.memory_space<vmem>>, vector<8x32xf32>,
    } else {
    }
    %c4_i32_511 = arith.constant 4 : i32
    %1082 = arith.index_cast %c4_i32_511 : i32 to index
    %c0_512 = arith.constant 0 : index
    %c0_513 = arith.constant 0 : index
    %1083 = vector.load %arg15[%1082, %c0_512, %c0_513] : memref<8x8x256xf32, #tpu.memory_space<vmem>>, vector<1x8x256xf32>
    %1084 = vector.shape_cast %1083 : vector<1x8x256xf32> to vector<8x256xf32>
    %c7_i32_514 = arith.constant 7 : i32
    %1085 = arith.subi %c7_i32_514, %c4_i32_511 : i32
    %1086 = arith.index_cast %1085 : i32 to index
    %c0_515 = arith.constant 0 : index
    %c0_516 = arith.constant 0 : index
    %1087 = vector.load %arg15[%1086, %c0_515, %c0_516] : memref<8x8x256xf32, #tpu.memory_space<vmem>>, vector<1x8x256xf32>
    %1088 = vector.shape_cast %1087 : vector<1x8x256xf32> to vector<8x256xf32>
    %1089 = vector.extract_strided_slice %1084 {offsets = [0, 0], sizes = [8, 128], strides = [1, 1]} : vector<8x256xf32> to vector<8x128xf32>
    %1090 = vector.extract_strided_slice %1088 {offsets = [0, 128], sizes = [8, 128], strides = [1, 1]} : vector<8x256xf32> to vector<8x128xf32>
    %1091 = tpu.concatenate %1089, %1090 in 1 : vector<8x128xf32>, vector<8x128xf32> -> vector<8x256xf32>
    %c0_517 = arith.constant 0 : index
    %c0_518 = arith.constant 0 : index
    %1092 = vector.load %arg18[%c0_517, %c0_518] : memref<8x64xf32, #tpu.memory_space<vmem>>, vector<8x64xf32>
    %cst_519 = arith.constant dense<0.000000e+00> : vector<8x256xf32>
    %1093 = tpu.matmul %1092, %885, %cst_519 {dimension_numbers = #tpu.dot_dimension_numbers<[1], [0], [0], [1], [0, 0, 1, 1], [], []>} : vector<8x64xf32>, vector<64x256xf32>, vector<8x256xf32> -> vector<8x256xf32>
    %1094 = arith.addf %1091, %1093 : vector<8x256xf32>
    %1095 = arith.negf %1094 : vector<8x256xf32>
    %1096 = math.exp %1095 : vector<8x256xf32>
    %cst_520 = arith.constant 1.000000e+00 : f32
    %1097 = vector.broadcast %cst_520 : f32 to vector<8x256xf32>
    %1098 = arith.addf %1097, %1096 : vector<8x256xf32>
    %1099 = arith.divf %1097, %1098 : vector<8x256xf32>
    %1100 = math.tanh %1094 : vector<8x256xf32>
    %1101 = vector.extract_strided_slice %1099 {offsets = [0, 32], sizes = [8, 32], strides = [1, 1]} : vector<8x256xf32> to vector<8x32xf32>
    %c0_521 = arith.constant 0 : index
    %c0_522 = arith.constant 0 : index
    %1102 = vector.load %arg19[%c0_521, %c0_522] : memref<8x64xf32, #tpu.memory_space<vmem>>, vector<8x32xf32>
    %1103 = arith.mulf %1101, %1102 : vector<8x32xf32>
    %1104 = vector.extract_strided_slice %1099 {offsets = [0, 0], sizes = [8, 32], strides = [1, 1]} : vector<8x256xf32> to vector<8x32xf32>
    %1105 = vector.extract_strided_slice %1100 {offsets = [0, 64], sizes = [8, 32], strides = [1, 1]} : vector<8x256xf32> to vector<8x32xf32>
    %1106 = arith.mulf %1104, %1105 : vector<8x32xf32>
    %1107 = arith.addf %1103, %1106 : vector<8x32xf32>
    %1108 = vector.extract_strided_slice %1099 {offsets = [0, 160], sizes = [8, 32], strides = [1, 1]} : vector<8x256xf32> to vector<8x32xf32>
    %c0_523 = arith.constant 0 : index
    %c32_524 = arith.constant 32 : index
    %1109 = vector.load %arg19[%c0_523, %c32_524] : memref<8x64xf32, #tpu.memory_space<vmem>>, vector<8x32xf32>
    %1110 = arith.mulf %1108, %1109 : vector<8x32xf32>
    %1111 = vector.extract_strided_slice %1099 {offsets = [0, 128], sizes = [8, 32], strides = [1, 1]} : vector<8x256xf32> to vector<8x32xf32>
    %1112 = vector.extract_strided_slice %1100 {offsets = [0, 192], sizes = [8, 32], strides = [1, 1]} : vector<8x256xf32> to vector<8x32xf32>
    %1113 = arith.mulf %1111, %1112 : vector<8x32xf32>
    %1114 = arith.addf %1110, %1113 : vector<8x32xf32>
    %1115 = vector.extract_strided_slice %1099 {offsets = [0, 96], sizes = [8, 32], strides = [1, 1]} : vector<8x256xf32> to vector<8x32xf32>
    %1116 = math.tanh %1107 : vector<8x32xf32>
    %1117 = arith.mulf %1115, %1116 : vector<8x32xf32>
    %1118 = vector.extract_strided_slice %1099 {offsets = [0, 224], sizes = [8, 32], strides = [1, 1]} : vector<8x256xf32> to vector<8x32xf32>
    %1119 = math.tanh %1114 : vector<8x32xf32>
    %1120 = arith.mulf %1118, %1119 : vector<8x32xf32>
    %1121 = tpu.concatenate %1107, %1114 in 1 : vector<8x32xf32>, vector<8x32xf32> -> vector<8x64xf32>
    %c0_525 = arith.constant 0 : index
    %c0_526 = arith.constant 0 : index
    %1122 = vector.load %arg19[%c0_525, %c0_526] : memref<8x64xf32, #tpu.memory_space<vmem>>, vector<8x64xf32>
    tpu.vector_store %arg19[%c0_525, %c0_526], %1121 {strides = array<i32>} : memref<8x64xf32, #tpu.memory_space<vmem>>, vector<8x64xf32>,
    %1123 = tpu.concatenate %1117, %1120 in 1 : vector<8x32xf32>, vector<8x32xf32> -> vector<8x64xf32>
    %c0_527 = arith.constant 0 : index
    %c0_528 = arith.constant 0 : index
    %1124 = vector.load %arg18[%c0_527, %c0_528] : memref<8x64xf32, #tpu.memory_space<vmem>>, vector<8x64xf32>
    tpu.vector_store %arg18[%c0_527, %c0_528], %1123 {strides = array<i32>} : memref<8x64xf32, #tpu.memory_space<vmem>>, vector<8x64xf32>,
    %c4_i32_529 = arith.constant 4 : i32
    %1125 = arith.cmpi eq, %c4_i32_511, %c4_i32_529 : i32
    %1126 = arith.extui %1125 : i1 to i32
    %c0_i32_530 = arith.constant 0 : i32
    %1127 = arith.cmpi ne, %1126, %c0_i32_530 : i32
    scf.if %1127 {
      %c0_552 = arith.constant 0 : index
      %c0_553 = arith.constant 0 : index
      %1154 = vector.load %arg20[%c0_552, %c0_553] : memref<8x32xf32, #tpu.memory_space<vmem>>, vector<8x32xf32>
      tpu.vector_store %arg20[%c0_552, %c0_553], %1117 {strides = array<i32>} : memref<8x32xf32, #tpu.memory_space<vmem>>, vector<8x32xf32>,
    } else {
    }
    %c3_i32_531 = arith.constant 3 : i32
    %1128 = arith.cmpi eq, %c4_i32_511, %c3_i32_531 : i32
    %1129 = arith.extui %1128 : i1 to i32
    %c0_i32_532 = arith.constant 0 : i32
    %1130 = arith.cmpi ne, %1129, %c0_i32_532 : i32
    scf.if %1130 {
      %c0_552 = arith.constant 0 : index
      %c0_553 = arith.constant 0 : index
      %1154 = vector.load %arg21[%c0_552, %c0_553] : memref<8x32xf32, #tpu.memory_space<vmem>>, vector<8x32xf32>
      tpu.vector_store %arg21[%c0_552, %c0_553], %1120 {strides = array<i32>} : memref<8x32xf32, #tpu.memory_space<vmem>>, vector<8x32xf32>,
    } else {
    }
    %c5_i32_533 = arith.constant 5 : i32
    %c0_534 = arith.constant 0 : index
    %c0_535 = arith.constant 0 : index
    %1131 = vector.load %arg20[%c0_534, %c0_535] : memref<8x32xf32, #tpu.memory_space<vmem>>, vector<8x32xf32>
    %c0_536 = arith.constant 0 : index
    %c0_537 = arith.constant 0 : index
    %1132 = vector.load %arg21[%c0_536, %c0_537] : memref<8x32xf32, #tpu.memory_space<vmem>>, vector<8x32xf32>
    %1133 = tpu.concatenate %1131, %1132 in 1 : vector<8x32xf32>, vector<8x32xf32> -> vector<8x64xf32>
    %c0_538 = arith.constant 0 : index
    %c0_539 = arith.constant 0 : index
    %1134 = vector.load %arg10[%c0_538, %c0_539] : memref<64x4xf32, #tpu.memory_space<vmem>>, vector<64x4xf32>
    %cst_540 = arith.constant dense<0.000000e+00> : vector<8x4xf32>
    %1135 = tpu.matmul %1133, %1134, %cst_540 {dimension_numbers = #tpu.dot_dimension_numbers<[1], [0], [0], [1], [0, 0, 1, 1], [], []>} : vector<8x64xf32>, vector<64x4xf32>, vector<8x4xf32> -> vector<8x4xf32>
    %c0_541 = arith.constant 0 : index
    %c0_542 = arith.constant 0 : index
    %1136 = vector.load %arg11[%c0_541, %c0_542] : memref<1x4xf32, #tpu.memory_space<vmem>>, vector<1x4xf32>
    %1137 = vector.broadcast %1136 : vector<1x4xf32> to vector<8x4xf32>
    %1138 = arith.addf %1135, %1137 : vector<8x4xf32>
    %c0_543 = arith.constant 0 : index
    %c0_544 = arith.constant 0 : index
    %1139 = vector.load %arg12[%c0_543, %c0_544] : memref<4x2xf32, #tpu.memory_space<vmem>>, vector<4x2xf32>
    %cst_545 = arith.constant dense<0.000000e+00> : vector<8x2xf32>
    %1140 = tpu.matmul %1138, %1139, %cst_545 {dimension_numbers = #tpu.dot_dimension_numbers<[1], [0], [0], [1], [0, 0, 1, 1], [], []>} : vector<8x4xf32>, vector<4x2xf32>, vector<8x2xf32> -> vector<8x2xf32>
    %c0_546 = arith.constant 0 : index
    %c0_547 = arith.constant 0 : index
    %1141 = vector.load %arg13[%c0_546, %c0_547] : memref<1x2xf32, #tpu.memory_space<vmem>>, vector<1x2xf32>
    %1142 = vector.broadcast %1141 : vector<1x2xf32> to vector<8x2xf32>
    %1143 = arith.addf %1140, %1142 : vector<8x2xf32>
    %cst_548 = arith.constant dense<0xFF800000> : vector<8xf32>
    %1144 = vector.multi_reduction <maximumf>, %1143, %cst_548 [1] : vector<8x2xf32> to vector<8xf32>
    %1145 = vector.shape_cast %1144 : vector<8xf32> to vector<8x1xf32>
    %1146 = vector.broadcast %1145 : vector<8x1xf32> to vector<8x2xf32>
    %1147 = arith.subf %1143, %1146 : vector<8x2xf32>
    %1148 = math.exp %1147 : vector<8x2xf32>
    %cst_549 = arith.constant dense<0.000000e+00> : vector<8xf32>
    %1149 = vector.multi_reduction <add>, %1148, %cst_549 [1] : vector<8x2xf32> to vector<8xf32>
    %1150 = vector.shape_cast %1149 : vector<8xf32> to vector<8x1xf32>
    %1151 = vector.broadcast %1150 : vector<8x1xf32> to vector<8x2xf32>
    %1152 = arith.divf %1148, %1151 : vector<8x2xf32>
    %c0_550 = arith.constant 0 : index
    %c0_551 = arith.constant 0 : index
    %1153 = vector.load %arg14[%c0_550, %c0_551] : memref<8x2xf32, #tpu.memory_space<vmem>>, vector<8x2xf32>
    tpu.vector_store %arg14[%c0_550, %c0_551], %1152 {strides = array<i32>} : memref<8x2xf32, #tpu.memory_space<vmem>>, vector<8x2xf32>,
    return
  }
}

</mosaic_0001>

<bundles_post_ra>
// kernel: signal_pred_forward.1
= control target key start
LH: loop header
LB: loop body
LE: loop exit
PB: predicated region body
PF: predicated region fallthrough
CT: control target
= control target key end

     0   :  { %19 = vsyncpa [#allocation10], 0  ;;  %s6434_s0 = inlined_call_operand.vmem [shape: f32[8,8,16], index: 0, kind: input, shape index: {}]   ;;  %s6435_s1 = inlined_call_operand.vmem [shape: f32[16,256], index: 1, kind: input, shape index: {}]   ;;  %s6436_s2 = inlined_call_operand.vmem [shape: f32[64,256], index: 2, kind: input, shape index: {}]   ;;  %s6437_s3 = inlined_call_operand.vmem [shape: f32[1,256], index: 3, kind: input, shape index: {}]   ;;  %s6438_s4 = inlined_call_operand.hbm [shape: f32[64,256], index: 4, kind: input, shape index: {}]   ;;  %s6439_s5 = inlined_call_operand.hbm [shape: f32[64,256], index: 5, kind: input, shape index: {}]   ;;  %s6440_s6 = inlined_call_operand.vmem [shape: f32[1,256], index: 6, kind: input, shape index: {}]   ;;  %s6441_s7 = inlined_call_operand.hbm [shape: f32[64,256], index: 7, kind: input, shape index: {}]   ;;  %s6442_s8 = inlined_call_operand.hbm [shape: f32[64,256], index: 8, kind: input, shape index: {}]   ;;  %s6443_s9 = inlined_call_operand.vmem [shape: f32[1,256], index: 9, kind: input, shape index: {}]   ;;  %s6444_s10 = inlined_call_operand.vmem [shape: f32[64,4], index: 10, kind: input, shape index: {}]   ;;  %s6445_s11 = inlined_call_operand.vmem [shape: f32[1,4], index: 11, kind: input, shape index: {}]   ;;  %s6446_s12 = inlined_call_operand.vmem [shape: f32[4,2], index: 12, kind: input, shape index: {}]   ;;  %s6447_s13 = inlined_call_operand.vmem [shape: f32[1,2], index: 13, kind: input, shape index: {}]   ;;  %s6448_s14 = inlined_call_operand.vmem [shape: f32[8,2], index: 14, kind: output, shape index: {}]  }
   0x1   :  { %20 = vsyncpa [#allocation12], 0 }
   0x2   :  { %21 = vsyncpa [#allocation15], 0  ;;  %s5046_s29 = smov [#allocation11]   ;;  %s5047_s15 = smov [#allocation9]  }
   0x3   :  { %s47_s30 = sshll.u32 %s5046_s29, 4  ;;  %s35_s16 = sshll.u32 %s5047_s15, 4  ;;  %s48_s30 = int_to_ptr.vmem [resolvable:$true] %s47_s30  ;;  %s36_s16 = int_to_ptr.vmem [resolvable:$true] %s35_s16 }
   0x4   :  { %s4968_s17 = scalar_lea.vmem %s48_s30, 2048  ;;  %p4973_p1 = scmp.lt.s32.totalorder %s48_s30, %s48_s30 }
   0x5   :  { %p4969_p0 = scmp.ne.s32.totalorder %s48_s30, %s4968_s17  ;;  %p4974_p2 = scmp.lt.s32.totalorder %s4968_s17, %s4968_s17 }
   0x7   :  { %p4975_p3 = por %p4974_p2, %p4973_p1 }
   0x9   :  { %p4976_p4 = pnand %p4975_p3, %p4969_p0 }
   0xb   :  { %4979 = shalt.err (!%p4976_p4)
}
   0xc   :  { %s5048_s18 = smov 256   ;;  %s5049_s19 = smov 16  }
   0xd   :  { %53 = dma.hbm_to_vmem [thread:$0]  %s6439_s5, 2048, %s48_s30, [#allocation12], %s5048_s18, %s5048_s18, %s5049_s19  }
   0xe   :  { %s4988_s22 = scalar_lea.vmem %s36_s16, 2048  ;;  %p4993_p6 = scmp.lt.s32.totalorder %s36_s16, %s36_s16 }
   0xf   :  { %p4989_p5 = scmp.ne.s32.totalorder %s36_s16, %s4988_s22  ;;  %p4994_p7 = scmp.lt.s32.totalorder %s4988_s22, %s4988_s22 }
  0x11   :  { %p4995_p8 = por %p4994_p7, %p4993_p6 }
  0x13   :  { %p4996_p9 = pnand %p4995_p8, %p4989_p5 }
  0x15   :  { %4999 = shalt.err (!%p4996_p9)
}
  0x16   :  { %41 = dma.hbm_to_vmem [thread:$0]  %s6438_s4, 2048, %s36_s16, [#allocation10], %s5048_s18, %s5048_s18, %s5049_s19  }
  0x17   :  { %s5050_s25 = smov [#allocation13]   ;;  %s5051_s27 = smov [#allocation14]  }
  0x18   :  { %s61_s26 = sshll.u32 %s5050_s25, 4  ;;  %s73_s28 = sshll.u32 %s5051_s27, 4  ;;  %s62_s26 = int_to_ptr.vmem [resolvable:$true] %s61_s26  ;;  %s74_s28 = int_to_ptr.vmem [resolvable:$true] %s73_s28 }
  0x19   :  { %s5008_s5 = scalar_lea.vmem %s62_s26, 2048  ;;  %p5013_p11 = scmp.lt.s32.totalorder %s62_s26, %s62_s26 }
  0x1a   :  { %p5009_p10 = scmp.ne.s32.totalorder %s62_s26, %s5008_s5  ;;  %p5014_p12 = scmp.lt.s32.totalorder %s5008_s5, %s5008_s5 }
  0x1c   :  { %p5015_p13 = por %p5014_p12, %p5013_p11 }
  0x1e   :  { %p5016_p0 = pnand %p5015_p13, %p5009_p10 }
  0x20   :  { %5019 = shalt.err (!%p5016_p0)
}
  0x21   :  { %67 = dma.hbm_to_vmem [thread:$0]  %s6441_s7, 2048, %s62_s26, [#allocation12], %s5048_s18, %s5048_s18, %s5049_s19  }
  0x22   :  { %s5028_s4 = scalar_lea.vmem %s74_s28, 2048  ;;  %p5033_p2 = scmp.lt.s32.totalorder %s74_s28, %s74_s28 }
  0x23   :  { %p5029_p1 = scmp.ne.s32.totalorder %s74_s28, %s5028_s4  ;;  %p5034_p3 = scmp.lt.s32.totalorder %s5028_s4, %s5028_s4 }
  0x25   :  { %p5035_p4 = por %p5034_p3, %p5033_p2 }
  0x27   :  { %p5036_p5 = pnand %p5035_p4, %p5029_p1 }
  0x29   :  { %5039 = shalt.err (!%p5036_p5)
}
  0x2a   :  { %79 = dma.hbm_to_vmem [thread:$0]  %s6442_s8, 2048, %s74_s28, [#allocation15], %s5048_s18, %s5048_s18, %s5049_s19  }
  0x2b   :  { %5040 = dma.done.wait [#allocation10], 2048  }
  0x2c   :  { %5041 = vsyncadd [#allocation10], 4294965248 }
  0x2d   :  { %5042 = dma.done.wait [#allocation12], 4096  }
  0x2e   :  { %5043 = vsyncadd [#allocation12], 4294963200 }
  0x2f   :  { %5044 = dma.done.wait [#allocation15], 2048  }
  0x30   :  { %5045 = vsyncadd [#allocation15], 4294965248  ;;  %vm280_vm0 = vcmask 523264   ;;  %v5052_v0 = vmov 0.0   ;;  %v113_v1 = vld [vmem:[%s6435_s1 + $0x18] sm:$0xff]  ;;  %v112_v3 = vld [vmem:[%s6435_s1 + $0x10] sm:$0xff]  ;;  %v116_v31 = vlaneseq }
  0x31   :  { %215 = vmatprep.mubr.f32.mxu0 %v5052_v0  ;;  %370 = vmatprep.mubr.f32.mxu1 %v5052_v0  ;;  %281 = vst.msk [vmem:[#allocation5] sm:$0xff] %vm280_vm0, %v5052_v0  ;;  %282 = vst.msk [vmem:[#allocation6] sm:$0xff] %vm280_vm0, %v5052_v0  ;;  %v5168_v2 = vld [vmem:[%s6436_s2 + $0x78] sm:$0xff]  ;;  %v5177_v4 = vld [vmem:[%s6436_s2 + $0x70] sm:$0xff]  ;;  %vm126_vm1 = vcmask 130048   ;;  %s5055_s29 = smov 96  }
  0x32   :  { %179 = vmatprep.subr.mxu0 %v113_v1  ;;  %322 = vmatprep.subr.mxu1 %v5168_v2  ;;  %v111_v5 = vld [vmem:[%s6435_s1 + $0x8] sm:$0xff]  ;;  %v110_v7 = vld [vmem:[%s6435_s1] sm:$0xff]  ;;  %v5203_v10 = vld [vmem:[%s6436_s2 + $0x58] sm:$0xff]  ;;  %s5053_s1 = smov 32   ;;  %v117_v32 = vshrl.u32 %v116_v31, 7  ;;  %vm436_vm2 = vcmask 261120  }
  0x33   :  { %v5185_v6 = vld [vmem:[%s6436_s2 + $0x68] sm:$0xff]  ;;  %180 = vmatpush1.msra.mxu0 %v112_v3  ;;  %323 = vmatpush1.msra.mxu1 %v5177_v4  ;;  %v5194_v8 = vld [vmem:[%s6436_s2 + $0x60] sm:$0xff]  ;;  %v5208_v11 = vld [vmem:[%s6436_s2 + $0x50] sm:$0xff]  ;;  %vm5056_vm3 = vmmov 0   ;;  %vm4357_vm4 = vcmask 1043456   ;;  %vm4353_vm5 = vcmask 31744  }
  0x34   :  { %v102_v9 = vld [vmem:[%s6434_s0] sm:$0xff]  ;;  %181 = vmatprep.subr.mxu0 %v111_v5  ;;  %324 = vmatprep.subr.mxu1 %v5185_v6  ;;  %v5214_v12 = vld [vmem:[%s6436_s2 + $0x48] sm:$0xff]  ;;  %v5231_v15 = vld [vmem:[%s6436_s2 + $0x38] sm:$0xff]  ;;  %v5350_v33 = vsub.s32 1, %v117_v32  ;;  %v5355_v35 = vsub.s32 0, %v117_v32  ;;  %vm4431_vm6 = vcmask 15360  }
  0x35   :  { %182 = vmatpush1.msra.mxu0 %v110_v7  ;;  %325 = vmatpush1.msra.mxu1 %v5194_v8  ;;  %v5221_v13 = vld [vmem:[%s6436_s2 + $0x40] sm:$0xff]  ;;  %v103_v14 = vld [vmem:[%s6434_s0 + $0x8] sm:$0xff]  ;;  %v5237_v16 = vld [vmem:[%s6436_s2 + $0x30] sm:$0xff] }
  0x36   :  { %4451 = vmatmul.mubr.msk.f32.vlgmr.msra.gmra.mxu0 %vm126_vm1, %v102_v9  ;;  %326 = vmatprep.subr.mxu1 %v5203_v10  ;;  %v5244_v17 = vld [vmem:[%s6436_s2 + $0x28] sm:$0xff]  ;;  %v5252_v18 = vld [vmem:[%s6436_s2 + $0x20] sm:$0xff]  ;;  %v104_v20 = vld [vmem:[%s6434_s0 + $0x10] sm:$0xff] }
  0x37   :  { %327 = vmatpush1.msra.mxu1 %v5208_v11  ;;  %221 = vmatprep.mubr.f32.mxu0 %v5052_v0  ;;  %v5264_v21 = vld [vmem:[%s6436_s2 + $0x18] sm:$0xff]  ;;  %v5270_v22 = vld [vmem:[%s6436_s2 + $0x10] sm:$0xff]  ;;  %v5278_v23 = vld [vmem:[%s6436_s2 + $0x8] sm:$0xff] }
  0x38   :  { %328 = vmatprep.subr.mxu1 %v5214_v12  ;;  %636 = vmatprep.subr.mxu0 %v5168_v2  ;;  %v5254_v19 = vld [vmem:[#allocation6] sm:$0xff]  ;;  %v5286_v24 = vld [vmem:[%s6436_s2] sm:$0xff]  ;;  %v105_v25 = vld [vmem:[%s6434_s0 + $0x18] sm:$0xff] }
  0x39   :  { %329 = vmatpush1.msra.mxu1 %v5221_v13  ;;  %637 = vmatpush1.msra.mxu0 %v5177_v4  ;;  %v302_v26 = vld [vmem:[#allocation5] sm:$0xff]  ;;  %v107_v28 = vld [vmem:[%s6434_s0 + $0x28] sm:$0xff]  ;;  %v108_v29 = vld [vmem:[%s6434_s0 + $0x30] sm:$0xff] }
  0x3a   :  { %4452 = vmatmul.mubr.msk.f32.gmra.mxu0 %vm126_vm1, %v103_v14  ;;  %330 = vmatprep.subr.mxu1 %v5231_v15  ;;  %v106_v27 = vld [vmem:[%s6434_s0 + $0x20] sm:$0xff]  ;;  %v109_v30 = vld [vmem:[%s6434_s0 + $0x38] sm:$0xff] }
  0x3b   :  { %331 = vmatpush1.msra.mxu1 %v5237_v16  ;;  %227 = vmatprep.mubr.f32.mxu0 %v5052_v0  ;;  %v114_v34 = vld [vmem:[%s6437_s3] sm:$0x3]  ;;  %s5054_s3 = smov 64  }
  0x3c   :  { %332 = vmatprep.subr.mxu1 %v5244_v17  ;;  %395 = vrot.lane.b32.xlu1 %v5254_v19, %s5053_s1  ;;  %v123_v36 = vrot.slane %v114_v34, %v5350_v33  ;;  %v119_v39 = vrot.slane %v114_v34, %v5355_v35 }
  0x3d   :  { %333 = vmatpush1.msra.mxu1 %v5252_v18  ;;  %638 = vmatprep.subr.mxu0 %v5185_v6 }
  0x3e   :  { %4453 = vmatmul.mubr.msk.f32.gmra.mxu0 %vm126_vm1, %v104_v20  ;;  %334 = vmatprep.subr.mxu1 %v5264_v21 }
  0x3f   :  { %335 = vmatpush1.msra.mxu1 %v5270_v22  ;;  %233 = vmatprep.mubr.f32.mxu0 %v5052_v0 }
  0x40   :  { %336 = vmatprep.subr.mxu1 %v5278_v23  ;;  %639 = vmatpush1.msra.mxu0 %v5194_v8 }
  0x41   :  { %337 = vmatpush1.msra.mxu1 %v5286_v24  ;;  %640 = vmatprep.subr.mxu0 %v5203_v10 }
  0x42   :  { %4454 = vmatmul.mubr.msk.f32.gmra.mxu0 %vm126_vm1, %v105_v25  ;;  %4459 = vmatmul.mubr.msk.f32.vlgmr.msra.gmra.mxu1 %vm280_vm0, %v302_v26 }
  0x43   :  { %239 = vmatprep.mubr.f32.mxu0 %v5052_v0  ;;  %479 = vmatprep.subr.mxu1 %v5168_v2 }
  0x44   :  { %480 = vmatpush1.msra.mxu1 %v5177_v4  ;;  %527 = vmatprep.mubr.f32.mxu1 %v5052_v0 }
  0x45   :  { %481 = vmatprep.subr.mxu1 %v5185_v6  ;;  %641 = vmatpush1.msra.mxu0 %v5208_v11 }
  0x46   :  { %4455 = vmatmul.mubr.msk.f32.gmra.mxu0 %vm126_vm1, %v106_v27  ;;  %482 = vmatpush1.msra.mxu1 %v5194_v8 }
  0x47   :  { %245 = vmatprep.mubr.f32.mxu0 %v5052_v0  ;;  %483 = vmatprep.subr.mxu1 %v5203_v10 }
  0x48   :  { %484 = vmatpush1.msra.mxu1 %v5208_v11  ;;  %642 = vmatprep.subr.mxu0 %v5214_v12 }
  0x49   :  { %485 = vmatprep.subr.mxu1 %v5214_v12  ;;  %643 = vmatpush1.msra.mxu0 %v5221_v13 }
  0x4a   :  { %4456 = vmatmul.mubr.msk.f32.gmra.mxu0 %vm126_vm1, %v107_v28  ;;  %486 = vmatpush1.msra.mxu1 %v5221_v13 }
  0x4b   :  { %251 = vmatprep.mubr.f32.mxu0 %v5052_v0  ;;  %487 = vmatprep.subr.mxu1 %v5231_v15 }
  0x4c   :  { %488 = vmatpush1.msra.mxu1 %v5237_v16  ;;  %644 = vmatprep.subr.mxu0 %v5231_v15 }
  0x4d   :  { %489 = vmatprep.subr.mxu1 %v5244_v17  ;;  %645 = vmatpush1.msra.mxu0 %v5237_v16 }
  0x4e   :  { %4457 = vmatmul.mubr.msk.f32.gmra.mxu0 %vm126_vm1, %v108_v29  ;;  %490 = vmatpush1.msra.mxu1 %v5252_v18 }
  0x4f   :  { %257 = vmatprep.mubr.f32.mxu0 %v5052_v0  ;;  %491 = vmatprep.subr.mxu1 %v5264_v21 }
  0x50   :  { %492 = vmatpush1.msra.mxu1 %v5270_v22  ;;  %646 = vmatprep.subr.mxu0 %v5244_v17 }
  0x51   :  { %493 = vmatprep.subr.mxu1 %v5278_v23  ;;  %647 = vmatpush1.msra.mxu0 %v5252_v18 }
  0x52   :  { %4458 = vmatmul.mubr.msk.f32.gmra.mxu0 %vm126_vm1, %v109_v30  ;;  %494 = vmatpush1.msra.mxu1 %v5286_v24 }
  0x53   :  { %648 = vmatprep.subr.mxu0 %v5264_v21  ;;  %684 = vmatprep.mubr.f32.mxu0 %v5052_v0 }
  0x54   :  { %649 = vmatpush1.msra.mxu0 %v5270_v22  ;;  %793 = vmatprep.subr.mxu1 %v5168_v2 }
  0x55   :  { %650 = vmatprep.subr.mxu0 %v5278_v23 }
  0x56   :  { %651 = vmatpush1.msra.mxu0 %v5286_v24 }
  0x57   :  { %948 = vmatprep.subr.mxu0 %v5168_v2 }
  0xf6   :  { %v217_v37 = vpop.f32.mrf.mxu0 }
  0xf7   :  { %v218_v48 = vadd.f32 %v217_v37, %v119_v39 }
  0xf8   :  { %v219_v38 = vpop.f32.mrf.mxu0 }
  0xf9   :  { %v5359_v40 = vadd.f32 %v219_v38, %v123_v36 }
  0xfa   :  { %v223_v41 = vpop.f32.mrf.mxu0 }
  0xfb   :  { %v5361_v42 = vadd.f32 %v223_v41, %v119_v39 }
  0xfc   :  { %v225_v43 = vpop.f32.mrf.mxu0 }
  0xfd   :  { %v5363_v44 = vadd.f32 %v225_v43, %v123_v36 }
  0xfe   :  { %v229_v45 = vpop.f32.mrf.mxu0 }
  0xff   :  { %v5365_v46 = vadd.f32 %v229_v45, %v119_v39 }
 0x100   :  { %v231_v47 = vpop.f32.mrf.mxu0 }
 0x101   :  { %v5367_v49 = vadd.f32 %v231_v47, %v123_v36 }
 0x102   :  { %v235_v50 = vpop.f32.mrf.mxu0  ;;  %v372_v51 = vpop.f32.mrf.mxu1 }
 0x103   :  { %v5369_v52 = vadd.f32 %v235_v50, %v119_v39  ;;  %v377_v53 = vadd.f32 %v372_v51, %v218_v48  ;;  %v396_v48 = vpop.permute.xlu1 %395 }
 0x104   :  { %v237_v54 = vpop.f32.mrf.mxu0  ;;  %v374_v27 = vpop.f32.mrf.mxu1 }
 0x105   :  { %4605 = vtanh.f32 %v377_v53  ;;  %v5371_v55 = vadd.f32 %v237_v54, %v123_v36  ;;  %v4460_v30 = vmul.f32 -1.442695, %v377_v53 }
 0x106   :  { %v241_v56 = vpop.f32.mrf.mxu0 }
 0x107   :  { %v5373_v57 = vadd.f32 %v241_v56, %v119_v39 }
 0x108   :  { %v243_v58 = vpop.f32.mrf.mxu0 }
 0x109   :  { %v5375_v59 = vadd.f32 %v243_v58, %v123_v36 }
 0x10a   :  { %v247_v60 = vpop.f32.mrf.mxu0 }
 0x10b   :  { %v5377_v61 = vadd.f32 %v247_v60, %v119_v39 }
 0x10c   :  { %v249_v62 = vpop.f32.mrf.mxu0 }
 0x10d   :  { %v5379_v63 = vadd.f32 %v249_v62, %v123_v36 }
 0x10e   :  { %v253_v1 = vpop.f32.mrf.mxu0 }
 0x10f   :  { %v5381_v3 = vadd.f32 %v253_v1, %v119_v39 }
 0x110   :  { %v255_v5 = vpop.f32.mrf.mxu0 }
 0x111   :  { %v5383_v7 = vadd.f32 %v255_v5, %v123_v36 }
 0x112   :  { %v4606_v9 = vpop.eup %4605  ;;  %v259_v14 = vpop.f32.mrf.mxu0 }
 0x113   :  { %v5385_v20 = vadd.f32 %v259_v14, %v119_v39  ;;  %400 = vrot.lane.b32.xlu0 %v4606_v9, %s5054_s3 }
 0x114   :  { %v261_v25 = vpop.f32.mrf.mxu0 }
 0x115   :  { %v262_v26 = vadd.f32 %v261_v25, %v123_v36 }
 0x117   :  { %v378_v28 = vadd.f32 %v374_v27, %v262_v26 }
 0x119   :  { %4607 = vtanh.f32 %v378_v28  ;;  %v4461_v34 = vmul.f32 -1.442695, %v378_v28 }
 0x11a   :  { %4609 = vpow2.f32 %v4460_v30 }
 0x126   :  { %v4608_v29 = vpop.eup %4607 }
 0x127   :  { %411 = vrot.lane.b32.xlu0 %v4608_v29, %s5054_s3  ;;  %v4610_v31 = vpop.eup %4609 }
 0x128   :  { %v385_v32 = vadd.f32 1.0, %v4610_v31 }
 0x12a   :  { %4611 = vrcp.f32 %v385_v32 }
 0x12b   :  { %4613 = vpow2.f32 %v4461_v34 }
 0x137   :  { %v4612_v37 = vpop.eup %4611 }
 0x138   :  { %v4614_v38 = vpop.eup %4613  ;;  %v398_v50 = vmul.f32 %v4612_v37, %v396_v48 }
 0x139   :  { %v386_v43 = vadd.f32 1.0, %v4614_v38 }
 0x13b   :  { %4615 = vrcp.f32 %v386_v43 }
 0x148   :  { %v4616_v36 = vpop.eup %4615 }
 0x149   :  { %v409_v56 = vmul.f32 %v4616_v36, %v5254_v19 }
 0x185   :  { %v401_v39 = vpop.permute.xlu0 %400 }
 0x186   :  { %v403_v41 = vmul.f32 %v4612_v37, %v401_v39 }
 0x188   :  { %405 = vrot.lane.b32.xlu1 %v403_v41, %s5053_s1 }
 0x199   :  { %v412_v45 = vpop.permute.xlu0 %411 }
 0x19a   :  { %v414_v47 = vmul.f32 %v4616_v36, %v412_v45 }
 0x19c   :  { %416 = vrot.lane.b32.xlu0 %v414_v47, %s5053_s1 }
 0x1fa   :  { %v406_v51 = vpop.permute.xlu1 %405 }
 0x1fb   :  { %v408_v53 = vadd.f32 %v406_v51, %v398_v50 }
 0x1fd   :  { %4617 = vtanh.f32 %v408_v53 }
 0x20a   :  { %v4618_v54 = vpop.eup %4617 }
 0x20b   :  { %422 = vrot.lane.b32.xlu1 %v4618_v54, %s5054_s3 }
 0x20e   :  { %v417_v58 = vpop.permute.xlu0 %416 }
 0x20f   :  { %v419_v60 = vadd.f32 %v417_v58, %v409_v56 }
 0x211   :  { %4619 = vtanh.f32 %v419_v60 }
 0x21e   :  { %v4620_v62 = vpop.eup %4619 }
 0x21f   :  { %428 = vrot.lane.b32.xlu0 %v4620_v62, %s5054_s3 }
 0x27d   :  { %v423_v1 = vpop.permute.xlu1 %422 }
 0x27e   :  { %v425_v5 = vmul.f32 %v4612_v37, %v423_v1 }
 0x280   :  { %440 = vrot.lane.b32.xlu1 %v425_v5, %s5053_s1 }
 0x284   :  { %433 = vrot.lane.b32.xlu1 %v408_v53, %s5055_s29 }
 0x291   :  { %v429_v9 = vpop.permute.xlu0 %428 }
 0x292   :  { %v5396_v14 = vmul.f32 %v4616_v36, %v429_v9 }
 0x294   :  { %444 = vrot.lane.b32.xlu0 %v5396_v14, %s5054_s3 }
 0x2f2   :  { %v441_v19 = vpop.permute.xlu1 %440 }
 0x2f3   :  { %449 = vst.msk [vmem:[#allocation3] sm:$0xff] %vm436_vm2, %v441_v19 }
 0x2f6   :  { %v434_v25 = vpop.permute.xlu1 %433 }
 0x2f7   :  { %v437_v26 = vsel %vm436_vm2, %v434_v25, %v419_v60 }
 0x2f8   :  { %438 = vst.msk [vmem:[#allocation6] sm:$0xff] %vm280_vm0, %v437_v26 }
 0x2ff   :  { %v550_v39 = vld [vmem:[#allocation6] sm:$0xff] }
 0x306   :  { %v445_v27 = vpop.permute.xlu0 %444 }
 0x307   :  { %v447_v28 = vsel %vm436_vm2, %v441_v19, %v445_v27 }
 0x308   :  { %448 = vst.msk [vmem:[#allocation5] sm:$0xff] %vm280_vm0, %v447_v28 }
 0x30f   :  { %v459_v29 = vld [vmem:[#allocation5] sm:$0xff] }
 0x310   :  { %4462 = vmatmul.mubr.msk.f32.vlgmr.msra.gmra.mxu1 %vm280_vm0, %v459_v29 }
 0x311   :  { %794 = vmatpush1.msra.mxu1 %v5177_v4  ;;  %841 = vmatprep.mubr.f32.mxu1 %v5052_v0 }
 0x312   :  { %795 = vmatprep.subr.mxu1 %v5185_v6 }
 0x313   :  { %796 = vmatpush1.msra.mxu1 %v5194_v8 }
 0x314   :  { %797 = vmatprep.subr.mxu1 %v5203_v10 }
 0x315   :  { %798 = vmatpush1.msra.mxu1 %v5208_v11 }
 0x316   :  { %799 = vmatprep.subr.mxu1 %v5214_v12 }
 0x317   :  { %800 = vmatpush1.msra.mxu1 %v5221_v13 }
 0x318   :  { %801 = vmatprep.subr.mxu1 %v5231_v15 }
 0x319   :  { %802 = vmatpush1.msra.mxu1 %v5237_v16 }
 0x31a   :  { %803 = vmatprep.subr.mxu1 %v5244_v17 }
 0x31b   :  { %804 = vmatpush1.msra.mxu1 %v5252_v18 }
 0x31c   :  { %805 = vmatprep.subr.mxu1 %v5264_v21 }
 0x31d   :  { %806 = vmatpush1.msra.mxu1 %v5270_v22 }
 0x31e   :  { %807 = vmatprep.subr.mxu1 %v5278_v23 }
 0x31f   :  { %808 = vmatpush1.msra.mxu1 %v5286_v24 }
 0x320   :  { %1103 = vmatprep.subr.mxu1 %v5168_v2 }
 0x3d0   :  { %v529_v30 = vpop.f32.mrf.mxu1 }
 0x3d1   :  { %v534_v31 = vadd.f32 %v529_v30, %v5361_v42 }
 0x3d2   :  { %v531_v32 = vpop.f32.mrf.mxu1 }
 0x3d3   :  { %4621 = vtanh.f32 %v534_v31  ;;  %v535_v34 = vadd.f32 %v531_v32, %v5383_v7  ;;  %v4463_v41 = vmul.f32 -1.442695, %v534_v31 }
 0x3d5   :  { %4623 = vtanh.f32 %v535_v34  ;;  %v4464_v43 = vmul.f32 -1.442695, %v535_v34 }
 0x3d6   :  { %4625 = vpow2.f32 %v4463_v41 }
 0x3d7   :  { %4627 = vpow2.f32 %v4464_v43 }
 0x3e0   :  { %v4622_v37 = vpop.eup %4621 }
 0x3e1   :  { %557 = vrot.lane.b32.xlu0 %v4622_v37, %s5054_s3 }
 0x3e2   :  { %v4624_v38 = vpop.eup %4623 }
 0x3e3   :  { %568 = vrot.lane.b32.xlu1 %v4624_v38, %s5054_s3  ;;  %v4626_v36 = vpop.eup %4625 }
 0x3e4   :  { %v4628_v42 = vpop.eup %4627  ;;  %v542_v45 = vadd.f32 1.0, %v4626_v36 }
 0x3e5   :  { %552 = vrot.lane.b32.xlu0 %v550_v39, %s5053_s1  ;;  %v543_v47 = vadd.f32 1.0, %v4628_v42 }
 0x3e6   :  { %4629 = vrcp.f32 %v542_v45 }
 0x3e7   :  { %4631 = vrcp.f32 %v543_v47 }
 0x3f3   :  { %v4630_v7 = vpop.eup %4629 }
 0x3f4   :  { %v4632_v51 = vpop.eup %4631 }
 0x3f5   :  { %v566_v1 = vmul.f32 %v4632_v51, %v550_v39 }
 0x453   :  { %v558_v48 = vpop.permute.xlu0 %557 }
 0x454   :  { %v560_v50 = vmul.f32 %v4630_v7, %v558_v48 }
 0x455   :  { %v569_v53 = vpop.permute.xlu1 %568 }
 0x456   :  { %562 = vrot.lane.b32.xlu1 %v560_v50, %s5053_s1  ;;  %v571_v54 = vmul.f32 %v4632_v51, %v569_v53 }
 0x457   :  { %v553_v56 = vpop.permute.xlu0 %552 }
 0x458   :  { %573 = vrot.lane.b32.xlu0 %v571_v54, %s5053_s1  ;;  %v555_v58 = vmul.f32 %v4630_v7, %v553_v56 }
 0x4c8   :  { %v563_v60 = vpop.permute.xlu1 %562 }
 0x4c9   :  { %v565_v62 = vadd.f32 %v563_v60, %v555_v58 }
 0x4ca   :  { %v574_v5 = vpop.permute.xlu0 %573 }
 0x4cb   :  { %4633 = vtanh.f32 %v565_v62  ;;  %v576_v9 = vadd.f32 %v574_v5, %v566_v1 }
 0x4cd   :  { %4635 = vtanh.f32 %v576_v9 }
 0x4d8   :  { %v4634_v19 = vpop.eup %4633 }
 0x4d9   :  { %579 = vrot.lane.b32.xlu1 %v4634_v19, %s5054_s3 }
 0x4da   :  { %v4636_v25 = vpop.eup %4635 }
 0x4db   :  { %585 = vrot.lane.b32.xlu0 %v4636_v25, %s5054_s3 }
 0x54b   :  { %v580_v26 = vpop.permute.xlu1 %579 }
 0x54c   :  { %v582_v27 = vmul.f32 %v4630_v7, %v580_v26 }
 0x54d   :  { %v586_v28 = vpop.permute.xlu0 %585 }
 0x54e   :  { %596 = vrot.lane.b32.xlu1 %v582_v27, %s5053_s1  ;;  %v5433_v29 = vmul.f32 %v4632_v51, %v586_v28 }
 0x550   :  { %600 = vrot.lane.b32.xlu0 %v5433_v29, %s5054_s3 }
 0x552   :  { %590 = vrot.lane.b32.xlu1 %v565_v62, %s5055_s29 }
 0x5c0   :  { %v597_v30 = vpop.permute.xlu1 %596 }
 0x5c1   :  { %606 = vst.msk [vmem:[#allocation3 + $0x8] sm:$0xff] %vm436_vm2, %v597_v30 }
 0x5c2   :  { %v601_v31 = vpop.permute.xlu0 %600 }
 0x5c3   :  { %v603_v32 = vsel %vm436_vm2, %v597_v30, %v601_v31 }
 0x5c4   :  { %v591_v34 = vpop.permute.xlu1 %590  ;;  %604 = vst.msk [vmem:[#allocation5] sm:$0xff] %vm280_vm0, %v603_v32 }
 0x5c5   :  { %v593_v37 = vsel %vm436_vm2, %v591_v34, %v576_v9 }
 0x5c6   :  { %594 = vst.msk [vmem:[#allocation6] sm:$0xff] %vm280_vm0, %v593_v37 }
 0x5cb   :  { %v616_v38 = vld [vmem:[#allocation5] sm:$0xff] }
 0x5cc   :  { %4465 = vmatmul.mubr.msk.f32.vlgmr.msra.gmra.mxu0 %vm280_vm0, %v616_v38 }
 0x5cd   :  { %949 = vmatpush1.msra.mxu0 %v5177_v4  ;;  %996 = vmatprep.mubr.f32.mxu0 %v5052_v0  ;;  %v707_v47 = vld [vmem:[#allocation6] sm:$0xff] }
 0x5ce   :  { %950 = vmatprep.subr.mxu0 %v5185_v6 }
 0x5cf   :  { %951 = vmatpush1.msra.mxu0 %v5194_v8 }
 0x5d0   :  { %952 = vmatprep.subr.mxu0 %v5203_v10 }
 0x5d1   :  { %953 = vmatpush1.msra.mxu0 %v5208_v11 }
 0x5d2   :  { %954 = vmatprep.subr.mxu0 %v5214_v12 }
 0x5d3   :  { %955 = vmatpush1.msra.mxu0 %v5221_v13 }
 0x5d4   :  { %956 = vmatprep.subr.mxu0 %v5231_v15 }
 0x5d5   :  { %957 = vmatpush1.msra.mxu0 %v5237_v16 }
 0x5d6   :  { %958 = vmatprep.subr.mxu0 %v5244_v17 }
 0x5d7   :  { %959 = vmatpush1.msra.mxu0 %v5252_v18 }
 0x5d8   :  { %960 = vmatprep.subr.mxu0 %v5264_v21 }
 0x5d9   :  { %961 = vmatpush1.msra.mxu0 %v5270_v22 }
 0x5da   :  { %962 = vmatprep.subr.mxu0 %v5278_v23 }
 0x5db   :  { %963 = vmatpush1.msra.mxu0 %v5286_v24 }
 0x5dc   :  { %1258 = vmatprep.subr.mxu0 %v5168_v2 }
 0x68c   :  { %v686_v39 = vpop.f32.mrf.mxu0 }
 0x68d   :  { %v691_v41 = vadd.f32 %v686_v39, %v5365_v46 }
 0x68e   :  { %v688_v43 = vpop.f32.mrf.mxu0 }
 0x68f   :  { %4637 = vtanh.f32 %v691_v41  ;;  %v692_v36 = vadd.f32 %v688_v43, %v5379_v63  ;;  %v4466_v7 = vmul.f32 -1.442695, %v691_v41 }
 0x691   :  { %4639 = vtanh.f32 %v692_v36  ;;  %v4467_v48 = vmul.f32 -1.442695, %v692_v36 }
 0x692   :  { %4641 = vpow2.f32 %v4466_v7 }
 0x693   :  { %4643 = vpow2.f32 %v4467_v48 }
 0x69c   :  { %v4638_v42 = vpop.eup %4637 }
 0x69d   :  { %714 = vrot.lane.b32.xlu0 %v4638_v42, %s5054_s3 }
 0x69e   :  { %v4640_v45 = vpop.eup %4639 }
 0x69f   :  { %725 = vrot.lane.b32.xlu1 %v4640_v45, %s5054_s3  ;;  %v4642_v50 = vpop.eup %4641 }
 0x6a0   :  { %v4644_v46 = vpop.eup %4643  ;;  %v699_v51 = vadd.f32 1.0, %v4642_v50 }
 0x6a1   :  { %709 = vrot.lane.b32.xlu0 %v707_v47, %s5053_s1  ;;  %v700_v53 = vadd.f32 1.0, %v4644_v46 }
 0x6a2   :  { %4645 = vrcp.f32 %v699_v51 }
 0x6a3   :  { %4647 = vrcp.f32 %v700_v53 }
 0x6af   :  { %v4646_v63 = vpop.eup %4645 }
 0x6b0   :  { %v4648_v58 = vpop.eup %4647 }
 0x6b1   :  { %v723_v25 = vmul.f32 %v4648_v58, %v707_v47 }
 0x70f   :  { %v715_v54 = vpop.permute.xlu0 %714 }
 0x710   :  { %v717_v56 = vmul.f32 %v4646_v63, %v715_v54 }
 0x711   :  { %v726_v60 = vpop.permute.xlu1 %725 }
 0x712   :  { %719 = vrot.lane.b32.xlu1 %v717_v56, %s5053_s1  ;;  %v728_v62 = vmul.f32 %v4648_v58, %v726_v60 }
 0x713   :  { %v710_v1 = vpop.permute.xlu0 %709 }
 0x714   :  { %730 = vrot.lane.b32.xlu0 %v728_v62, %s5053_s1  ;;  %v712_v5 = vmul.f32 %v4646_v63, %v710_v1 }
 0x784   :  { %v720_v9 = vpop.permute.xlu1 %719 }
 0x785   :  { %v722_v19 = vadd.f32 %v720_v9, %v712_v5 }
 0x786   :  { %v731_v26 = vpop.permute.xlu0 %730 }
 0x787   :  { %4649 = vtanh.f32 %v722_v19  ;;  %v733_v27 = vadd.f32 %v731_v26, %v723_v25 }
 0x789   :  { %4651 = vtanh.f32 %v733_v27 }
 0x794   :  { %v4650_v28 = vpop.eup %4649 }
 0x795   :  { %736 = vrot.lane.b32.xlu1 %v4650_v28, %s5054_s3 }
 0x796   :  { %v4652_v30 = vpop.eup %4651 }
 0x797   :  { %742 = vrot.lane.b32.xlu0 %v4652_v30, %s5054_s3 }
 0x807   :  { %v737_v31 = vpop.permute.xlu1 %736 }
 0x808   :  { %v739_v32 = vmul.f32 %v4646_v63, %v737_v31 }
 0x809   :  { %v743_v34 = vpop.permute.xlu0 %742 }
 0x80a   :  { %753 = vrot.lane.b32.xlu1 %v739_v32, %s5053_s1  ;;  %v5471_v37 = vmul.f32 %v4648_v58, %v743_v34 }
 0x80c   :  { %757 = vrot.lane.b32.xlu0 %v5471_v37, %s5054_s3 }
 0x80e   :  { %747 = vrot.lane.b32.xlu1 %v722_v19, %s5055_s29 }
 0x87c   :  { %v754_v38 = vpop.permute.xlu1 %753 }
 0x87d   :  { %763 = vst.msk [vmem:[#allocation3 + $0x10] sm:$0xff] %vm436_vm2, %v754_v38 }
 0x87e   :  { %v758_v39 = vpop.permute.xlu0 %757 }
 0x87f   :  { %v760_v41 = vsel %vm436_vm2, %v754_v38, %v758_v39 }
 0x880   :  { %v748_v43 = vpop.permute.xlu1 %747  ;;  %761 = vst.msk [vmem:[#allocation5] sm:$0xff] %vm280_vm0, %v760_v41 }
 0x881   :  { %v750_v36 = vsel %vm436_vm2, %v748_v43, %v733_v27 }
 0x882   :  { %751 = vst.msk [vmem:[#allocation6] sm:$0xff] %vm280_vm0, %v750_v36 }
 0x887   :  { %v773_v42 = vld [vmem:[#allocation5] sm:$0xff] }
 0x888   :  { %4468 = vmatmul.mubr.msk.f32.vlgmr.msra.gmra.mxu1 %vm280_vm0, %v773_v42 }
 0x889   :  { %1104 = vmatpush1.msra.mxu1 %v5177_v4  ;;  %1151 = vmatprep.mubr.f32.mxu1 %v5052_v0  ;;  %v864_v51 = vld [vmem:[#allocation6] sm:$0xff] }
 0x88a   :  { %1105 = vmatprep.subr.mxu1 %v5185_v6 }
 0x88b   :  { %1106 = vmatpush1.msra.mxu1 %v5194_v8 }
 0x88c   :  { %1107 = vmatprep.subr.mxu1 %v5203_v10 }
 0x88d   :  { %1108 = vmatpush1.msra.mxu1 %v5208_v11 }
 0x88e   :  { %1109 = vmatprep.subr.mxu1 %v5214_v12 }
 0x88f   :  { %1110 = vmatpush1.msra.mxu1 %v5221_v13 }
 0x890   :  { %1111 = vmatprep.subr.mxu1 %v5231_v15 }
 0x891   :  { %1112 = vmatpush1.msra.mxu1 %v5237_v16 }
 0x892   :  { %1113 = vmatprep.subr.mxu1 %v5244_v17 }
 0x893   :  { %1114 = vmatpush1.msra.mxu1 %v5252_v18 }
 0x894   :  { %1115 = vmatprep.subr.mxu1 %v5264_v21 }
 0x895   :  { %1116 = vmatpush1.msra.mxu1 %v5270_v22 }
 0x896   :  { %1117 = vmatprep.subr.mxu1 %v5278_v23 }
 0x897   :  { %1118 = vmatpush1.msra.mxu1 %v5286_v24 }
 0x898   :  { %1413 = vmatprep.subr.mxu1 %v5168_v2 }
 0x948   :  { %v843_v45 = vpop.f32.mrf.mxu1 }
 0x949   :  { %v848_v47 = vadd.f32 %v843_v45, %v5369_v52 }
 0x94a   :  { %v845_v7 = vpop.f32.mrf.mxu1 }
 0x94b   :  { %4653 = vtanh.f32 %v848_v47  ;;  %v849_v48 = vadd.f32 %v845_v7, %v5375_v59  ;;  %v4469_v53 = vmul.f32 -1.442695, %v848_v47 }
 0x94d   :  { %4655 = vtanh.f32 %v849_v48  ;;  %v4470_v63 = vmul.f32 -1.442695, %v849_v48 }
 0x94e   :  { %4657 = vpow2.f32 %v4469_v53 }
 0x94f   :  { %4659 = vpow2.f32 %v4470_v63 }
 0x958   :  { %v4654_v50 = vpop.eup %4653 }
 0x959   :  { %871 = vrot.lane.b32.xlu0 %v4654_v50, %s5054_s3 }
 0x95a   :  { %v4656_v46 = vpop.eup %4655 }
 0x95b   :  { %882 = vrot.lane.b32.xlu1 %v4656_v46, %s5054_s3  ;;  %v4658_v2 = vpop.eup %4657 }
 0x95c   :  { %v4660_v52 = vpop.eup %4659  ;;  %v856_v54 = vadd.f32 1.0, %v4658_v2 }
 0x95d   :  { %866 = vrot.lane.b32.xlu0 %v864_v51, %s5053_s1  ;;  %v857_v56 = vadd.f32 1.0, %v4660_v52 }
 0x95e   :  { %4661 = vrcp.f32 %v856_v54 }
 0x95f   :  { %4663 = vrcp.f32 %v857_v56 }
 0x96b   :  { %v4662_v59 = vpop.eup %4661 }
 0x96c   :  { %v4664_v62 = vpop.eup %4663 }
 0x96d   :  { %v880_v27 = vmul.f32 %v4664_v62, %v864_v51 }
 0x9cb   :  { %v872_v58 = vpop.permute.xlu0 %871 }
 0x9cc   :  { %v874_v60 = vmul.f32 %v4662_v59, %v872_v58 }
 0x9cd   :  { %v883_v1 = vpop.permute.xlu1 %882 }
 0x9ce   :  { %876 = vrot.lane.b32.xlu1 %v874_v60, %s5053_s1  ;;  %v885_v5 = vmul.f32 %v4664_v62, %v883_v1 }
 0x9cf   :  { %v867_v9 = vpop.permute.xlu0 %866 }
 0x9d0   :  { %887 = vrot.lane.b32.xlu0 %v885_v5, %s5053_s1  ;;  %v869_v19 = vmul.f32 %v4662_v59, %v867_v9 }
 0xa40   :  { %v877_v25 = vpop.permute.xlu1 %876 }
 0xa41   :  { %v879_v26 = vadd.f32 %v877_v25, %v869_v19 }
 0xa42   :  { %v888_v28 = vpop.permute.xlu0 %887 }
 0xa43   :  { %4665 = vtanh.f32 %v879_v26  ;;  %v890_v30 = vadd.f32 %v888_v28, %v880_v27 }
 0xa45   :  { %4667 = vtanh.f32 %v890_v30 }
 0xa50   :  { %v4666_v31 = vpop.eup %4665 }
 0xa51   :  { %893 = vrot.lane.b32.xlu1 %v4666_v31, %s5054_s3 }
 0xa52   :  { %v4668_v32 = vpop.eup %4667 }
 0xa53   :  { %899 = vrot.lane.b32.xlu0 %v4668_v32, %s5054_s3 }
 0xac3   :  { %v894_v34 = vpop.permute.xlu1 %893 }
 0xac4   :  { %v896_v38 = vmul.f32 %v4662_v59, %v894_v34 }
 0xac5   :  { %v900_v39 = vpop.permute.xlu0 %899 }
 0xac6   :  { %910 = vrot.lane.b32.xlu1 %v896_v38, %s5053_s1  ;;  %v5509_v41 = vmul.f32 %v4664_v62, %v900_v39 }
 0xac8   :  { %914 = vrot.lane.b32.xlu0 %v5509_v41, %s5054_s3 }
 0xaca   :  { %904 = vrot.lane.b32.xlu1 %v879_v26, %s5055_s29 }
 0xb38   :  { %v911_v43 = vpop.permute.xlu1 %910 }
 0xb39   :  { %920 = vst.msk [vmem:[#allocation3 + $0x18] sm:$0xff] %vm436_vm2, %v911_v43 }
 0xb3a   :  { %v915_v36 = vpop.permute.xlu0 %914 }
 0xb3b   :  { %v917_v42 = vsel %vm436_vm2, %v911_v43, %v915_v36 }
 0xb3c   :  { %v905_v45 = vpop.permute.xlu1 %904  ;;  %918 = vst.msk [vmem:[#allocation5] sm:$0xff] %vm280_vm0, %v917_v42 }
 0xb3d   :  { %v907_v47 = vsel %vm436_vm2, %v905_v45, %v890_v30 }
 0xb3e   :  { %908 = vst.msk [vmem:[#allocation6] sm:$0xff] %vm280_vm0, %v907_v47 }
 0xb43   :  { %v928_v7 = vld [vmem:[#allocation5] sm:$0xff] }
 0xb44   :  { %4471 = vmatmul.mubr.msk.f32.vlgmr.msra.gmra.mxu0 %vm280_vm0, %v928_v7 }
 0xb45   :  { %1259 = vmatpush1.msra.mxu0 %v5177_v4  ;;  %1306 = vmatprep.mubr.f32.mxu0 %v5052_v0  ;;  %v1019_v2 = vld [vmem:[#allocation6] sm:$0xff] }
 0xb46   :  { %1260 = vmatprep.subr.mxu0 %v5185_v6 }
 0xb47   :  { %1261 = vmatpush1.msra.mxu0 %v5194_v8 }
 0xb48   :  { %1262 = vmatprep.subr.mxu0 %v5203_v10 }
 0xb49   :  { %1263 = vmatpush1.msra.mxu0 %v5208_v11 }
 0xb4a   :  { %1264 = vmatprep.subr.mxu0 %v5214_v12 }
 0xb4b   :  { %1265 = vmatpush1.msra.mxu0 %v5221_v13 }
 0xb4c   :  { %1266 = vmatprep.subr.mxu0 %v5231_v15 }
 0xb4d   :  { %1267 = vmatpush1.msra.mxu0 %v5237_v16 }
 0xb4e   :  { %1268 = vmatprep.subr.mxu0 %v5244_v17 }
 0xb4f   :  { %1269 = vmatpush1.msra.mxu0 %v5252_v18 }
 0xb50   :  { %1270 = vmatprep.subr.mxu0 %v5264_v21 }
 0xb51   :  { %1271 = vmatpush1.msra.mxu0 %v5270_v22 }
 0xb52   :  { %1272 = vmatprep.subr.mxu0 %v5278_v23 }
 0xb53   :  { %1273 = vmatpush1.msra.mxu0 %v5286_v24 }
 0xc04   :  { %v998_v48 = vpop.f32.mrf.mxu0 }
 0xc05   :  { %v1003_v50 = vadd.f32 %v998_v48, %v5373_v57 }
 0xc06   :  { %v1000_v46 = vpop.f32.mrf.mxu0 }
 0xc07   :  { %4669 = vtanh.f32 %v1003_v50  ;;  %v1004_v51 = vadd.f32 %v1000_v46, %v5371_v55  ;;  %v4472_v52 = vmul.f32 -1.442695, %v1003_v50 }
 0xc09   :  { %4671 = vtanh.f32 %v1004_v51  ;;  %v4473_v54 = vmul.f32 -1.442695, %v1004_v51 }
 0xc0a   :  { %4673 = vpow2.f32 %v4472_v52 }
 0xc0b   :  { %4675 = vpow2.f32 %v4473_v54 }
 0xc14   :  { %v4670_v53 = vpop.eup %4669 }
 0xc15   :  { %1026 = vrot.lane.b32.xlu0 %v4670_v53, %s5054_s3 }
 0xc16   :  { %v4672_v63 = vpop.eup %4671 }
 0xc17   :  { %1037 = vrot.lane.b32.xlu1 %v4672_v63, %s5054_s3  ;;  %v4674_v56 = vpop.eup %4673 }
 0xc18   :  { %v4676_v57 = vpop.eup %4675  ;;  %v1011_v59 = vadd.f32 1.0, %v4674_v56 }
 0xc19   :  { %1021 = vrot.lane.b32.xlu0 %v1019_v2, %s5053_s1  ;;  %v1012_v58 = vadd.f32 1.0, %v4676_v57 }
 0xc1a   :  { %4677 = vrcp.f32 %v1011_v59 }
 0xc1b   :  { %4679 = vrcp.f32 %v1012_v58 }
 0xc27   :  { %v4678_v55 = vpop.eup %4677 }
 0xc28   :  { %v4680_v1 = vpop.eup %4679 }
 0xc29   :  { %v1035_v28 = vmul.f32 %v4680_v1, %v1019_v2 }
 0xc87   :  { %v1027_v60 = vpop.permute.xlu0 %1026 }
 0xc88   :  { %v1029_v62 = vmul.f32 %v4678_v55, %v1027_v60 }
 0xc89   :  { %v1038_v5 = vpop.permute.xlu1 %1037 }
 0xc8a   :  { %1031 = vrot.lane.b32.xlu1 %v1029_v62, %s5053_s1  ;;  %v1040_v9 = vmul.f32 %v4680_v1, %v1038_v5 }
 0xc8b   :  { %v1022_v19 = vpop.permute.xlu0 %1021 }
 0xc8c   :  { %1042 = vrot.lane.b32.xlu0 %v1040_v9, %s5053_s1  ;;  %v1024_v25 = vmul.f32 %v4678_v55, %v1022_v19 }
 0xcfc   :  { %v1032_v26 = vpop.permute.xlu1 %1031 }
 0xcfd   :  { %v1034_v27 = vadd.f32 %v1032_v26, %v1024_v25 }
 0xcfe   :  { %v1043_v30 = vpop.permute.xlu0 %1042 }
 0xcff   :  { %4681 = vtanh.f32 %v1034_v27  ;;  %v1045_v31 = vadd.f32 %v1043_v30, %v1035_v28 }
 0xd01   :  { %4683 = vtanh.f32 %v1045_v31 }
 0xd0c   :  { %v4682_v32 = vpop.eup %4681 }
 0xd0d   :  { %1048 = vrot.lane.b32.xlu1 %v4682_v32, %s5054_s3 }
 0xd0e   :  { %v4684_v34 = vpop.eup %4683 }
 0xd0f   :  { %1054 = vrot.lane.b32.xlu0 %v4684_v34, %s5054_s3 }
 0xd7f   :  { %v1049_v38 = vpop.permute.xlu1 %1048 }
 0xd80   :  { %v1051_v39 = vmul.f32 %v4678_v55, %v1049_v38 }
 0xd81   :  { %v1055_v43 = vpop.permute.xlu0 %1054 }
 0xd82   :  { %1065 = vrot.lane.b32.xlu1 %v1051_v39, %s5053_s1  ;;  %v5546_v36 = vmul.f32 %v4680_v1, %v1055_v43 }
 0xd84   :  { %1069 = vrot.lane.b32.xlu0 %v5546_v36, %s5054_s3 }
 0xd86   :  { %1059 = vrot.lane.b32.xlu1 %v1034_v27, %s5055_s29 }
 0xdf4   :  { %v1066_v42 = vpop.permute.xlu1 %1065 }
 0xdf5   :  { %1075 = vst.msk [vmem:[#allocation3 + $0x20] sm:$0xff] %vm436_vm2, %v1066_v42 }
 0xdf6   :  { %v1070_v45 = vpop.permute.xlu0 %1069 }
 0xdf7   :  { %v1072_v47 = vsel %vm436_vm2, %v1066_v42, %v1070_v45 }
 0xdf8   :  { %v1060_v7 = vpop.permute.xlu1 %1059  ;;  %1073 = vst.msk [vmem:[#allocation5] sm:$0xff] %vm280_vm0, %v1072_v47 }
 0xdf9   :  { %v1062_v48 = vsel %vm436_vm2, %v1060_v7, %v1045_v31 }
 0xdfa   :  { %1063 = vst.msk [vmem:[#allocation6] sm:$0xff] %vm280_vm0, %v1062_v48 }
 0xdff   :  { %v1083_v50 = vld [vmem:[#allocation5] sm:$0xff] }
 0xe00   :  { %4474 = vmatmul.mubr.msk.f32.vlgmr.msra.gmra.mxu1 %vm280_vm0, %v1083_v50 }
 0xe01   :  { %1414 = vmatpush1.msra.mxu1 %v5177_v4  ;;  %1461 = vmatprep.mubr.f32.mxu1 %v5052_v0 }
 0xe02   :  { %1415 = vmatprep.subr.mxu1 %v5185_v6 }
 0xe03   :  { %1416 = vmatpush1.msra.mxu1 %v5194_v8 }
 0xe04   :  { %1417 = vmatprep.subr.mxu1 %v5203_v10 }
 0xe05   :  { %1418 = vmatpush1.msra.mxu1 %v5208_v11 }
 0xe06   :  { %1419 = vmatprep.subr.mxu1 %v5214_v12 }
 0xe07   :  { %1420 = vmatpush1.msra.mxu1 %v5221_v13  ;;  %v1174_v13 = vld [vmem:[#allocation6] sm:$0xff] }
 0xe08   :  { %1421 = vmatprep.subr.mxu1 %v5231_v15 }
 0xe09   :  { %1422 = vmatpush1.msra.mxu1 %v5237_v16 }
 0xe0a   :  { %1423 = vmatprep.subr.mxu1 %v5244_v17 }
 0xe0b   :  { %1424 = vmatpush1.msra.mxu1 %v5252_v18 }
 0xe0c   :  { %1425 = vmatprep.subr.mxu1 %v5264_v21 }
 0xe0d   :  { %1426 = vmatpush1.msra.mxu1 %v5270_v22 }
 0xe0e   :  { %1427 = vmatprep.subr.mxu1 %v5278_v23 }
 0xe0f   :  { %1428 = vmatpush1.msra.mxu1 %v5286_v24 }
 0xec0   :  { %v1153_v4 = vpop.f32.mrf.mxu1 }
 0xec1   :  { %v1158_v6 = vadd.f32 %v1153_v4, %v5377_v61 }
 0xec2   :  { %v1155_v8 = vpop.f32.mrf.mxu1 }
 0xec3   :  { %4685 = vtanh.f32 %v1158_v6  ;;  %v1159_v10 = vadd.f32 %v1155_v8, %v5367_v49  ;;  %v4475_v15 = vmul.f32 -1.442695, %v1158_v6 }
 0xec5   :  { %4687 = vtanh.f32 %v1159_v10  ;;  %v4476_v16 = vmul.f32 -1.442695, %v1159_v10 }
 0xec6   :  { %4689 = vpow2.f32 %v4475_v15 }
 0xec7   :  { %4691 = vpow2.f32 %v4476_v16 }
 0xed0   :  { %v4686_v11 = vpop.eup %4685 }
 0xed1   :  { %1181 = vrot.lane.b32.xlu0 %v4686_v11, %s5054_s3 }
 0xed2   :  { %v4688_v12 = vpop.eup %4687 }
 0xed3   :  { %1192 = vrot.lane.b32.xlu1 %v4688_v12, %s5054_s3  ;;  %v4690_v17 = vpop.eup %4689 }
 0xed4   :  { %v4692_v18 = vpop.eup %4691  ;;  %v1166_v21 = vadd.f32 1.0, %v4690_v17 }
 0xed5   :  { %1176 = vrot.lane.b32.xlu0 %v1174_v13, %s5053_s1  ;;  %v1167_v22 = vadd.f32 1.0, %v4692_v18 }
 0xed6   :  { %4693 = vrcp.f32 %v1166_v21 }
 0xed7   :  { %4695 = vrcp.f32 %v1167_v22  ;;  %v1552_v22 = vld [vmem:[#allocation9 + $0x38] sm:$0xff] }
 0xed8   :  { %1762 = vmatprep.subr.mxu1 %v1552_v22  ;;  %v1558_v22 = vld [vmem:[#allocation9 + $0x68] sm:$0xff] }
 0xee3   :  { %v4694_v23 = vpop.eup %4693 }
 0xee4   :  { %v4696_v61 = vpop.eup %4695 }
 0xee5   :  { %v1190_v54 = vmul.f32 %v4696_v61, %v1174_v13 }
 0xf43   :  { %v1182_v24 = vpop.permute.xlu0 %1181 }
 0xf44   :  { %v1184_v49 = vmul.f32 %v4694_v23, %v1182_v24 }
 0xf45   :  { %v1193_v46 = vpop.permute.xlu1 %1192 }
 0xf46   :  { %1186 = vrot.lane.b32.xlu1 %v1184_v49, %s5053_s1  ;;  %v1195_v51 = vmul.f32 %v4696_v61, %v1193_v46 }
 0xf47   :  { %v1177_v53 = vpop.permute.xlu0 %1176 }
 0xf48   :  { %1197 = vrot.lane.b32.xlu0 %v1195_v51, %s5053_s1  ;;  %v1179_v63 = vmul.f32 %v4694_v23, %v1177_v53 }
 0xfb8   :  { %v1187_v2 = vpop.permute.xlu1 %1186 }
 0xfb9   :  { %v1189_v52 = vadd.f32 %v1187_v2, %v1179_v63 }
 0xfba   :  { %v1198_v56 = vpop.permute.xlu0 %1197 }
 0xfbb   :  { %4697 = vtanh.f32 %v1189_v52  ;;  %v1200_v57 = vadd.f32 %v1198_v56, %v1190_v54  ;;  %v1550_v56 = vld [vmem:[#allocation9 + $0x28] sm:$0xff] }
 0xfbd   :  { %4699 = vtanh.f32 %v1200_v57 }
 0xfc8   :  { %v4698_v59 = vpop.eup %4697 }
 0xfc9   :  { %1203 = vrot.lane.b32.xlu1 %v4698_v59, %s5054_s3  ;;  %v1548_v59 = vld [vmem:[#allocation9 + $0x18] sm:$0xff] }
 0xfca   :  { %v4700_v58 = vpop.eup %4699 }
 0xfcb   :  { %1209 = vrot.lane.b32.xlu0 %v4700_v58, %s5054_s3  ;;  %v1547_v58 = vld [vmem:[#allocation9 + $0x10] sm:$0xff] }
0x103b   :  { %v1204_v55 = vpop.permute.xlu1 %1203 }
0x103c   :  { %v1206_v60 = vmul.f32 %v4694_v23, %v1204_v55  ;;  %v1546_v55 = vld [vmem:[#allocation9 + $0x8] sm:$0xff] }
0x103d   :  { %v1210_v62 = vpop.permute.xlu0 %1209 }
0x103e   :  { %1220 = vrot.lane.b32.xlu1 %v1206_v60, %s5053_s1  ;;  %v5583_v1 = vmul.f32 %v4696_v61, %v1210_v62  ;;  %v1545_v60 = vld [vmem:[#allocation9] sm:$0xff] }
0x103f   :  { %v1561_v62 = vld [vmem:[#allocation3] sm:$0xff] }
0x1040   :  { %1224 = vrot.lane.b32.xlu0 %v5583_v1, %s5054_s3 }
0x1042   :  { %1214 = vrot.lane.b32.xlu1 %v1189_v52, %s5055_s29  ;;  %v1551_v52 = vld [vmem:[#allocation9 + $0x30] sm:$0xff] }
0x10b0   :  { %v1221_v5 = vpop.permute.xlu1 %1220 }
0x10b1   :  { %1230 = vst.msk [vmem:[#allocation3 + $0x28] sm:$0xff] %vm436_vm2, %v1221_v5 }
0x10b2   :  { %v1225_v9 = vpop.permute.xlu0 %1224 }
0x10b3   :  { %v1227_v19 = vsel %vm436_vm2, %v1221_v5, %v1225_v9  ;;  %v1562_v5 = vld [vmem:[#allocation3 + $0x8] sm:$0xff]  ;;  %v1563_v9 = vld [vmem:[#allocation3 + $0x10] sm:$0xff] }
0x10b4   :  { %v1215_v25 = vpop.permute.xlu1 %1214  ;;  %1228 = vst.msk [vmem:[#allocation5] sm:$0xff] %vm280_vm0, %v1227_v19  ;;  %v1564_v19 = vld [vmem:[#allocation3 + $0x18] sm:$0xff] }
0x10b5   :  { %v1217_v26 = vsel %vm436_vm2, %v1215_v25, %v1200_v57  ;;  %v1549_v57 = vld [vmem:[#allocation9 + $0x20] sm:$0xff] }
0x10b6   :  { %1218 = vst.msk [vmem:[#allocation6] sm:$0xff] %vm280_vm0, %v1217_v26  ;;  %v1565_v25 = vld [vmem:[#allocation3 + $0x20] sm:$0xff] }
0x10b8   :  { %v1566_v26 = vld [vmem:[#allocation3 + $0x28] sm:$0xff] }
0x10bb   :  { %v1238_v27 = vld [vmem:[#allocation5] sm:$0xff] }
0x10bc   :  { %4477 = vmatmul.mubr.msk.f32.vlgmr.msra.gmra.mxu0 %vm280_vm0, %v1238_v27 }
0x10bd   :  { %1665 = vmatprep.mubr.f32.mxu0 %v5052_v0  ;;  %v1329_v39 = vld [vmem:[#allocation6] sm:$0xff] }
0x117c   :  { %v1308_v28 = vpop.f32.mrf.mxu0 }
0x117d   :  { %v1313_v30 = vadd.f32 %v1308_v28, %v5381_v3 }
0x117e   :  { %v1310_v31 = vpop.f32.mrf.mxu0 }
0x117f   :  { %4701 = vtanh.f32 %v1313_v30  ;;  %v1314_v32 = vadd.f32 %v1310_v31, %v5363_v44  ;;  %v4478_v43 = vmul.f32 -1.442695, %v1313_v30 }
0x1181   :  { %4703 = vtanh.f32 %v1314_v32  ;;  %v4479_v42 = vmul.f32 -1.442695, %v1314_v32 }
0x1182   :  { %4705 = vpow2.f32 %v4478_v43 }
0x1183   :  { %4707 = vpow2.f32 %v4479_v42 }
0x118c   :  { %v4702_v34 = vpop.eup %4701 }
0x118d   :  { %1336 = vrot.lane.b32.xlu0 %v4702_v34, %s5054_s3 }
0x118e   :  { %v4704_v38 = vpop.eup %4703 }
0x118f   :  { %1347 = vrot.lane.b32.xlu1 %v4704_v38, %s5054_s3  ;;  %v4706_v45 = vpop.eup %4705 }
0x1190   :  { %v4708_v3 = vpop.eup %4707  ;;  %v1321_v47 = vadd.f32 1.0, %v4706_v45 }
0x1191   :  { %1331 = vrot.lane.b32.xlu0 %v1329_v39, %s5053_s1  ;;  %v1322_v7 = vadd.f32 1.0, %v4708_v3 }
0x1192   :  { %4709 = vrcp.f32 %v1321_v47 }
0x1193   :  { %4711 = vrcp.f32 %v1322_v7 }
0x119f   :  { %v4710_v44 = vpop.eup %4709 }
0x11a0   :  { %v4712_v4 = vpop.eup %4711 }
0x11a1   :  { %v1345_v15 = vmul.f32 %v4712_v4, %v1329_v39 }
0x11ff   :  { %v1337_v48 = vpop.permute.xlu0 %1336 }
0x1200   :  { %v1339_v50 = vmul.f32 %v4710_v44, %v1337_v48 }
0x1201   :  { %v1348_v6 = vpop.permute.xlu1 %1347 }
0x1202   :  { %1341 = vrot.lane.b32.xlu1 %v1339_v50, %s5053_s1  ;;  %v1350_v8 = vmul.f32 %v4712_v4, %v1348_v6 }
0x1203   :  { %v1332_v10 = vpop.permute.xlu0 %1331 }
0x1204   :  { %1352 = vrot.lane.b32.xlu0 %v1350_v8, %s5053_s1  ;;  %v1334_v11 = vmul.f32 %v4710_v44, %v1332_v10 }
0x1274   :  { %v1342_v12 = vpop.permute.xlu1 %1341 }
0x1275   :  { %v1344_v13 = vadd.f32 %v1342_v12, %v1334_v11 }
0x1276   :  { %v1353_v16 = vpop.permute.xlu0 %1352 }
0x1277   :  { %4713 = vtanh.f32 %v1344_v13  ;;  %v1355_v17 = vadd.f32 %v1353_v16, %v1345_v15 }
0x1279   :  { %4715 = vtanh.f32 %v1355_v17 }
0x1284   :  { %v4714_v18 = vpop.eup %4713 }
0x1285   :  { %1358 = vrot.lane.b32.xlu1 %v4714_v18, %s5054_s3  ;;  %v1560_v18 = vld [vmem:[#allocation9 + $0x78] sm:$0xff] }
0x1286   :  { %v4716_v21 = vpop.eup %4715  ;;  %1625 = vmatprep.subr.mxu0 %v1560_v18 }
0x1287   :  { %1364 = vrot.lane.b32.xlu0 %v4716_v21, %s5054_s3  ;;  %v1559_v21 = vld [vmem:[#allocation9 + $0x70] sm:$0xff] }
0x1288   :  { %1626 = vmatpush1.msra.mxu0 %v1559_v21 }
0x1289   :  { %1627 = vmatprep.subr.mxu0 %v1558_v22 }
0x12f7   :  { %v1359_v23 = vpop.permute.xlu1 %1358 }
0x12f8   :  { %v1361_v24 = vmul.f32 %v4710_v44, %v1359_v23  ;;  %v1557_v23 = vld [vmem:[#allocation9 + $0x60] sm:$0xff] }
0x12f9   :  { %v1365_v49 = vpop.permute.xlu0 %1364  ;;  %1628 = vmatpush1.msra.mxu0 %v1557_v23 }
0x12fa   :  { %1375 = vrot.lane.b32.xlu1 %v1361_v24, %s5053_s1  ;;  %v5605_v61 = vmul.f32 %v4712_v4, %v1365_v49  ;;  %v1556_v24 = vld [vmem:[#allocation9 + $0x58] sm:$0xff]  ;;  %v1555_v49 = vld [vmem:[#allocation9 + $0x50] sm:$0xff] }
0x12fb   :  { %1629 = vmatprep.subr.mxu0 %v1556_v24 }
0x12fc   :  { %1379 = vrot.lane.b32.xlu0 %v5605_v61, %s5054_s3  ;;  %1630 = vmatpush1.msra.mxu0 %v1555_v49 }
0x1300   :  { %1369 = vrot.lane.b32.xlu0 %v1344_v13, %s5055_s29 }
0x136c   :  { %v1376_v46 = vpop.permute.xlu1 %1375 }
0x136d   :  { %1385 = vst.msk [vmem:[#allocation3 + $0x30] sm:$0xff] %vm436_vm2, %v1376_v46 }
0x136e   :  { %v1380_v51 = vpop.permute.xlu0 %1379 }
0x136f   :  { %v1382_v53 = vsel %vm436_vm2, %v1376_v46, %v1380_v51  ;;  %v1553_v46 = vld [vmem:[#allocation9 + $0x40] sm:$0xff]  ;;  %v5658_v51 = vld [vmem:[#allocation11 + $0x78] sm:$0xff] }
0x1370   :  { %1383 = vst.msk [vmem:[#allocation5] sm:$0xff] %vm280_vm0, %v1382_v53 }
0x1372   :  { %v1370_v63 = vpop.permute.xlu0 %1369 }
0x1373   :  { %v1372_v2 = vsel %vm436_vm2, %v1370_v63, %v1355_v17  ;;  %v5670_v63 = vld [vmem:[#allocation11 + $0x60] sm:$0xff] }
0x1374   :  { %1373 = vst.msk [vmem:[#allocation6] sm:$0xff] %vm280_vm0, %v1372_v2  ;;  %v1567_v27 = vld [vmem:[#allocation3 + $0x30] sm:$0xff] }
0x1377   :  { %v1393_v54 = vld [vmem:[#allocation5] sm:$0xff] }
0x1378   :  { %4480 = vmatmul.mubr.msk.f32.vlgmr.msra.gmra.mxu1 %vm280_vm0, %v1393_v54 }
0x1379   :  { %1763 = vmatpush1.msra.mxu1 %v1551_v52  ;;  %1802 = vmatprep.mubr.f32.mxu1 %v5052_v0  ;;  %v5672_v52 = vld [vmem:[#allocation11 + $0x58] sm:$0xff] }
0x137a   :  { %1764 = vmatprep.subr.mxu1 %v1550_v56  ;;  %v5678_v56 = vld [vmem:[#allocation11 + $0x50] sm:$0xff] }
0x137b   :  { %1765 = vmatpush1.msra.mxu1 %v1549_v57  ;;  %v1484_v39 = vld [vmem:[#allocation6] sm:$0xff] }
0x137c   :  { %1766 = vmatprep.subr.mxu1 %v1548_v59  ;;  %v5681_v57 = vld [vmem:[#allocation11 + $0x48] sm:$0xff] }
0x137d   :  { %1767 = vmatpush1.msra.mxu1 %v1547_v58  ;;  %v5687_v58 = vld [vmem:[#allocation11 + $0x40] sm:$0xff] }
0x137e   :  { %1768 = vmatprep.subr.mxu1 %v1546_v55  ;;  %v5693_v55 = vld [vmem:[#allocation11 + $0x30] sm:$0xff] }
0x137f   :  { %1769 = vmatpush1.msra.mxu1 %v1545_v60  ;;  %v5698_v60 = vld [vmem:[#allocation11 + $0x28] sm:$0xff] }
0x1380   :  { %4491 = vmatmul.mubr.msk.f32.vlgmr.msra.gmra.mxu1 %vm436_vm2, %v1561_v62  ;;  %2088 = vmatprep.subr.mxu1 %v5658_v51 }
0x1381   :  { %1808 = vmatprep.mubr.f32.mxu1 %v5052_v0 }
0x1384   :  { %4492 = vmatmul.mubr.msk.f32.gmra.mxu1 %vm436_vm2, %v1562_v5  ;;  %v5704_v5 = vld [vmem:[#allocation11 + $0x20] sm:$0xff] }
0x1385   :  { %1814 = vmatprep.mubr.f32.mxu1 %v5052_v0 }
0x1388   :  { %4493 = vmatmul.mubr.msk.f32.gmra.mxu1 %vm436_vm2, %v1563_v9  ;;  %v5707_v9 = vld [vmem:[#allocation11 + $0x18] sm:$0xff] }
0x1389   :  { %1820 = vmatprep.mubr.f32.mxu1 %v5052_v0 }
0x138c   :  { %4494 = vmatmul.mubr.msk.f32.gmra.mxu1 %vm436_vm2, %v1564_v19  ;;  %v5712_v19 = vld [vmem:[#allocation11 + $0x10] sm:$0xff] }
0x138d   :  { %1826 = vmatprep.mubr.f32.mxu1 %v5052_v0 }
0x1390   :  { %4495 = vmatmul.mubr.msk.f32.gmra.mxu1 %vm436_vm2, %v1565_v25  ;;  %v5716_v25 = vld [vmem:[#allocation11 + $0x8] sm:$0xff] }
0x1391   :  { %1832 = vmatprep.mubr.f32.mxu1 %v5052_v0 }
0x1394   :  { %4496 = vmatmul.mubr.msk.f32.gmra.mxu1 %vm436_vm2, %v1566_v26  ;;  %v5720_v26 = vld [vmem:[#allocation11] sm:$0xff] }
0x1395   :  { %1838 = vmatprep.mubr.f32.mxu1 %v5052_v0 }
0x1398   :  { %4497 = vmatmul.mubr.msk.f32.gmra.mxu1 %vm436_vm2, %v1567_v27 }
0x1399   :  { %1844 = vmatprep.mubr.f32.mxu1 %v5052_v0 }
0x1438   :  { %v1463_v28 = vpop.f32.mrf.mxu1 }
0x1439   :  { %v1468_v32 = vadd.f32 %v1463_v28, %v5385_v20 }
0x143a   :  { %v1465_v30 = vpop.f32.mrf.mxu1 }
0x143b   :  { %v1469_v31 = vadd.f32 %v1465_v30, %v5359_v40  ;;  %v4481_v42 = vmul.f32 -1.442695, %v1468_v32 }
0x143d   :  { %4717 = vtanh.f32 %v1469_v31  ;;  %v4482_v43 = vmul.f32 -1.442695, %v1469_v31 }
0x143e   :  { %4719 = vtanh.f32 %v1468_v32 }
0x143f   :  { %4721 = vpow2.f32 %v4482_v43 }
0x1440   :  { %4723 = vpow2.f32 %v4481_v42 }
0x144a   :  { %v4718_v34 = vpop.eup %4717 }
0x144b   :  { %1502 = vrot.lane.b32.xlu1 %v4718_v34, %s5054_s3  ;;  %v4720_v38 = vpop.eup %4719 }
0x144c   :  { %v4722_v45 = vpop.eup %4721 }
0x144d   :  { %v1477_v3 = vadd.f32 1.0, %v4722_v45  ;;  %v4724_v40 = vpop.eup %4723 }
0x144e   :  { %v1476_v47 = vadd.f32 1.0, %v4724_v40 }
0x144f   :  { %1491 = vrot.lane.b32.xlu1 %v4720_v38, %s5054_s3  ;;  %4725 = vrcp.f32 %v1477_v3 }
0x1450   :  { %4727 = vrcp.f32 %v1476_v47 }
0x1453   :  { %1486 = vrot.lane.b32.xlu1 %v1484_v39, %s5053_s1 }
0x145c   :  { %v4726_v20 = vpop.eup %4725 }
0x145d   :  { %v5637_v48 = vpop.eup %4727  ;;  %v1500_v6 = vmul.f32 %v4726_v20, %v1484_v39 }
0x14bd   :  { %v1503_v7 = vpop.permute.xlu1 %1502 }
0x14be   :  { %v1505_v44 = vmul.f32 %v4726_v20, %v1503_v7 }
0x14c0   :  { %1507 = vrot.lane.b32.xlu0 %v1505_v44, %s5053_s1 }
0x14c1   :  { %v1492_v50 = vpop.permute.xlu1 %1491 }
0x14c2   :  { %v1494_v4 = vmul.f32 %v5637_v48, %v1492_v50 }
0x14c4   :  { %1496 = vrot.lane.b32.xlu0 %v1494_v4, %s5053_s1  ;;  %v1804_v4 = vpop.f32.mrf.mxu1 }
0x14c5   :  { %v1487_v8 = vpop.permute.xlu1 %1486 }
0x14c6   :  { %v1489_v12 = vmul.f32 %v5637_v48, %v1487_v8 }
0x1532   :  { %v1508_v10 = vpop.permute.xlu0 %1507 }
0x1533   :  { %v5641_v11 = vadd.f32 %v1508_v10, %v1500_v6  ;;  %v1806_v6 = vpop.f32.mrf.mxu1 }
0x1535   :  { %4729 = vtanh.f32 %v5641_v11  ;;  %v1810_v8 = vpop.f32.mrf.mxu1 }
0x1536   :  { %v1497_v13 = vpop.permute.xlu0 %1496 }
0x1537   :  { %v5645_v15 = vadd.f32 %v1497_v13, %v1489_v12  ;;  %v1812_v10 = vpop.f32.mrf.mxu1 }
0x1539   :  { %4731 = vtanh.f32 %v5645_v15 }
0x1542   :  { %v4730_v16 = vpop.eup %4729 }
0x1543   :  { %1519 = vrot.lane.b32.xlu1 %v4730_v16, %s5054_s3 }
0x1546   :  { %v4732_v17 = vpop.eup %4731 }
0x1547   :  { %1513 = vrot.lane.b32.xlu0 %v4732_v17, %s5054_s3  ;;  %v1851_v17 = vld [vmem:[%s6440_s6] sm:$0x3] }
0x1548   :  { %v1860_v18 = vrot.slane %v1851_v17, %v5350_v33 }
0x154b   :  { %1386 = vrot.lane.b32.xlu0 %v5605_v61, %s5053_s1  ;;  %v1554_v61 = vld [vmem:[#allocation9 + $0x48] sm:$0xff] }
0x154c   :  { %1631 = vmatprep.subr.mxu0 %v1554_v61  ;;  %v1856_v61 = vrot.slane %v1851_v17, %v5355_v35 }
0x154d   :  { %1632 = vmatpush1.msra.mxu0 %v1553_v46 }
0x154e   :  { %1935 = vmatprep.subr.mxu0 %v5658_v51 }
0x154f   :  { %1076 = vrot.lane.b32.xlu0 %v5546_v36, %s5053_s1 }
0x1553   :  { %764 = vrot.lane.b32.xlu0 %v5471_v37, %s5053_s1  ;;  %v5664_v37 = vld [vmem:[#allocation11 + $0x68] sm:$0xff] }
0x1557   :  { %450 = vrot.lane.b32.xlu0 %v5396_v14, %s5053_s1  ;;  %v5662_v14 = vld [vmem:[#allocation11 + $0x70] sm:$0xff] }
0x1558   :  { %2089 = vmatpush1.msra.mxu1 %v5662_v14 }
0x1559   :  { %2090 = vmatprep.subr.mxu1 %v5664_v37 }
0x155a   :  { %2091 = vmatpush1.msra.mxu1 %v5670_v63 }
0x155b   :  { %2092 = vmatprep.subr.mxu1 %v5672_v52 }
0x155c   :  { %2093 = vmatpush1.msra.mxu1 %v5678_v56 }
0x155d   :  { %2094 = vmatprep.subr.mxu1 %v5681_v57 }
0x155e   :  { %2095 = vmatpush1.msra.mxu1 %v5687_v58 }
0x15b5   :  { %v1520_v36 = vpop.permute.xlu1 %1519 }
0x15b6   :  { %v1522_v53 = vmul.f32 %v4726_v20, %v1520_v36 }
0x15b8   :  { %1534 = vrot.lane.b32.xlu0 %v1522_v53, %s5054_s3  ;;  %1541 = vrot.lane.b32.xlu1 %v1522_v53, %s5053_s1 }
0x15b9   :  { %v1514_v2 = vpop.permute.xlu0 %1513 }
0x15ba   :  { %v1516_v62 = vmul.f32 %v5637_v48, %v1514_v2 }
0x15bc   :  { %1231 = vrot.lane.b32.xlu1 %v5583_v1, %s5053_s1  ;;  %v5690_v1 = vld [vmem:[#allocation11 + $0x38] sm:$0xff] }
0x15bd   :  { %v1387_v54 = vpop.permute.xlu0 %1386  ;;  %2096 = vmatprep.subr.mxu1 %v5690_v1 }
0x15be   :  { %1390 = vst.msk [vmem:[#allocation4 + $0x8] sm:$0xff] %vm436_vm2, %v1387_v54  ;;  %2097 = vmatpush1.msra.mxu1 %v5693_v55 }
0x15bf   :  { %2098 = vmatprep.subr.mxu1 %v5698_v60 }
0x15c0   :  { %921 = vrot.lane.b32.xlu1 %v5509_v41, %s5053_s1  ;;  %2099 = vmatpush1.msra.mxu1 %v5704_v5 }
0x15c1   :  { %v1077_v59 = vpop.permute.xlu0 %1076  ;;  %2100 = vmatprep.subr.mxu1 %v5707_v9 }
0x15c2   :  { %1080 = vst.msk [vmem:[#allocation4 + $0x18] sm:$0xff] %vm436_vm2, %v1077_v59  ;;  %2101 = vmatpush1.msra.mxu1 %v5712_v19 }
0x15c3   :  { %2102 = vmatprep.subr.mxu1 %v5716_v25 }
0x15c4   :  { %607 = vrot.lane.b32.xlu1 %v5433_v29, %s5053_s1  ;;  %2103 = vmatpush1.msra.mxu1 %v5720_v26 }
0x15c5   :  { %v765_v41 = vpop.permute.xlu0 %764  ;;  %2394 = vmatprep.subr.mxu1 %v5658_v51  ;;  %v1570_v34 = vld [vmem:[#allocation4 + $0x8] sm:$0xff] }
0x15c6   :  { %768 = vst.msk [vmem:[#allocation4 + $0x28] sm:$0xff] %vm436_vm2, %v765_v41 }
0x15c8   :  { %1530 = vrot.lane.b32.xlu1 %v1516_v62, %s5053_s1 }
0x15c9   :  { %v451_v29 = vpop.permute.xlu0 %450  ;;  %v1572_v3 = vld [vmem:[#allocation4 + $0x18] sm:$0xff] }
0x15ca   :  { %454 = vst.msk [vmem:[#allocation4 + $0x38] sm:$0xff] %vm436_vm2, %v451_v29 }
0x15cc   :  { %1524 = vrot.lane.b32.xlu1 %v5645_v15, %s5055_s29 }
0x15cd   :  { %v1574_v7 = vld [vmem:[#allocation4 + $0x28] sm:$0xff] }
0x15d1   :  { %v1576_v48 = vld [vmem:[#allocation4 + $0x38] sm:$0xff] }
0x162a   :  { %v1542_v27 = vpop.permute.xlu1 %1541  ;;  %v1535_v38 = vpop.permute.xlu0 %1534 }
0x162b   :  { %1544 = vst.msk [vmem:[#allocation4] sm:$0xff] %vm436_vm2, %v1542_v27 }
0x162e   :  { %v1232_v28 = vpop.permute.xlu1 %1231 }
0x162f   :  { %1235 = vst.msk [vmem:[#allocation4 + $0x10] sm:$0xff] %vm436_vm2, %v1232_v28 }
0x1632   :  { %v922_v30 = vpop.permute.xlu1 %921  ;;  %v1569_v31 = vld [vmem:[#allocation4] sm:$0xff] }
0x1633   :  { %925 = vst.msk [vmem:[#allocation4 + $0x20] sm:$0xff] %vm436_vm2, %v922_v30  ;;  %4483 = vmatmul.mubr.msk.f32.vlgmr.msra.gmra.mxu0 %vm436_vm2, %v1569_v31 }
0x1634   :  { %1936 = vmatpush1.msra.mxu0 %v5662_v14  ;;  %1671 = vmatprep.mubr.f32.mxu0 %v5052_v0 }
0x1635   :  { %1937 = vmatprep.subr.mxu0 %v5664_v37 }
0x1636   :  { %v608_v32 = vpop.permute.xlu1 %607  ;;  %1938 = vmatpush1.msra.mxu0 %v5670_v63  ;;  %v1571_v43 = vld [vmem:[#allocation4 + $0x10] sm:$0xff] }
0x1637   :  { %611 = vst.msk [vmem:[#allocation4 + $0x30] sm:$0xff] %vm436_vm2, %v608_v32  ;;  %4484 = vmatmul.mubr.msk.f32.gmra.mxu0 %vm436_vm2, %v1570_v34  ;;  %1939 = vmatprep.subr.mxu0 %v5672_v52 }
0x1638   :  { %1677 = vmatprep.mubr.f32.mxu0 %v5052_v0  ;;  %1940 = vmatpush1.msra.mxu0 %v5678_v56 }
0x1639   :  { %1941 = vmatprep.subr.mxu0 %v5681_v57 }
0x163a   :  { %v1531_v39 = vpop.permute.xlu1 %1530  ;;  %1942 = vmatpush1.msra.mxu0 %v5687_v58  ;;  %v1573_v47 = vld [vmem:[#allocation4 + $0x20] sm:$0xff] }
0x163b   :  { %v1537_v42 = vsel %vm436_vm2, %v1531_v39, %v1535_v38  ;;  %1540 = vst.msk [vmem:[#allocation3 + $0x38] sm:$0xff] %vm436_vm2, %v1531_v39  ;;  %4485 = vmatmul.mubr.msk.f32.gmra.mxu0 %vm436_vm2, %v1571_v43  ;;  %1943 = vmatprep.subr.mxu0 %v5690_v1 }
0x163c   :  { %1538 = vst.msk [vmem:[#allocation5] sm:$0xff] %vm280_vm0, %v1537_v42  ;;  %1683 = vmatprep.mubr.f32.mxu0 %v5052_v0  ;;  %1944 = vmatpush1.msra.mxu0 %v5693_v55 }
0x163d   :  { %1895 = vst.msk [vmem:[#allocation5] sm:$0xff] %vm280_vm0, %v5052_v0  ;;  %1945 = vmatprep.subr.mxu0 %v5698_v60 }
0x163e   :  { %v1525_v45 = vpop.permute.xlu1 %1524  ;;  %1946 = vmatpush1.msra.mxu0 %v5704_v5  ;;  %v1575_v44 = vld [vmem:[#allocation4 + $0x30] sm:$0xff] }
0x163f   :  { %v1527_v40 = vsel %vm436_vm2, %v1525_v45, %v5641_v11  ;;  %4486 = vmatmul.mubr.msk.f32.gmra.mxu0 %vm436_vm2, %v1572_v3  ;;  %1947 = vmatprep.subr.mxu0 %v5707_v9  ;;  %v1816_v11 = vpop.f32.mrf.mxu1 }
0x1640   :  { %1528 = vst.msk [vmem:[#allocation6] sm:$0xff] %vm280_vm0, %v1527_v40  ;;  %1689 = vmatprep.mubr.f32.mxu0 %v5052_v0  ;;  %1948 = vmatpush1.msra.mxu0 %v5712_v19 }
0x1641   :  { %1896 = vst.msk [vmem:[#allocation6] sm:$0xff] %vm280_vm0, %v5052_v0  ;;  %1949 = vmatprep.subr.mxu0 %v5716_v25  ;;  %v1818_v12 = vpop.f32.mrf.mxu1 }
0x1642   :  { %v1568_v20 = vld [vmem:[#allocation3 + $0x38] sm:$0xff]  ;;  %1950 = vmatpush1.msra.mxu0 %v5720_v26 }
0x1643   :  { %4487 = vmatmul.mubr.msk.f32.gmra.mxu0 %vm436_vm2, %v1573_v47  ;;  %4498 = vmatmul.mubr.msk.f32.gmra.mxu1 %vm436_vm2, %v1568_v20  ;;  %v1822_v13 = vpop.f32.mrf.mxu1 }
0x1644   :  { %1695 = vmatprep.mubr.f32.mxu0 %v5052_v0  ;;  %2136 = vmatprep.mubr.f32.mxu1 %v5052_v0  ;;  %v1915_v50 = vld [vmem:[#allocation5] sm:$0xff] }
0x1645   :  { %2241 = vmatprep.subr.mxu0 %v5658_v51  ;;  %v1824_v15 = vpop.f32.mrf.mxu1 }
0x1647   :  { %4488 = vmatmul.mubr.msk.f32.gmra.mxu0 %vm436_vm2, %v1574_v7  ;;  %v1828_v23 = vpop.f32.mrf.mxu1 }
0x1648   :  { %1701 = vmatprep.mubr.f32.mxu0 %v5052_v0 }
0x1649   :  { %v1830_v54 = vpop.f32.mrf.mxu1 }
0x164b   :  { %4489 = vmatmul.mubr.msk.f32.gmra.mxu0 %vm436_vm2, %v1575_v44  ;;  %v1834_v30 = vpop.f32.mrf.mxu1 }
0x164c   :  { %1707 = vmatprep.mubr.f32.mxu0 %v5052_v0 }
0x164d   :  { %v1836_v42 = vpop.f32.mrf.mxu1 }
0x164f   :  { %4490 = vmatmul.mubr.msk.f32.gmra.mxu0 %vm436_vm2, %v1576_v48  ;;  %v1840_v44 = vpop.f32.mrf.mxu1 }
0x1650   :  { %1983 = vmatprep.mubr.f32.mxu0 %v5052_v0 }
0x1653   :  { %4499 = vmatmul.mubr.msk.f32.vlgmr.msra.gmra.mxu0 %vm280_vm0, %v1915_v50 }
0x1654   :  { %2242 = vmatpush1.msra.mxu0 %v5662_v14  ;;  %2289 = vmatprep.mubr.f32.mxu0 %v5052_v0 }
0x1655   :  { %2243 = vmatprep.subr.mxu0 %v5664_v37 }
0x1656   :  { %2244 = vmatpush1.msra.mxu0 %v5670_v63 }
0x1657   :  { %2245 = vmatprep.subr.mxu0 %v5672_v52 }
0x1658   :  { %2246 = vmatpush1.msra.mxu0 %v5678_v56 }
0x1659   :  { %2247 = vmatprep.subr.mxu0 %v5681_v57 }
0x165a   :  { %2248 = vmatpush1.msra.mxu0 %v5687_v58 }
0x165b   :  { %2249 = vmatprep.subr.mxu0 %v5690_v1 }
0x165c   :  { %2250 = vmatpush1.msra.mxu0 %v5693_v55 }
0x165d   :  { %2251 = vmatprep.subr.mxu0 %v5698_v60 }
0x165e   :  { %2252 = vmatpush1.msra.mxu0 %v5704_v5 }
0x165f   :  { %2253 = vmatprep.subr.mxu0 %v5707_v9 }
0x1660   :  { %2254 = vmatpush1.msra.mxu0 %v5712_v19 }
0x1661   :  { %2255 = vmatprep.subr.mxu0 %v5716_v25 }
0x1662   :  { %2256 = vmatpush1.msra.mxu0 %v5720_v26 }
0x1663   :  { %2547 = vmatprep.subr.mxu0 %v5658_v51 }
0x16f3   :  { %v1667_v16 = vpop.f32.mrf.mxu0 }
0x16f5   :  { %v1669_v21 = vpop.f32.mrf.mxu0 }
0x16f6   :  { %v1807_v22 = vadd.f32 %v1806_v6, %v1669_v21 }
0x16f7   :  { %v1673_v24 = vpop.f32.mrf.mxu0 }
0x16f8   :  { %v1811_v49 = vadd.f32 %v1810_v8, %v1673_v24  ;;  %v5795_v46 = vadd.f32 %v1860_v18, %v1807_v22 }
0x16f9   :  { %v1675_v36 = vpop.f32.mrf.mxu0 }
0x16fa   :  { %v1813_v53 = vadd.f32 %v1812_v10, %v1675_v36  ;;  %v5797_v2 = vadd.f32 %v1856_v61, %v1811_v49 }
0x16fb   :  { %v1679_v59 = vpop.f32.mrf.mxu0 }
0x16fc   :  { %v1817_v41 = vadd.f32 %v1816_v11, %v1679_v59  ;;  %v5799_v62 = vadd.f32 %v1860_v18, %v1813_v53 }
0x16fd   :  { %v1681_v29 = vpop.f32.mrf.mxu0 }
0x16fe   :  { %v1819_v27 = vadd.f32 %v1818_v12, %v1681_v29  ;;  %v5801_v28 = vadd.f32 %v1856_v61, %v1817_v41  ;;  %v1842_v12 = vpop.f32.mrf.mxu1 }
0x16ff   :  { %v1685_v31 = vpop.f32.mrf.mxu0 }
0x1700   :  { %v1823_v32 = vadd.f32 %v1822_v13, %v1685_v31  ;;  %v5803_v34 = vadd.f32 %v1860_v18, %v1819_v27 }
0x1701   :  { %v1687_v38 = vpop.f32.mrf.mxu0 }
0x1702   :  { %v1825_v39 = vadd.f32 %v1824_v15, %v1687_v38  ;;  %v5805_v43 = vadd.f32 %v1856_v61, %v1823_v32 }
0x1703   :  { %v1691_v45 = vpop.f32.mrf.mxu0  ;;  %v1846_v21 = vpop.f32.mrf.mxu1 }
0x1704   :  { %v1829_v3 = vadd.f32 %v1828_v23, %v1691_v45  ;;  %v5807_v40 = vadd.f32 %v1860_v18, %v1825_v39  ;;  %v1805_v23 = vadd.f32 %v1804_v4, %v1667_v16  ;;  %v2006_v16 = vld [vmem:[#allocation6] sm:$0xff] }
0x1705   :  { %v1693_v47 = vpop.f32.mrf.mxu0  ;;  %v1848_v59 = vpop.f32.mrf.mxu1 }
0x1706   :  { %v1831_v20 = vadd.f32 %v1830_v54, %v1693_v47  ;;  %v5809_v7 = vadd.f32 %v1856_v61, %v1829_v3  ;;  %v1863_v27 = vadd.f32 %v1856_v61, %v1805_v23 }
0x1707   :  { %v1697_v48 = vpop.f32.mrf.mxu0 }
0x1708   :  { %v1835_v50 = vadd.f32 %v1834_v30, %v1697_v48  ;;  %v5811_v6 = vadd.f32 %v1860_v18, %v1831_v20 }
0x1709   :  { %v1699_v8 = vpop.f32.mrf.mxu0 }
0x170a   :  { %v1837_v10 = vadd.f32 %v1836_v42, %v1699_v8  ;;  %v5813_v11 = vadd.f32 %v1856_v61, %v1835_v50 }
0x170b   :  { %v1703_v13 = vpop.f32.mrf.mxu0 }
0x170c   :  { %v1841_v15 = vadd.f32 %v1840_v44, %v1703_v13  ;;  %v5815_v17 = vadd.f32 %v1860_v18, %v1837_v10 }
0x170d   :  { %v1705_v22 = vpop.f32.mrf.mxu0 }
0x170e   :  { %v1843_v24 = vadd.f32 %v1842_v12, %v1705_v22  ;;  %v5817_v49 = vadd.f32 %v1856_v61, %v1841_v15 }
0x170f   :  { %v1709_v36 = vpop.f32.mrf.mxu0 }
0x1710   :  { %v1847_v53 = vadd.f32 %v1846_v21, %v1709_v36  ;;  %v5819_v54 = vadd.f32 %v1860_v18, %v1843_v24 }
0x1711   :  { %v1711_v41 = vpop.f32.mrf.mxu0 }
0x1712   :  { %v1849_v29 = vadd.f32 %v1848_v59, %v1711_v41  ;;  %v5821_v30 = vadd.f32 %v1856_v61, %v1847_v53 }
0x1713   :  { %v1985_v31 = vpop.f32.mrf.mxu0 }
0x1714   :  { %v1990_v32 = vadd.f32 %v1985_v31, %v1863_v27  ;;  %v1878_v38 = vadd.f32 %v1860_v18, %v1849_v29 }
0x1715   :  { %v1987_v39 = vpop.f32.mrf.mxu0 }
0x1716   :  { %4733 = vtanh.f32 %v1990_v32  ;;  %v1991_v42 = vadd.f32 %v1987_v39, %v1878_v38  ;;  %v4500_v3 = vmul.f32 -1.442695, %v1990_v32 }
0x1718   :  { %4735 = vtanh.f32 %v1991_v42  ;;  %v4501_v47 = vmul.f32 -1.442695, %v1991_v42 }
0x1719   :  { %4737 = vpow2.f32 %v4500_v3 }
0x171a   :  { %4739 = vpow2.f32 %v4501_v47 }
0x1723   :  { %v4734_v4 = vpop.eup %4733 }
0x1724   :  { %2013 = vrot.lane.b32.xlu0 %v4734_v4, %s5054_s3 }
0x1725   :  { %v4736_v45 = vpop.eup %4735 }
0x1726   :  { %2024 = vrot.lane.b32.xlu1 %v4736_v45, %s5054_s3  ;;  %v4738_v61 = vpop.eup %4737 }
0x1727   :  { %v4740_v20 = vpop.eup %4739  ;;  %v1998_v18 = vadd.f32 1.0, %v4738_v61 }
0x1728   :  { %2008 = vrot.lane.b32.xlu0 %v2006_v16, %s5053_s1  ;;  %v1999_v44 = vadd.f32 1.0, %v4740_v20 }
0x1729   :  { %4741 = vrcp.f32 %v1998_v18 }
0x172a   :  { %4743 = vrcp.f32 %v1999_v44 }
0x1736   :  { %v4742_v48 = vpop.eup %4741 }
0x1737   :  { %v4744_v10 = vpop.eup %4743 }
0x1738   :  { %v2022_v24 = vmul.f32 %v4744_v10, %v2006_v16 }
0x1796   :  { %v2014_v50 = vpop.permute.xlu0 %2013 }
0x1797   :  { %v2016_v8 = vmul.f32 %v4742_v48, %v2014_v50 }
0x1798   :  { %v2025_v12 = vpop.permute.xlu1 %2024 }
0x1799   :  { %2018 = vrot.lane.b32.xlu1 %v2016_v8, %s5053_s1  ;;  %v2027_v13 = vmul.f32 %v4744_v10, %v2025_v12 }
0x179a   :  { %v2009_v15 = vpop.permute.xlu0 %2008 }
0x179b   :  { %2029 = vrot.lane.b32.xlu0 %v2027_v13, %s5053_s1  ;;  %v2011_v21 = vmul.f32 %v4742_v48, %v2009_v15 }
0x180b   :  { %v2019_v22 = vpop.permute.xlu1 %2018 }
0x180c   :  { %v2021_v23 = vadd.f32 %v2019_v22, %v2011_v21 }
0x180d   :  { %v2030_v36 = vpop.permute.xlu0 %2029 }
0x180e   :  { %4745 = vtanh.f32 %v2021_v23  ;;  %v2032_v53 = vadd.f32 %v2030_v36, %v2022_v24 }
0x1810   :  { %4747 = vtanh.f32 %v2032_v53 }
0x181b   :  { %v4746_v59 = vpop.eup %4745 }
0x181c   :  { %2035 = vrot.lane.b32.xlu1 %v4746_v59, %s5054_s3 }
0x181d   :  { %v4748_v41 = vpop.eup %4747 }
0x181e   :  { %2041 = vrot.lane.b32.xlu0 %v4748_v41, %s5054_s3 }
0x188e   :  { %v2036_v29 = vpop.permute.xlu1 %2035 }
0x188f   :  { %v2038_v27 = vmul.f32 %v4742_v48, %v2036_v29 }
0x1890   :  { %v2042_v31 = vpop.permute.xlu0 %2041 }
0x1891   :  { %2052 = vrot.lane.b32.xlu1 %v2038_v27, %s5053_s1  ;;  %v5831_v32 = vmul.f32 %v4744_v10, %v2042_v31 }
0x1893   :  { %2056 = vrot.lane.b32.xlu0 %v5831_v32, %s5054_s3 }
0x1895   :  { %2046 = vrot.lane.b32.xlu1 %v2021_v23, %s5055_s29 }
0x1903   :  { %v2053_v38 = vpop.permute.xlu1 %2052 }
0x1904   :  { %2061 = vst.msk [vmem:[#allocation3] sm:$0xff] %vm436_vm2, %v2053_v38 }
0x1905   :  { %v2057_v39 = vpop.permute.xlu0 %2056 }
0x1906   :  { %v2059_v42 = vsel %vm436_vm2, %v2053_v38, %v2057_v39 }
0x1907   :  { %v2047_v4 = vpop.permute.xlu1 %2046  ;;  %2060 = vst.msk [vmem:[#allocation5] sm:$0xff] %vm280_vm0, %v2059_v42 }
0x1908   :  { %v2049_v16 = vsel %vm436_vm2, %v2047_v4, %v2032_v53 }
0x1909   :  { %2050 = vst.msk [vmem:[#allocation6] sm:$0xff] %vm280_vm0, %v2049_v16 }
0x190e   :  { %v2068_v45 = vld [vmem:[#allocation5] sm:$0xff] }
0x190f   :  { %4502 = vmatmul.mubr.msk.f32.vlgmr.msra.gmra.mxu1 %vm280_vm0, %v2068_v45 }
0x1910   :  { %2395 = vmatpush1.msra.mxu1 %v5662_v14  ;;  %2442 = vmatprep.mubr.f32.mxu1 %v5052_v0  ;;  %v2159_v48 = vld [vmem:[#allocation6] sm:$0xff] }
0x1911   :  { %2396 = vmatprep.subr.mxu1 %v5664_v37 }
0x1912   :  { %2397 = vmatpush1.msra.mxu1 %v5670_v63 }
0x1913   :  { %2398 = vmatprep.subr.mxu1 %v5672_v52 }
0x1914   :  { %2399 = vmatpush1.msra.mxu1 %v5678_v56 }
0x1915   :  { %2400 = vmatprep.subr.mxu1 %v5681_v57 }
0x1916   :  { %2401 = vmatpush1.msra.mxu1 %v5687_v58 }
0x1917   :  { %2402 = vmatprep.subr.mxu1 %v5690_v1 }
0x1918   :  { %2403 = vmatpush1.msra.mxu1 %v5693_v55 }
0x1919   :  { %2404 = vmatprep.subr.mxu1 %v5698_v60 }
0x191a   :  { %2405 = vmatpush1.msra.mxu1 %v5704_v5 }
0x191b   :  { %2406 = vmatprep.subr.mxu1 %v5707_v9 }
0x191c   :  { %2407 = vmatpush1.msra.mxu1 %v5712_v19 }
0x191d   :  { %2408 = vmatprep.subr.mxu1 %v5716_v25 }
0x191e   :  { %2409 = vmatpush1.msra.mxu1 %v5720_v26 }
0x191f   :  { %2700 = vmatprep.subr.mxu1 %v5658_v51 }
0x19cf   :  { %v2138_v3 = vpop.f32.mrf.mxu1 }
0x19d0   :  { %v2143_v47 = vadd.f32 %v2138_v3, %v5797_v2 }
0x19d1   :  { %v2140_v61 = vpop.f32.mrf.mxu1 }
0x19d2   :  { %4749 = vtanh.f32 %v2143_v47  ;;  %v2144_v20 = vadd.f32 %v2140_v61, %v5819_v54  ;;  %v4503_v50 = vmul.f32 -1.442695, %v2143_v47 }
0x19d4   :  { %4751 = vtanh.f32 %v2144_v20  ;;  %v4504_v8 = vmul.f32 -1.442695, %v2144_v20 }
0x19d5   :  { %4753 = vpow2.f32 %v4503_v50 }
0x19d6   :  { %4755 = vpow2.f32 %v4504_v8 }
0x19df   :  { %v4750_v18 = vpop.eup %4749 }
0x19e0   :  { %2166 = vrot.lane.b32.xlu0 %v4750_v18, %s5054_s3 }
0x19e1   :  { %v4752_v44 = vpop.eup %4751 }
0x19e2   :  { %2177 = vrot.lane.b32.xlu1 %v4752_v44, %s5054_s3  ;;  %v4754_v10 = vpop.eup %4753 }
0x19e3   :  { %v4756_v2 = vpop.eup %4755  ;;  %v2151_v12 = vadd.f32 1.0, %v4754_v10 }
0x19e4   :  { %2161 = vrot.lane.b32.xlu0 %v2159_v48, %s5053_s1  ;;  %v2152_v13 = vadd.f32 1.0, %v4756_v2 }
0x19e5   :  { %4757 = vrcp.f32 %v2151_v12 }
0x19e6   :  { %4759 = vrcp.f32 %v2152_v13 }
0x19f2   :  { %v4758_v54 = vpop.eup %4757 }
0x19f3   :  { %v4760_v22 = vpop.eup %4759 }
0x19f4   :  { %v2175_v29 = vmul.f32 %v4760_v22, %v2159_v48 }
0x1a52   :  { %v2167_v15 = vpop.permute.xlu0 %2166 }
0x1a53   :  { %v2169_v21 = vmul.f32 %v4758_v54, %v2167_v15 }
0x1a54   :  { %v2178_v23 = vpop.permute.xlu1 %2177 }
0x1a55   :  { %2171 = vrot.lane.b32.xlu1 %v2169_v21, %s5053_s1  ;;  %v2180_v24 = vmul.f32 %v4760_v22, %v2178_v23 }
0x1a56   :  { %v2162_v36 = vpop.permute.xlu0 %2161 }
0x1a57   :  { %2182 = vrot.lane.b32.xlu0 %v2180_v24, %s5053_s1  ;;  %v2164_v53 = vmul.f32 %v4758_v54, %v2162_v36 }
0x1ac7   :  { %v2172_v59 = vpop.permute.xlu1 %2171 }
0x1ac8   :  { %v2174_v41 = vadd.f32 %v2172_v59, %v2164_v53 }
0x1ac9   :  { %v2183_v27 = vpop.permute.xlu0 %2182 }
0x1aca   :  { %4761 = vtanh.f32 %v2174_v41  ;;  %v2185_v31 = vadd.f32 %v2183_v27, %v2175_v29 }
0x1acc   :  { %4763 = vtanh.f32 %v2185_v31 }
0x1ad7   :  { %v4762_v38 = vpop.eup %4761 }
0x1ad8   :  { %2188 = vrot.lane.b32.xlu1 %v4762_v38, %s5054_s3 }
0x1ad9   :  { %v4764_v39 = vpop.eup %4763 }
0x1ada   :  { %2194 = vrot.lane.b32.xlu0 %v4764_v39, %s5054_s3 }
0x1b4a   :  { %v2189_v42 = vpop.permute.xlu1 %2188 }
0x1b4b   :  { %v2191_v4 = vmul.f32 %v4758_v54, %v2189_v42 }
0x1b4c   :  { %v2195_v16 = vpop.permute.xlu0 %2194 }
0x1b4d   :  { %2205 = vrot.lane.b32.xlu1 %v2191_v4, %s5053_s1  ;;  %v5869_v45 = vmul.f32 %v4760_v22, %v2195_v16 }
0x1b4f   :  { %2209 = vrot.lane.b32.xlu0 %v5869_v45, %s5054_s3 }
0x1b51   :  { %2199 = vrot.lane.b32.xlu1 %v2174_v41, %s5055_s29 }
0x1bbf   :  { %v2206_v3 = vpop.permute.xlu1 %2205 }
0x1bc0   :  { %2214 = vst.msk [vmem:[#allocation3 + $0x8] sm:$0xff] %vm436_vm2, %v2206_v3 }
0x1bc1   :  { %v2210_v47 = vpop.permute.xlu0 %2209 }
0x1bc2   :  { %v2212_v61 = vsel %vm436_vm2, %v2206_v3, %v2210_v47 }
0x1bc3   :  { %v2200_v20 = vpop.permute.xlu1 %2199  ;;  %2213 = vst.msk [vmem:[#allocation5] sm:$0xff] %vm280_vm0, %v2212_v61 }
0x1bc4   :  { %v2202_v18 = vsel %vm436_vm2, %v2200_v20, %v2185_v31 }
0x1bc5   :  { %2203 = vst.msk [vmem:[#allocation6] sm:$0xff] %vm280_vm0, %v2202_v18 }
0x1bca   :  { %v2221_v44 = vld [vmem:[#allocation5] sm:$0xff] }
0x1bcb   :  { %4505 = vmatmul.mubr.msk.f32.vlgmr.msra.gmra.mxu0 %vm280_vm0, %v2221_v44 }
0x1bcc   :  { %2548 = vmatpush1.msra.mxu0 %v5662_v14  ;;  %2595 = vmatprep.mubr.f32.mxu0 %v5052_v0  ;;  %v2312_v13 = vld [vmem:[#allocation6] sm:$0xff] }
0x1bcd   :  { %2549 = vmatprep.subr.mxu0 %v5664_v37 }
0x1bce   :  { %2550 = vmatpush1.msra.mxu0 %v5670_v63 }
0x1bcf   :  { %2551 = vmatprep.subr.mxu0 %v5672_v52 }
0x1bd0   :  { %2552 = vmatpush1.msra.mxu0 %v5678_v56 }
0x1bd1   :  { %2553 = vmatprep.subr.mxu0 %v5681_v57 }
0x1bd2   :  { %2554 = vmatpush1.msra.mxu0 %v5687_v58 }
0x1bd3   :  { %2555 = vmatprep.subr.mxu0 %v5690_v1 }
0x1bd4   :  { %2556 = vmatpush1.msra.mxu0 %v5693_v55 }
0x1bd5   :  { %2557 = vmatprep.subr.mxu0 %v5698_v60 }
0x1bd6   :  { %2558 = vmatpush1.msra.mxu0 %v5704_v5 }
0x1bd7   :  { %2559 = vmatprep.subr.mxu0 %v5707_v9 }
0x1bd8   :  { %2560 = vmatpush1.msra.mxu0 %v5712_v19 }
0x1bd9   :  { %2561 = vmatprep.subr.mxu0 %v5716_v25 }
0x1bda   :  { %2562 = vmatpush1.msra.mxu0 %v5720_v26 }
0x1bdb   :  { %2853 = vmatprep.subr.mxu0 %v5658_v51 }
0x1c8b   :  { %v2291_v48 = vpop.f32.mrf.mxu0 }
0x1c8c   :  { %v2296_v50 = vadd.f32 %v2291_v48, %v5801_v28 }
0x1c8d   :  { %v2293_v8 = vpop.f32.mrf.mxu0 }
0x1c8e   :  { %4765 = vtanh.f32 %v2296_v50  ;;  %v2297_v10 = vadd.f32 %v2293_v8, %v5815_v17  ;;  %v4506_v54 = vmul.f32 -1.442695, %v2296_v50 }
0x1c90   :  { %4767 = vtanh.f32 %v2297_v10  ;;  %v4507_v15 = vmul.f32 -1.442695, %v2297_v10 }
0x1c91   :  { %4769 = vpow2.f32 %v4506_v54 }
0x1c92   :  { %4771 = vpow2.f32 %v4507_v15 }
0x1c9b   :  { %v4766_v2 = vpop.eup %4765 }
0x1c9c   :  { %2319 = vrot.lane.b32.xlu0 %v4766_v2, %s5054_s3 }
0x1c9d   :  { %v4768_v12 = vpop.eup %4767 }
0x1c9e   :  { %2330 = vrot.lane.b32.xlu1 %v4768_v12, %s5054_s3  ;;  %v4770_v21 = vpop.eup %4769 }
0x1c9f   :  { %v4772_v28 = vpop.eup %4771  ;;  %v2304_v22 = vadd.f32 1.0, %v4770_v21 }
0x1ca0   :  { %2314 = vrot.lane.b32.xlu0 %v2312_v13, %s5053_s1  ;;  %v2305_v23 = vadd.f32 1.0, %v4772_v28 }
0x1ca1   :  { %4773 = vrcp.f32 %v2304_v22 }
0x1ca2   :  { %4775 = vrcp.f32 %v2305_v23 }
0x1cae   :  { %v4774_v17 = vpop.eup %4773 }
0x1caf   :  { %v4776_v53 = vpop.eup %4775 }
0x1cb0   :  { %v2328_v39 = vmul.f32 %v4776_v53, %v2312_v13 }
0x1d0e   :  { %v2320_v24 = vpop.permute.xlu0 %2319 }
0x1d0f   :  { %v2322_v36 = vmul.f32 %v4774_v17, %v2320_v24 }
0x1d10   :  { %v2331_v59 = vpop.permute.xlu1 %2330 }
0x1d11   :  { %2324 = vrot.lane.b32.xlu1 %v2322_v36, %s5053_s1  ;;  %v2333_v41 = vmul.f32 %v4776_v53, %v2331_v59 }
0x1d12   :  { %v2315_v29 = vpop.permute.xlu0 %2314 }
0x1d13   :  { %2335 = vrot.lane.b32.xlu0 %v2333_v41, %s5053_s1  ;;  %v2317_v27 = vmul.f32 %v4774_v17, %v2315_v29 }
0x1d83   :  { %v2325_v31 = vpop.permute.xlu1 %2324 }
0x1d84   :  { %v2327_v38 = vadd.f32 %v2325_v31, %v2317_v27 }
0x1d85   :  { %v2336_v42 = vpop.permute.xlu0 %2335 }
0x1d86   :  { %4777 = vtanh.f32 %v2327_v38  ;;  %v2338_v4 = vadd.f32 %v2336_v42, %v2328_v39 }
0x1d88   :  { %4779 = vtanh.f32 %v2338_v4 }
0x1d93   :  { %v4778_v16 = vpop.eup %4777 }
0x1d94   :  { %2341 = vrot.lane.b32.xlu1 %v4778_v16, %s5054_s3 }
0x1d95   :  { %v4780_v3 = vpop.eup %4779 }
0x1d96   :  { %2347 = vrot.lane.b32.xlu0 %v4780_v3, %s5054_s3 }
0x1e06   :  { %v2342_v47 = vpop.permute.xlu1 %2341 }
0x1e07   :  { %v2344_v61 = vmul.f32 %v4774_v17, %v2342_v47 }
0x1e08   :  { %v2348_v20 = vpop.permute.xlu0 %2347 }
0x1e09   :  { %2358 = vrot.lane.b32.xlu1 %v2344_v61, %s5053_s1  ;;  %v5907_v18 = vmul.f32 %v4776_v53, %v2348_v20 }
0x1e0b   :  { %2362 = vrot.lane.b32.xlu0 %v5907_v18, %s5054_s3 }
0x1e0d   :  { %2352 = vrot.lane.b32.xlu1 %v2327_v38, %s5055_s29 }
0x1e7b   :  { %v2359_v44 = vpop.permute.xlu1 %2358 }
0x1e7c   :  { %2367 = vst.msk [vmem:[#allocation3 + $0x10] sm:$0xff] %vm436_vm2, %v2359_v44 }
0x1e7d   :  { %v2363_v48 = vpop.permute.xlu0 %2362 }
0x1e7e   :  { %v2365_v50 = vsel %vm436_vm2, %v2359_v44, %v2363_v48 }
0x1e7f   :  { %v2353_v8 = vpop.permute.xlu1 %2352  ;;  %2366 = vst.msk [vmem:[#allocation5] sm:$0xff] %vm280_vm0, %v2365_v50 }
0x1e80   :  { %v2355_v10 = vsel %vm436_vm2, %v2353_v8, %v2338_v4 }
0x1e81   :  { %2356 = vst.msk [vmem:[#allocation6] sm:$0xff] %vm280_vm0, %v2355_v10 }
0x1e86   :  { %v2374_v2 = vld [vmem:[#allocation5] sm:$0xff] }
0x1e87   :  { %4508 = vmatmul.mubr.msk.f32.vlgmr.msra.gmra.mxu1 %vm280_vm0, %v2374_v2 }
0x1e88   :  { %2701 = vmatpush1.msra.mxu1 %v5662_v14  ;;  %2748 = vmatprep.mubr.f32.mxu1 %v5052_v0  ;;  %v2465_v22 = vld [vmem:[#allocation6] sm:$0xff] }
0x1e89   :  { %2702 = vmatprep.subr.mxu1 %v5664_v37 }
0x1e8a   :  { %2703 = vmatpush1.msra.mxu1 %v5670_v63 }
0x1e8b   :  { %2704 = vmatprep.subr.mxu1 %v5672_v52 }
0x1e8c   :  { %2705 = vmatpush1.msra.mxu1 %v5678_v56 }
0x1e8d   :  { %2706 = vmatprep.subr.mxu1 %v5681_v57 }
0x1e8e   :  { %2707 = vmatpush1.msra.mxu1 %v5687_v58 }
0x1e8f   :  { %2708 = vmatprep.subr.mxu1 %v5690_v1 }
0x1e90   :  { %2709 = vmatpush1.msra.mxu1 %v5693_v55 }
0x1e91   :  { %2710 = vmatprep.subr.mxu1 %v5698_v60 }
0x1e92   :  { %2711 = vmatpush1.msra.mxu1 %v5704_v5 }
0x1e93   :  { %2712 = vmatprep.subr.mxu1 %v5707_v9 }
0x1e94   :  { %2713 = vmatpush1.msra.mxu1 %v5712_v19 }
0x1e95   :  { %2714 = vmatprep.subr.mxu1 %v5716_v25 }
0x1e96   :  { %2715 = vmatpush1.msra.mxu1 %v5720_v26 }
0x1e97   :  { %3006 = vmatprep.subr.mxu1 %v5658_v51 }
0x1f47   :  { %v2444_v12 = vpop.f32.mrf.mxu1 }
0x1f48   :  { %v2449_v13 = vadd.f32 %v2444_v12, %v5805_v43 }
0x1f49   :  { %v2446_v54 = vpop.f32.mrf.mxu1 }
0x1f4a   :  { %4781 = vtanh.f32 %v2449_v13  ;;  %v2450_v15 = vadd.f32 %v2446_v54, %v5811_v6  ;;  %v4509_v23 = vmul.f32 -1.442695, %v2449_v13 }
0x1f4c   :  { %4783 = vtanh.f32 %v2450_v15  ;;  %v4510_v17 = vmul.f32 -1.442695, %v2450_v15 }
0x1f4d   :  { %4785 = vpow2.f32 %v4509_v23 }
0x1f4e   :  { %4787 = vpow2.f32 %v4510_v17 }
0x1f57   :  { %v4782_v21 = vpop.eup %4781 }
0x1f58   :  { %2472 = vrot.lane.b32.xlu0 %v4782_v21, %s5054_s3 }
0x1f59   :  { %v4784_v28 = vpop.eup %4783 }
0x1f5a   :  { %2483 = vrot.lane.b32.xlu1 %v4784_v28, %s5054_s3  ;;  %v4786_v51 = vpop.eup %4785 }
0x1f5b   :  { %v4788_v43 = vpop.eup %4787  ;;  %v2457_v24 = vadd.f32 1.0, %v4786_v51 }
0x1f5c   :  { %2467 = vrot.lane.b32.xlu0 %v2465_v22, %s5053_s1  ;;  %v2458_v36 = vadd.f32 1.0, %v4788_v43 }
0x1f5d   :  { %4789 = vrcp.f32 %v2457_v24 }
0x1f5e   :  { %4791 = vrcp.f32 %v2458_v36 }
0x1f6a   :  { %v4790_v6 = vpop.eup %4789 }
0x1f6b   :  { %v4792_v41 = vpop.eup %4791 }
0x1f6c   :  { %v2481_v4 = vmul.f32 %v4792_v41, %v2465_v22 }
0x1fca   :  { %v2473_v53 = vpop.permute.xlu0 %2472 }
0x1fcb   :  { %v2475_v59 = vmul.f32 %v4790_v6, %v2473_v53 }
0x1fcc   :  { %v2484_v29 = vpop.permute.xlu1 %2483 }
0x1fcd   :  { %2477 = vrot.lane.b32.xlu1 %v2475_v59, %s5053_s1  ;;  %v2486_v27 = vmul.f32 %v4792_v41, %v2484_v29 }
0x1fce   :  { %v2468_v31 = vpop.permute.xlu0 %2467 }
0x1fcf   :  { %2488 = vrot.lane.b32.xlu0 %v2486_v27, %s5053_s1  ;;  %v2470_v38 = vmul.f32 %v4790_v6, %v2468_v31 }
0x203f   :  { %v2478_v39 = vpop.permute.xlu1 %2477 }
0x2040   :  { %v2480_v42 = vadd.f32 %v2478_v39, %v2470_v38 }
0x2041   :  { %v2489_v16 = vpop.permute.xlu0 %2488 }
0x2042   :  { %4793 = vtanh.f32 %v2480_v42  ;;  %v2491_v3 = vadd.f32 %v2489_v16, %v2481_v4  ;;  %v4945_v16 = vld [vmem:[#allocation11 + $0x70] sm:$0xff] }
0x2044   :  { %4795 = vtanh.f32 %v2491_v3 }
0x204f   :  { %v4794_v47 = vpop.eup %4793 }
0x2050   :  { %2494 = vrot.lane.b32.xlu1 %v4794_v47, %s5054_s3  ;;  %v4947_v47 = vld [vmem:[#allocation11 + $0x60] sm:$0xff] }
0x2051   :  { %v4796_v61 = vpop.eup %4795 }
0x2052   :  { %2500 = vrot.lane.b32.xlu0 %v4796_v61, %s5054_s3  ;;  %v4948_v61 = vld [vmem:[#allocation11 + $0x58] sm:$0xff] }
0x20c2   :  { %v2495_v20 = vpop.permute.xlu1 %2494 }
0x20c3   :  { %v2497_v44 = vmul.f32 %v4790_v6, %v2495_v20  ;;  %v4949_v20 = vld [vmem:[#allocation11 + $0x50] sm:$0xff] }
0x20c4   :  { %v2501_v48 = vpop.permute.xlu0 %2500 }
0x20c5   :  { %2511 = vrot.lane.b32.xlu1 %v2497_v44, %s5053_s1  ;;  %v5945_v50 = vmul.f32 %v4792_v41, %v2501_v48  ;;  %v4950_v44 = vld [vmem:[#allocation11 + $0x48] sm:$0xff]  ;;  %v4951_v48 = vld [vmem:[#allocation11 + $0x40] sm:$0xff] }
0x20c7   :  { %2515 = vrot.lane.b32.xlu0 %v5945_v50, %s5054_s3 }
0x20c9   :  { %2505 = vrot.lane.b32.xlu1 %v2480_v42, %s5055_s29 }
0x2137   :  { %v2512_v8 = vpop.permute.xlu1 %2511 }
0x2138   :  { %2520 = vst.msk [vmem:[#allocation3 + $0x18] sm:$0xff] %vm436_vm2, %v2512_v8 }
0x2139   :  { %v2516_v10 = vpop.permute.xlu0 %2515 }
0x213a   :  { %v2518_v2 = vsel %vm436_vm2, %v2512_v8, %v2516_v10  ;;  %v4952_v8 = vld [vmem:[#allocation11 + $0x38] sm:$0xff]  ;;  %v4953_v10 = vld [vmem:[#allocation11 + $0x30] sm:$0xff] }
0x213b   :  { %v2506_v12 = vpop.permute.xlu1 %2505  ;;  %2519 = vst.msk [vmem:[#allocation5] sm:$0xff] %vm280_vm0, %v2518_v2  ;;  %v4954_v2 = vld [vmem:[#allocation11 + $0x28] sm:$0xff] }
0x213c   :  { %v2508_v13 = vsel %vm436_vm2, %v2506_v12, %v2491_v3  ;;  %v4946_v3 = vld [vmem:[#allocation11 + $0x68] sm:$0xff]  ;;  %v4955_v12 = vld [vmem:[#allocation11 + $0x20] sm:$0xff] }
0x213d   :  { %2509 = vst.msk [vmem:[#allocation6] sm:$0xff] %vm280_vm0, %v2508_v13  ;;  %v4956_v13 = vld [vmem:[#allocation11 + $0x18] sm:$0xff] }
0x2142   :  { %v2527_v54 = vld [vmem:[#allocation5] sm:$0xff] }
0x2143   :  { %4511 = vmatmul.mubr.msk.f32.vlgmr.msra.gmra.mxu0 %vm280_vm0, %v2527_v54  ;;  %v4957_v54 = vld [vmem:[#allocation11 + $0x10] sm:$0xff] }
0x2144   :  { %2854 = vmatpush1.msra.mxu0 %v5662_v14  ;;  %2901 = vmatprep.mubr.f32.mxu0 %v5052_v0 }
0x2145   :  { %2855 = vmatprep.subr.mxu0 %v5664_v37 }
0x2146   :  { %2856 = vmatpush1.msra.mxu0 %v5670_v63 }
0x2147   :  { %2857 = vmatprep.subr.mxu0 %v5672_v52 }
0x2148   :  { %2858 = vmatpush1.msra.mxu0 %v5678_v56 }
0x2149   :  { %2859 = vmatprep.subr.mxu0 %v5681_v57 }
0x214a   :  { %2860 = vmatpush1.msra.mxu0 %v5687_v58  ;;  %v2618_v58 = vld [vmem:[#allocation6] sm:$0xff] }
0x214b   :  { %2861 = vmatprep.subr.mxu0 %v5690_v1 }
0x214c   :  { %2862 = vmatpush1.msra.mxu0 %v5693_v55 }
0x214d   :  { %2863 = vmatprep.subr.mxu0 %v5698_v60 }
0x214e   :  { %2864 = vmatpush1.msra.mxu0 %v5704_v5 }
0x214f   :  { %2865 = vmatprep.subr.mxu0 %v5707_v9 }
0x2150   :  { %2866 = vmatpush1.msra.mxu0 %v5712_v19 }
0x2151   :  { %2867 = vmatprep.subr.mxu0 %v5716_v25 }
0x2152   :  { %2868 = vmatpush1.msra.mxu0 %v5720_v26 }
0x2203   :  { %v2597_v14 = vpop.f32.mrf.mxu0 }
0x2204   :  { %v2602_v37 = vadd.f32 %v2597_v14, %v5809_v7  ;;  %v4958_v14 = vld [vmem:[#allocation11 + $0x8] sm:$0xff] }
0x2205   :  { %v2599_v63 = vpop.f32.mrf.mxu0 }
0x2206   :  { %4797 = vtanh.f32 %v2602_v37  ;;  %v2603_v52 = vadd.f32 %v2599_v63, %v5807_v40  ;;  %v4512_v1 = vmul.f32 -1.442695, %v2602_v37  ;;  %v4959_v37 = vld [vmem:[#allocation11] sm:$0xff] }
0x2208   :  { %4799 = vtanh.f32 %v2603_v52  ;;  %v4513_v55 = vmul.f32 -1.442695, %v2603_v52 }
0x2209   :  { %4801 = vpow2.f32 %v4512_v1 }
0x220a   :  { %4803 = vpow2.f32 %v4513_v55 }
0x2213   :  { %v4798_v56 = vpop.eup %4797 }
0x2214   :  { %2625 = vrot.lane.b32.xlu0 %v4798_v56, %s5054_s3 }
0x2215   :  { %v4800_v57 = vpop.eup %4799 }
0x2216   :  { %2636 = vrot.lane.b32.xlu1 %v4800_v57, %s5054_s3  ;;  %v4802_v60 = vpop.eup %4801 }
0x2217   :  { %v4804_v5 = vpop.eup %4803  ;;  %v2610_v9 = vadd.f32 1.0, %v4802_v60 }
0x2218   :  { %2620 = vrot.lane.b32.xlu0 %v2618_v58, %s5053_s1  ;;  %v2611_v19 = vadd.f32 1.0, %v4804_v5 }
0x2219   :  { %4805 = vrcp.f32 %v2610_v9 }
0x221a   :  { %4807 = vrcp.f32 %v2611_v19 }
0x2226   :  { %v4806_v25 = vpop.eup %4805 }
0x2227   :  { %v4808_v7 = vpop.eup %4807 }
0x2228   :  { %v2634_v51 = vmul.f32 %v4808_v7, %v2618_v58 }
0x2286   :  { %v2626_v26 = vpop.permute.xlu0 %2625 }
0x2287   :  { %v2628_v40 = vmul.f32 %v4806_v25, %v2626_v26 }
0x2288   :  { %v2637_v15 = vpop.permute.xlu1 %2636 }
0x2289   :  { %2630 = vrot.lane.b32.xlu1 %v2628_v40, %s5053_s1  ;;  %v2639_v21 = vmul.f32 %v4808_v7, %v2637_v15 }
0x228a   :  { %v2621_v28 = vpop.permute.xlu0 %2620 }
0x228b   :  { %2641 = vrot.lane.b32.xlu0 %v2639_v21, %s5053_s1  ;;  %v2623_v22 = vmul.f32 %v4806_v25, %v2621_v28 }
0x22fb   :  { %v2631_v23 = vpop.permute.xlu1 %2630 }
0x22fc   :  { %v2633_v17 = vadd.f32 %v2631_v23, %v2623_v22 }
0x22fd   :  { %v2642_v43 = vpop.permute.xlu0 %2641 }
0x22fe   :  { %4809 = vtanh.f32 %v2633_v17  ;;  %v2644_v24 = vadd.f32 %v2642_v43, %v2634_v51 }
0x2300   :  { %4811 = vtanh.f32 %v2644_v24 }
0x230b   :  { %v4810_v36 = vpop.eup %4809 }
0x230c   :  { %2647 = vrot.lane.b32.xlu1 %v4810_v36, %s5054_s3 }
0x230d   :  { %v4812_v6 = vpop.eup %4811 }
0x230e   :  { %2653 = vrot.lane.b32.xlu0 %v4812_v6, %s5054_s3 }
0x237e   :  { %v2648_v53 = vpop.permute.xlu1 %2647 }
0x237f   :  { %v2650_v59 = vmul.f32 %v4806_v25, %v2648_v53 }
0x2380   :  { %v2654_v41 = vpop.permute.xlu0 %2653 }
0x2381   :  { %2664 = vrot.lane.b32.xlu1 %v2650_v59, %s5053_s1  ;;  %v5982_v29 = vmul.f32 %v4808_v7, %v2654_v41 }
0x2383   :  { %2668 = vrot.lane.b32.xlu0 %v5982_v29, %s5054_s3 }
0x2385   :  { %2658 = vrot.lane.b32.xlu1 %v2633_v17, %s5055_s29 }
0x23f3   :  { %v2665_v27 = vpop.permute.xlu1 %2664 }
0x23f4   :  { %2673 = vst.msk [vmem:[#allocation3 + $0x20] sm:$0xff] %vm436_vm2, %v2665_v27 }
0x23f5   :  { %v2669_v31 = vpop.permute.xlu0 %2668 }
0x23f6   :  { %v2671_v38 = vsel %vm436_vm2, %v2665_v27, %v2669_v31 }
0x23f7   :  { %v2659_v39 = vpop.permute.xlu1 %2658  ;;  %2672 = vst.msk [vmem:[#allocation5] sm:$0xff] %vm280_vm0, %v2671_v38 }
0x23f8   :  { %v2661_v42 = vsel %vm436_vm2, %v2659_v39, %v2644_v24 }
0x23f9   :  { %2662 = vst.msk [vmem:[#allocation6] sm:$0xff] %vm280_vm0, %v2661_v42 }
0x23fe   :  { %v2680_v4 = vld [vmem:[#allocation5] sm:$0xff] }
0x23ff   :  { %4514 = vmatmul.mubr.msk.f32.vlgmr.msra.gmra.mxu1 %vm280_vm0, %v2680_v4 }
0x2400   :  { %3007 = vmatpush1.msra.mxu1 %v4945_v16  ;;  %3054 = vmatprep.mubr.f32.mxu1 %v5052_v0  ;;  %v2771_v55 = vld [vmem:[#allocation6] sm:$0xff] }
0x2401   :  { %3008 = vmatprep.subr.mxu1 %v4946_v3 }
0x2402   :  { %3009 = vmatpush1.msra.mxu1 %v4947_v47 }
0x2403   :  { %3010 = vmatprep.subr.mxu1 %v4948_v61 }
0x2404   :  { %3011 = vmatpush1.msra.mxu1 %v4949_v20 }
0x2405   :  { %3012 = vmatprep.subr.mxu1 %v4950_v44 }
0x2406   :  { %3013 = vmatpush1.msra.mxu1 %v4951_v48 }
0x2407   :  { %3014 = vmatprep.subr.mxu1 %v4952_v8 }
0x2408   :  { %3015 = vmatpush1.msra.mxu1 %v4953_v10 }
0x2409   :  { %3016 = vmatprep.subr.mxu1 %v4954_v2 }
0x240a   :  { %3017 = vmatpush1.msra.mxu1 %v4955_v12 }
0x240b   :  { %3018 = vmatprep.subr.mxu1 %v4956_v13 }
0x240c   :  { %3019 = vmatpush1.msra.mxu1 %v4957_v54 }
0x240d   :  { %3020 = vmatprep.subr.mxu1 %v4958_v14 }
0x240e   :  { %3021 = vmatpush1.msra.mxu1 %v4959_v37 }
0x24bf   :  { %v2750_v63 = vpop.f32.mrf.mxu1 }
0x24c0   :  { %v2755_v52 = vadd.f32 %v2750_v63, %v5813_v11 }
0x24c1   :  { %v2752_v56 = vpop.f32.mrf.mxu1 }
0x24c2   :  { %4813 = vtanh.f32 %v2755_v52  ;;  %v2756_v57 = vadd.f32 %v2752_v56, %v5803_v34  ;;  %v4515_v60 = vmul.f32 -1.442695, %v2755_v52 }
0x24c4   :  { %4815 = vtanh.f32 %v2756_v57  ;;  %v4516_v5 = vmul.f32 -1.442695, %v2756_v57 }
0x24c5   :  { %4817 = vpow2.f32 %v4515_v60 }
0x24c6   :  { %4819 = vpow2.f32 %v4516_v5 }
0x24cf   :  { %v4814_v58 = vpop.eup %4813 }
0x24d0   :  { %2778 = vrot.lane.b32.xlu0 %v4814_v58, %s5054_s3 }
0x24d1   :  { %v4816_v1 = vpop.eup %4815 }
0x24d2   :  { %2789 = vrot.lane.b32.xlu1 %v4816_v1, %s5054_s3  ;;  %v4818_v9 = vpop.eup %4817 }
0x24d3   :  { %v4820_v11 = vpop.eup %4819  ;;  %v2763_v19 = vadd.f32 1.0, %v4818_v9 }
0x24d4   :  { %2773 = vrot.lane.b32.xlu0 %v2771_v55, %s5053_s1  ;;  %v2764_v25 = vadd.f32 1.0, %v4820_v11 }
0x24d5   :  { %4821 = vrcp.f32 %v2763_v19 }
0x24d6   :  { %4823 = vrcp.f32 %v2764_v25  ;;  %v3144_v25 = vld [vmem:[#allocation13 + $0x38] sm:$0xff] }
0x24d7   :  { %3354 = vmatprep.subr.mxu1 %v3144_v25 }
0x24e2   :  { %v4822_v34 = vpop.eup %4821 }
0x24e3   :  { %v4824_v7 = vpop.eup %4823 }
0x24e4   :  { %v2787_v51 = vmul.f32 %v4824_v7, %v2771_v55 }
0x2542   :  { %v2779_v26 = vpop.permute.xlu0 %2778 }
0x2543   :  { %v2781_v40 = vmul.f32 %v4822_v34, %v2779_v26 }
0x2544   :  { %v2790_v15 = vpop.permute.xlu1 %2789 }
0x2545   :  { %2783 = vrot.lane.b32.xlu1 %v2781_v40, %s5053_s1  ;;  %v2792_v21 = vmul.f32 %v4824_v7, %v2790_v15 }
0x2546   :  { %v2774_v28 = vpop.permute.xlu0 %2773 }
0x2547   :  { %2794 = vrot.lane.b32.xlu0 %v2792_v21, %s5053_s1  ;;  %v2776_v22 = vmul.f32 %v4822_v34, %v2774_v28 }
0x25b7   :  { %v2784_v23 = vpop.permute.xlu1 %2783 }
0x25b8   :  { %v2786_v17 = vadd.f32 %v2784_v23, %v2776_v22 }
0x25b9   :  { %v2795_v43 = vpop.permute.xlu0 %2794 }
0x25ba   :  { %4825 = vtanh.f32 %v2786_v17  ;;  %v2797_v24 = vadd.f32 %v2795_v43, %v2787_v51  ;;  %v3142_v43 = vld [vmem:[#allocation13 + $0x28] sm:$0xff] }
0x25bc   :  { %4827 = vtanh.f32 %v2797_v24 }
0x25c7   :  { %v4826_v36 = vpop.eup %4825 }
0x25c8   :  { %2800 = vrot.lane.b32.xlu1 %v4826_v36, %s5054_s3  ;;  %v3140_v36 = vld [vmem:[#allocation13 + $0x18] sm:$0xff] }
0x25c9   :  { %v4828_v6 = vpop.eup %4827 }
0x25ca   :  { %2806 = vrot.lane.b32.xlu0 %v4828_v6, %s5054_s3  ;;  %v3139_v6 = vld [vmem:[#allocation13 + $0x10] sm:$0xff] }
0x263a   :  { %v2801_v53 = vpop.permute.xlu1 %2800 }
0x263b   :  { %v2803_v59 = vmul.f32 %v4822_v34, %v2801_v53  ;;  %v3138_v53 = vld [vmem:[#allocation13 + $0x8] sm:$0xff] }
0x263c   :  { %v2807_v41 = vpop.permute.xlu0 %2806 }
0x263d   :  { %2817 = vrot.lane.b32.xlu1 %v2803_v59, %s5053_s1  ;;  %v6004_v27 = vmul.f32 %v4824_v7, %v2807_v41  ;;  %v3137_v59 = vld [vmem:[#allocation13] sm:$0xff] }
0x263e   :  { %v3153_v41 = vld [vmem:[#allocation3] sm:$0xff] }
0x263f   :  { %2821 = vrot.lane.b32.xlu0 %v6004_v27, %s5054_s3 }
0x2641   :  { %2811 = vrot.lane.b32.xlu1 %v2786_v17, %s5055_s29  ;;  %v3143_v17 = vld [vmem:[#allocation13 + $0x30] sm:$0xff] }
0x26af   :  { %v2818_v31 = vpop.permute.xlu1 %2817 }
0x26b0   :  { %2826 = vst.msk [vmem:[#allocation3 + $0x28] sm:$0xff] %vm436_vm2, %v2818_v31 }
0x26b1   :  { %v2822_v38 = vpop.permute.xlu0 %2821 }
0x26b2   :  { %v2824_v39 = vsel %vm436_vm2, %v2818_v31, %v2822_v38  ;;  %v3154_v31 = vld [vmem:[#allocation3 + $0x8] sm:$0xff]  ;;  %v3155_v38 = vld [vmem:[#allocation3 + $0x10] sm:$0xff] }
0x26b3   :  { %v2812_v42 = vpop.permute.xlu1 %2811  ;;  %2825 = vst.msk [vmem:[#allocation5] sm:$0xff] %vm280_vm0, %v2824_v39  ;;  %v3156_v39 = vld [vmem:[#allocation3 + $0x18] sm:$0xff] }
0x26b4   :  { %v2814_v4 = vsel %vm436_vm2, %v2812_v42, %v2797_v24  ;;  %v3141_v24 = vld [vmem:[#allocation13 + $0x20] sm:$0xff] }
0x26b5   :  { %2815 = vst.msk [vmem:[#allocation6] sm:$0xff] %vm280_vm0, %v2814_v4  ;;  %v3157_v42 = vld [vmem:[#allocation3 + $0x20] sm:$0xff] }
0x26b7   :  { %v3158_v4 = vld [vmem:[#allocation3 + $0x28] sm:$0xff] }
0x26ba   :  { %v2833_v16 = vld [vmem:[#allocation5] sm:$0xff] }
0x26bb   :  { %4517 = vmatmul.mubr.msk.f32.vlgmr.msra.gmra.mxu0 %vm280_vm0, %v2833_v16 }
0x26bc   :  { %3257 = vmatprep.mubr.f32.mxu0 %v5052_v0  ;;  %v2924_v8 = vld [vmem:[#allocation6] sm:$0xff] }
0x277b   :  { %v2903_v3 = vpop.f32.mrf.mxu0 }
0x277c   :  { %v2908_v47 = vadd.f32 %v2903_v3, %v5817_v49 }
0x277d   :  { %v2905_v61 = vpop.f32.mrf.mxu0 }
0x277e   :  { %4829 = vtanh.f32 %v2908_v47  ;;  %v2909_v20 = vadd.f32 %v2905_v61, %v5799_v62  ;;  %v4518_v10 = vmul.f32 -1.442695, %v2908_v47 }
0x2780   :  { %4831 = vtanh.f32 %v2909_v20  ;;  %v4519_v2 = vmul.f32 -1.442695, %v2909_v20 }
0x2781   :  { %4833 = vpow2.f32 %v4518_v10 }
0x2782   :  { %4835 = vpow2.f32 %v4519_v2 }
0x278b   :  { %v4830_v44 = vpop.eup %4829 }
0x278c   :  { %2931 = vrot.lane.b32.xlu0 %v4830_v44, %s5054_s3 }
0x278d   :  { %v4832_v48 = vpop.eup %4831 }
0x278e   :  { %2942 = vrot.lane.b32.xlu1 %v4832_v48, %s5054_s3  ;;  %v4834_v12 = vpop.eup %4833 }
0x278f   :  { %v4836_v49 = vpop.eup %4835  ;;  %v2916_v13 = vadd.f32 1.0, %v4834_v12 }
0x2790   :  { %2926 = vrot.lane.b32.xlu0 %v2924_v8, %s5053_s1  ;;  %v2917_v54 = vadd.f32 1.0, %v4836_v49 }
0x2791   :  { %4837 = vrcp.f32 %v2916_v13 }
0x2792   :  { %4839 = vrcp.f32 %v2917_v54 }
0x279e   :  { %v4838_v62 = vpop.eup %4837 }
0x279f   :  { %v4840_v63 = vpop.eup %4839 }
0x27a0   :  { %v2940_v60 = vmul.f32 %v4840_v63, %v2924_v8 }
0x27fe   :  { %v2932_v14 = vpop.permute.xlu0 %2931 }
0x27ff   :  { %v2934_v37 = vmul.f32 %v4838_v62, %v2932_v14 }
0x2800   :  { %v2943_v52 = vpop.permute.xlu1 %2942 }
0x2801   :  { %2936 = vrot.lane.b32.xlu1 %v2934_v37, %s5053_s1  ;;  %v2945_v56 = vmul.f32 %v4840_v63, %v2943_v52 }
0x2802   :  { %v2927_v57 = vpop.permute.xlu0 %2926 }
0x2803   :  { %2947 = vrot.lane.b32.xlu0 %v2945_v56, %s5053_s1  ;;  %v2929_v58 = vmul.f32 %v4838_v62, %v2927_v57 }
0x2873   :  { %v2937_v1 = vpop.permute.xlu1 %2936 }
0x2874   :  { %v2939_v55 = vadd.f32 %v2937_v1, %v2929_v58 }
0x2875   :  { %v2948_v5 = vpop.permute.xlu0 %2947 }
0x2876   :  { %4841 = vtanh.f32 %v2939_v55  ;;  %v2950_v9 = vadd.f32 %v2948_v5, %v2940_v60 }
0x2878   :  { %4843 = vtanh.f32 %v2950_v9 }
0x2883   :  { %v4842_v11 = vpop.eup %4841 }
0x2884   :  { %2953 = vrot.lane.b32.xlu1 %v4842_v11, %s5054_s3 }
0x2885   :  { %v4844_v19 = vpop.eup %4843 }
0x2886   :  { %2959 = vrot.lane.b32.xlu0 %v4844_v19, %s5054_s3 }
0x28f6   :  { %v2954_v34 = vpop.permute.xlu1 %2953 }
0x28f7   :  { %v2956_v26 = vmul.f32 %v4838_v62, %v2954_v34 }
0x28f8   :  { %v2960_v40 = vpop.permute.xlu0 %2959 }
0x28f9   :  { %2970 = vrot.lane.b32.xlu1 %v2956_v26, %s5053_s1  ;;  %v6026_v7 = vmul.f32 %v4840_v63, %v2960_v40 }
0x28fb   :  { %2974 = vrot.lane.b32.xlu0 %v6026_v7, %s5054_s3 }
0x28ff   :  { %2964 = vrot.lane.b32.xlu0 %v2939_v55, %s5055_s29 }
0x296b   :  { %v2971_v15 = vpop.permute.xlu1 %2970 }
0x296c   :  { %2979 = vst.msk [vmem:[#allocation3 + $0x30] sm:$0xff] %vm436_vm2, %v2971_v15 }
0x296d   :  { %v2975_v21 = vpop.permute.xlu0 %2974 }
0x296e   :  { %v2977_v28 = vsel %vm436_vm2, %v2971_v15, %v2975_v21 }
0x296f   :  { %2978 = vst.msk [vmem:[#allocation5] sm:$0xff] %vm280_vm0, %v2977_v28 }
0x2971   :  { %v2965_v22 = vpop.permute.xlu0 %2964 }
0x2972   :  { %v2967_v23 = vsel %vm436_vm2, %v2965_v22, %v2950_v9 }
0x2973   :  { %2968 = vst.msk [vmem:[#allocation6] sm:$0xff] %vm280_vm0, %v2967_v23  ;;  %v3159_v16 = vld [vmem:[#allocation3 + $0x30] sm:$0xff] }
0x2976   :  { %v2986_v51 = vld [vmem:[#allocation5] sm:$0xff] }
0x2977   :  { %4520 = vmatmul.mubr.msk.f32.vlgmr.msra.gmra.mxu1 %vm280_vm0, %v2986_v51 }
0x2978   :  { %3355 = vmatpush1.msra.mxu1 %v3143_v17  ;;  %3394 = vmatprep.mubr.f32.mxu1 %v5052_v0 }
0x2979   :  { %3356 = vmatprep.subr.mxu1 %v3142_v43  ;;  %v3152_v43 = vld [vmem:[#allocation13 + $0x78] sm:$0xff] }
0x297a   :  { %3357 = vmatpush1.msra.mxu1 %v3141_v24  ;;  %v3077_v14 = vld [vmem:[#allocation6] sm:$0xff]  ;;  %3217 = vmatprep.subr.mxu0 %v3152_v43  ;;  %v3151_v24 = vld [vmem:[#allocation13 + $0x70] sm:$0xff]  ;;  %v3443_v43 = vld [vmem:[%s6443_s9] sm:$0x3] }
0x297b   :  { %3358 = vmatprep.subr.mxu1 %v3140_v36  ;;  %v3150_v36 = vld [vmem:[#allocation13 + $0x68] sm:$0xff]  ;;  %3218 = vmatpush1.msra.mxu0 %v3151_v24 }
0x297c   :  { %3359 = vmatpush1.msra.mxu1 %v3139_v6  ;;  %v3149_v6 = vld [vmem:[#allocation13 + $0x60] sm:$0xff]  ;;  %3219 = vmatprep.subr.mxu0 %v3150_v36 }
0x297d   :  { %3360 = vmatprep.subr.mxu1 %v3138_v53  ;;  %v3148_v53 = vld [vmem:[#allocation13 + $0x58] sm:$0xff]  ;;  %3220 = vmatpush1.msra.mxu0 %v3149_v6  ;;  %v3448_v6 = vrot.slane %v3443_v43, %v5355_v35 }
0x297e   :  { %3361 = vmatpush1.msra.mxu1 %v3137_v59  ;;  %3221 = vmatprep.subr.mxu0 %v3148_v53  ;;  %v3146_v59 = vld [vmem:[#allocation13 + $0x48] sm:$0xff] }
0x297f   :  { %4531 = vmatmul.mubr.msk.f32.vlgmr.msra.gmra.mxu1 %vm436_vm2, %v3153_v41  ;;  %v3145_v41 = vld [vmem:[#allocation13 + $0x40] sm:$0xff] }
0x2980   :  { %3400 = vmatprep.mubr.f32.mxu1 %v5052_v0 }
0x2983   :  { %4532 = vmatmul.mubr.msk.f32.gmra.mxu1 %vm436_vm2, %v3154_v31  ;;  %v6095_v31 = vld [vmem:[#allocation14 + $0x78] sm:$0xff] }
0x2984   :  { %3406 = vmatprep.mubr.f32.mxu1 %v5052_v0  ;;  %3675 = vmatprep.subr.mxu1 %v6095_v31 }
0x2987   :  { %4533 = vmatmul.mubr.msk.f32.gmra.mxu1 %vm436_vm2, %v3155_v38 }
0x2988   :  { %3412 = vmatprep.mubr.f32.mxu1 %v5052_v0 }
0x298b   :  { %4534 = vmatmul.mubr.msk.f32.gmra.mxu1 %vm436_vm2, %v3156_v39  ;;  %v6107_v39 = vld [vmem:[#allocation14 + $0x60] sm:$0xff] }
0x298c   :  { %3418 = vmatprep.mubr.f32.mxu1 %v5052_v0 }
0x298f   :  { %4535 = vmatmul.mubr.msk.f32.gmra.mxu1 %vm436_vm2, %v3157_v42 }
0x2990   :  { %3424 = vmatprep.mubr.f32.mxu1 %v5052_v0 }
0x2993   :  { %4536 = vmatmul.mubr.msk.f32.gmra.mxu1 %vm436_vm2, %v3158_v4  ;;  %v6109_v4 = vld [vmem:[#allocation14 + $0x58] sm:$0xff] }
0x2994   :  { %3430 = vmatprep.mubr.f32.mxu1 %v5052_v0 }
0x2997   :  { %4537 = vmatmul.mubr.msk.f32.gmra.mxu1 %vm436_vm2, %v3159_v16 }
0x2998   :  { %3436 = vmatprep.mubr.f32.mxu1 %v5052_v0 }
0x2a37   :  { %v3056_v3 = vpop.f32.mrf.mxu1 }
0x2a38   :  { %v3061_v20 = vadd.f32 %v3056_v3, %v5821_v30  ;;  %v6115_v3 = vld [vmem:[#allocation14 + $0x50] sm:$0xff] }
0x2a39   :  { %v3058_v47 = vpop.f32.mrf.mxu1 }
0x2a3a   :  { %v3062_v61 = vadd.f32 %v3058_v47, %v5795_v46  ;;  %v4521_v57 = vmul.f32 -1.442695, %v3061_v20  ;;  %v6118_v47 = vld [vmem:[#allocation14 + $0x48] sm:$0xff] }
0x2a3c   :  { %4845 = vtanh.f32 %v3062_v61  ;;  %v4522_v56 = vmul.f32 -1.442695, %v3062_v61 }
0x2a3d   :  { %4847 = vtanh.f32 %v3061_v20  ;;  %v6124_v20 = vld [vmem:[#allocation14 + $0x40] sm:$0xff] }
0x2a3e   :  { %4849 = vpow2.f32 %v4522_v56 }
0x2a3f   :  { %v6054_v44 = vpop.f32.mrf.mxu1  ;;  %4851 = vpow2.f32 %v4521_v57 }
0x2a41   :  { %v3398_v48 = vpop.f32.mrf.mxu1 }
0x2a42   :  { %v6130_v48 = vld [vmem:[#allocation14 + $0x30] sm:$0xff] }
0x2a43   :  { %v6056_v8 = vpop.f32.mrf.mxu1 }
0x2a45   :  { %v3404_v10 = vpop.f32.mrf.mxu1 }
0x2a46   :  { %v6135_v10 = vld [vmem:[#allocation14 + $0x28] sm:$0xff] }
0x2a47   :  { %v6058_v2 = vpop.f32.mrf.mxu1 }
0x2a49   :  { %v3410_v12 = vpop.f32.mrf.mxu1  ;;  %v4846_v49 = vpop.eup %4845 }
0x2a4a   :  { %3095 = vrot.lane.b32.xlu1 %v4846_v49, %s5054_s3  ;;  %v4848_v46 = vpop.eup %4847  ;;  %v6141_v49 = vld [vmem:[#allocation14 + $0x20] sm:$0xff] }
0x2a4b   :  { %v6060_v13 = vpop.f32.mrf.mxu1  ;;  %v4850_v58 = vpop.eup %4849 }
0x2a4c   :  { %v3070_v1 = vadd.f32 1.0, %v4850_v58  ;;  %v4852_v55 = vpop.eup %4851 }
0x2a4d   :  { %v6063_v54 = vpop.f32.mrf.mxu1  ;;  %v3069_v60 = vadd.f32 1.0, %v4852_v55 }
0x2a4e   :  { %3084 = vrot.lane.b32.xlu1 %v4848_v46, %s5054_s3  ;;  %4853 = vrcp.f32 %v3070_v1  ;;  %v6144_v46 = vld [vmem:[#allocation14 + $0x18] sm:$0xff] }
0x2a4f   :  { %v6065_v30 = vpop.f32.mrf.mxu1  ;;  %4855 = vrcp.f32 %v3069_v60 }
0x2a51   :  { %v6068_v62 = vpop.f32.mrf.mxu1 }
0x2a52   :  { %3079 = vrot.lane.b32.xlu1 %v3077_v14, %s5053_s1 }
0x2a53   :  { %v3426_v37 = vpop.f32.mrf.mxu1 }
0x2a54   :  { %v6153_v37 = vld [vmem:[#allocation14 + $0x8] sm:$0xff] }
0x2a55   :  { %v6071_v63 = vpop.f32.mrf.mxu1 }
0x2a57   :  { %v3432_v52 = vpop.f32.mrf.mxu1 }
0x2a58   :  { %v6157_v52 = vld [vmem:[#allocation14] sm:$0xff] }
0x2a5b   :  { %v4854_v5 = vpop.eup %4853 }
0x2a5c   :  { %v6074_v19 = vpop.eup %4855  ;;  %v3093_v26 = vmul.f32 %v4854_v5, %v3077_v14  ;;  %v6149_v14 = vld [vmem:[#allocation14 + $0x10] sm:$0xff] }
0x2abc   :  { %v3096_v9 = vpop.permute.xlu1 %3095 }
0x2abd   :  { %v3098_v11 = vmul.f32 %v4854_v5, %v3096_v9 }
0x2abf   :  { %3100 = vrot.lane.b32.xlu0 %v3098_v11, %s5053_s1 }
0x2ac0   :  { %v3085_v25 = vpop.permute.xlu1 %3084 }
0x2ac1   :  { %v3087_v34 = vmul.f32 %v6074_v19, %v3085_v25 }
0x2ac3   :  { %3089 = vrot.lane.b32.xlu0 %v3087_v34, %s5053_s1 }
0x2ac4   :  { %v3080_v40 = vpop.permute.xlu1 %3079 }
0x2ac5   :  { %v3082_v28 = vmul.f32 %v6074_v19, %v3080_v40 }
0x2b31   :  { %v3101_v15 = vpop.permute.xlu0 %3100 }
0x2b32   :  { %v6078_v21 = vadd.f32 %v3101_v15, %v3093_v26 }
0x2b34   :  { %4857 = vtanh.f32 %v6078_v21 }
0x2b35   :  { %v3090_v22 = vpop.permute.xlu0 %3089 }
0x2b36   :  { %v6082_v23 = vadd.f32 %v3090_v22, %v3082_v28 }
0x2b38   :  { %4859 = vtanh.f32 %v6082_v23 }
0x2b41   :  { %v4858_v17 = vpop.eup %4857 }
0x2b42   :  { %3112 = vrot.lane.b32.xlu1 %v4858_v17, %s5054_s3 }
0x2b45   :  { %v4860_v51 = vpop.eup %4859 }
0x2b46   :  { %3106 = vrot.lane.b32.xlu0 %v4860_v51, %s5054_s3 }
0x2b4a   :  { %2980 = vrot.lane.b32.xlu0 %v6026_v7, %s5053_s1  ;;  %v3147_v7 = vld [vmem:[#allocation13 + $0x50] sm:$0xff] }
0x2b4b   :  { %3222 = vmatpush1.msra.mxu0 %v3147_v7 }
0x2b4c   :  { %3223 = vmatprep.subr.mxu0 %v3146_v59 }
0x2b4d   :  { %3224 = vmatpush1.msra.mxu0 %v3145_v41 }
0x2b4e   :  { %2674 = vrot.lane.b32.xlu0 %v5982_v29, %s5053_s1  ;;  %3527 = vmatprep.subr.mxu0 %v6095_v31 }
0x2b52   :  { %2368 = vrot.lane.b32.xlu0 %v5907_v18, %s5053_s1  ;;  %v6101_v18 = vld [vmem:[#allocation14 + $0x68] sm:$0xff] }
0x2b56   :  { %2062 = vrot.lane.b32.xlu0 %v5831_v32, %s5053_s1  ;;  %v6099_v32 = vld [vmem:[#allocation14 + $0x70] sm:$0xff] }
0x2b57   :  { %3676 = vmatpush1.msra.mxu1 %v6099_v32 }
0x2b58   :  { %3677 = vmatprep.subr.mxu1 %v6101_v18 }
0x2b59   :  { %3678 = vmatpush1.msra.mxu1 %v6107_v39 }
0x2b5a   :  { %3679 = vmatprep.subr.mxu1 %v6109_v4 }
0x2b5b   :  { %3680 = vmatpush1.msra.mxu1 %v6115_v3 }
0x2b5c   :  { %3681 = vmatprep.subr.mxu1 %v6118_v47 }
0x2b5d   :  { %3682 = vmatpush1.msra.mxu1 %v6124_v20 }
0x2bb4   :  { %v3113_v29 = vpop.permute.xlu1 %3112 }
0x2bb5   :  { %v3115_v38 = vmul.f32 %v4854_v5, %v3113_v29 }
0x2bb7   :  { %3127 = vrot.lane.b32.xlu0 %v3115_v38, %s5054_s3  ;;  %3133 = vrot.lane.b32.xlu1 %v3115_v38, %s5053_s1 }
0x2bb8   :  { %v3107_v42 = vpop.permute.xlu0 %3106 }
0x2bb9   :  { %v3109_v12 = vmul.f32 %v6074_v19, %v3107_v42 }
0x2bbb   :  { %2827 = vrot.lane.b32.xlu1 %v6004_v27, %s5053_s1  ;;  %v6127_v27 = vld [vmem:[#allocation14 + $0x38] sm:$0xff] }
0x2bbc   :  { %v2981_v16 = vpop.permute.xlu0 %2980  ;;  %3683 = vmatprep.subr.mxu1 %v6127_v27 }
0x2bbd   :  { %2983 = vst.msk [vmem:[#allocation4 + $0x8] sm:$0xff] %vm436_vm2, %v2981_v16  ;;  %3684 = vmatpush1.msra.mxu1 %v6130_v48  ;;  %v3452_v16 = vrot.slane %v3443_v43, %v5350_v33 }
0x2bbe   :  { %3685 = vmatprep.subr.mxu1 %v6135_v10 }
0x2bbf   :  { %2521 = vrot.lane.b32.xlu1 %v5945_v50, %s5053_s1  ;;  %3686 = vmatpush1.msra.mxu1 %v6141_v49 }
0x2bc0   :  { %v2675_v61 = vpop.permute.xlu0 %2674  ;;  %3687 = vmatprep.subr.mxu1 %v6144_v46 }
0x2bc1   :  { %2677 = vst.msk [vmem:[#allocation4 + $0x18] sm:$0xff] %vm436_vm2, %v2675_v61  ;;  %3688 = vmatpush1.msra.mxu1 %v6149_v14  ;;  %v3434_v61 = vpop.f32.mrf.mxu1 }
0x2bc2   :  { %3689 = vmatprep.subr.mxu1 %v6153_v37 }
0x2bc3   :  { %2215 = vrot.lane.b32.xlu1 %v5869_v45, %s5053_s1  ;;  %3690 = vmatpush1.msra.mxu1 %v6157_v52 }
0x2bc4   :  { %v2369_v50 = vpop.permute.xlu0 %2368  ;;  %3971 = vmatprep.subr.mxu1 %v6095_v31  ;;  %v3162_v60 = vld [vmem:[#allocation4 + $0x8] sm:$0xff] }
0x2bc5   :  { %2371 = vst.msk [vmem:[#allocation4 + $0x28] sm:$0xff] %vm436_vm2, %v2369_v50 }
0x2bc7   :  { %3123 = vrot.lane.b32.xlu1 %v3109_v12, %s5053_s1 }
0x2bc8   :  { %v2063_v45 = vpop.permute.xlu0 %2062  ;;  %v3164_v34 = vld [vmem:[#allocation4 + $0x18] sm:$0xff] }
0x2bc9   :  { %2065 = vst.msk [vmem:[#allocation4 + $0x38] sm:$0xff] %vm436_vm2, %v2063_v45 }
0x2bcb   :  { %3117 = vrot.lane.b32.xlu1 %v6082_v23, %s5055_s29 }
0x2bd0   :  { %v3168_v22 = vld [vmem:[#allocation4 + $0x38] sm:$0xff] }
0x2c29   :  { %v3134_v56 = vpop.permute.xlu1 %3133  ;;  %v3128_v5 = vpop.permute.xlu0 %3127 }
0x2c2a   :  { %3136 = vst.msk [vmem:[#allocation4] sm:$0xff] %vm436_vm2, %v3134_v56 }
0x2c2d   :  { %v2828_v57 = vpop.permute.xlu1 %2827 }
0x2c2e   :  { %2830 = vst.msk [vmem:[#allocation4 + $0x10] sm:$0xff] %vm436_vm2, %v2828_v57 }
0x2c31   :  { %v2522_v58 = vpop.permute.xlu1 %2521  ;;  %v3161_v1 = vld [vmem:[#allocation4] sm:$0xff] }
0x2c32   :  { %2524 = vst.msk [vmem:[#allocation4 + $0x20] sm:$0xff] %vm436_vm2, %v2522_v58  ;;  %4523 = vmatmul.mubr.msk.f32.vlgmr.msra.gmra.mxu0 %vm436_vm2, %v3161_v1 }
0x2c33   :  { %3528 = vmatpush1.msra.mxu0 %v6099_v32  ;;  %3263 = vmatprep.mubr.f32.mxu0 %v5052_v0 }
0x2c34   :  { %3529 = vmatprep.subr.mxu0 %v6101_v18 }
0x2c35   :  { %v2216_v55 = vpop.permute.xlu1 %2215  ;;  %3530 = vmatpush1.msra.mxu0 %v6107_v39  ;;  %v3163_v11 = vld [vmem:[#allocation4 + $0x10] sm:$0xff] }
0x2c36   :  { %2218 = vst.msk [vmem:[#allocation4 + $0x30] sm:$0xff] %vm436_vm2, %v2216_v55  ;;  %4524 = vmatmul.mubr.msk.f32.gmra.mxu0 %vm436_vm2, %v3162_v60  ;;  %3531 = vmatprep.subr.mxu0 %v6109_v4 }
0x2c37   :  { %3269 = vmatprep.mubr.f32.mxu0 %v5052_v0  ;;  %3532 = vmatpush1.msra.mxu0 %v6115_v3 }
0x2c38   :  { %3533 = vmatprep.subr.mxu0 %v6118_v47 }
0x2c39   :  { %v3124_v9 = vpop.permute.xlu1 %3123  ;;  %3534 = vmatpush1.msra.mxu0 %v6124_v20  ;;  %v3165_v40 = vld [vmem:[#allocation4 + $0x20] sm:$0xff] }
0x2c3a   :  { %v3130_v19 = vsel %vm436_vm2, %v3124_v9, %v3128_v5  ;;  %3132 = vst.msk [vmem:[#allocation3 + $0x38] sm:$0xff] %vm436_vm2, %v3124_v9  ;;  %4525 = vmatmul.mubr.msk.f32.gmra.mxu0 %vm436_vm2, %v3163_v11  ;;  %3535 = vmatprep.subr.mxu0 %v6127_v27 }
0x2c3b   :  { %3131 = vst.msk [vmem:[#allocation5] sm:$0xff] %vm280_vm0, %v3130_v19  ;;  %3275 = vmatprep.mubr.f32.mxu0 %v5052_v0  ;;  %3536 = vmatpush1.msra.mxu0 %v6130_v48 }
0x2c3c   :  { %3487 = vst.msk [vmem:[#allocation5] sm:$0xff] %vm280_vm0, %v5052_v0  ;;  %3537 = vmatprep.subr.mxu0 %v6135_v10 }
0x2c3d   :  { %v3118_v25 = vpop.permute.xlu1 %3117  ;;  %3538 = vmatpush1.msra.mxu0 %v6141_v49  ;;  %v3167_v28 = vld [vmem:[#allocation4 + $0x30] sm:$0xff] }
0x2c3e   :  { %v3120_v26 = vsel %vm436_vm2, %v3118_v25, %v6078_v21  ;;  %4526 = vmatmul.mubr.msk.f32.gmra.mxu0 %vm436_vm2, %v3164_v34  ;;  %3539 = vmatprep.subr.mxu0 %v6144_v46  ;;  %v3166_v21 = vld [vmem:[#allocation4 + $0x28] sm:$0xff] }
0x2c3f   :  { %3121 = vst.msk [vmem:[#allocation6] sm:$0xff] %vm280_vm0, %v3120_v26  ;;  %3281 = vmatprep.mubr.f32.mxu0 %v5052_v0  ;;  %3540 = vmatpush1.msra.mxu0 %v6149_v14 }
0x2c40   :  { %3488 = vst.msk [vmem:[#allocation6] sm:$0xff] %vm280_vm0, %v5052_v0  ;;  %3541 = vmatprep.subr.mxu0 %v6153_v37 }
0x2c41   :  { %v3160_v15 = vld [vmem:[#allocation3 + $0x38] sm:$0xff]  ;;  %3542 = vmatpush1.msra.mxu0 %v6157_v52 }
0x2c42   :  { %4527 = vmatmul.mubr.msk.f32.gmra.mxu0 %vm436_vm2, %v3165_v40  ;;  %4538 = vmatmul.mubr.msk.f32.gmra.mxu1 %vm436_vm2, %v3160_v15 }
0x2c43   :  { %3287 = vmatprep.mubr.f32.mxu0 %v5052_v0  ;;  %3723 = vmatprep.mubr.f32.mxu1 %v5052_v0  ;;  %v3507_v23 = vld [vmem:[#allocation5] sm:$0xff] }
0x2c44   :  { %3823 = vmatprep.subr.mxu0 %v6095_v31 }
0x2c46   :  { %4528 = vmatmul.mubr.msk.f32.gmra.mxu0 %vm436_vm2, %v3166_v21 }
0x2c47   :  { %3293 = vmatprep.mubr.f32.mxu0 %v5052_v0 }
0x2c4a   :  { %4529 = vmatmul.mubr.msk.f32.gmra.mxu0 %vm436_vm2, %v3167_v28 }
0x2c4b   :  { %3299 = vmatprep.mubr.f32.mxu0 %v5052_v0 }
0x2c4e   :  { %4530 = vmatmul.mubr.msk.f32.gmra.mxu0 %vm436_vm2, %v3168_v22 }
0x2c4f   :  { %3575 = vmatprep.mubr.f32.mxu0 %v5052_v0 }
0x2c52   :  { %4539 = vmatmul.mubr.msk.f32.vlgmr.msra.gmra.mxu0 %vm280_vm0, %v3507_v23 }
0x2c53   :  { %3824 = vmatpush1.msra.mxu0 %v6099_v32  ;;  %3871 = vmatprep.mubr.f32.mxu0 %v5052_v0 }
0x2c54   :  { %3825 = vmatprep.subr.mxu0 %v6101_v18 }
0x2c55   :  { %3826 = vmatpush1.msra.mxu0 %v6107_v39 }
0x2c56   :  { %3827 = vmatprep.subr.mxu0 %v6109_v4 }
0x2c57   :  { %3828 = vmatpush1.msra.mxu0 %v6115_v3 }
0x2c58   :  { %3829 = vmatprep.subr.mxu0 %v6118_v47 }
0x2c59   :  { %3830 = vmatpush1.msra.mxu0 %v6124_v20 }
0x2c5a   :  { %3831 = vmatprep.subr.mxu0 %v6127_v27 }
0x2c5b   :  { %3832 = vmatpush1.msra.mxu0 %v6130_v48 }
0x2c5c   :  { %3833 = vmatprep.subr.mxu0 %v6135_v10 }
0x2c5d   :  { %3834 = vmatpush1.msra.mxu0 %v6141_v49 }
0x2c5e   :  { %3835 = vmatprep.subr.mxu0 %v6144_v46 }
0x2c5f   :  { %3836 = vmatpush1.msra.mxu0 %v6149_v14 }
0x2c60   :  { %3837 = vmatprep.subr.mxu0 %v6153_v37 }
0x2c61   :  { %3838 = vmatpush1.msra.mxu0 %v6157_v52 }
0x2c62   :  { %4123 = vmatprep.subr.mxu0 %v6095_v31 }
0x2cf2   :  { %v3259_v17 = vpop.f32.mrf.mxu0 }
0x2cf3   :  { %v3397_v11 = vadd.f32 %v6054_v44, %v3259_v17 }
0x2cf4   :  { %v3261_v51 = vpop.f32.mrf.mxu0 }
0x2cf5   :  { %v3455_v40 = vadd.f32 %v3448_v6, %v3397_v11  ;;  %v3598_v51 = vld [vmem:[#allocation6] sm:$0xff] }
0x2cf6   :  { %v3265_v24 = vpop.f32.mrf.mxu0 }
0x2cf7   :  { %v3403_v36 = vadd.f32 %v6056_v8, %v3265_v24 }
0x2cf8   :  { %v3267_v53 = vpop.f32.mrf.mxu0 }
0x2cf9   :  { %v6232_v7 = vadd.f32 %v3448_v6, %v3403_v36 }
0x2cfa   :  { %v3271_v59 = vpop.f32.mrf.mxu0 }
0x2cfb   :  { %v3409_v41 = vadd.f32 %v6058_v2, %v3271_v59 }
0x2cfc   :  { %v3273_v29 = vpop.f32.mrf.mxu0 }
0x2cfd   :  { %v6235_v38 = vadd.f32 %v3448_v6, %v3409_v41 }
0x2cfe   :  { %v3277_v31 = vpop.f32.mrf.mxu0 }
0x2cff   :  { %v3415_v42 = vadd.f32 %v6060_v13, %v3277_v31 }
0x2d00   :  { %v3279_v50 = vpop.f32.mrf.mxu0 }
0x2d01   :  { %v3417_v8 = vadd.f32 %v6063_v54, %v3279_v50  ;;  %v6240_v12 = vadd.f32 %v3448_v6, %v3415_v42 }
0x2d02   :  { %v3283_v35 = vpop.f32.mrf.mxu0  ;;  %v3438_v45 = vpop.f32.mrf.mxu1 }
0x2d03   :  { %v3421_v56 = vadd.f32 %v6065_v30, %v3283_v35  ;;  %v6243_v57 = vadd.f32 %v3452_v16, %v3417_v8 }
0x2d04   :  { %v3285_v2 = vpop.f32.mrf.mxu0  ;;  %v3440_v34 = vpop.f32.mrf.mxu1 }
0x2d05   :  { %v3423_v58 = vadd.f32 %v6068_v62, %v3285_v2  ;;  %v6246_v1 = vadd.f32 %v3448_v6, %v3421_v56 }
0x2d06   :  { %v3289_v13 = vpop.f32.mrf.mxu0 }
0x2d07   :  { %v6248_v55 = vadd.f32 %v3452_v16, %v3423_v58 }
0x2d08   :  { %v3291_v33 = vpop.f32.mrf.mxu0 }
0x2d09   :  { %v3429_v60 = vadd.f32 %v6071_v63, %v3291_v33 }
0x2d0a   :  { %v3295_v54 = vpop.f32.mrf.mxu0 }
0x2d0b   :  { %v6251_v5 = vadd.f32 %v3452_v16, %v3429_v60 }
0x2d0c   :  { %v3297_v9 = vpop.f32.mrf.mxu0 }
0x2d0d   :  { %v3435_v30 = vadd.f32 %v3434_v61, %v3297_v9 }
0x2d0e   :  { %v3301_v19 = vpop.f32.mrf.mxu0 }
0x2d0f   :  { %v6254_v25 = vadd.f32 %v3452_v16, %v3435_v30 }
0x2d10   :  { %v3303_v62 = vpop.f32.mrf.mxu0 }
0x2d11   :  { %v3441_v26 = vadd.f32 %v3440_v34, %v3303_v62 }
0x2d12   :  { %v3577_v15 = vpop.f32.mrf.mxu0 }
0x2d13   :  { %v3582_v21 = vadd.f32 %v3577_v15, %v3455_v40  ;;  %v3470_v28 = vadd.f32 %v3452_v16, %v3441_v26 }
0x2d14   :  { %v3579_v22 = vpop.f32.mrf.mxu0 }
0x2d15   :  { %4861 = vtanh.f32 %v3582_v21  ;;  %v3583_v63 = vadd.f32 %v3579_v22, %v3470_v28  ;;  %v4540_v17 = vmul.f32 -1.442695, %v3582_v21 }
0x2d17   :  { %4863 = vtanh.f32 %v3583_v63  ;;  %v4541_v43 = vmul.f32 -1.442695, %v3583_v63 }
0x2d18   :  { %4865 = vpow2.f32 %v4540_v17 }
0x2d19   :  { %4867 = vpow2.f32 %v4541_v43 }
0x2d22   :  { %v4862_v23 = vpop.eup %4861 }
0x2d23   :  { %3605 = vrot.lane.b32.xlu0 %v4862_v23, %s5054_s3 }
0x2d24   :  { %v4864_v44 = vpop.eup %4863 }
0x2d25   :  { %3616 = vrot.lane.b32.xlu1 %v4864_v44, %s5054_s3  ;;  %v4866_v24 = vpop.eup %4865 }
0x2d26   :  { %v4868_v36 = vpop.eup %4867  ;;  %v3590_v6 = vadd.f32 1.0, %v4866_v24 }
0x2d27   :  { %3600 = vrot.lane.b32.xlu0 %v3598_v51, %s5053_s1  ;;  %v3591_v53 = vadd.f32 1.0, %v4868_v36 }
0x2d28   :  { %4869 = vrcp.f32 %v3590_v6 }
0x2d29   :  { %4871 = vrcp.f32 %v3591_v53 }
0x2d35   :  { %v4870_v59 = vpop.eup %4869 }
0x2d36   :  { %v4872_v31 = vpop.eup %4871 }
0x2d37   :  { %v3614_v45 = vmul.f32 %v4872_v31, %v3598_v51 }
0x2d95   :  { %v3606_v41 = vpop.permute.xlu0 %3605 }
0x2d96   :  { %v3608_v29 = vmul.f32 %v4870_v59, %v3606_v41 }
0x2d97   :  { %v3617_v42 = vpop.permute.xlu1 %3616 }
0x2d98   :  { %3610 = vrot.lane.b32.xlu1 %v3608_v29, %s5053_s1  ;;  %v3619_v16 = vmul.f32 %v4872_v31, %v3617_v42 }
0x2d99   :  { %v3601_v61 = vpop.permute.xlu0 %3600 }
0x2d9a   :  { %3621 = vrot.lane.b32.xlu0 %v3619_v16, %s5053_s1  ;;  %v3603_v50 = vmul.f32 %v4870_v59, %v3601_v61 }
0x2e0a   :  { %v3611_v8 = vpop.permute.xlu1 %3610 }
0x2e0b   :  { %v3613_v35 = vadd.f32 %v3611_v8, %v3603_v50 }
0x2e0c   :  { %v3622_v56 = vpop.permute.xlu0 %3621 }
0x2e0d   :  { %4873 = vtanh.f32 %v3613_v35  ;;  %v3624_v2 = vadd.f32 %v3622_v56, %v3614_v45 }
0x2e0f   :  { %4875 = vtanh.f32 %v3624_v2 }
0x2e1a   :  { %v4874_v58 = vpop.eup %4873 }
0x2e1b   :  { %3627 = vrot.lane.b32.xlu1 %v4874_v58, %s5054_s3 }
0x2e1c   :  { %v4876_v13 = vpop.eup %4875 }
0x2e1d   :  { %3633 = vrot.lane.b32.xlu0 %v4876_v13, %s5054_s3 }
0x2e8d   :  { %v3628_v33 = vpop.permute.xlu1 %3627 }
0x2e8e   :  { %v3630_v60 = vmul.f32 %v4870_v59, %v3628_v33 }
0x2e8f   :  { %v3634_v54 = vpop.permute.xlu0 %3633 }
0x2e90   :  { %3644 = vrot.lane.b32.xlu1 %v3630_v60, %s5053_s1  ;;  %v3636_v9 = vmul.f32 %v4872_v31, %v3634_v54 }
0x2e92   :  { %3648 = vrot.lane.b32.xlu0 %v3636_v9, %s5054_s3 }
0x2e94   :  { %3638 = vrot.lane.b32.xlu1 %v3613_v35, %s5055_s29 }
0x2f02   :  { %v3645_v11 = vpop.permute.xlu1 %3644 }
0x2f04   :  { %v3649_v30 = vpop.permute.xlu0 %3648 }
0x2f05   :  { %v3651_v19 = vsel %vm436_vm2, %v3645_v11, %v3649_v30 }
0x2f06   :  { %v3639_v34 = vpop.permute.xlu1 %3638  ;;  %3652 = vst.msk [vmem:[#allocation5] sm:$0xff] %vm280_vm0, %v3651_v19 }
0x2f07   :  { %v3641_v62 = vsel %vm436_vm2, %v3639_v34, %v3624_v2 }
0x2f08   :  { %3642 = vst.msk [vmem:[#allocation6] sm:$0xff] %vm280_vm0, %v3641_v62 }
0x2f0d   :  { %v3655_v26 = vld [vmem:[#allocation5] sm:$0xff] }
0x2f0e   :  { %4542 = vmatmul.mubr.msk.f32.vlgmr.msra.gmra.mxu1 %vm280_vm0, %v3655_v26 }
0x2f0f   :  { %3972 = vmatpush1.msra.mxu1 %v6099_v32  ;;  %4019 = vmatprep.mubr.f32.mxu1 %v5052_v0  ;;  %v3746_v23 = vld [vmem:[#allocation6] sm:$0xff] }
0x2f10   :  { %3973 = vmatprep.subr.mxu1 %v6101_v18 }
0x2f11   :  { %3974 = vmatpush1.msra.mxu1 %v6107_v39 }
0x2f12   :  { %3975 = vmatprep.subr.mxu1 %v6109_v4 }
0x2f13   :  { %3976 = vmatpush1.msra.mxu1 %v6115_v3 }
0x2f14   :  { %3977 = vmatprep.subr.mxu1 %v6118_v47 }
0x2f15   :  { %3978 = vmatpush1.msra.mxu1 %v6124_v20 }
0x2f16   :  { %3979 = vmatprep.subr.mxu1 %v6127_v27 }
0x2f17   :  { %3980 = vmatpush1.msra.mxu1 %v6130_v48 }
0x2f18   :  { %3981 = vmatprep.subr.mxu1 %v6135_v10 }
0x2f19   :  { %3982 = vmatpush1.msra.mxu1 %v6141_v49 }
0x2f1a   :  { %3983 = vmatprep.subr.mxu1 %v6144_v46 }
0x2f1b   :  { %3984 = vmatpush1.msra.mxu1 %v6149_v14 }
0x2f1c   :  { %3985 = vmatprep.subr.mxu1 %v6153_v37 }
0x2f1d   :  { %3986 = vmatpush1.msra.mxu1 %v6157_v52 }
0x2f1e   :  { %4570 = vmatprep.subr.mxu1 %v5052_v0 }
0x2fce   :  { %v3725_v40 = vpop.f32.mrf.mxu1 }
0x2fcf   :  { %v3730_v15 = vadd.f32 %v3725_v40, %v6232_v7 }
0x2fd0   :  { %v3727_v21 = vpop.f32.mrf.mxu1 }
0x2fd1   :  { %4877 = vtanh.f32 %v3730_v15  ;;  %v3731_v28 = vadd.f32 %v3727_v21, %v6254_v25  ;;  %v4543_v51 = vmul.f32 -1.442695, %v3730_v15 }
0x2fd3   :  { %4879 = vtanh.f32 %v3731_v28  ;;  %v4544_v44 = vmul.f32 -1.442695, %v3731_v28 }
0x2fd4   :  { %4881 = vpow2.f32 %v4543_v51 }
0x2fd5   :  { %4883 = vpow2.f32 %v4544_v44 }
0x2fde   :  { %v4878_v22 = vpop.eup %4877 }
0x2fdf   :  { %3753 = vrot.lane.b32.xlu0 %v4878_v22, %s5054_s3 }
0x2fe0   :  { %v4880_v63 = vpop.eup %4879 }
0x2fe1   :  { %3764 = vrot.lane.b32.xlu1 %v4880_v63, %s5054_s3  ;;  %v4882_v17 = vpop.eup %4881 }
0x2fe2   :  { %v4884_v7 = vpop.eup %4883  ;;  %v3738_v43 = vadd.f32 1.0, %v4882_v17 }
0x2fe3   :  { %3748 = vrot.lane.b32.xlu0 %v3746_v23, %s5053_s1  ;;  %v3739_v24 = vadd.f32 1.0, %v4884_v7 }
0x2fe4   :  { %4885 = vrcp.f32 %v3738_v43 }
0x2fe5   :  { %4887 = vrcp.f32 %v3739_v24 }
0x2ff1   :  { %v4886_v25 = vpop.eup %4885 }
0x2ff2   :  { %v4888_v53 = vpop.eup %4887 }
0x2ff3   :  { %v3762_v61 = vmul.f32 %v4888_v53, %v3746_v23 }
0x3051   :  { %v3754_v36 = vpop.permute.xlu0 %3753 }
0x3052   :  { %v3756_v6 = vmul.f32 %v4886_v25, %v3754_v36 }
0x3053   :  { %v3765_v59 = vpop.permute.xlu1 %3764 }
0x3054   :  { %3758 = vrot.lane.b32.xlu1 %v3756_v6, %s5053_s1  ;;  %v3767_v41 = vmul.f32 %v4888_v53, %v3765_v59 }
0x3055   :  { %v3749_v29 = vpop.permute.xlu0 %3748 }
0x3056   :  { %3769 = vrot.lane.b32.xlu0 %v3767_v41, %s5053_s1  ;;  %v3751_v31 = vmul.f32 %v4886_v25, %v3749_v29 }
0x30c6   :  { %v3759_v42 = vpop.permute.xlu1 %3758 }
0x30c7   :  { %v3761_v16 = vadd.f32 %v3759_v42, %v3751_v31 }
0x30c8   :  { %v3770_v50 = vpop.permute.xlu0 %3769 }
0x30c9   :  { %4889 = vtanh.f32 %v3761_v16  ;;  %v3772_v8 = vadd.f32 %v3770_v50, %v3762_v61 }
0x30cb   :  { %4891 = vtanh.f32 %v3772_v8 }
0x30d6   :  { %v4890_v35 = vpop.eup %4889 }
0x30d7   :  { %3775 = vrot.lane.b32.xlu1 %v4890_v35, %s5054_s3 }
0x30d8   :  { %v4892_v45 = vpop.eup %4891 }
0x30d9   :  { %3781 = vrot.lane.b32.xlu0 %v4892_v45, %s5054_s3 }
0x3149   :  { %v3776_v56 = vpop.permute.xlu1 %3775 }
0x314a   :  { %v3778_v2 = vmul.f32 %v4886_v25, %v3776_v56 }
0x314b   :  { %v3782_v58 = vpop.permute.xlu0 %3781 }
0x314c   :  { %3792 = vrot.lane.b32.xlu1 %v3778_v2, %s5053_s1  ;;  %v3784_v13 = vmul.f32 %v4888_v53, %v3782_v58 }
0x314e   :  { %3796 = vrot.lane.b32.xlu0 %v3784_v13, %s5054_s3 }
0x3150   :  { %3786 = vrot.lane.b32.xlu1 %v3761_v16, %s5055_s29 }
0x31be   :  { %v3793_v33 = vpop.permute.xlu1 %3792 }
0x31c0   :  { %v3797_v60 = vpop.permute.xlu0 %3796 }
0x31c1   :  { %v3799_v54 = vsel %vm436_vm2, %v3793_v33, %v3797_v60 }
0x31c2   :  { %v3787_v9 = vpop.permute.xlu1 %3786  ;;  %3800 = vst.msk [vmem:[#allocation5] sm:$0xff] %vm280_vm0, %v3799_v54 }
0x31c3   :  { %v3789_v11 = vsel %vm436_vm2, %v3787_v9, %v3772_v8 }
0x31c4   :  { %3790 = vst.msk [vmem:[#allocation6] sm:$0xff] %vm280_vm0, %v3789_v11 }
0x31c9   :  { %v3803_v30 = vld [vmem:[#allocation5] sm:$0xff] }
0x31ca   :  { %4545 = vmatmul.mubr.msk.f32.vlgmr.msra.gmra.mxu0 %vm280_vm0, %v3803_v30 }
0x31cb   :  { %4124 = vmatpush1.msra.mxu0 %v6099_v32  ;;  %4171 = vmatprep.mubr.f32.mxu0 %v5052_v0 }
0x31cc   :  { %4125 = vmatprep.subr.mxu0 %v6101_v18 }
0x31cd   :  { %4126 = vmatpush1.msra.mxu0 %v6107_v39 }
0x31ce   :  { %4127 = vmatprep.subr.mxu0 %v6109_v4 }
0x31cf   :  { %4128 = vmatpush1.msra.mxu0 %v6115_v3 }
0x31d0   :  { %4129 = vmatprep.subr.mxu0 %v6118_v47 }
0x31d1   :  { %4130 = vmatpush1.msra.mxu0 %v6124_v20  ;;  %v3894_v20 = vld [vmem:[#allocation6] sm:$0xff] }
0x31d2   :  { %4131 = vmatprep.subr.mxu0 %v6127_v27 }
0x31d3   :  { %4132 = vmatpush1.msra.mxu0 %v6130_v48 }
0x31d4   :  { %4133 = vmatprep.subr.mxu0 %v6135_v10 }
0x31d5   :  { %4134 = vmatpush1.msra.mxu0 %v6141_v49 }
0x31d6   :  { %4135 = vmatprep.subr.mxu0 %v6144_v46 }
0x31d7   :  { %4136 = vmatpush1.msra.mxu0 %v6149_v14 }
0x31d8   :  { %4137 = vmatprep.subr.mxu0 %v6153_v37 }
0x31d9   :  { %4138 = vmatpush1.msra.mxu0 %v6157_v52 }
0x31da   :  { %4589 = vmatprep.subr.mxu0 %v5052_v0 }
0x328a   :  { %v3873_v32 = vpop.f32.mrf.mxu0 }
0x328b   :  { %v3878_v18 = vadd.f32 %v3873_v32, %v6235_v38 }
0x328c   :  { %v3875_v39 = vpop.f32.mrf.mxu0 }
0x328d   :  { %4893 = vtanh.f32 %v3878_v18  ;;  %v3879_v4 = vadd.f32 %v3875_v39, %v6251_v5  ;;  %v4546_v27 = vmul.f32 -1.442695, %v3878_v18 }
0x328f   :  { %4895 = vtanh.f32 %v3879_v4  ;;  %v4547_v48 = vmul.f32 -1.442695, %v3879_v4 }
0x3290   :  { %4897 = vpow2.f32 %v4546_v27 }
0x3291   :  { %4899 = vpow2.f32 %v4547_v48 }
0x329a   :  { %v4894_v3 = vpop.eup %4893 }
0x329b   :  { %3901 = vrot.lane.b32.xlu0 %v4894_v3, %s5054_s3 }
0x329c   :  { %v4896_v47 = vpop.eup %4895 }
0x329d   :  { %3912 = vrot.lane.b32.xlu1 %v4896_v47, %s5054_s3  ;;  %v4898_v10 = vpop.eup %4897 }
0x329e   :  { %v4900_v49 = vpop.eup %4899  ;;  %v3886_v46 = vadd.f32 1.0, %v4898_v10 }
0x329f   :  { %3896 = vrot.lane.b32.xlu0 %v3894_v20, %s5053_s1  ;;  %v3887_v14 = vadd.f32 1.0, %v4900_v49 }
0x32a0   :  { %4901 = vrcp.f32 %v3886_v46 }
0x32a1   :  { %4903 = vrcp.f32 %v3887_v14 }
0x32ad   :  { %v4902_v37 = vpop.eup %4901 }
0x32ae   :  { %v4904_v5 = vpop.eup %4903 }
0x32af   :  { %v3910_v21 = vmul.f32 %v4904_v5, %v3894_v20 }
0x330d   :  { %v3902_v52 = vpop.permute.xlu0 %3901 }
0x330e   :  { %v3904_v38 = vmul.f32 %v4902_v37, %v3902_v52 }
0x330f   :  { %v3913_v19 = vpop.permute.xlu1 %3912 }
0x3310   :  { %3906 = vrot.lane.b32.xlu1 %v3904_v38, %s5053_s1  ;;  %v3915_v34 = vmul.f32 %v4904_v5, %v3913_v19 }
0x3311   :  { %v3897_v62 = vpop.permute.xlu0 %3896 }
0x3312   :  { %3917 = vrot.lane.b32.xlu0 %v3915_v34, %s5053_s1  ;;  %v3899_v26 = vmul.f32 %v4902_v37, %v3897_v62 }
0x3382   :  { %v3907_v40 = vpop.permute.xlu1 %3906 }
0x3383   :  { %v3909_v15 = vadd.f32 %v3907_v40, %v3899_v26 }
0x3384   :  { %v3918_v28 = vpop.permute.xlu0 %3917 }
0x3385   :  { %4905 = vtanh.f32 %v3909_v15  ;;  %v3920_v22 = vadd.f32 %v3918_v28, %v3910_v21 }
0x3387   :  { %4907 = vtanh.f32 %v3920_v22 }
0x3392   :  { %v4906_v63 = vpop.eup %4905 }
0x3393   :  { %3923 = vrot.lane.b32.xlu1 %v4906_v63, %s5054_s3 }
0x3394   :  { %v4908_v23 = vpop.eup %4907 }
0x3395   :  { %3929 = vrot.lane.b32.xlu0 %v4908_v23, %s5054_s3 }
0x3405   :  { %v3924_v51 = vpop.permute.xlu1 %3923 }
0x3406   :  { %v3926_v44 = vmul.f32 %v4902_v37, %v3924_v51 }
0x3407   :  { %v3930_v17 = vpop.permute.xlu0 %3929 }
0x3408   :  { %3940 = vrot.lane.b32.xlu1 %v3926_v44, %s5053_s1  ;;  %v3932_v7 = vmul.f32 %v4904_v5, %v3930_v17  ;;  %v4264_v44 = vld [vmem:[%s6444_s10 + $0x38] sm:$0xff]  ;;  %v4263_v17 = vld [vmem:[%s6444_s10 + $0x30] sm:$0xff] }
0x340a   :  { %3944 = vrot.lane.b32.xlu0 %v3932_v7, %s5054_s3 }
0x340c   :  { %3934 = vrot.lane.b32.xlu1 %v3909_v15, %s5055_s29 }
0x347a   :  { %v3941_v43 = vpop.permute.xlu1 %3940 }
0x347c   :  { %v3945_v24 = vpop.permute.xlu0 %3944 }
0x347d   :  { %v3947_v25 = vsel %vm436_vm2, %v3941_v43, %v3945_v24  ;;  %v4262_v43 = vld [vmem:[%s6444_s10 + $0x28] sm:$0xff] }
0x347e   :  { %v3935_v36 = vpop.permute.xlu1 %3934  ;;  %3948 = vst.msk [vmem:[#allocation5] sm:$0xff] %vm280_vm0, %v3947_v25 }
0x347f   :  { %v3937_v6 = vsel %vm436_vm2, %v3935_v36, %v3920_v22 }
0x3480   :  { %3938 = vst.msk [vmem:[#allocation6] sm:$0xff] %vm280_vm0, %v3937_v6  ;;  %v4261_v6 = vld [vmem:[%s6444_s10 + $0x20] sm:$0xff] }
0x3485   :  { %v3951_v53 = vld [vmem:[#allocation5] sm:$0xff] }
0x3486   :  { %4548 = vmatmul.mubr.msk.f32.vlgmr.msra.gmra.mxu1 %vm280_vm0, %v3951_v53  ;;  %v4260_v53 = vld [vmem:[%s6444_s10 + $0x18] sm:$0xff] }
0x3487   :  { %v4042_v61 = vld [vmem:[#allocation6] sm:$0xff]  ;;  %4571 = vmatpush3.msra.mxu1 %v4264_v44  ;;  %4586 = vmatprep.mubr.msk.f32.mxu1 %vm5056_vm3, %v5052_v0 }
0x3488   :  { %4572 = vmatprep.subr.mxu1 %v5052_v0 }
0x3489   :  { %4573 = vmatpush3.msra.mxu1 %v4263_v17 }
0x348a   :  { %4574 = vmatprep.subr.mxu1 %v5052_v0 }
0x348b   :  { %4575 = vmatpush3.msra.mxu1 %v4262_v43 }
0x348c   :  { %4576 = vmatprep.subr.mxu1 %v5052_v0 }
0x348d   :  { %4577 = vmatpush3.msra.mxu1 %v4261_v6 }
0x348e   :  { %4578 = vmatprep.subr.mxu1 %v5052_v0 }
0x348f   :  { %4579 = vmatpush3.msra.mxu1 %v4260_v53 }
0x3490   :  { %4580 = vmatprep.subr.mxu1 %v5052_v0 }
0x3546   :  { %v4021_v59 = vpop.f32.mrf.mxu1 }
0x3547   :  { %v4026_v41 = vadd.f32 %v4021_v59, %v6240_v12  ;;  %v4259_v59 = vld [vmem:[%s6444_s10 + $0x10] sm:$0xff] }
0x3548   :  { %v4023_v29 = vpop.f32.mrf.mxu1  ;;  %4581 = vmatpush3.msra.mxu1 %v4259_v59 }
0x3549   :  { %4909 = vtanh.f32 %v4026_v41  ;;  %v4027_v31 = vadd.f32 %v4023_v29, %v6248_v55  ;;  %v4549_v50 = vmul.f32 -1.442695, %v4026_v41  ;;  %4582 = vmatprep.subr.mxu1 %v5052_v0  ;;  %v4257_v41 = vld [vmem:[%s6444_s10] sm:$0xff] }
0x354b   :  { %4911 = vtanh.f32 %v4027_v31  ;;  %v4550_v8 = vmul.f32 -1.442695, %v4027_v31 }
0x354c   :  { %4913 = vpow2.f32 %v4549_v50 }
0x354d   :  { %4915 = vpow2.f32 %v4550_v8 }
0x3556   :  { %v4910_v42 = vpop.eup %4909 }
0x3557   :  { %4049 = vrot.lane.b32.xlu0 %v4910_v42, %s5054_s3 }
0x3558   :  { %v4912_v16 = vpop.eup %4911 }
0x3559   :  { %4060 = vrot.lane.b32.xlu1 %v4912_v16, %s5054_s3  ;;  %v4914_v35 = vpop.eup %4913 }
0x355a   :  { %v4916_v12 = vpop.eup %4915  ;;  %v4034_v45 = vadd.f32 1.0, %v4914_v35 }
0x355b   :  { %4044 = vrot.lane.b32.xlu0 %v4042_v61, %s5053_s1  ;;  %v4035_v56 = vadd.f32 1.0, %v4916_v12 }
0x355c   :  { %4917 = vrcp.f32 %v4034_v45 }
0x355d   :  { %4919 = vrcp.f32 %v4035_v56 }
0x3569   :  { %v4918_v55 = vpop.eup %4917 }
0x356a   :  { %v4920_v13 = vpop.eup %4919 }
0x356b   :  { %v4058_v32 = vmul.f32 %v4920_v13, %v4042_v61 }
0x35c9   :  { %v4050_v2 = vpop.permute.xlu0 %4049 }
0x35ca   :  { %v4052_v58 = vmul.f32 %v4918_v55, %v4050_v2  ;;  %v4345_v2 = vld [vmem:[%s6446_s12] sm:$0xf] }
0x35cb   :  { %v4061_v33 = vpop.permute.xlu1 %4060 }
0x35cc   :  { %4054 = vrot.lane.b32.xlu1 %v4052_v58, %s5053_s1  ;;  %v4063_v60 = vmul.f32 %v4920_v13, %v4061_v33 }
0x35cd   :  { %v4045_v54 = vpop.permute.xlu0 %4044 }
0x35ce   :  { %4065 = vrot.lane.b32.xlu0 %v4063_v60, %s5053_s1  ;;  %v4047_v9 = vmul.f32 %v4918_v55, %v4045_v54  ;;  %v4554_v54 = vld [vmem:[%s6445_s11] ss:$0 sm:$0xff] }
0x363e   :  { %v4055_v11 = vpop.permute.xlu1 %4054 }
0x363f   :  { %v4057_v30 = vadd.f32 %v4055_v11, %v4047_v9 }
0x3640   :  { %v4066_v18 = vpop.permute.xlu0 %4065 }
0x3641   :  { %4921 = vtanh.f32 %v4057_v30  ;;  %v4068_v39 = vadd.f32 %v4066_v18, %v4058_v32  ;;  %v4556_v32 = vld [vmem:[%s6447_s13] ss:$0 sm:$0xff] }
0x3643   :  { %4923 = vtanh.f32 %v4068_v39 }
0x364e   :  { %v4922_v4 = vpop.eup %4921 }
0x364f   :  { %4071 = vrot.lane.b32.xlu1 %v4922_v4, %s5054_s3 }
0x3650   :  { %v4924_v3 = vpop.eup %4923 }
0x3651   :  { %4077 = vrot.lane.b32.xlu0 %v4924_v3, %s5054_s3 }
0x36c1   :  { %v4072_v47 = vpop.permute.xlu1 %4071 }
0x36c2   :  { %v4074_v20 = vmul.f32 %v4918_v55, %v4072_v47 }
0x36c3   :  { %v4078_v27 = vpop.permute.xlu0 %4077 }
0x36c4   :  { %4088 = vrot.lane.b32.xlu1 %v4074_v20, %s5053_s1  ;;  %v4080_v48 = vmul.f32 %v4920_v13, %v4078_v27 }
0x36c6   :  { %4092 = vrot.lane.b32.xlu0 %v4080_v48, %s5054_s3 }
0x36c8   :  { %4082 = vrot.lane.b32.xlu1 %v4057_v30, %s5055_s29 }
0x3736   :  { %v4089_v10 = vpop.permute.xlu1 %4088 }
0x3738   :  { %v4093_v49 = vpop.permute.xlu0 %4092 }
0x3739   :  { %v4095_v46 = vsel %vm436_vm2, %v4089_v10, %v4093_v49 }
0x373a   :  { %v4083_v14 = vpop.permute.xlu1 %4082  ;;  %4096 = vst.msk [vmem:[#allocation5] sm:$0xff] %vm280_vm0, %v4095_v46 }
0x373b   :  { %v4085_v37 = vsel %vm436_vm2, %v4083_v14, %v4068_v39 }
0x373c   :  { %4086 = vst.msk [vmem:[#allocation6] sm:$0xff] %vm280_vm0, %v4085_v37 }
0x3741   :  { %v4103_v52 = vld [vmem:[#allocation5] sm:$0xff] }
0x3742   :  { %4551 = vmatmul.mubr.msk.f32.vlgmr.msra.gmra.mxu0 %vm280_vm0, %v4103_v52 }
0x3743   :  { %v6356_v38 = vld [vmem:[#allocation6] sm:$0xff]  ;;  %4591 = vmatprep.mubr.msk.f32.mxu0 %vm5056_vm3, %v5052_v0  ;;  %4590 = vmatpush3.msk.msra.mxu0 %vm4357_vm4, %v4345_v2 }
0x3744   :  { %4196 = vrot.lane.b32.xlu1 %v6356_v38, %s5053_s1 }
0x37b6   :  { %v4197_v22 = vpop.permute.xlu1 %4196 }
0x3802   :  { %v4173_v5 = vpop.f32.mrf.mxu0 }
0x3803   :  { %v4178_v19 = vadd.f32 %v4173_v5, %v6246_v1 }
0x3804   :  { %v4175_v25 = vpop.f32.mrf.mxu0 }
0x3805   :  { %4925 = vtanh.f32 %v4178_v19  ;;  %v4552_v62 = vmul.f32 -1.442695, %v4178_v19  ;;  %v4179_v36 = vadd.f32 %v4175_v25, %v6243_v57  ;;  %v4258_v57 = vld [vmem:[%s6444_s10 + $0x8] sm:$0xff] }
0x3806   :  { %4583 = vmatpush3.msra.mxu1 %v4258_v57 }
0x3807   :  { %4927 = vpow2.f32 %v4552_v62  ;;  %4584 = vmatprep.subr.mxu1 %v5052_v0  ;;  %v4553_v16 = vmul.f32 -1.442695, %v4179_v36 }
0x3808   :  { %4585 = vmatpush3.msra.mxu1 %v4257_v41 }
0x3812   :  { %v4926_v34 = vpop.eup %4925 }
0x3813   :  { %4201 = vrot.lane.b32.xlu0 %v4926_v34, %s5054_s3 }
0x3814   :  { %v4928_v26 = vpop.eup %4927 }
0x3815   :  { %v4186_v40 = vadd.f32 1.0, %v4928_v26 }
0x3817   :  { %4929 = vrcp.f32 %v4186_v40 }
0x3824   :  { %v4930_v15 = vpop.eup %4929 }
0x3825   :  { %v4199_v63 = vmul.f32 %v4930_v15, %v4197_v22 }
0x3885   :  { %v4202_v21 = vpop.permute.xlu0 %4201 }
0x3886   :  { %v4204_v28 = vmul.f32 %v4930_v15, %v4202_v21 }
0x3888   :  { %4206 = vrot.lane.b32.xlu0 %v4204_v28, %s5053_s1 }
0x388c   :  { %4097 = vrot.lane.b32.xlu0 %v4080_v48, %s5053_s1 }
0x38fa   :  { %v4207_v23 = vpop.permute.xlu0 %4206 }
0x38fb   :  { %v6364_v1 = vadd.f32 %v4207_v23, %v4199_v63 }
0x38fd   :  { %4931 = vtanh.f32 %v6364_v1 }
0x38fe   :  { %v4098_v51 = vpop.permute.xlu0 %4097  ;;  %4933 = vtanh.f32 %v4179_v36 }
0x38ff   :  { %4100 = vst.msk [vmem:[#allocation8] sm:$0xff] %vm436_vm2, %v4098_v51  ;;  %4935 = vpow2.f32 %v4553_v16 }
0x3906   :  { %v4251_v7 = vld [vmem:[#allocation8] sm:$0xff] }
0x3907   :  { %4253 = vrot.lane.b32.xlu0 %v4251_v7, %s5053_s1 }
0x390a   :  { %v4932_v24 = vpop.eup %4931 }
0x390b   :  { %4223 = vrot.lane.b32.xlu1 %v4932_v24, %s5054_s3  ;;  %v4934_v42 = vpop.eup %4933 }
0x390c   :  { %v4936_v61 = vpop.eup %4935 }
0x390d   :  { %v4187_v50 = vadd.f32 1.0, %v4936_v61 }
0x390f   :  { %4937 = vrcp.f32 %v4187_v50 }
0x391c   :  { %v4938_v35 = vpop.eup %4937 }
0x391d   :  { %v4210_v58 = vmul.f32 %v4938_v35, %v6356_v38 }
0x3979   :  { %v4254_v0 = vpop.permute.xlu0 %4253 }
0x397d   :  { %v4224_v29 = vpop.permute.xlu1 %4223 }
0x397e   :  { %v4226_v31 = vmul.f32 %v4930_v15, %v4224_v29 }
0x3980   :  { %4240 = vrot.lane.b32.xlu1 %v4226_v31, %s5053_s1 }
0x3984   :  { %4212 = vrot.lane.b32.xlu1 %v4934_v42, %s5054_s3 }
0x39f2   :  { %v4241_v8 = vpop.permute.xlu1 %4240 }
0x39f3   :  { %4249 = vst.msk [vmem:[#allocation7] sm:$0xff] %vm436_vm2, %v4241_v8 }
0x39f6   :  { %v4213_v12 = vpop.permute.xlu1 %4212 }
0x39f7   :  { %v4215_v45 = vmul.f32 %v4938_v35, %v4213_v12 }
0x39f9   :  { %4217 = vrot.lane.b32.xlu0 %v4215_v45, %s5053_s1 }
0x39fa   :  { %v4250_v56 = vld [vmem:[#allocation7] sm:$0xff] }
0x39fb   :  { %v4256_v55 = vsel %vm436_vm2, %v4250_v56, %v4254_v0 }
0x39fc   :  { %4587 = vmatmul.mubr.msk.f32.vlgmr.msra.gmra.mxu1 %vm280_vm0, %v4256_v55 }
0x3a6b   :  { %v4218_v13 = vpop.permute.xlu0 %4217 }
0x3a6c   :  { %v4220_v33 = vadd.f32 %v4218_v13, %v4210_v58 }
0x3a6e   :  { %4939 = vtanh.f32 %v4220_v33 }
0x3a7b   :  { %v4940_v60 = vpop.eup %4939 }
0x3a7c   :  { %4229 = vrot.lane.b32.xlu0 %v4940_v60, %s5054_s3 }
0x3abc   :  { %v4341_v9 = vpop.f32.mrf.mxu1 }
0x3abd   :  { %v4342_v11 = vadd.f32 %v4554_v54, %v4341_v9 }
0x3abe   :  { %v4588_v30 = vpop.f32.mrf.mxu1 }
0x3abf   :  { %4592 = vmatmul.mubr.msk.f32.vlgmr.msra.gmra.mxu0 %vm4353_vm5, %v4342_v11 }
0x3aee   :  { %v4230_v14 = vpop.permute.xlu0 %4229 }
0x3aef   :  { %v4232_v37 = vmul.f32 %v4938_v35, %v4230_v14 }
0x3b7f   :  { %v4427_v18 = vpop.f32.mrf.mxu0 }
0x3b80   :  { %v4428_v39 = vadd.f32 %v4556_v32, %v4427_v18 }
0x3b81   :  { %v4593_v4 = vpop.f32.mrf.mxu0 }
0x3b82   :  { %v4432_v3 = vsel %vm4431_vm6, %v4428_v39, -inf }
0x3b83   :  { %4433 = vmax.xlane.f32.xlu1 %v4432_v3 }
0x3b94   :  { %4234 = vrot.lane.b32.xlu1 %v6364_v1, %s5055_s29 }
0x3c0c   :  { %v4434_v47 = vpop.xlane.xlu1 %4433 }
0x3c0d   :  { %v4435_v20 = vsub.f32 %v4428_v39, %v4434_v47 }
0x3c0f   :  { %v4436_v27 = vmul.f32 1.442695, %v4435_v20 }
0x3c10   :  { %v4235_v48 = vpop.permute.xlu1 %4234 }
0x3c11   :  { %4941 = vpow2.f32 %v4436_v27  ;;  %v4237_v10 = vsel %vm436_vm2, %v4235_v48, %v4220_v33 }
0x3c12   :  { %4238 = vst.msk [vmem:[#allocation6] sm:$0xff] %vm280_vm0, %v4237_v10 }
0x3c1e   :  { %v4942_v49 = vpop.eup %4941 }
0x3c1f   :  { %v4438_v46 = vsel %vm4431_vm6, %v4942_v49, 0.0 }
0x3c20   :  { %4439 = vadd.xlane.f32.xlu0 %v4438_v46 }
0x3c36   :  { %4244 = vrot.lane.b32.xlu0 %v4232_v37, %s5054_s3 }
0x3ca9   :  { %v4440_v52 = vpop.xlane.xlu0 %4439 }
0x3caa   :  { %4943 = vrcp.f32 %v4440_v52 }
0x3cad   :  { %v4245_v38 = vpop.permute.xlu0 %4244 }
0x3cae   :  { %v4247_v5 = vsel %vm436_vm2, %v4241_v8, %v4245_v38 }
0x3caf   :  { %4248 = vst.msk [vmem:[#allocation5] sm:$0xff] %vm280_vm0, %v4247_v5 }
0x3cb7   :  { %v4944_v19 = vpop.eup %4943 }
0x3cb8   :  { %v4442_v34 = vmul.f32 %v4944_v19, %v4942_v49 }
0x3cba   :  { %4443 = vst.msk [vmem:[%s6448_s14] sm:$0xff] %vm4431_vm6, %v4442_v34 }
0x3cbb   :  { %4448 = vsyncpa [#allocation10], 1 }
0x3cbc   :  { %4449 = vsyncpa [#allocation12], 1 }
0x3cbd   :  { %4450 = vsyncpa [#allocation15], 1 }

</bundles_post_ra>
